<compile_context>
chip_gen: v6e
topology: v6e:2x2x1
jax: 0.10.0
libtpu: 0.0.40
codegen_flags: <defaults>
</compile_context>

<pallas_src>
import functools

import numpy as np
import jax
import jax.numpy as jnp
from jax.experimental import pallas as pl
from jax.experimental.pallas import tpu as pltpu


def _generate_planes_np():
    return np.array(
        [[[1, 0, 0], [0, 1, 0], [0, 0, 1]],
         [[1, 0, 0], [0, 0, 1], [0, 1, 0]],
         [[0, 0, 1], [1, 0, 0], [0, 1, 0]]],
        dtype=np.float32)


def generate_planes():
    return jnp.asarray(_generate_planes_np())


def _round_up(x, m):
    return ((x + m - 1) // m) * m


def _pick_w_chunk(W, C, TM):
    """Chunk width of the y-gather so the [w_chunk*C, TM] f32 intermediate ~<= 2 MiB."""
    budget_rows = max(C, (2 << 20) // (4 * TM))
    wc = max(1, min(W, budget_rows // C))
    while W % wc:
        wc -= 1
    return wc


def _affine(coefs, vecs):
    """sum_k coefs[k] * vecs[k] with static (Python float) coefs; zero terms skipped."""
    out = None
    for cf, v in zip(coefs, vecs):
        if cf == 0.0:
            continue
        term = v if cf == 1.0 else cf * v
        out = term if out is None else out + term
    if out is None:
        out = jnp.zeros_like(vecs[0])
    return out


def _renderer_kernel(coords_ref, feat_ref, w1_ref, b1_ref, w2_ref, b2_ref,
                     out_ref, *, a_coeffs, H, W, C, w_chunk):
    """One grid step == one (batch element, M tile).

    coords_ref : (1, 3, TM) f32      sample coordinates, samples on lanes
    feat_ref   : (1, 3, W*C, H) bf16 tri-plane features (row = w*C + c, col = h)
    w1/b1/w2/b2: decoder MLP params  (weights bf16 transposed, biases f32 [*,1])
    out_ref    : (1, 4, TM) f32      row 0 = sigma, rows 1..3 = colors (*2 - 1)
    a_coeffs   : static 3x6 Python floats; projection coeffs incl. 2/box_warp
    """
    TM = coords_ref.shape[2]

    c0 = coords_ref[0, 0:1, :]                                    # [1, TM] f32
    c1 = coords_ref[0, 1:2, :]
    c2 = coords_ref[0, 2:3, :]
    cvecs = (c0, c1, c2)

    iota_h = jax.lax.broadcasted_iota(jnp.int32, (H, TM), 0)
    iota_w = jax.lax.broadcasted_iota(jnp.int32, (W, TM), 0)

    acc = jnp.zeros((C, TM), jnp.float32)

    # Fully-unrolled static loop over the 3 planes: static feat_ref indices, and the
    # LLO scheduler can overlap plane p's VPU blend with plane p+1's MXU pushes.
    for p in range(3):
        a = a_coeffs[p]
        gx = _affine(a[0:3], cvecs)                               # [1, TM]
        gy = _affine(a[3:6], cvecs)

        # grid_sample, align_corners=False: grid -> continuous texel coords
        ix = (gx + 1.0) * (0.5 * W) - 0.5
        iy = (gy + 1.0) * (0.5 * H) - 0.5
        ix0f = jnp.floor(ix)
        iy0f = jnp.floor(iy)
        ix0 = ix0f.astype(jnp.int32)
        iy0 = iy0f.astype(jnp.int32)
        fx = ix - ix0f
        fy = iy - iy0f

        # Separable sparse one-hot bilinear weights (<=2 nonzeros per column).
        # padding_mode='zeros': out-of-range indices simply never match iota,
        # so no extra OOB guards are needed.
        wy_t = (jnp.where(iota_h == iy0, 1.0 - fy, 0.0)
                + jnp.where(iota_h == iy0 + 1, fy, 0.0))          # [H, TM]
        wx_t = (jnp.where(iota_w == ix0, 1.0 - fx, 0.0)
                + jnp.where(iota_w == ix0 + 1, fx, 0.0))          # [W, TM]
        wy_bf = wy_t.astype(feat_ref.dtype)

        # y-gather on the MXU (bf16 operands, f32 accumulate), chunked over W so the
        # [w_chunk*C, TM] f32 intermediate stays small; x-gather + blend on the VPU.
        for w0 in range(0, W, w_chunk):
            chunk = feat_ref[0, p, w0 * C:(w0 + w_chunk) * C, :]  # [wc*C, H] bf16
            s = jnp.dot(chunk, wy_bf,
                        preferred_element_type=jnp.float32)       # [wc*C, TM] f32
            s = s.reshape(w_chunk, C, TM)
            acc = acc + jnp.sum(s * wx_t[w0:w0 + w_chunk, None, :], axis=0)

    # OSGDecoder-style decoder: mean over 3 planes -> Linear / Softplus / Linear
    feats = (acc * (1.0 / 3.0)).astype(jnp.bfloat16)              # [C, TM]
    h = jnp.dot(w1_ref[...], feats,
                preferred_element_type=jnp.float32) + b1_ref[...]  # [HID, TM]
    h = jnp.maximum(h, 0.0) + jnp.log1p(jnp.exp(-jnp.abs(h)))      # softplus
    o = jnp.dot(w2_ref[...], h.astype(jnp.bfloat16),
                preferred_element_type=jnp.float32) + b2_ref[...]  # [4, TM]

    # Two slice stores: sigma row is raw; rgb rows get sigmoid/scale/(*2-1).
    out_ref[0, 0:1, :] = o[0:1, :]
    rgb = 1.0 / (1.0 + jnp.exp(-o[1:4, :]))
    rgb = rgb * (1.0 + 2.0 * 0.001) - 0.001
    out_ref[0, 1:4, :] = rgb * 2.0 - 1.0


def run_model_pallas(planes, sample_coordinates, decoder_params, box_warp):
    """planes: [N, 3, C, H, W] (PyTorch NCHW per plane).
    sample_coordinates: [N, M, 3] (per-pixel 3D positions; the kaolin rasterizer
    that produces them is untranslatable).  Returns (colors_coarse, sigma)."""
    N, n_planes, C, H, W = planes.shape
    assert n_planes == 3
    M = sample_coordinates.shape[1]
    WC = W * C

    # Host-side layout glue.
    # TODO(synk): at production sizes, produce the plane features upstream already in
    # this [N, 3, W*C, H] bf16 layout to avoid a per-call HBM-bound transpose.
    feat = jnp.transpose(planes, (0, 1, 4, 2, 3)).reshape(N, 3, WC, H)
    feat = feat.astype(jnp.bfloat16)
    coords_t = jnp.transpose(sample_coordinates.astype(jnp.float32), (0, 2, 1))  # [N,3,M]

    # project_onto_planes coefficients (only the first 2 output columns are used),
    # with 2/box_warp folded in.  Static numpy -> Python floats (constant folded).
    inv_planes = np.linalg.inv(_generate_planes_np())                     # [3,3,3]
    a_np = np.transpose(inv_planes[:, :, :2] * (2.0 / float(box_warp)),
                        (0, 2, 1)).reshape(3, 6)                          # [3,6]
    a_coeffs = tuple(tuple(float(v) for v in row) for row in a_np)

    w1, b1, w2, b2 = decoder_params
    HID = w1.shape[1]
    w1_t = jnp.transpose(w1).astype(jnp.bfloat16)            # [HID, C]
    b1_t = jnp.reshape(b1, (HID, 1)).astype(jnp.float32)     # [HID, 1]
    w2_t = jnp.transpose(w2).astype(jnp.bfloat16)            # [4, HID]
    b2_t = jnp.reshape(b2, (4, 1)).astype(jnp.float32)       # [4, 1]

    # Keep TM large; pad M on the host instead of shrinking the tile.
    TM = 512 if M >= 512 else _round_up(M, 128)
    M_pad = _round_up(M, TM)
    if M_pad != M:
        coords_t = jnp.pad(coords_t, ((0, 0), (0, 0), (0, M_pad - M)))
    n_m = M_pad // TM

    w_chunk = _pick_w_chunk(W, C, TM)

    # VMEM budget from the actual buffers (generation-safe: stays well under 32 MiB
    # at production H=W=256, C=32, TM=512; v5e/v6e have 128 MiB, v7x has 64 MiB).
    feat_slab = 3 * WC * H * 2                      # bf16 3-plane slab per batch elem
    big_feat = feat_slab > (8 << 20)
    feat_bufs = 1 if big_feat else 2
    onehots = (H + W) * TM * 4 * 2                  # wy/wx one-hots (+ bf16 copy)
    chunk_inter = w_chunk * C * TM * 4 * 2          # per-chunk matmul + blend temps
    io_tiles = 2 * (3 * TM * 4 + 4 * TM * 4)        # double-buffered coords/out tiles
    dec = (HID * C + 4 * HID) * 2 + (HID + 4) * 4
    needed = feat_bufs * feat_slab + onehots + chunk_inter + io_tiles + dec
    vmem_limit = int(min(max(needed * 5 // 4 + (4 << 20), 16 << 20), 48 << 20))

    feat_spec_kwargs = {}
    if big_feat:
        # feat block index never changes along the M axis: a single buffer saves a
        # full 3-plane slab of VMEM (one exposed DMA per batch element, amortized
        # over all M tiles).  Only engaged at large plane sizes.
        feat_spec_kwargs["pipeline_mode"] = pl.Buffered(1)

    kernel = functools.partial(_renderer_kernel, a_coeffs=a_coeffs,
                               H=H, W=W, C=C, w_chunk=w_chunk)

    out = pl.pallas_call(
        kernel,
        out_shape=jax.ShapeDtypeStruct((N, 4, M_pad), jnp.float32),
        grid_spec=pltpu.PrefetchScalarGridSpec(
            num_scalar_prefetch=0,
            grid=(N, n_m),
            in_specs=[
                pl.BlockSpec((1, 3, TM), lambda n, m: (n, 0, m)),
                # feat block index is independent of the M axis -> resident in VMEM
                # across all M tiles of a batch element.
                pl.BlockSpec((1, 3, WC, H), lambda n, m: (n, 0, 0, 0),
                             **feat_spec_kwargs),
                pl.BlockSpec((HID, C), lambda n, m: (0, 0)),
                pl.BlockSpec((HID, 1), lambda n, m: (0, 0)),
                pl.BlockSpec((4, HID), lambda n, m: (0, 0)),
                pl.BlockSpec((4, 1), lambda n, m: (0, 0)),
            ],
            out_specs=pl.BlockSpec((1, 4, TM), lambda n, m: (n, 0, m)),
        ),
        compiler_params=pltpu.CompilerParams(
            dimension_semantics=("parallel", "parallel"),
            vmem_limit_bytes=vmem_limit),
    )(coords_t, feat, w1_t, b1_t, w2_t, b2_t)

    out = out[:, :, :M]
    colors = jnp.transpose(out[:, 1:4, :], (0, 2, 1))     # [N, M, 3]
    sigma = jnp.transpose(out[:, 0:1, :], (0, 2, 1))      # [N, M, 1]
    return colors, sigma


def my_importance_renderer_forward(planes, sample_coordinates, decoder_params,
                                   box_warp, resolution=None):
    colors_coarse, _sigma = run_model_pallas(planes, sample_coordinates,
                                             decoder_params, box_warp)
    ones = jnp.ones_like(colors_coarse[..., 0:1])
    if resolution is None:
        resolution = int(round(sample_coordinates.shape[1] ** 0.5))
    # TODO(synk): samples_mask comes from kaolin rasterize(); empty-mesh (zeros) branch.
    samples_mask = jnp.zeros((planes.shape[0], resolution * 4, resolution * 4, 1),
                             jnp.float32)
    return colors_coarse, ones, samples_mask


def reference_run_model(planes, coords, decoder_params, box_warp):
    """Pure-JAX f32 reference of the same compute (no Pallas)."""
    N, P, C, H, W = planes.shape
    M = coords.shape[1]
    HW = H * W
    feat = jnp.transpose(planes, (0, 1, 3, 4, 2)).reshape(N, P, HW, C)
    feat = feat.astype(jnp.float32)
    inv_planes = jnp.asarray(np.linalg.inv(_generate_planes_np()))
    w1, b1, w2, b2 = [x.astype(jnp.float32) for x in decoder_params]
    hi = jax.lax.Precision.HIGHEST

    c = coords.astype(jnp.float32) * (2.0 / box_warp)
    acc = jnp.zeros((N, M, C), jnp.float32)
    n_idx = jnp.arange(N)[:, None]
    for p in range(P):
        proj = jnp.einsum('nmk,kj->nmj', c, inv_planes[p], precision=hi)
        gx, gy = proj[..., 0], proj[..., 1]
        ix = ((gx + 1.0) * W - 1.0) * 0.5
        iy = ((gy + 1.0) * H - 1.0) * 0.5
        ix0 = jnp.floor(ix).astype(jnp.int32)
        iy0 = jnp.floor(iy).astype(jnp.int32)
        fx = ix - jnp.floor(ix)
        fy = iy - jnp.floor(iy)
        for dx, wxv in ((0, 1.0 - fx), (1, fx)):
            for dy, wyv in ((0, 1.0 - fy), (1, fy)):
                xi = ix0 + dx
                yi = iy0 + dy
                valid = (xi >= 0) & (xi < W) & (yi >= 0) & (yi < H)
                lin = jnp.clip(yi * W + xi, 0, HW - 1)
                g = feat[n_idx, p, lin]                       # [N, M, C]
                acc = acc + jnp.where(valid[..., None],
                                      (wxv * wyv)[..., None] * g, 0.0)
    feats = acc / 3.0
    h = jnp.einsum('nmc,ch->nmh', feats, w1, precision=hi) + b1
    h = jnp.maximum(h, 0.0) + jnp.log(1.0 + jnp.exp(-jnp.abs(h)))
    o = jnp.einsum('nmh,hk->nmk', h, w2, precision=hi) + b2
    sigma = o[..., 0:1]
    rgb = 1.0 / (1.0 + jnp.exp(-o[..., 1:4]))
    rgb = rgb * (1.0 + 2.0 * 0.001) - 0.001
    return rgb * 2.0 - 1.0, sigma


if __name__ == "__main__":
    key = jax.random.PRNGKey(0)
    N, C, H, W = 2, 32, 16, 16        # planes: [N, 3, C, H, W]
    resolution = 30                   # small stand-in for the module's 128
    M = resolution * resolution       # 900 samples -> exercises pad-to-512 + 2 M tiles
    HID = 64
    box_warp = 2.0                    # rendering_options['box_warp']

    k1, k2, k3, k4 = jax.random.split(key, 4)
    planes = jax.random.normal(k1, (N, 3, C, H, W), jnp.float32)
    # deterministic stand-in for rasterized per-pixel 3D positions
    sample_coordinates = jax.random.uniform(
        k2, (N, M, 3), jnp.float32, minval=-1.2, maxval=1.2)

    # deterministic synthetic decoder (OSGDecoder-shaped MLP)
    w1 = 0.1 * jax.random.normal(k3, (C, HID), jnp.float32)
    b1 = jnp.zeros((1, HID), jnp.float32)
    w2 = 0.1 * jax.random.normal(k4, (HID, 1 + 3), jnp.float32)
    b2 = jnp.zeros((1, 1 + 3), jnp.float32)
    decoder_params = (w1, b1, w2, b2)

    colors, sigma = run_model_pallas(planes, sample_coordinates,
                                     decoder_params, box_warp)
    colors_fwd, depths, mask = my_importance_renderer_forward(
        planes, sample_coordinates, decoder_params, box_warp,
        resolution=resolution)
    jax.block_until_ready((colors, sigma, colors_fwd, depths, mask))

    assert colors.shape == (N, M, 3)
    assert sigma.shape == (N, M, 1)
    assert colors_fwd.shape == (N, M, 3)
    assert depths.shape == (N, M, 1)
    assert mask.shape == (N, resolution * 4, resolution * 4, 1)

    ref_colors, ref_sigma = reference_run_model(
        planes, sample_coordinates, decoder_params, box_warp)
    # bf16 MXU operands vs f32 reference: ~2e-2 tolerance.
    np.testing.assert_allclose(np.asarray(colors), np.asarray(ref_colors),
                               rtol=2e-2, atol=2e-2)
    np.testing.assert_allclose(np.asarray(sigma), np.asarray(ref_sigma),
                               rtol=2e-2, atol=2e-2)
    np.testing.assert_allclose(np.asarray(colors_fwd), np.asarray(colors),
                               rtol=0, atol=0)
    print("KERNEL_OK")
</pallas_src>

<mosaic_0001>
module attributes {stable_mosaic.version = 11 : i64} {
  func.func @_renderer_kernel(%arg0: i32, %arg1: i32, %arg2: memref<1x3x512xf32, #tpu.memory_space<vmem>>, %arg3: memref<1x3x512x16xbf16, #tpu.memory_space<vmem>>, %arg4: memref<64x32xbf16, #tpu.memory_space<vmem>>, %arg5: memref<64x1xf32, #tpu.memory_space<vmem>>, %arg6: memref<4x64xbf16, #tpu.memory_space<vmem>>, %arg7: memref<4x1xf32, #tpu.memory_space<vmem>>, %arg8: memref<1x4x512xf32, #tpu.memory_space<vmem>>) attributes {dimension_semantics = [#tpu.dimension_semantics<parallel>, #tpu.dimension_semantics<parallel>], iteration_bounds = array<i64: 2, 2>, scalar_prefetch = 0 : i64, scratch_operands = 0 : i64, tpu.core_type = #tpu.core_type<tc>, window_params = [{transform_indices = @transform_0, window_bounds = array<i64: 1, 3, 512>}, {transform_indices = @transform_1, window_bounds = array<i64: 1, 3, 512, 16>}, {pipeline_mode = #tpu.pipeline_mode<synchronous>, transform_indices = @transform_2, window_bounds = array<i64: 64, 32>}, {pipeline_mode = #tpu.pipeline_mode<synchronous>, transform_indices = @transform_3, window_bounds = array<i64: 64, 1>}, {pipeline_mode = #tpu.pipeline_mode<synchronous>, transform_indices = @transform_4, window_bounds = array<i64: 4, 64>}, {pipeline_mode = #tpu.pipeline_mode<synchronous>, transform_indices = @transform_5, window_bounds = array<i64: 4, 1>}, {transform_indices = @transform_6, window_bounds = array<i64: 1, 4, 512>}]} {
    %c0 = arith.constant 0 : index
    %c0_0 = arith.constant 0 : index
    %c0_1 = arith.constant 0 : index
    %0 = vector.load %arg2[%c0, %c0_0, %c0_1] : memref<1x3x512xf32, #tpu.memory_space<vmem>>, vector<1x1x512xf32>
    %1 = vector.shape_cast %0 : vector<1x1x512xf32> to vector<1x512xf32>
    %c0_2 = arith.constant 0 : index
    %c1 = arith.constant 1 : index
    %c0_3 = arith.constant 0 : index
    %2 = vector.load %arg2[%c0_2, %c1, %c0_3] : memref<1x3x512xf32, #tpu.memory_space<vmem>>, vector<1x1x512xf32>
    %3 = vector.shape_cast %2 : vector<1x1x512xf32> to vector<1x512xf32>
    %c0_4 = arith.constant 0 : index
    %c2 = arith.constant 2 : index
    %c0_5 = arith.constant 0 : index
    %4 = vector.load %arg2[%c0_4, %c2, %c0_5] : memref<1x3x512xf32, #tpu.memory_space<vmem>>, vector<1x1x512xf32>
    %5 = vector.shape_cast %4 : vector<1x1x512xf32> to vector<1x512xf32>
    %6 = tpu.iota {dimensions = array<i32: 0>} : vector<16x512xi32>
    %7 = tpu.iota {dimensions = array<i32: 0>} : vector<16x512xi32>
    %cst = arith.constant 0.000000e+00 : f32
    %8 = vector.broadcast %cst : f32 to vector<32x512xf32>
    %cst_6 = arith.constant 1.000000e+00 : f32
    %9 = vector.broadcast %cst_6 : f32 to vector<1x512xf32>
    %10 = arith.addf %1, %9 : vector<1x512xf32>
    %cst_7 = arith.constant 8.000000e+00 : f32
    %11 = vector.broadcast %cst_7 : f32 to vector<1x512xf32>
    %12 = arith.mulf %10, %11 : vector<1x512xf32>
    %cst_8 = arith.constant 5.000000e-01 : f32
    %13 = vector.broadcast %cst_8 : f32 to vector<1x512xf32>
    %14 = arith.subf %12, %13 : vector<1x512xf32>
    %cst_9 = arith.constant 1.000000e+00 : f32
    %15 = vector.broadcast %cst_9 : f32 to vector<1x512xf32>
    %16 = arith.addf %3, %15 : vector<1x512xf32>
    %cst_10 = arith.constant 8.000000e+00 : f32
    %17 = vector.broadcast %cst_10 : f32 to vector<1x512xf32>
    %18 = arith.mulf %16, %17 : vector<1x512xf32>
    %cst_11 = arith.constant 5.000000e-01 : f32
    %19 = vector.broadcast %cst_11 : f32 to vector<1x512xf32>
    %20 = arith.subf %18, %19 : vector<1x512xf32>
    %21 = math.floor %14 : vector<1x512xf32>
    %22 = math.floor %20 : vector<1x512xf32>
    %23 = arith.fptosi %21 : vector<1x512xf32> to vector<1x512xi32>
    %24 = arith.fptosi %22 : vector<1x512xf32> to vector<1x512xi32>
    %25 = arith.subf %14, %21 : vector<1x512xf32>
    %26 = arith.subf %20, %22 : vector<1x512xf32>
    %27 = vector.broadcast %24 : vector<1x512xi32> to vector<16x512xi32>
    %28 = arith.cmpi eq, %6, %27 : vector<16x512xi32>
    %cst_12 = arith.constant 1.000000e+00 : f32
    %29 = vector.broadcast %cst_12 : f32 to vector<1x512xf32>
    %30 = arith.subf %29, %26 : vector<1x512xf32>
    %cst_13 = arith.constant 0.000000e+00 : f32
    %31 = vector.shape_cast %30 : vector<1x512xf32> to vector<1x512xf32>
    %32 = vector.broadcast %31 : vector<1x512xf32> to vector<16x512xf32>
    %33 = vector.broadcast %cst_13 : f32 to vector<16x512xf32>
    %34 = arith.select %28, %32, %33 : vector<16x512xi1>, vector<16x512xf32>
    %c1_i32 = arith.constant 1 : i32
    %35 = vector.broadcast %c1_i32 : i32 to vector<1x512xi32>
    %36 = arith.addi %24, %35 : vector<1x512xi32>
    %37 = vector.broadcast %36 : vector<1x512xi32> to vector<16x512xi32>
    %38 = arith.cmpi eq, %6, %37 : vector<16x512xi32>
    %cst_14 = arith.constant 0.000000e+00 : f32
    %39 = vector.shape_cast %26 : vector<1x512xf32> to vector<1x512xf32>
    %40 = vector.broadcast %39 : vector<1x512xf32> to vector<16x512xf32>
    %41 = vector.broadcast %cst_14 : f32 to vector<16x512xf32>
    %42 = arith.select %38, %40, %41 : vector<16x512xi1>, vector<16x512xf32>
    %43 = arith.addf %34, %42 : vector<16x512xf32>
    %44 = vector.broadcast %23 : vector<1x512xi32> to vector<16x512xi32>
    %45 = arith.cmpi eq, %7, %44 : vector<16x512xi32>
    %cst_15 = arith.constant 1.000000e+00 : f32
    %46 = vector.broadcast %cst_15 : f32 to vector<1x512xf32>
    %47 = arith.subf %46, %25 : vector<1x512xf32>
    %cst_16 = arith.constant 0.000000e+00 : f32
    %48 = vector.shape_cast %47 : vector<1x512xf32> to vector<1x512xf32>
    %49 = vector.broadcast %48 : vector<1x512xf32> to vector<16x512xf32>
    %50 = vector.broadcast %cst_16 : f32 to vector<16x512xf32>
    %51 = arith.select %45, %49, %50 : vector<16x512xi1>, vector<16x512xf32>
    %c1_i32_17 = arith.constant 1 : i32
    %52 = vector.broadcast %c1_i32_17 : i32 to vector<1x512xi32>
    %53 = arith.addi %23, %52 : vector<1x512xi32>
    %54 = vector.broadcast %53 : vector<1x512xi32> to vector<16x512xi32>
    %55 = arith.cmpi eq, %7, %54 : vector<16x512xi32>
    %cst_18 = arith.constant 0.000000e+00 : f32
    %56 = vector.shape_cast %25 : vector<1x512xf32> to vector<1x512xf32>
    %57 = vector.broadcast %56 : vector<1x512xf32> to vector<16x512xf32>
    %58 = vector.broadcast %cst_18 : f32 to vector<16x512xf32>
    %59 = arith.select %55, %57, %58 : vector<16x512xi1>, vector<16x512xf32>
    %60 = arith.addf %51, %59 : vector<16x512xf32>
    %61 = arith.truncf %43 : vector<16x512xf32> to vector<16x512xbf16>
    %c0_19 = arith.constant 0 : index
    %c0_20 = arith.constant 0 : index
    %c0_21 = arith.constant 0 : index
    %c0_22 = arith.constant 0 : index
    %62 = vector.load %arg3[%c0_19, %c0_20, %c0_21, %c0_22] : memref<1x3x512x16xbf16, #tpu.memory_space<vmem>>, vector<1x1x512x16xbf16>
    %63 = vector.shape_cast %62 : vector<1x1x512x16xbf16> to vector<512x16xbf16>
    %cst_23 = arith.constant dense<0.000000e+00> : vector<512x512xf32>
    %64 = tpu.matmul %63, %61, %cst_23 {dimension_numbers = #tpu.dot_dimension_numbers<[1], [0], [0], [1], [0, 0, 1, 1], [], []>} : vector<512x16xbf16>, vector<16x512xbf16>, vector<512x512xf32> -> vector<512x512xf32>
    %65 = vector.shape_cast %64 : vector<512x512xf32> to vector<16x32x512xf32>
    %66 = vector.shape_cast %60 : vector<16x512xf32> to vector<16x1x512xf32>
    %67 = vector.broadcast %66 : vector<16x1x512xf32> to vector<16x32x512xf32>
    %68 = arith.mulf %65, %67 : vector<16x32x512xf32>
    %cst_24 = arith.constant dense<0.000000e+00> : vector<32x512xf32>
    %69 = vector.multi_reduction <add>, %68, %cst_24 [0] : vector<16x32x512xf32> to vector<32x512xf32>
    %70 = arith.addf %8, %69 : vector<32x512xf32>
    %cst_25 = arith.constant 1.000000e+00 : f32
    %71 = vector.broadcast %cst_25 : f32 to vector<1x512xf32>
    %72 = arith.addf %1, %71 : vector<1x512xf32>
    %cst_26 = arith.constant 8.000000e+00 : f32
    %73 = vector.broadcast %cst_26 : f32 to vector<1x512xf32>
    %74 = arith.mulf %72, %73 : vector<1x512xf32>
    %cst_27 = arith.constant 5.000000e-01 : f32
    %75 = vector.broadcast %cst_27 : f32 to vector<1x512xf32>
    %76 = arith.subf %74, %75 : vector<1x512xf32>
    %cst_28 = arith.constant 1.000000e+00 : f32
    %77 = vector.broadcast %cst_28 : f32 to vector<1x512xf32>
    %78 = arith.addf %5, %77 : vector<1x512xf32>
    %cst_29 = arith.constant 8.000000e+00 : f32
    %79 = vector.broadcast %cst_29 : f32 to vector<1x512xf32>
    %80 = arith.mulf %78, %79 : vector<1x512xf32>
    %cst_30 = arith.constant 5.000000e-01 : f32
    %81 = vector.broadcast %cst_30 : f32 to vector<1x512xf32>
    %82 = arith.subf %80, %81 : vector<1x512xf32>
    %83 = math.floor %76 : vector<1x512xf32>
    %84 = math.floor %82 : vector<1x512xf32>
    %85 = arith.fptosi %83 : vector<1x512xf32> to vector<1x512xi32>
    %86 = arith.fptosi %84 : vector<1x512xf32> to vector<1x512xi32>
    %87 = arith.subf %76, %83 : vector<1x512xf32>
    %88 = arith.subf %82, %84 : vector<1x512xf32>
    %89 = vector.broadcast %86 : vector<1x512xi32> to vector<16x512xi32>
    %90 = arith.cmpi eq, %6, %89 : vector<16x512xi32>
    %cst_31 = arith.constant 1.000000e+00 : f32
    %91 = vector.broadcast %cst_31 : f32 to vector<1x512xf32>
    %92 = arith.subf %91, %88 : vector<1x512xf32>
    %cst_32 = arith.constant 0.000000e+00 : f32
    %93 = vector.shape_cast %92 : vector<1x512xf32> to vector<1x512xf32>
    %94 = vector.broadcast %93 : vector<1x512xf32> to vector<16x512xf32>
    %95 = vector.broadcast %cst_32 : f32 to vector<16x512xf32>
    %96 = arith.select %90, %94, %95 : vector<16x512xi1>, vector<16x512xf32>
    %c1_i32_33 = arith.constant 1 : i32
    %97 = vector.broadcast %c1_i32_33 : i32 to vector<1x512xi32>
    %98 = arith.addi %86, %97 : vector<1x512xi32>
    %99 = vector.broadcast %98 : vector<1x512xi32> to vector<16x512xi32>
    %100 = arith.cmpi eq, %6, %99 : vector<16x512xi32>
    %cst_34 = arith.constant 0.000000e+00 : f32
    %101 = vector.shape_cast %88 : vector<1x512xf32> to vector<1x512xf32>
    %102 = vector.broadcast %101 : vector<1x512xf32> to vector<16x512xf32>
    %103 = vector.broadcast %cst_34 : f32 to vector<16x512xf32>
    %104 = arith.select %100, %102, %103 : vector<16x512xi1>, vector<16x512xf32>
    %105 = arith.addf %96, %104 : vector<16x512xf32>
    %106 = vector.broadcast %85 : vector<1x512xi32> to vector<16x512xi32>
    %107 = arith.cmpi eq, %7, %106 : vector<16x512xi32>
    %cst_35 = arith.constant 1.000000e+00 : f32
    %108 = vector.broadcast %cst_35 : f32 to vector<1x512xf32>
    %109 = arith.subf %108, %87 : vector<1x512xf32>
    %cst_36 = arith.constant 0.000000e+00 : f32
    %110 = vector.shape_cast %109 : vector<1x512xf32> to vector<1x512xf32>
    %111 = vector.broadcast %110 : vector<1x512xf32> to vector<16x512xf32>
    %112 = vector.broadcast %cst_36 : f32 to vector<16x512xf32>
    %113 = arith.select %107, %111, %112 : vector<16x512xi1>, vector<16x512xf32>
    %c1_i32_37 = arith.constant 1 : i32
    %114 = vector.broadcast %c1_i32_37 : i32 to vector<1x512xi32>
    %115 = arith.addi %85, %114 : vector<1x512xi32>
    %116 = vector.broadcast %115 : vector<1x512xi32> to vector<16x512xi32>
    %117 = arith.cmpi eq, %7, %116 : vector<16x512xi32>
    %cst_38 = arith.constant 0.000000e+00 : f32
    %118 = vector.shape_cast %87 : vector<1x512xf32> to vector<1x512xf32>
    %119 = vector.broadcast %118 : vector<1x512xf32> to vector<16x512xf32>
    %120 = vector.broadcast %cst_38 : f32 to vector<16x512xf32>
    %121 = arith.select %117, %119, %120 : vector<16x512xi1>, vector<16x512xf32>
    %122 = arith.addf %113, %121 : vector<16x512xf32>
    %123 = arith.truncf %105 : vector<16x512xf32> to vector<16x512xbf16>
    %c0_39 = arith.constant 0 : index
    %c1_40 = arith.constant 1 : index
    %c0_41 = arith.constant 0 : index
    %c0_42 = arith.constant 0 : index
    %124 = vector.load %arg3[%c0_39, %c1_40, %c0_41, %c0_42] : memref<1x3x512x16xbf16, #tpu.memory_space<vmem>>, vector<1x1x512x16xbf16>
    %125 = vector.shape_cast %124 : vector<1x1x512x16xbf16> to vector<512x16xbf16>
    %cst_43 = arith.constant dense<0.000000e+00> : vector<512x512xf32>
    %126 = tpu.matmul %125, %123, %cst_43 {dimension_numbers = #tpu.dot_dimension_numbers<[1], [0], [0], [1], [0, 0, 1, 1], [], []>} : vector<512x16xbf16>, vector<16x512xbf16>, vector<512x512xf32> -> vector<512x512xf32>
    %127 = vector.shape_cast %126 : vector<512x512xf32> to vector<16x32x512xf32>
    %128 = vector.shape_cast %122 : vector<16x512xf32> to vector<16x1x512xf32>
    %129 = vector.broadcast %128 : vector<16x1x512xf32> to vector<16x32x512xf32>
    %130 = arith.mulf %127, %129 : vector<16x32x512xf32>
    %cst_44 = arith.constant dense<0.000000e+00> : vector<32x512xf32>
    %131 = vector.multi_reduction <add>, %130, %cst_44 [0] : vector<16x32x512xf32> to vector<32x512xf32>
    %132 = arith.addf %70, %131 : vector<32x512xf32>
    %cst_45 = arith.constant 1.000000e+00 : f32
    %133 = vector.broadcast %cst_45 : f32 to vector<1x512xf32>
    %134 = arith.addf %5, %133 : vector<1x512xf32>
    %cst_46 = arith.constant 8.000000e+00 : f32
    %135 = vector.broadcast %cst_46 : f32 to vector<1x512xf32>
    %136 = arith.mulf %134, %135 : vector<1x512xf32>
    %cst_47 = arith.constant 5.000000e-01 : f32
    %137 = vector.broadcast %cst_47 : f32 to vector<1x512xf32>
    %138 = arith.subf %136, %137 : vector<1x512xf32>
    %cst_48 = arith.constant 1.000000e+00 : f32
    %139 = vector.broadcast %cst_48 : f32 to vector<1x512xf32>
    %140 = arith.addf %1, %139 : vector<1x512xf32>
    %cst_49 = arith.constant 8.000000e+00 : f32
    %141 = vector.broadcast %cst_49 : f32 to vector<1x512xf32>
    %142 = arith.mulf %140, %141 : vector<1x512xf32>
    %cst_50 = arith.constant 5.000000e-01 : f32
    %143 = vector.broadcast %cst_50 : f32 to vector<1x512xf32>
    %144 = arith.subf %142, %143 : vector<1x512xf32>
    %145 = math.floor %138 : vector<1x512xf32>
    %146 = math.floor %144 : vector<1x512xf32>
    %147 = arith.fptosi %145 : vector<1x512xf32> to vector<1x512xi32>
    %148 = arith.fptosi %146 : vector<1x512xf32> to vector<1x512xi32>
    %149 = arith.subf %138, %145 : vector<1x512xf32>
    %150 = arith.subf %144, %146 : vector<1x512xf32>
    %151 = vector.broadcast %148 : vector<1x512xi32> to vector<16x512xi32>
    %152 = arith.cmpi eq, %6, %151 : vector<16x512xi32>
    %cst_51 = arith.constant 1.000000e+00 : f32
    %153 = vector.broadcast %cst_51 : f32 to vector<1x512xf32>
    %154 = arith.subf %153, %150 : vector<1x512xf32>
    %cst_52 = arith.constant 0.000000e+00 : f32
    %155 = vector.shape_cast %154 : vector<1x512xf32> to vector<1x512xf32>
    %156 = vector.broadcast %155 : vector<1x512xf32> to vector<16x512xf32>
    %157 = vector.broadcast %cst_52 : f32 to vector<16x512xf32>
    %158 = arith.select %152, %156, %157 : vector<16x512xi1>, vector<16x512xf32>
    %c1_i32_53 = arith.constant 1 : i32
    %159 = vector.broadcast %c1_i32_53 : i32 to vector<1x512xi32>
    %160 = arith.addi %148, %159 : vector<1x512xi32>
    %161 = vector.broadcast %160 : vector<1x512xi32> to vector<16x512xi32>
    %162 = arith.cmpi eq, %6, %161 : vector<16x512xi32>
    %cst_54 = arith.constant 0.000000e+00 : f32
    %163 = vector.shape_cast %150 : vector<1x512xf32> to vector<1x512xf32>
    %164 = vector.broadcast %163 : vector<1x512xf32> to vector<16x512xf32>
    %165 = vector.broadcast %cst_54 : f32 to vector<16x512xf32>
    %166 = arith.select %162, %164, %165 : vector<16x512xi1>, vector<16x512xf32>
    %167 = arith.addf %158, %166 : vector<16x512xf32>
    %168 = vector.broadcast %147 : vector<1x512xi32> to vector<16x512xi32>
    %169 = arith.cmpi eq, %7, %168 : vector<16x512xi32>
    %cst_55 = arith.constant 1.000000e+00 : f32
    %170 = vector.broadcast %cst_55 : f32 to vector<1x512xf32>
    %171 = arith.subf %170, %149 : vector<1x512xf32>
    %cst_56 = arith.constant 0.000000e+00 : f32
    %172 = vector.shape_cast %171 : vector<1x512xf32> to vector<1x512xf32>
    %173 = vector.broadcast %172 : vector<1x512xf32> to vector<16x512xf32>
    %174 = vector.broadcast %cst_56 : f32 to vector<16x512xf32>
    %175 = arith.select %169, %173, %174 : vector<16x512xi1>, vector<16x512xf32>
    %c1_i32_57 = arith.constant 1 : i32
    %176 = vector.broadcast %c1_i32_57 : i32 to vector<1x512xi32>
    %177 = arith.addi %147, %176 : vector<1x512xi32>
    %178 = vector.broadcast %177 : vector<1x512xi32> to vector<16x512xi32>
    %179 = arith.cmpi eq, %7, %178 : vector<16x512xi32>
    %cst_58 = arith.constant 0.000000e+00 : f32
    %180 = vector.shape_cast %149 : vector<1x512xf32> to vector<1x512xf32>
    %181 = vector.broadcast %180 : vector<1x512xf32> to vector<16x512xf32>
    %182 = vector.broadcast %cst_58 : f32 to vector<16x512xf32>
    %183 = arith.select %179, %181, %182 : vector<16x512xi1>, vector<16x512xf32>
    %184 = arith.addf %175, %183 : vector<16x512xf32>
    %185 = arith.truncf %167 : vector<16x512xf32> to vector<16x512xbf16>
    %c0_59 = arith.constant 0 : index
    %c2_60 = arith.constant 2 : index
    %c0_61 = arith.constant 0 : index
    %c0_62 = arith.constant 0 : index
    %186 = vector.load %arg3[%c0_59, %c2_60, %c0_61, %c0_62] : memref<1x3x512x16xbf16, #tpu.memory_space<vmem>>, vector<1x1x512x16xbf16>
    %187 = vector.shape_cast %186 : vector<1x1x512x16xbf16> to vector<512x16xbf16>
    %cst_63 = arith.constant dense<0.000000e+00> : vector<512x512xf32>
    %188 = tpu.matmul %187, %185, %cst_63 {dimension_numbers = #tpu.dot_dimension_numbers<[1], [0], [0], [1], [0, 0, 1, 1], [], []>} : vector<512x16xbf16>, vector<16x512xbf16>, vector<512x512xf32> -> vector<512x512xf32>
    %189 = vector.shape_cast %188 : vector<512x512xf32> to vector<16x32x512xf32>
    %190 = vector.shape_cast %184 : vector<16x512xf32> to vector<16x1x512xf32>
    %191 = vector.broadcast %190 : vector<16x1x512xf32> to vector<16x32x512xf32>
    %192 = arith.mulf %189, %191 : vector<16x32x512xf32>
    %cst_64 = arith.constant dense<0.000000e+00> : vector<32x512xf32>
    %193 = vector.multi_reduction <add>, %192, %cst_64 [0] : vector<16x32x512xf32> to vector<32x512xf32>
    %194 = arith.addf %132, %193 : vector<32x512xf32>
    %cst_65 = arith.constant 0.333333343 : f32
    %195 = vector.broadcast %cst_65 : f32 to vector<32x512xf32>
    %196 = arith.mulf %194, %195 : vector<32x512xf32>
    %197 = arith.truncf %196 : vector<32x512xf32> to vector<32x512xbf16>
    %c0_66 = arith.constant 0 : index
    %c0_67 = arith.constant 0 : index
    %198 = vector.load %arg4[%c0_66, %c0_67] : memref<64x32xbf16, #tpu.memory_space<vmem>>, vector<64x32xbf16>
    %cst_68 = arith.constant dense<0.000000e+00> : vector<64x512xf32>
    %199 = tpu.matmul %198, %197, %cst_68 {dimension_numbers = #tpu.dot_dimension_numbers<[1], [0], [0], [1], [0, 0, 1, 1], [], []>} : vector<64x32xbf16>, vector<32x512xbf16>, vector<64x512xf32> -> vector<64x512xf32>
    %c0_69 = arith.constant 0 : index
    %c0_70 = arith.constant 0 : index
    %200 = vector.load %arg5[%c0_69, %c0_70] : memref<64x1xf32, #tpu.memory_space<vmem>>, vector<64x1xf32>
    %201 = vector.broadcast %200 : vector<64x1xf32> to vector<64x512xf32>
    %202 = arith.addf %199, %201 : vector<64x512xf32>
    %cst_71 = arith.constant 0.000000e+00 : f32
    %203 = vector.broadcast %cst_71 : f32 to vector<64x512xf32>
    %204 = arith.maximumf %202, %203 : vector<64x512xf32>
    %205 = math.absf %202 : vector<64x512xf32>
    %cst_72 = arith.constant 0.000000e+00 : f32
    %206 = vector.broadcast %cst_72 : f32 to vector<64x512xf32>
    %207 = arith.subf %206, %205 : vector<64x512xf32>
    %208 = math.exp %207 : vector<64x512xf32>
    %209 = math.log1p %208 : vector<64x512xf32>
    %210 = arith.addf %204, %209 : vector<64x512xf32>
    %c0_73 = arith.constant 0 : index
    %c0_74 = arith.constant 0 : index
    %211 = vector.load %arg6[%c0_73, %c0_74] : memref<4x64xbf16, #tpu.memory_space<vmem>>, vector<4x64xbf16>
    %212 = arith.truncf %210 : vector<64x512xf32> to vector<64x512xbf16>
    %cst_75 = arith.constant dense<0.000000e+00> : vector<4x512xf32>
    %213 = tpu.matmul %211, %212, %cst_75 {dimension_numbers = #tpu.dot_dimension_numbers<[1], [0], [0], [1], [0, 0, 1, 1], [], []>} : vector<4x64xbf16>, vector<64x512xbf16>, vector<4x512xf32> -> vector<4x512xf32>
    %c0_76 = arith.constant 0 : index
    %c0_77 = arith.constant 0 : index
    %214 = vector.load %arg7[%c0_76, %c0_77] : memref<4x1xf32, #tpu.memory_space<vmem>>, vector<4x1xf32>
    %215 = vector.broadcast %214 : vector<4x1xf32> to vector<4x512xf32>
    %216 = arith.addf %213, %215 : vector<4x512xf32>
    %217 = vector.extract_strided_slice %216 {offsets = [0, 0], sizes = [1, 512], strides = [1, 1]} : vector<4x512xf32> to vector<1x512xf32>
    %c0_78 = arith.constant 0 : index
    %c0_79 = arith.constant 0 : index
    %c0_80 = arith.constant 0 : index
    %218 = vector.load %arg8[%c0_78, %c0_79, %c0_80] : memref<1x4x512xf32, #tpu.memory_space<vmem>>, vector<1x1x512xf32>
    %219 = vector.shape_cast %218 : vector<1x1x512xf32> to vector<1x512xf32>
    %220 = vector.shape_cast %217 : vector<1x512xf32> to vector<1x1x512xf32>
    tpu.vector_store %arg8[%c0_78, %c0_79, %c0_80], %220 {strides = array<i32>} : memref<1x4x512xf32, #tpu.memory_space<vmem>>, vector<1x1x512xf32>,
    %221 = vector.extract_strided_slice %216 {offsets = [1, 0], sizes = [3, 512], strides = [1, 1]} : vector<4x512xf32> to vector<3x512xf32>
    %cst_81 = arith.constant 0.000000e+00 : f32
    %222 = vector.broadcast %cst_81 : f32 to vector<3x512xf32>
    %223 = arith.subf %222, %221 : vector<3x512xf32>
    %224 = math.exp %223 : vector<3x512xf32>
    %cst_82 = arith.constant 1.000000e+00 : f32
    %225 = vector.broadcast %cst_82 : f32 to vector<3x512xf32>
    %226 = arith.addf %225, %224 : vector<3x512xf32>
    %cst_83 = arith.constant 1.000000e+00 : f32
    %227 = vector.broadcast %cst_83 : f32 to vector<3x512xf32>
    %228 = arith.divf %227, %226 : vector<3x512xf32>
    %cst_84 = arith.constant 1.002000e+00 : f32
    %229 = vector.broadcast %cst_84 : f32 to vector<3x512xf32>
    %230 = arith.mulf %228, %229 : vector<3x512xf32>
    %cst_85 = arith.constant 1.000000e-03 : f32
    %231 = vector.broadcast %cst_85 : f32 to vector<3x512xf32>
    %232 = arith.subf %230, %231 : vector<3x512xf32>
    %cst_86 = arith.constant 2.000000e+00 : f32
    %233 = vector.broadcast %cst_86 : f32 to vector<3x512xf32>
    %234 = arith.mulf %232, %233 : vector<3x512xf32>
    %cst_87 = arith.constant 1.000000e+00 : f32
    %235 = vector.broadcast %cst_87 : f32 to vector<3x512xf32>
    %236 = arith.subf %234, %235 : vector<3x512xf32>
    %c0_88 = arith.constant 0 : index
    %c1_89 = arith.constant 1 : index
    %c0_90 = arith.constant 0 : index
    %237 = vector.load %arg8[%c0_88, %c1_89, %c0_90] : memref<1x4x512xf32, #tpu.memory_space<vmem>>, vector<1x3x512xf32>
    %238 = vector.shape_cast %237 : vector<1x3x512xf32> to vector<3x512xf32>
    %239 = vector.shape_cast %236 : vector<3x512xf32> to vector<1x3x512xf32>
    tpu.vector_store %arg8[%c0_88, %c1_89, %c0_90], %239 {strides = array<i32>} : memref<1x4x512xf32, #tpu.memory_space<vmem>>, vector<1x3x512xf32>,
    return
  }
  func.func @transform_0(%arg0: i32, %arg1: i32) -> (i32, i32, i32) {
    %c0_i32 = arith.constant 0 : i32
    %c0_i32_0 = arith.constant 0 : i32
    return %arg0, %c0_i32, %arg1 : i32, i32, i32
  }
  func.func @transform_1(%arg0: i32, %arg1: i32) -> (i32, i32, i32, i32) {
    %c0_i32 = arith.constant 0 : i32
    %c0_i32_0 = arith.constant 0 : i32
    %c0_i32_1 = arith.constant 0 : i32
    %c0_i32_2 = arith.constant 0 : i32
    return %arg0, %c0_i32, %c0_i32_0, %c0_i32_1 : i32, i32, i32, i32
  }
  func.func @transform_2(%arg0: i32, %arg1: i32) -> (i32, i32) {
    %c0_i32 = arith.constant 0 : i32
    %c0_i32_0 = arith.constant 0 : i32
    %c0_i32_1 = arith.constant 0 : i32
    return %c0_i32, %c0_i32_0 : i32, i32
  }
  func.func @transform_3(%arg0: i32, %arg1: i32) -> (i32, i32) {
    %c0_i32 = arith.constant 0 : i32
    %c0_i32_0 = arith.constant 0 : i32
    %c0_i32_1 = arith.constant 0 : i32
    return %c0_i32, %c0_i32_0 : i32, i32
  }
  func.func @transform_4(%arg0: i32, %arg1: i32) -> (i32, i32) {
    %c0_i32 = arith.constant 0 : i32
    %c0_i32_0 = arith.constant 0 : i32
    %c0_i32_1 = arith.constant 0 : i32
    return %c0_i32, %c0_i32_0 : i32, i32
  }
  func.func @transform_5(%arg0: i32, %arg1: i32) -> (i32, i32) {
    %c0_i32 = arith.constant 0 : i32
    %c0_i32_0 = arith.constant 0 : i32
    %c0_i32_1 = arith.constant 0 : i32
    return %c0_i32, %c0_i32_0 : i32, i32
  }
  func.func @transform_6(%arg0: i32, %arg1: i32) -> (i32, i32, i32) {
    %c0_i32 = arith.constant 0 : i32
    %c0_i32_0 = arith.constant 0 : i32
    return %arg0, %c0_i32, %arg1 : i32, i32, i32
  }
}

</mosaic_0001>

<bundles_post_ra>
// kernel: tpu_custom_call.1
= control target key start
LH: loop header
LB: loop body
LE: loop exit
PB: predicated region body
PF: predicated region fallthrough
CT: control target
= control target key end

     0   :  { %11 = vsyncpa [#allocation3], 0  ;;  %s12058_s0 = inlined_call_operand.vmem [shape: f32[2,3,1024], index: 0, kind: input, shape index: {}]   ;;  %s12059_s1 = inlined_call_operand.vmem [shape: bf16[2,3,512,16], index: 1, kind: input, shape index: {}]   ;;  %s12060_s2 = inlined_call_operand.vmem [shape: bf16[64,32], index: 2, kind: input, shape index: {}]   ;;  %s12061_s3 = inlined_call_operand.vmem [shape: f32[64,1], index: 3, kind: input, shape index: {}]   ;;  %s12062_s4 = inlined_call_operand.vmem [shape: bf16[4,64], index: 4, kind: input, shape index: {}]   ;;  %s12063_s5 = inlined_call_operand.vmem [shape: f32[4,1], index: 5, kind: input, shape index: {}]   ;;  %s12064_s6 = inlined_call_operand.hbm [shape: f32[2,4,1024], index: 6, kind: output, shape index: {}]  }
   0x1   :  { %13 = vsyncpa [#allocation3 + $0x1], 0  ;;  %s8190_s21 = smov 0   ;;  %s8192_s22 = smov 0  }
   0x2   :  { %s8194_s23 = smov 0   ;;  %s8196_s24 = smov 0  }
   0x3   :  { %s8198_s25 = smov 0   ;;  %s8200_s26 = smov 0  }
   0x4   :  { %s8202_s27 = smov 0   ;;  %s8204_s28 = smov 0  }
   0x5 LB: > { %s7273_s29 = sadd.s32 4294967295, %s8150_s28   ;;  %s7274_s30 = sadd.s32 4294967294, %s8150_s28   ;;  %s8150_s28 = sphi %s8204_s28, %s19_s28   ;;  %s8146_s27 = sphi %s8202_s27, %s12531_s27   ;;  %s8142_s26 = sphi %s8200_s26, %s12530_s26   ;;  %s8138_s25 = sphi %s8198_s25, %s12529_s25   ;;  %s8134_s24 = sphi %s8196_s24, %s12528_s24   ;;  %s8130_s23 = sphi %s8194_s23, %s12527_s23   ;;  %s8126_s22 = sphi %s8192_s22, %s12526_s22   ;;  %s8122_s21 = sphi %s8190_s21, %s12525_s21  }
   0x6   : > { %s28_s7 = sadd.s32 1, %s8142_s26  ;;  %s31_s8 = sadd.s32 1, %s8146_s27 }
   0x7   : > { %p29_p0 = scmp.ge.s32.totalorder %s28_s7, 2  ;;  %p188_p1 = scmp.ne.s32.totalorder %s8130_s23, %s8126_s22 }
   0x8   : > { %p189_p2 = scmp.eq.s32.totalorder %s7273_s29, 3  ;;  %p194_p5 = scmp.ne.s32.totalorder %s8126_s22, %s8122_s21 }
   0x9   : > { %s12533_s7 = smov (%p29_p0, %s28_s7), 0  ;;  %s12535_s8 = smov (!%p29_p0, %s31_s8), %s8146_s27 }
   0xa   : > { %s174_s9 = ssub.s32 %s8142_s26, %s12533_s7  ;;  %p8241_p3 = por %p189_p2, %p188_p1 }
   0xb   : > { %p33_p4 = scmp.ge.s32.totalorder %s12535_s8, 2  ;;  %p195_p6 = scmp.eq.s32.totalorder %s7274_s30, 3 }
   0xc   : > { %p7277_p7 = scmp.ge.s32.totalorder %s8150_s28, 1  ;;  %p246_p9 = scmp.lt.s32.totalorder %s8150_s28, 5 }
   0xd   : > { %s12537_s8 = smov (%p33_p4, %s12535_s8), 0  ;;  %p8250_p8 = por %p195_p6, %p194_p5 }
   0xe   : > { %12201 = sst [smem:[#allocation5_spill]] %s12537_s8  ;;  %s173_s12 = ssub.s32 %s8146_s27, %s12537_s8 }
   0xf   : > { %s178_s13 = sadd.s32 1, %s8130_s23  ;;  %s175_s14 = sor.u32 %s174_s9, %s173_s12 }
  0x10   : > { %p247_p10 = pnand %p7277_p7, %p246_p9  ;;  %p176_p11 = scmp.eq.s32.totalorder %s175_s14, 0 }
  0x12   : > { %s8259_s15 = scalar_select %p176_p11, %s8130_s23, %s178_s13  }
  0x13   : > { %250 = sbr.rel (%p247_p10) target bundleno = 1643 (0x66b), region = 44 }
  0x18   : > { %s8262_s16 = sshll.u32 %s8134_s24, 2  ;;  %p286_p12 = scmp.lt.s32.totalorder %s8138_s25, 1  ;;  %v12067_v0 = vmov 0   ;;  %v12066_v1 = vlaneseq }
  0x19   : > { %p288_p13 = scmp.lt.s32.totalorder %s8262_s16, 7  ;;  %911 = vmatprep.mubr.bf16.mxu0 %v12067_v0  ;;  %1264 = vmatprep.mubr.bf16.mxu1 %v12067_v0  ;;  %s7728_s30 = sshll.u32 %s8138_s25, 3 }
  0x1a   : > { %s287_s17 = scalar_select %p286_p12, %s8138_s25, 1  ;;  %7812 = vset.pattern.permute.xlu0 %v12067_v0  ;;  %7813 = vset.pattern.permute.xlu1 %v12067_v0  ;;  %v8284_v4 = vshrl.u32 %v12066_v1, 7 }
  0x1b   : > { %s289_s18 = scalar_select %p288_p13, %s8262_s16, 7 }
  0x1c   : > { %s7280_s19 = sshll.u32 %s287_s17, 3  ;;  %s7732_s20 = smul.u32 768, %s287_s17  ;;  %v8287_v8 = vsub.s32 0, %v8284_v4  ;;  %v8290_v9 = vsub.s32 1, %v8284_v4  ;;  %v8293_v10 = vsub.s32 2, %v8284_v4  ;;  %v8296_v11 = vsub.s32 3, %v8284_v4 }
  0x1d   : > { %s291_s29 = sadd.s32 %s7280_s19, %s289_s18  ;;  %v8299_v14 = vadd.s32 8, %v8284_v4  ;;  %s7178_s9 = sadd.s32 %s7728_s30, %s8262_s16 }
  0x1e   : > { %s7281_s24 = sshll.u32 %s291_s29, 2  ;;  %s8275_s12 = scalar_lea.vmem %s12059_s1, %s7732_s20  ;;  %12203 = vst [vmem:[#allocation6_spill] sm:$0xff] %v8287_v8  ;;  %12204 = vst [vmem:[#allocation7_spill] sm:$0xff] %v8290_v9 }
  0x1f   : > { %s8280_s8 = scalar_lea.vmem %s12058_s0, %s7281_s24  ;;  %12205 = vst [vmem:[#allocation8_spill] sm:$0xff] %v8293_v10  ;;  %12206 = vst [vmem:[#allocation9_spill] sm:$0xff] %v8296_v11  ;;  %v7814_v61 = vld [vmem:[%s8275_s12] sm:$0xff]   ;;  %v7815_v63 = vld [vmem:[%s8275_s12 + $0x8] sm:$0xff]   ;;  %s282_s20 = sand.u32 1, %s8126_s22  }
  0x20   : > { %v7283_v2 = vld [vmem:[%s8280_s8 + $0x1] ss:$4 sm:$0xf]  ;;  %s7278_s29 = sshll.u32 %s282_s20, 4  ;;  %s7166_s16 = scalar_lea.sflag [#allocation3], %s282_s20 }
  0x21   : > { %v313_v3 = vadd.f32 1.0, %v7283_v2  ;;  %v7816_v2 = vld [vmem:[%s8275_s12 + $0x10] sm:$0xff]   ;;  %s11999_s24 = scalar_lea.vmem [#allocation2], %s7278_s29  ;;  %s8154_s18 = smov [#allocation2]  }
  0x22   : > { %s7182_s13 = sshll.u32 %s11999_s24, 4  ;;  %s8062_s19 = sshll.u32 %s8154_s18, 4  ;;  %s7183_s13 = int_to_ptr.vmem [resolvable:$true] %s7182_s13  ;;  %s8063_s19 = int_to_ptr.vmem [resolvable:$false] %s8062_s19 }
  0x23   : > { %v314_v5 = vmul.f32 8.0, %v313_v3  ;;  %v7817_v3 = vld [vmem:[%s8275_s12 + $0x18] sm:$0xff]   ;;  %s8058_s17 = scalar_lea.vmem %s7183_s13, 256  ;;  %s8064_s29 = scalar_lea.vmem %s8063_s19, 512 }
  0x24   : > { %p8059_p0 = scmp.ne.s32.totalorder %s7183_s13, %s8058_s17  ;;  %p8065_p4 = scmp.lt.s32.totalorder %s7183_s13, %s8063_s19 }
  0x25   : > { %v7286_v6 = vadd.f32 -0.5, %v314_v5  ;;  %v7818_v5 = vld [vmem:[%s8275_s12 + $0x20] sm:$0xff]   ;;  %p8066_p5 = scmp.lt.s32.totalorder %s8064_s29, %s8058_s17 }
  0x26   : > { %p8060_p1 = pnand %p8059_p0, %p8241_p3 }
  0x27   : > { %v317_v7 = vfloor.f32 %v7286_v6  ;;  %p8067_p6 = por %p8066_p5, %p8065_p4 }
  0x28   : > { %p8061_p2 = pneg %p8060_p1 }
  0x29   : > { %v7735_v12 = vtrunc.f32 %v317_v7  ;;  %v321_v13 = vsub.f32 %v7286_v6, %v317_v7  ;;  %v7819_v6 = vld [vmem:[%s8275_s12 + $0x28] sm:$0xff]   ;;  %v7820_v7 = vld [vmem:[%s8275_s12 + $0x30] sm:$0xff]  }
  0x2a   : > { %p8068_p7 = pnand %p8067_p6, %p8061_p2 }
  0x2b   : > { %v7736_v15 = vcvt.f32.s32 %v7735_v12  ;;  %v346_v16 = vsub.f32 1.0, %v321_v13  ;;  %v409_v17 = vrot.slane %v321_v13, %v8290_v9  ;;  %v417_v18 = vrot.slane %v321_v13, %v8296_v11  ;;  %v7821_v12 = vld [vmem:[%s8275_s12 + $0x38] sm:$0xff]  }
  0x2c   : > { %v405_v19 = vrot.slane %v321_v13, %v8287_v8  ;;  %v413_v20 = vrot.slane %v321_v13, %v8293_v10  ;;  %v7822_v13 = vld [vmem:[%s8275_s12 + $0x40] sm:$0xff]  }
  0x2d   : > { %v329_v21 = vrot.slane %v7736_v15, %v8290_v9  ;;  %v355_v22 = vrot.slane %v346_v16, %v8290_v9  ;;  %v376_v23 = vadd.s32 1, %v7736_v15  ;;  %v337_v24 = vrot.slane %v7736_v15, %v8296_v11 }
  0x2e   : > { %v363_v25 = vrot.slane %v346_v16, %v8296_v11  ;;  %v325_v26 = vrot.slane %v7736_v15, %v8287_v8  ;;  %v351_v27 = vrot.slane %v346_v16, %v8287_v8  ;;  %v333_v28 = vrot.slane %v7736_v15, %v8293_v10  ;;  %v7823_v15 = vld [vmem:[%s8275_s12 + $0x48] sm:$0xff]  }
  0x2f   : > { %vm339_vm0 = vcmp.eq.s32.totalorder %v8284_v4, %v329_v21  ;;  %vm343_vm1 = vcmp.eq.s32.totalorder %v8299_v14, %v329_v21  ;;  %v384_v29 = vrot.slane %v376_v23, %v8290_v9  ;;  %vm341_vm2 = vcmp.eq.s32.totalorder %v8284_v4, %v337_v24  ;;  %v7827_v21 = vld [vmem:[%s8275_s12 + $0x68] sm:$0xff]  }
  0x30   : > { %v369_v30 = vsel %vm339_vm0, %v355_v22, 0.0  ;;  %v373_v31 = vsel %vm343_vm1, %v355_v22, 0.0  ;;  %vm345_vm3 = vcmp.eq.s32.totalorder %v8299_v14, %v337_v24  ;;  %v371_v32 = vsel %vm341_vm2, %v363_v25, 0.0 }
  0x31   : > { %vm394_vm4 = vcmp.eq.s32.totalorder %v8284_v4, %v384_v29  ;;  %vm398_vm5 = vcmp.eq.s32.totalorder %v8299_v14, %v384_v29  ;;  %v375_v33 = vsel %vm345_vm3, %v363_v25, 0.0  ;;  %v392_v34 = vrot.slane %v376_v23, %v8296_v11  ;;  %v7829_v29 = vld [vmem:[%s8275_s12 + $0x78] sm:$0xff]  }
  0x32   : > { %v423_v35 = vsel %vm394_vm4, %v409_v17, 0.0  ;;  %v427_v36 = vsel %vm398_vm5, %v409_v17, 0.0  ;;  %vm338_vm6 = vcmp.eq.s32.totalorder %v8284_v4, %v325_v26  ;;  %vm342_vm7 = vcmp.eq.s32.totalorder %v8299_v14, %v325_v26  ;;  %v7825_v17 = vld [vmem:[%s8275_s12 + $0x58] sm:$0xff]  }
  0x33   : > { %v431_v37 = vadd.f32 %v423_v35, %v369_v30  ;;  %v435_v38 = vadd.f32 %v427_v36, %v373_v31  ;;  %vm396_vm8 = vcmp.eq.s32.totalorder %v8284_v4, %v392_v34  ;;  %vm400_vm9 = vcmp.eq.s32.totalorder %v8299_v14, %v392_v34 }
  0x34   : > { %v425_v39 = vsel %vm396_vm8, %v417_v18, 0.0  ;;  %v429_v40 = vsel %vm400_vm9, %v417_v18, 0.0  ;;  %v368_v41 = vsel %vm338_vm6, %v351_v27, 0.0  ;;  %v372_v42 = vsel %vm342_vm7, %v351_v27, 0.0  ;;  %v7826_v18 = vld [vmem:[%s8275_s12 + $0x60] sm:$0xff]  }
  0x35   : > { %v555_v43 = vpack.c.bf16 %v435_v38, %v431_v37  ;;  %v433_v44 = vadd.f32 %v425_v39, %v371_v32  ;;  %v437_v45 = vadd.f32 %v429_v40, %v375_v33  ;;  %v380_v46 = vrot.slane %v376_v23, %v8287_v8 }
  0x36   : > { %vm340_vm10 = vcmp.eq.s32.totalorder %v8284_v4, %v333_v28  ;;  %vm344_vm11 = vcmp.eq.s32.totalorder %v8299_v14, %v333_v28  ;;  %v359_v47 = vrot.slane %v346_v16, %v8293_v10  ;;  %v388_v48 = vrot.slane %v376_v23, %v8293_v10  ;;  %v7824_v16 = vld [vmem:[%s8275_s12 + $0x50] sm:$0xff]  }
  0x37   : > { %893 = vmatprep.subr.bf16.mxu0 %v555_v43  ;;  %v557_v49 = vpack.c.bf16 %v437_v45, %v433_v44  ;;  %vm393_vm12 = vcmp.eq.s32.totalorder %v8284_v4, %v380_v46  ;;  %vm397_vm13 = vcmp.eq.s32.totalorder %v8299_v14, %v380_v46  ;;  %vm782_vm0 = vcmask 130048   ;;  %v7828_v23 = vld [vmem:[%s8275_s12 + $0x70] sm:$0xff]  }
  0x38   : > { %v422_v50 = vsel %vm393_vm12, %v405_v19, 0.0  ;;  %v426_v51 = vsel %vm397_vm13, %v405_v19, 0.0  ;;  %v370_v52 = vsel %vm340_vm10, %v359_v47, 0.0  ;;  %v374_v53 = vsel %vm344_vm11, %v359_v47, 0.0 }
  0x39   : > { %1246 = vmatprep.subr.bf16.mxu1 %v557_v49  ;;  %v430_v54 = vadd.f32 %v422_v50, %v368_v41  ;;  %v434_v55 = vadd.f32 %v426_v51, %v372_v42  ;;  %vm395_vm14 = vcmp.eq.s32.totalorder %v8284_v4, %v388_v48  ;;  %vm399_vm15 = vcmp.eq.s32.totalorder %v8299_v14, %v388_v48  ;;  %v7284_v19 = vld [vmem:[%s8280_s8 + $0x2] ss:$4 sm:$0xf] }
  0x3a   : > { %v424_v56 = vsel %vm395_vm14, %v413_v20, 0.0  ;;  %v428_v57 = vsel %vm399_vm15, %v413_v20, 0.0  ;;  %v2561_v20 = vadd.f32 1.0, %v7284_v19  ;;  %v7830_v48 = vld [vmem:[%s8275_s12 + $0x80] sm:$0xff]  }
  0x3b   : > { %v554_v58 = vpack.c.bf16 %v434_v55, %v430_v54  ;;  %v432_v59 = vadd.f32 %v424_v56, %v370_v52  ;;  %v436_v60 = vadd.f32 %v428_v57, %v374_v53 }
  0x3c   : > { %v2562_v22 = vmul.f32 8.0, %v2561_v20 }
  0x3d   : > { %894 = vmatpush1.bf16.msra.mxu0 %v554_v58  ;;  %v556_v62 = vpack.c.bf16 %v436_v60, %v432_v59 }
  0x3e   : > { %v7383_v24 = vadd.f32 -0.5, %v2562_v22  ;;  %v7832_v22 = vld [vmem:[%s8275_s12 + $0x90] sm:$0xff]  }
  0x3f   : > { %1247 = vmatpush1.bf16.msra.mxu1 %v556_v62 }
  0x40   : > { %7319 = vmatmul.mubr.msk.bf16.vlgmr.msra.gmra.mxu0 %vm782_vm0, %v7814_v61  ;;  %v2564_v25 = vfloor.f32 %v7383_v24 }
  0x41   : > { %921 = vmatprep.mubr.bf16.mxu0 %v12067_v0 }
  0x42   : > { %7351 = vmatmul.mubr.msk.bf16.vlgmr.msra.gmra.mxu1 %vm782_vm0, %v7814_v61  ;;  %v7737_v26 = vtrunc.f32 %v2564_v25  ;;  %v8409_v28 = vsub.f32 %v7383_v24, %v2564_v25  ;;  %v7833_v25 = vld [vmem:[%s8275_s12 + $0x98] sm:$0xff]  }
  0x43   : > { %1274 = vmatprep.mubr.bf16.mxu1 %v12067_v0 }
  0x44   : > { %v7738_v27 = vcvt.f32.s32 %v7737_v26  ;;  %v2591_v31 = vsub.f32 1.0, %v8409_v28  ;;  %v2654_v37 = vrot.slane %v8409_v28, %v8290_v9  ;;  %v2662_v39 = vrot.slane %v8409_v28, %v8296_v11 }
  0x45   : > { %v2650_v57 = vrot.slane %v8409_v28, %v8287_v8 }
  0x46   : > { %v2621_v30 = vadd.s32 1, %v7738_v27  ;;  %v2574_v32 = vrot.slane %v7738_v27, %v8290_v9  ;;  %v2582_v34 = vrot.slane %v7738_v27, %v8296_v11  ;;  %v2600_v36 = vrot.slane %v2591_v31, %v8290_v9 }
  0x47   : > { %v2608_v38 = vrot.slane %v2591_v31, %v8296_v11  ;;  %v2570_v52 = vrot.slane %v7738_v27, %v8287_v8  ;;  %v2596_v55 = vrot.slane %v2591_v31, %v8287_v8  ;;  %v2578_v58 = vrot.slane %v7738_v27, %v8293_v10 }
  0x48   : > { %7320 = vmatmul.mubr.msk.bf16.gmra.mxu0 %vm782_vm0, %v7815_v63  ;;  %v2629_v33 = vrot.slane %v2621_v30, %v8290_v9  ;;  %v2637_v35 = vrot.slane %v2621_v30, %v8296_v11  ;;  %vm2584_vm1 = vcmp.eq.s32.totalorder %v8284_v4, %v2574_v32  ;;  %vm2588_vm2 = vcmp.eq.s32.totalorder %v8299_v14, %v2574_v32 }
  0x49   : > { %931 = vmatprep.mubr.bf16.mxu0 %v12067_v0  ;;  %v2614_v40 = vsel %vm2584_vm1, %v2600_v36, 0.0  ;;  %v2618_v41 = vsel %vm2588_vm2, %v2600_v36, 0.0  ;;  %vm2586_vm5 = vcmp.eq.s32.totalorder %v8284_v4, %v2582_v34  ;;  %vm2590_vm6 = vcmp.eq.s32.totalorder %v8299_v14, %v2582_v34  ;;  %v7836_v36 = vld [vmem:[%s8275_s12 + $0xb0] sm:$0xff]  }
  0x4a   : > { %7352 = vmatmul.mubr.msk.bf16.gmra.mxu1 %vm782_vm0, %v7815_v63  ;;  %vm2639_vm3 = vcmp.eq.s32.totalorder %v8284_v4, %v2629_v33  ;;  %vm2643_vm4 = vcmp.eq.s32.totalorder %v8299_v14, %v2629_v33  ;;  %v2616_v46 = vsel %vm2586_vm5, %v2608_v38, 0.0  ;;  %v2620_v47 = vsel %vm2590_vm6, %v2608_v38, 0.0 }
  0x4b   : > { %1284 = vmatprep.mubr.bf16.mxu1 %v12067_v0  ;;  %v2668_v42 = vsel %vm2639_vm3, %v2654_v37, 0.0  ;;  %v2672_v43 = vsel %vm2643_vm4, %v2654_v37, 0.0  ;;  %vm2641_vm7 = vcmp.eq.s32.totalorder %v8284_v4, %v2637_v35  ;;  %vm2645_vm8 = vcmp.eq.s32.totalorder %v8299_v14, %v2637_v35 }
  0x4c   : > { %v8430_v44 = vadd.f32 %v2668_v42, %v2614_v40  ;;  %v8432_v45 = vadd.f32 %v2672_v43, %v2618_v41  ;;  %v2670_v50 = vsel %vm2641_vm7, %v2662_v39, 0.0  ;;  %v2674_v51 = vsel %vm2645_vm8, %v2662_v39, 0.0 }
  0x4d   : > { %v8443_v53 = vadd.f32 %v2670_v50, %v2616_v46  ;;  %v8445_v54 = vadd.f32 %v2674_v51, %v2620_v47  ;;  %v2625_v56 = vrot.slane %v2621_v30, %v8287_v8  ;;  %vm2583_vm9 = vcmp.eq.s32.totalorder %v8284_v4, %v2570_v52 }
  0x4e   : > { %12207 = vst [vmem:[#allocation10_spill] sm:$0xff] %v8430_v44  ;;  %12208 = vst [vmem:[#allocation11_spill] sm:$0xff] %v8432_v45  ;;  %v2684_v49 = vpack.c.bf16 %v8432_v45, %v8430_v44  ;;  %vm2587_vm10 = vcmp.eq.s32.totalorder %v8299_v14, %v2570_v52  ;;  %v2613_v60 = vsel %vm2583_vm9, %v2596_v55, 0.0  ;;  %vm2585_vm13 = vcmp.eq.s32.totalorder %v8284_v4, %v2578_v58 }
  0x4f   : > { %12209 = vst [vmem:[#allocation12_spill] sm:$0xff] %v8443_v53  ;;  %12210 = vst [vmem:[#allocation13_spill] sm:$0xff] %v8445_v54  ;;  %v2686_v59 = vpack.c.bf16 %v8445_v54, %v8443_v53  ;;  %v2617_v61 = vsel %vm2587_vm10, %v2596_v55, 0.0  ;;  %vm2638_vm11 = vcmp.eq.s32.totalorder %v8284_v4, %v2625_v56  ;;  %vm2642_vm12 = vcmp.eq.s32.totalorder %v8299_v14, %v2625_v56 }
  0x50   : > { %7321 = vmatmul.mubr.msk.bf16.gmra.mxu0 %vm782_vm0, %v7816_v2  ;;  %3022 = vmatprep.subr.bf16.mxu0 %v2684_v49  ;;  %v2667_v62 = vsel %vm2638_vm11, %v2650_v57, 0.0  ;;  %vm2589_vm14 = vcmp.eq.s32.totalorder %v8299_v14, %v2578_v58  ;;  %v2671_v63 = vsel %vm2642_vm12, %v2650_v57, 0.0  ;;  %v7837_v57 = vld [vmem:[%s8275_s12 + $0xb8] sm:$0xff]  }
  0x51   : > { %941 = vmatprep.mubr.bf16.mxu0 %v12067_v0  ;;  %3375 = vmatprep.subr.bf16.mxu1 %v2686_v59 }
  0x52   : > { %7353 = vmatmul.mubr.msk.bf16.gmra.mxu1 %vm782_vm0, %v7816_v2  ;;  %v8462_v2 = vadd.f32 %v2667_v62, %v2613_v60  ;;  %v8153_v62 = vmov 1966171168  }
  0x53   : > { %1294 = vmatprep.mubr.bf16.mxu1 %v12067_v0 }
  0x54   : > { %12211 = vst [vmem:[#allocation14_spill] sm:$0xff] %v8462_v2 }
  0x58   : > { %7322 = vmatmul.mubr.msk.bf16.gmra.mxu0 %vm782_vm0, %v7817_v3 }
  0x59   : > { %951 = vmatprep.mubr.bf16.mxu0 %v12067_v0 }
  0x5a   : > { %7354 = vmatmul.mubr.msk.bf16.gmra.mxu1 %vm782_vm0, %v7817_v3  ;;  %v2604_v3 = vrot.slane %v2591_v31, %v8293_v10  ;;  %v7835_v31 = vld [vmem:[%s8275_s12 + $0xa8] sm:$0xff]  }
  0x5b   : > { %1304 = vmatprep.mubr.bf16.mxu1 %v12067_v0 }
  0x60   : > { %7323 = vmatmul.mubr.msk.bf16.gmra.mxu0 %vm782_vm0, %v7818_v5 }
  0x61   : > { %961 = vmatprep.mubr.bf16.mxu0 %v12067_v0 }
  0x62   : > { %7355 = vmatmul.mubr.msk.bf16.gmra.mxu1 %vm782_vm0, %v7818_v5  ;;  %v2633_v5 = vrot.slane %v2621_v30, %v8293_v10 }
  0x63   : > { %1314 = vmatprep.mubr.bf16.mxu1 %v12067_v0 }
  0x64   : > { %vm2640_vm15 = vcmp.eq.s32.totalorder %v8284_v4, %v2633_v5  ;;  %vm2644_vm1 = vcmp.eq.s32.totalorder %v8299_v14, %v2633_v5 }
  0x68   : > { %7324 = vmatmul.mubr.msk.bf16.gmra.mxu0 %vm782_vm0, %v7819_v6 }
  0x69   : > { %971 = vmatprep.mubr.bf16.mxu0 %v12067_v0 }
  0x6a   : > { %7356 = vmatmul.mubr.msk.bf16.gmra.mxu1 %vm782_vm0, %v7819_v6  ;;  %v8467_v6 = vadd.f32 %v2671_v63, %v2617_v61  ;;  %v1598_v63 = vunpack.c.l.s4 %v8153_v62 }
  0x6b   : > { %1324 = vmatprep.mubr.bf16.mxu1 %v12067_v0 }
  0x6c   : > { %12212 = vst [vmem:[#allocation15_spill] sm:$0xff] %v8467_v6 }
  0x70   : > { %7325 = vmatmul.mubr.msk.bf16.gmra.mxu0 %vm782_vm0, %v7820_v7 }
  0x71   : > { %981 = vmatprep.mubr.bf16.mxu0 %v12067_v0 }
  0x72   : > { %7357 = vmatmul.mubr.msk.bf16.gmra.mxu1 %vm782_vm0, %v7820_v7  ;;  %v2658_v7 = vrot.slane %v8409_v28, %v8293_v10  ;;  %v7834_v28 = vld [vmem:[%s8275_s12 + $0xa0] sm:$0xff]  }
  0x73   : > { %1334 = vmatprep.mubr.bf16.mxu1 %v12067_v0 }
  0x78   : > { %7326 = vmatmul.mubr.msk.bf16.gmra.mxu0 %vm782_vm0, %v7821_v12 }
  0x79   : > { %991 = vmatprep.mubr.bf16.mxu0 %v12067_v0 }
  0x7a   : > { %7358 = vmatmul.mubr.msk.bf16.gmra.mxu1 %vm782_vm0, %v7821_v12  ;;  %v2615_v12 = vsel %vm2585_vm13, %v2604_v3, 0.0 }
  0x7b   : > { %1344 = vmatprep.mubr.bf16.mxu1 %v12067_v0 }
  0x80   : > { %7327 = vmatmul.mubr.msk.bf16.gmra.mxu0 %vm782_vm0, %v7822_v13 }
  0x81   : > { %1001 = vmatprep.mubr.bf16.mxu0 %v12067_v0 }
  0x82   : > { %7359 = vmatmul.mubr.msk.bf16.gmra.mxu1 %vm782_vm0, %v7822_v13  ;;  %v2619_v13 = vsel %vm2589_vm14, %v2604_v3, 0.0 }
  0x83   : > { %1354 = vmatprep.mubr.bf16.mxu1 %v12067_v0 }
  0x88   : > { %7328 = vmatmul.mubr.msk.bf16.gmra.mxu0 %vm782_vm0, %v7823_v15 }
  0x89   : > { %1011 = vmatprep.mubr.bf16.mxu0 %v12067_v0 }
  0x8a   : > { %7360 = vmatmul.mubr.msk.bf16.gmra.mxu1 %vm782_vm0, %v7823_v15  ;;  %v7831_v15 = vld [vmem:[%s8275_s12 + $0x88] sm:$0xff]  }
  0x8b   : > { %1364 = vmatprep.mubr.bf16.mxu1 %v12067_v0 }
  0x90   : > { %7329 = vmatmul.mubr.msk.bf16.gmra.mxu0 %vm782_vm0, %v7824_v16 }
  0x91   : > { %1021 = vmatprep.mubr.bf16.mxu0 %v12067_v0 }
  0x92   : > { %7361 = vmatmul.mubr.msk.bf16.gmra.mxu1 %vm782_vm0, %v7824_v16  ;;  %v2683_v16 = vpack.c.bf16 %v8467_v6, %v8462_v2 }
  0x93   : > { %1374 = vmatprep.mubr.bf16.mxu1 %v12067_v0 }
  0x94   : > { %3023 = vmatpush1.bf16.msra.mxu0 %v2683_v16 }
  0x98   : > { %7330 = vmatmul.mubr.msk.bf16.gmra.mxu0 %vm782_vm0, %v7825_v17 }
  0x99   : > { %1031 = vmatprep.mubr.bf16.mxu0 %v12067_v0 }
  0x9a   : > { %7362 = vmatmul.mubr.msk.bf16.gmra.mxu1 %vm782_vm0, %v7825_v17  ;;  %v2669_v17 = vsel %vm2640_vm15, %v2658_v7, 0.0 }
  0x9b   : > { %1384 = vmatprep.mubr.bf16.mxu1 %v12067_v0  ;;  %v8477_v19 = vadd.f32 %v2669_v17, %v2615_v12 }
  0x9d   : > { %12213 = vst [vmem:[#allocation16_spill] sm:$0xff] %v8477_v19 }
  0xa0   : > { %7331 = vmatmul.mubr.msk.bf16.gmra.mxu0 %vm782_vm0, %v7826_v18 }
  0xa1   : > { %1041 = vmatprep.mubr.bf16.mxu0 %v12067_v0 }
  0xa2   : > { %7363 = vmatmul.mubr.msk.bf16.gmra.mxu1 %vm782_vm0, %v7826_v18  ;;  %v2673_v18 = vsel %vm2644_vm1, %v2658_v7, 0.0 }
  0xa3   : > { %1394 = vmatprep.mubr.bf16.mxu1 %v12067_v0  ;;  %v8479_v20 = vadd.f32 %v2673_v18, %v2619_v13  ;;  %v1599_v18 = vunpack.c.0.s8 %v1598_v63 }
  0xa5   : > { %12214 = vst [vmem:[#allocation17_spill] sm:$0xff] %v8479_v20 }
  0xa8   : > { %7332 = vmatmul.mubr.msk.bf16.gmra.mxu0 %vm782_vm0, %v7827_v21 }
  0xa9   : > { %1051 = vmatprep.mubr.bf16.mxu0 %v12067_v0 }
  0xaa   : > { %7364 = vmatmul.mubr.msk.bf16.gmra.mxu1 %vm782_vm0, %v7827_v21  ;;  %v2685_v21 = vpack.c.bf16 %v8479_v20, %v8477_v19  ;;  %v12225_v20 = vmov 0  }
  0xab   : > { %1404 = vmatprep.mubr.bf16.mxu1 %v12067_v0 }
  0xac   : > { %3376 = vmatpush1.bf16.msra.mxu1 %v2685_v21  ;;  %v7838_v21 = vld [vmem:[%s8275_s12 + $0xc0] sm:$0xff]  }
  0xb0   : > { %7333 = vmatmul.mubr.msk.bf16.gmra.mxu0 %vm782_vm0, %v7828_v23 }
  0xb1   : > { %1061 = vmatprep.mubr.bf16.mxu0 %v12067_v0 }
  0xb2   : > { %7365 = vmatmul.mubr.msk.bf16.gmra.mxu1 %vm782_vm0, %v7828_v23  ;;  %v302_v23 = vld [vmem:[%s8280_s8] ss:$4 sm:$0xf] }
  0xb3   : > { %1414 = vmatprep.mubr.bf16.mxu1 %v12067_v0  ;;  %v310_v24 = vadd.f32 1.0, %v302_v23 }
  0xb5   : > { %v311_v26 = vmul.f32 8.0, %v310_v24  ;;  %v8607_v24 = vsub.s32 %v1599_v18, %v8284_v4 }
  0xb7   : > { %v7285_v27 = vadd.f32 -0.5, %v311_v26  ;;  %12220 = vst [vmem:[#allocation23_spill] sm:$0xff] %v8607_v24 }
  0xb8   : > { %7334 = vmatmul.mubr.msk.bf16.gmra.mxu0 %vm782_vm0, %v7829_v29 }
  0xb9   : > { %1071 = vmatprep.mubr.bf16.mxu0 %v12067_v0 }
  0xba   : > { %7366 = vmatmul.mubr.msk.bf16.gmra.mxu1 %vm782_vm0, %v7829_v29  ;;  %v316_v29 = vfloor.f32 %v7285_v27 }
  0xbb   : > { %1424 = vmatprep.mubr.bf16.mxu1 %v12067_v0 }
  0xbc   : > { %v7733_v30 = vtrunc.f32 %v316_v29  ;;  %v320_v33 = vsub.f32 %v7285_v27, %v316_v29 }
  0xbe   : > { %v7734_v32 = vcvt.f32.s32 %v7733_v30  ;;  %v462_v35 = vsub.f32 1.0, %v320_v33  ;;  %v8554_v51 = vrot.slane %v320_v33, %v8287_v8  ;;  %v8557_v52 = vrot.slane %v320_v33, %v8290_v9 }
  0xbf   : > { %v8563_v55 = vrot.slane %v320_v33, %v8293_v10  ;;  %v8566_v56 = vrot.slane %v320_v33, %v8296_v11 }
  0xc0   : > { %7335 = vmatmul.mubr.msk.bf16.gmra.mxu0 %vm782_vm0, %v7830_v48  ;;  %v492_v34 = vadd.s32 1, %v7734_v32  ;;  %v8510_v37 = vrot.slane %v7734_v32, %v8287_v8  ;;  %v8513_v38 = vrot.slane %v7734_v32, %v8290_v9  ;;  %v8516_v39 = vrot.slane %v7734_v32, %v8293_v10  ;;  %12216 = vst [vmem:[#allocation19_spill] sm:$0xff] %v8554_v51 }
  0xc1   : > { %1081 = vmatprep.mubr.bf16.mxu0 %v12067_v0  ;;  %v8519_v40 = vrot.slane %v7734_v32, %v8296_v11  ;;  %v8525_v42 = vrot.slane %v462_v35, %v8287_v8  ;;  %v8543_v49 = vrot.slane %v462_v35, %v8293_v10  ;;  %v8546_v50 = vrot.slane %v462_v35, %v8296_v11  ;;  %v7839_v32 = vld [vmem:[%s8275_s12 + $0xc8] sm:$0xff]  }
  0xc2   : > { %7367 = vmatmul.mubr.msk.bf16.gmra.mxu1 %vm782_vm0, %v7830_v48  ;;  %v8522_v41 = vrot.slane %v492_v34, %v8287_v8  ;;  %v8528_v43 = vrot.slane %v492_v34, %v8290_v9  ;;  %v8531_v46 = vrot.slane %v492_v34, %v8293_v10  ;;  %v8534_v47 = vrot.slane %v492_v34, %v8296_v11 }
  0xc3   : > { %1434 = vmatprep.mubr.bf16.mxu1 %v12067_v0  ;;  %vm454_vm2 = vcmp.eq.s32.totalorder %v8284_v4, %v8510_v37  ;;  %v8540_v48 = vrot.slane %v462_v35, %v8290_v9  ;;  %12215 = vst [vmem:[#allocation18_spill] sm:$0xff] %v8546_v50  ;;  %vm455_vm3 = vcmp.eq.s32.totalorder %v8284_v4, %v8513_v38  ;;  %12217 = vst [vmem:[#allocation20_spill] sm:$0xff] %v8557_v52 }
  0xc4   : > { %vm456_vm4 = vcmp.eq.s32.totalorder %v8284_v4, %v8516_v39  ;;  %vm509_vm5 = vcmp.eq.s32.totalorder %v8284_v4, %v8522_v41  ;;  %12218 = vst [vmem:[#allocation21_spill] sm:$0xff] %v8563_v55  ;;  %12219 = vst [vmem:[#allocation22_spill] sm:$0xff] %v8566_v56  ;;  %vm457_vm6 = vcmp.eq.s32.totalorder %v8284_v4, %v8519_v40  ;;  %v484_v58 = vsel %vm454_vm2, %v8525_v42, 0.0 }
  0xc5   : > { %vm510_vm7 = vcmp.eq.s32.totalorder %v8284_v4, %v8528_v43  ;;  %vm511_vm8 = vcmp.eq.s32.totalorder %v8284_v4, %v8531_v46  ;;  %vm512_vm9 = vcmp.eq.s32.totalorder %v8284_v4, %v8534_v47  ;;  %v485_v59 = vsel %vm455_vm3, %v8540_v48, 0.0 }
  0xc6   : > { %v486_v60 = vsel %vm456_vm4, %v8543_v49, 0.0  ;;  %v538_v61 = vsel %vm509_vm5, %v8554_v51, 0.0  ;;  %v487_v3 = vsel %vm457_vm6, %v8546_v50, 0.0  ;;  %v539_v5 = vsel %vm510_vm7, %v8557_v52, 0.0 }
  0xc7   : > { %v540_v7 = vsel %vm511_vm8, %v8563_v55, 0.0  ;;  %v541_v12 = vsel %vm512_vm9, %v8566_v56, 0.0  ;;  %v8590_v13 = vadd.f32 %v538_v61, %v484_v58  ;;  %v7841_v55 = vld [vmem:[%s8275_s12 + $0xd8] sm:$0xff]   ;;  %vm458_vm10 = vcmp.eq.s32.totalorder %v8299_v14, %v8510_v37 }
  0xc8   : > { %7336 = vmatmul.mubr.msk.bf16.gmra.mxu0 %vm782_vm0, %v7831_v15  ;;  %v8595_v16 = vadd.f32 %v540_v7, %v486_v60  ;;  %v8597_v17 = vadd.f32 %v541_v12, %v487_v3  ;;  %v7840_v3 = vld [vmem:[%s8275_s12 + $0xd0] sm:$0xff]   ;;  %vm459_vm11 = vcmp.eq.s32.totalorder %v8299_v14, %v8513_v38  ;;  %vm460_vm12 = vcmp.eq.s32.totalorder %v8299_v14, %v8516_v39 }
  0xc9   : > { %1091 = vmatprep.mubr.bf16.mxu0 %v12067_v0  ;;  %vm461_vm13 = vcmp.eq.s32.totalorder %v8299_v14, %v8519_v40  ;;  %vm513_vm14 = vcmp.eq.s32.totalorder %v8299_v14, %v8522_v41  ;;  %vm514_vm15 = vcmp.eq.s32.totalorder %v8299_v14, %v8528_v43  ;;  %vm515_vm1 = vcmp.eq.s32.totalorder %v8299_v14, %v8531_v46 }
  0xca   : > { %7368 = vmatmul.mubr.msk.bf16.gmra.mxu1 %vm782_vm0, %v7831_v15  ;;  %v8593_v15 = vadd.f32 %v539_v5, %v485_v59  ;;  %v1595_v23 = vcombine.low %v8595_v16, %v8597_v17  ;;  %vm516_vm2 = vcmp.eq.s32.totalorder %v8299_v14, %v8534_v47 }
  0xcb   : > { %1444 = vmatprep.mubr.bf16.mxu1 %v12067_v0 }
  0xcc   : > { %v1617_v27 = vrot.slane %v1595_v23, %v8607_v24 }
  0xd0   : > { %7337 = vmatmul.mubr.msk.bf16.gmra.mxu0 %vm782_vm0, %v7832_v22 }
  0xd1   : > { %1101 = vmatprep.mubr.bf16.mxu0 %v12067_v0 }
  0xd2   : > { %7369 = vmatmul.mubr.msk.bf16.gmra.mxu1 %vm782_vm0, %v7832_v22  ;;  %v1593_v22 = vcombine.low %v8590_v13, %v8593_v15 }
  0xd3   : > { %1454 = vmatprep.mubr.bf16.mxu1 %v12067_v0 }
  0xd4   : > { %v1603_v26 = vrot.slane %v1593_v22, %v8607_v24 }
  0xd6   : > { %v1625_v4 = vcombine.low %v1603_v26, %v1617_v27  ;;  %v1626_v33 = vcombine.high %v1603_v26, %v1617_v27 }
  0xd8   : > { %7338 = vmatmul.mubr.msk.bf16.gmra.mxu0 %vm782_vm0, %v7833_v25  ;;  %v1635_v58 = vrot.slane %v1625_v4, %v8607_v24  ;;  %v8620_v59 = vrot.slane %v1626_v33, %v8607_v24 }
  0xd9   : > { %1111 = vmatprep.mubr.bf16.mxu0 %v12067_v0 }
  0xda   : > { %7370 = vmatmul.mubr.msk.bf16.gmra.mxu1 %vm782_vm0, %v7833_v25  ;;  %v8630_v5 = vrot.slane %v1635_v58, %v8287_v8  ;;  %v8634_v7 = vrot.slane %v8620_v59, %v8287_v8  ;;  %v8637_v12 = vrot.slane %v1635_v58, %v8293_v10  ;;  %v8644_v22 = vrot.slane %v1635_v58, %v8290_v9 }
  0xdb   : > { %1464 = vmatprep.mubr.bf16.mxu1 %v12067_v0  ;;  %v8648_v23 = vrot.slane %v8620_v59, %v8293_v10  ;;  %v8652_v26 = vrot.slane %v8620_v59, %v8290_v9  ;;  %v8655_v27 = vrot.slane %v1635_v58, %v8296_v11 }
  0xdc   : > { %12221 = vst [vmem:[#allocation24_spill] sm:$0xff] %v8644_v22 }
  0xdd   : > { %12222 = vst [vmem:[#allocation25_spill] sm:$0xff] %v8652_v26  ;;  %12223 = vst [vmem:[#allocation26_spill] sm:$0xff] %v8655_v27 }
  0xe0   : > { %7339 = vmatmul.mubr.msk.bf16.gmra.mxu0 %vm782_vm0, %v7834_v28 }
  0xe1   : > { %1121 = vmatprep.mubr.bf16.mxu0 %v12067_v0 }
  0xe2   : > { %7371 = vmatmul.mubr.msk.bf16.gmra.mxu1 %vm782_vm0, %v7834_v28 }
  0xe3   : > { %1474 = vmatprep.mubr.bf16.mxu1 %v12067_v0 }
  0xe8   : > { %7340 = vmatmul.mubr.msk.bf16.gmra.mxu0 %vm782_vm0, %v7835_v31 }
  0xe9   : > { %1131 = vmatprep.mubr.bf16.mxu0 %v12067_v0 }
  0xea   : > { %7372 = vmatmul.mubr.msk.bf16.gmra.mxu1 %vm782_vm0, %v7835_v31 }
  0xeb   : > { %1484 = vmatprep.mubr.bf16.mxu1 %v12067_v0 }
  0xf0   : > { %7341 = vmatmul.mubr.msk.bf16.gmra.mxu0 %vm782_vm0, %v7836_v36 }
  0xf1   : > { %1141 = vmatprep.mubr.bf16.mxu0 %v12067_v0 }
  0xf2   : > { %7373 = vmatmul.mubr.msk.bf16.gmra.mxu1 %vm782_vm0, %v7836_v36 }
  0xf3   : > { %1494 = vmatprep.mubr.bf16.mxu1 %v12067_v0 }
  0xf8   : > { %7342 = vmatmul.mubr.msk.bf16.gmra.mxu0 %vm782_vm0, %v7837_v57 }
  0xf9   : > { %1151 = vmatprep.mubr.bf16.mxu0 %v12067_v0 }
  0xfa   : > { %7374 = vmatmul.mubr.msk.bf16.gmra.mxu1 %vm782_vm0, %v7837_v57 }
  0xfb   : > { %1504 = vmatprep.mubr.bf16.mxu1 %v12067_v0 }
 0x100   : > { %v913_v25 = vpop.f32.mrf.mxu0  ;;  %7343 = vmatmul.mubr.msk.bf16.gmra.mxu0 %vm782_vm0, %v7838_v21 }
 0x101   : > { %1161 = vmatprep.mubr.bf16.mxu0 %v12067_v0  ;;  %v2049_v33 = vmul.f32 %v8630_v5, %v913_v25 }
 0x102   : > { %v1266_v28 = vpop.f32.mrf.mxu1  ;;  %7375 = vmatmul.mubr.msk.bf16.gmra.mxu1 %vm782_vm0, %v7838_v21  ;;  %v915_v29 = vpop.f32.mrf.mxu0 }
 0x103   : > { %1514 = vmatprep.mubr.bf16.mxu1 %v12067_v0  ;;  %v2051_v54 = vmul.f32 %v8637_v12, %v1266_v28  ;;  %v2050_v19 = vmul.f32 %v8644_v22, %v915_v29 }
 0x104   : > { %v1268_v30 = vpop.f32.mrf.mxu1  ;;  %v917_v31 = vpop.f32.mrf.mxu0 }
 0x105   : > { %v2052_v2 = vmul.f32 %v8655_v27, %v1268_v30  ;;  %v2053_v44 = vmul.f32 %v8630_v5, %v917_v31 }
 0x106   : > { %v1270_v34 = vpop.f32.mrf.mxu1  ;;  %v919_v35 = vpop.f32.mrf.mxu0 }
 0x108   : > { %v1272_v36 = vpop.f32.mrf.mxu1  ;;  %v923_v57 = vpop.f32.mrf.mxu0  ;;  %7344 = vmatmul.mubr.msk.bf16.gmra.mxu0 %vm782_vm0, %v7839_v32 }
 0x109   : > { %1171 = vmatprep.mubr.bf16.mxu0 %v12067_v0 }
 0x10a   : > { %v1276_v60 = vpop.f32.mrf.mxu1  ;;  %7376 = vmatmul.mubr.msk.bf16.gmra.mxu1 %vm782_vm0, %v7839_v32  ;;  %v925_v61 = vpop.f32.mrf.mxu0 }
 0x10b   : > { %1524 = vmatprep.mubr.bf16.mxu1 %v12067_v0  ;;  %v8664_v0 = vrot.slane %v8620_v59, %v8296_v11 }
 0x10c   : > { %v8624_v62 = vpop.f32.mrf.mxu1  ;;  %v8626_v63 = vpop.f32.mrf.mxu0 }
 0x10d   : > { %12224 = vst [vmem:[#allocation27_spill] sm:$0xff] %v8664_v0 }
 0x10e   : > { %v8639_v18 = vpop.f32.mrf.mxu1  ;;  %v8641_v21 = vpop.f32.mrf.mxu0 }
 0x110   : > { %v8657_v32 = vpop.f32.mrf.mxu1  ;;  %v933_v4 = vpop.f32.mrf.mxu0  ;;  %7345 = vmatmul.mubr.msk.bf16.gmra.mxu0 %vm782_vm0, %v7840_v3 }
 0x111   : > { %v2065_v1 = vmul.f32 %v8634_v7, %v933_v4  ;;  %1181 = vmatprep.mubr.bf16.mxu0 %v12225_v20 }
 0x112   : > { %v1286_v6 = vpop.f32.mrf.mxu1  ;;  %7377 = vmatmul.mubr.msk.bf16.gmra.mxu1 %vm782_vm0, %v7840_v3  ;;  %v935_v45 = vpop.f32.mrf.mxu0 }
 0x113   : > { %v8670_v53 = vadd.f32 %v2065_v1, %v2049_v33  ;;  %v2067_v25 = vmul.f32 %v8648_v23, %v1286_v6  ;;  %v2066_v4 = vmul.f32 %v8652_v26, %v935_v45  ;;  %1534 = vmatprep.mubr.bf16.mxu1 %v12225_v20  ;;  %v2055_v6 = vmul.f32 %v8637_v12, %v1270_v34 }
 0x114   : > { %v1288_v56 = vpop.f32.mrf.mxu1  ;;  %v937_v28 = vpop.f32.mrf.mxu0  ;;  %v2054_v45 = vmul.f32 %v8644_v22, %v919_v35  ;;  %v1657_v34 = vcombine.high %v1635_v58, %v1635_v58 }
 0x115   : > { %v8678_v52 = vadd.f32 %v2067_v25, %v2051_v54  ;;  %v8680_v3 = vadd.f32 %v2066_v4, %v2050_v19  ;;  %v2068_v1 = vmul.f32 %v8664_v0, %v1288_v56  ;;  %v2069_v29 = vmul.f32 %v8634_v7, %v937_v28 }
 0x116   : > { %v1290_v33 = vpop.f32.mrf.mxu1  ;;  %v939_v51 = vpop.f32.mrf.mxu0  ;;  %v2056_v19 = vmul.f32 %v8655_v27, %v1272_v36  ;;  %v2057_v56 = vmul.f32 %v8630_v5, %v923_v57  ;;  %v2058_v36 = vmul.f32 %v8644_v22, %v925_v61 }
 0x117   : > { %v8686_v30 = vadd.f32 %v2068_v1, %v2052_v2  ;;  %v8688_v31 = vadd.f32 %v2069_v29, %v2053_v44  ;;  %v2071_v50 = vmul.f32 %v8648_v23, %v1290_v33  ;;  %v2070_v54 = vmul.f32 %v8652_v26, %v939_v51 }
 0x118   : > { %v1292_v25 = vpop.f32.mrf.mxu1  ;;  %v943_v4 = vpop.f32.mrf.mxu0  ;;  %7346 = vmatmul.mubr.msk.bf16.gmra.mxu0 %vm782_vm0, %v7841_v55  ;;  %v2059_v51 = vmul.f32 %v8637_v12, %v1276_v60  ;;  %v2061_v60 = vmul.f32 %v8630_v5, %v8626_v63  ;;  %v2062_v63 = vmul.f32 %v8644_v22, %v8641_v21 }
 0x119   : > { %v8695_v35 = vadd.f32 %v2071_v50, %v2055_v6  ;;  %v8697_v28 = vadd.f32 %v2070_v54, %v2054_v45  ;;  %v2072_v44 = vmul.f32 %v8664_v0, %v1292_v25  ;;  %v2073_v2 = vmul.f32 %v8634_v7, %v943_v4  ;;  %1191 = vmatprep.mubr.bf16.mxu0 %v12225_v20  ;;  %v7842_v54 = vld [vmem:[%s8275_s12 + $0xe0] sm:$0xff]  }
 0x11a   : > { %v1296_v57 = vpop.f32.mrf.mxu1  ;;  %7378 = vmatmul.mubr.msk.bf16.gmra.mxu1 %vm782_vm0, %v7841_v55  ;;  %v945_v1 = vpop.f32.mrf.mxu0  ;;  %v2060_v45 = vmul.f32 %v8655_v27, %v8624_v62  ;;  %v8717_v55 = vrot.slane %v1657_v34, %v8287_v8  ;;  %v2063_v62 = vmul.f32 %v8637_v12, %v8639_v18  ;;  %v2064_v18 = vmul.f32 %v8655_v27, %v8657_v32 }
 0x11b   : > { %v8705_v58 = vadd.f32 %v2072_v44, %v2056_v19  ;;  %v8707_v50 = vadd.f32 %v2073_v2, %v2057_v56  ;;  %v2075_v29 = vmul.f32 %v8648_v23, %v1296_v57  ;;  %v2074_v6 = vmul.f32 %v8652_v26, %v945_v1  ;;  %1544 = vmatprep.mubr.bf16.mxu1 %v12225_v20 }
 0x11c   : > { %v1298_v61 = vpop.f32.mrf.mxu1  ;;  %v947_v33 = vpop.f32.mrf.mxu0  ;;  %12226 = vst [vmem:[#allocation28_spill] sm:$0xff] %v8717_v55  ;;  %v8731_v57 = vrot.slane %v1657_v34, %v8293_v10 }
 0x11d   : > { %v8720_v19 = vadd.f32 %v2075_v29, %v2059_v51  ;;  %v8722_v56 = vadd.f32 %v2074_v6, %v2058_v36  ;;  %v2076_v25 = vmul.f32 %v8664_v0, %v1298_v61  ;;  %v2077_v4 = vmul.f32 %v8634_v7, %v947_v33 }
 0x11e   : > { %v1300_v44 = vpop.f32.mrf.mxu1  ;;  %v949_v2 = vpop.f32.mrf.mxu0  ;;  %12227 = vst [vmem:[#allocation29_spill] sm:$0xff] %v8731_v57  ;;  %v8734_v51 = vrot.slane %v1657_v34, %v8290_v9  ;;  %v8746_v33 = vrot.slane %v1657_v34, %v8296_v11 }
 0x11f   : > { %v8736_v36 = vadd.f32 %v2076_v25, %v2060_v45  ;;  %v8738_v1 = vadd.f32 %v2077_v4, %v2061_v60  ;;  %v2079_v29 = vmul.f32 %v8648_v23, %v1300_v44  ;;  %v2078_v6 = vmul.f32 %v8652_v26, %v949_v2 }
 0x120   : > { %12228 = vst [vmem:[#allocation30_spill] sm:$0xff] %v8734_v51  ;;  %v1302_v21 = vpop.f32.mrf.mxu1  ;;  %v953_v61 = vpop.f32.mrf.mxu0  ;;  %7347 = vmatmul.mubr.msk.bf16.gmra.mxu0 %vm782_vm0, %v7842_v54  ;;  %12229 = vst [vmem:[#allocation31_spill] sm:$0xff] %v8746_v33 }
 0x121   : > { %v8748_v22 = vadd.f32 %v2079_v29, %v2063_v62  ;;  %v8750_v45 = vadd.f32 %v2078_v6, %v2062_v63  ;;  %v2080_v60 = vmul.f32 %v8664_v0, %v1302_v21  ;;  %v2081_v25 = vmul.f32 %v8717_v55, %v953_v61  ;;  %1201 = vmatprep.mubr.bf16.mxu0 %v12225_v20  ;;  %v7843_v6 = vld [vmem:[%s8275_s12 + $0xe8] sm:$0xff]  }
 0x122   : > { %v1306_v4 = vpop.f32.mrf.mxu1  ;;  %7379 = vmatmul.mubr.msk.bf16.gmra.mxu1 %vm782_vm0, %v7842_v54  ;;  %v955_v32 = vpop.f32.mrf.mxu0 }
 0x123   : > { %v8756_v44 = vadd.f32 %v2080_v60, %v2064_v18  ;;  %v8759_v34 = vadd.f32 %v8670_v53, %v2081_v25  ;;  %v2083_v62 = vmul.f32 %v8731_v57, %v1306_v4  ;;  %v2082_v63 = vmul.f32 %v8734_v51, %v955_v32  ;;  %1554 = vmatprep.mubr.bf16.mxu1 %v12225_v20 }
 0x124   : > { %v1308_v2 = vpop.f32.mrf.mxu1  ;;  %v957_v29 = vpop.f32.mrf.mxu0 }
 0x125   : > { %v8766_v21 = vadd.f32 %v8678_v52, %v2083_v62  ;;  %v8769_v54 = vadd.f32 %v8680_v3, %v2082_v63  ;;  %v2084_v18 = vmul.f32 %v8746_v33, %v1308_v2  ;;  %v2085_v53 = vmul.f32 %v8717_v55, %v957_v29 }
 0x126   : > { %v1310_v61 = vpop.f32.mrf.mxu1  ;;  %v959_v60 = vpop.f32.mrf.mxu0  ;;  %v1659_v3 = vcombine.high %v8620_v59, %v8620_v59 }
 0x127   : > { %v8774_v25 = vadd.f32 %v8686_v30, %v2084_v18  ;;  %v8777_v4 = vadd.f32 %v8688_v31, %v2085_v53  ;;  %v2087_v32 = vmul.f32 %v8731_v57, %v1310_v61  ;;  %v2086_v52 = vmul.f32 %v8734_v51, %v959_v60 }
 0x128   : > { %v1312_v62 = vpop.f32.mrf.mxu1  ;;  %v963_v0 = vpop.f32.mrf.mxu0  ;;  %7348 = vmatmul.mubr.msk.bf16.gmra.mxu0 %vm782_vm0, %v7843_v6  ;;  %v8804_v60 = vrot.slane %v1659_v3, %v8287_v8  ;;  %v8823_v27 = vrot.slane %v1659_v3, %v8290_v9 }
 0x129   : > { %v8785_v63 = vadd.f32 %v8695_v35, %v2087_v32  ;;  %v8788_v30 = vadd.f32 %v8697_v28, %v2086_v52  ;;  %v2088_v31 = vmul.f32 %v8746_v33, %v1312_v62  ;;  %v2089_v2 = vmul.f32 %v8717_v55, %v963_v0  ;;  %1211 = vmatprep.mubr.bf16.mxu0 %v12225_v20  ;;  %v7844_v32 = vld [vmem:[%s8275_s12 + $0xf0] sm:$0xff]  }
 0x12a   : > { %v1316_v29 = vpop.f32.mrf.mxu1  ;;  %7380 = vmatmul.mubr.msk.bf16.gmra.mxu1 %vm782_vm0, %v7843_v6  ;;  %v965_v18 = vpop.f32.mrf.mxu0  ;;  %12230 = vst [vmem:[#allocation32_spill] sm:$0xff] %v8804_v60  ;;  %v1594_v6 = vcombine.high %v8590_v13, %v8593_v15  ;;  %12231 = vst [vmem:[#allocation33_spill] sm:$0xff] %v8823_v27 }
 0x12b   : > { %v8795_v53 = vadd.f32 %v8705_v58, %v2088_v31  ;;  %v8798_v59 = vadd.f32 %v8707_v50, %v2089_v2  ;;  %v2091_v35 = vmul.f32 %v8731_v57, %v1316_v29  ;;  %v2090_v28 = vmul.f32 %v8734_v51, %v965_v18  ;;  %1564 = vmatprep.mubr.bf16.mxu1 %v12225_v20 }
 0x12c   : > { %v1318_v61 = vpop.f32.mrf.mxu1  ;;  %v967_v0 = vpop.f32.mrf.mxu0  ;;  %v1596_v58 = vcombine.high %v8595_v16, %v8597_v17  ;;  %v8820_v18 = vrot.slane %v1659_v3, %v8293_v10 }
 0x12d   : > { %v8812_v50 = vadd.f32 %v8720_v19, %v2091_v35  ;;  %v8815_v52 = vadd.f32 %v8722_v56, %v2090_v28  ;;  %v2092_v62 = vmul.f32 %v8746_v33, %v1318_v61  ;;  %v2093_v31 = vmul.f32 %v8717_v55, %v967_v0 }
 0x12e   : > { %v1320_v2 = vpop.f32.mrf.mxu1  ;;  %v969_v29 = vpop.f32.mrf.mxu0  ;;  %v8835_v0 = vrot.slane %v1659_v3, %v8296_v11  ;;  %v8838_v55 = vrot.slane %v1594_v6, %v8607_v24 }
 0x12f   : > { %v8826_v26 = vadd.f32 %v8736_v36, %v2092_v62  ;;  %v8829_v19 = vadd.f32 %v8738_v1, %v2093_v31  ;;  %v2095_v56 = vmul.f32 %v8731_v57, %v1320_v2  ;;  %v2094_v35 = vmul.f32 %v8734_v51, %v969_v29 }
 0x130   : > { %v1322_v28 = vpop.f32.mrf.mxu1  ;;  %v973_v61 = vpop.f32.mrf.mxu0  ;;  %7349 = vmatmul.mubr.msk.bf16.gmra.mxu0 %vm782_vm0, %v7844_v32  ;;  %12232 = vst [vmem:[#allocation34_spill] sm:$0xff] %v8835_v0  ;;  %v8841_v36 = vrot.slane %v1596_v58, %v8607_v24 }
 0x131   : > { %v8844_v1 = vadd.f32 %v8748_v22, %v2095_v56  ;;  %v8847_v62 = vadd.f32 %v8750_v45, %v2094_v35  ;;  %v2096_v31 = vmul.f32 %v8746_v33, %v1322_v28  ;;  %v2097_v2 = vmul.f32 %v8804_v60, %v973_v61  ;;  %1221 = vmatprep.mubr.bf16.mxu0 %v12225_v20  ;;  %v7845_v28 = vld [vmem:[%s8275_s12 + $0xf8] sm:$0xff]  }
 0x132   : > { %v1326_v3 = vpop.f32.mrf.mxu1  ;;  %7381 = vmatmul.mubr.msk.bf16.gmra.mxu1 %vm782_vm0, %v7844_v32  ;;  %v975_v6 = vpop.f32.mrf.mxu0  ;;  %v1627_v61 = vcombine.low %v8838_v55, %v8841_v36 }
 0x133   : > { %v8854_v58 = vadd.f32 %v8756_v44, %v2096_v31  ;;  %v8857_v29 = vadd.f32 %v8759_v34, %v2097_v2  ;;  %v2099_v22 = vmul.f32 %v8820_v18, %v1326_v3  ;;  %v2098_v45 = vmul.f32 %v8823_v27, %v975_v6  ;;  %1574 = vmatprep.mubr.bf16.mxu1 %v12225_v20 }
 0x134   : > { %v1328_v56 = vpop.f32.mrf.mxu1  ;;  %v977_v35 = vpop.f32.mrf.mxu0 }
 0x135   : > { %v8866_v32 = vadd.f32 %v8766_v21, %v2099_v22  ;;  %v8869_v44 = vadd.f32 %v8769_v54, %v2098_v45  ;;  %v2100_v34 = vmul.f32 %v8835_v0, %v1328_v56  ;;  %v2101_v31 = vmul.f32 %v8804_v60, %v977_v35 }
 0x136   : > { %v1330_v2 = vpop.f32.mrf.mxu1  ;;  %v979_v3 = vpop.f32.mrf.mxu0  ;;  %v8883_v54 = vrot.slane %v1627_v61, %v8607_v24 }
 0x137   : > { %v8874_v6 = vadd.f32 %v8774_v25, %v2100_v34  ;;  %v8877_v33 = vadd.f32 %v8777_v4, %v2101_v31  ;;  %v2103_v51 = vmul.f32 %v8820_v18, %v1330_v2  ;;  %v2102_v21 = vmul.f32 %v8823_v27, %v979_v3 }
 0x138   : > { %v1332_v22 = vpop.f32.mrf.mxu1  ;;  %v983_v57 = vpop.f32.mrf.mxu0  ;;  %7350 = vmatmul.mubr.msk.bf16.gmra.mxu0 %vm782_vm0, %v7845_v28  ;;  %v8906_v2 = vrot.slane %v8883_v54, %v8287_v8 }
 0x139   : > { %v8886_v45 = vadd.f32 %v8785_v63, %v2103_v51  ;;  %v8889_v25 = vadd.f32 %v8788_v30, %v2102_v21  ;;  %v2104_v4 = vmul.f32 %v8835_v0, %v1332_v22  ;;  %v2105_v56 = vmul.f32 %v8804_v60, %v983_v57  ;;  %3040 = vmatprep.mubr.bf16.mxu0 %v12225_v20 }
 0x13a   : > { %v1336_v35 = vpop.f32.mrf.mxu1  ;;  %7382 = vmatmul.mubr.msk.bf16.gmra.mxu1 %vm782_vm0, %v7845_v28  ;;  %v985_v34 = vpop.f32.mrf.mxu0  ;;  %12233 = vst [vmem:[#allocation35_spill] sm:$0xff] %v8906_v2  ;;  %v7846_v28 = vld [vmem:[%s8275_s12 + $0x100] sm:$0xff]  }
 0x13b   : > { %v8896_v61 = vadd.f32 %v8795_v53, %v2104_v4  ;;  %v8899_v51 = vadd.f32 %v8798_v59, %v2105_v56  ;;  %v2107_v63 = vmul.f32 %v8820_v18, %v1336_v35  ;;  %v2106_v30 = vmul.f32 %v8823_v27, %v985_v34  ;;  %3393 = vmatprep.mubr.bf16.mxu1 %v12225_v20 }
 0x13c   : > { %v1338_v31 = vpop.f32.mrf.mxu1  ;;  %v987_v57 = vpop.f32.mrf.mxu0  ;;  %v8919_v56 = vrot.slane %v8883_v54, %v8293_v10  ;;  %v8923_v35 = vrot.slane %v8883_v54, %v8290_v9 }
 0x13d   : > { %v8910_v3 = vadd.f32 %v8812_v50, %v2107_v63  ;;  %v8913_v53 = vadd.f32 %v8815_v52, %v2106_v30  ;;  %v2108_v59 = vmul.f32 %v8835_v0, %v1338_v31  ;;  %v2109_v21 = vmul.f32 %v8804_v60, %v987_v57 }
 0x13e   : > { %v1340_v22 = vpop.f32.mrf.mxu1  ;;  %v989_v4 = vpop.f32.mrf.mxu0  ;;  %12234 = vst [vmem:[#allocation36_spill] sm:$0xff] %v8919_v56  ;;  %12235 = vst [vmem:[#allocation37_spill] sm:$0xff] %v8923_v35  ;;  %v8936_v57 = vrot.slane %v8883_v54, %v8296_v11 }
 0x13f   : > { %v8926_v50 = vadd.f32 %v8826_v26, %v2108_v59  ;;  %v8929_v52 = vadd.f32 %v8829_v19, %v2109_v21  ;;  %v2111_v34 = vmul.f32 %v8820_v18, %v1340_v22  ;;  %v2110_v63 = vmul.f32 %v8823_v27, %v989_v4 }
 0x140   : > { %v1342_v30 = vpop.f32.mrf.mxu1  ;;  %v993_v31 = vpop.f32.mrf.mxu0  ;;  %7480 = vmatmul.mubr.msk.bf16.vlgmr.msra.gmra.mxu0 %vm782_vm0, %v7846_v28  ;;  %12236 = vst [vmem:[#allocation38_spill] sm:$0xff] %v8936_v57 }
 0x141   : > { %v8939_v60 = vadd.f32 %v8844_v1, %v2111_v34  ;;  %v8942_v26 = vadd.f32 %v8847_v62, %v2110_v63  ;;  %v2112_v19 = vmul.f32 %v8835_v0, %v1342_v30  ;;  %v2113_v59 = vmul.f32 %v8906_v2, %v993_v31  ;;  %3050 = vmatprep.mubr.bf16.mxu0 %v12225_v20  ;;  %v7847_v30 = vld [vmem:[%s8275_s12 + $0x108] sm:$0xff]  }
 0x142   : > { %v1346_v21 = vpop.f32.mrf.mxu1  ;;  %7512 = vmatmul.mubr.msk.bf16.vlgmr.msra.gmra.mxu1 %vm782_vm0, %v7846_v28  ;;  %v995_v22 = vpop.f32.mrf.mxu0  ;;  %v1628_v31 = vcombine.high %v8838_v55, %v8841_v36 }
 0x143   : > { %v8949_v4 = vadd.f32 %v8854_v58, %v2112_v19  ;;  %v8952_v27 = vadd.f32 %v8857_v29, %v2113_v59  ;;  %v2115_v1 = vmul.f32 %v8919_v56, %v1346_v21  ;;  %v2114_v62 = vmul.f32 %v8923_v35, %v995_v22  ;;  %3403 = vmatprep.mubr.bf16.mxu1 %v12225_v20 }
 0x144   : > { %v1348_v34 = vpop.f32.mrf.mxu1  ;;  %v997_v63 = vpop.f32.mrf.mxu0 }
 0x145   : > { %v8961_v28 = vadd.f32 %v8866_v32, %v2115_v1  ;;  %v8964_v58 = vadd.f32 %v8869_v44, %v2114_v62  ;;  %v2116_v29 = vmul.f32 %v8936_v57, %v1348_v34  ;;  %v2117_v19 = vmul.f32 %v8906_v2, %v997_v63 }
 0x146   : > { %v1350_v59 = vpop.f32.mrf.mxu1  ;;  %v999_v21 = vpop.f32.mrf.mxu0  ;;  %v8978_v44 = vrot.slane %v1628_v31, %v8607_v24 }
 0x147   : > { %v8969_v22 = vadd.f32 %v8874_v6, %v2116_v29  ;;  %v8972_v0 = vadd.f32 %v8877_v33, %v2117_v19  ;;  %v2119_v55 = vmul.f32 %v8919_v56, %v1350_v59  ;;  %v2118_v36 = vmul.f32 %v8923_v35, %v999_v21 }
 0x148   : > { %v1352_v32 = vpop.f32.mrf.mxu1  ;;  %v1003_v1 = vpop.f32.mrf.mxu0  ;;  %7481 = vmatmul.mubr.msk.bf16.gmra.mxu0 %vm782_vm0, %v7847_v30  ;;  %v1660_v46 = vcombine.high %v8978_v44, %v8978_v44 }
 0x149   : > { %v8981_v62 = vadd.f32 %v8886_v45, %v2119_v55  ;;  %v8984_v6 = vadd.f32 %v8889_v25, %v2118_v36  ;;  %v2120_v33 = vmul.f32 %v8936_v57, %v1352_v32  ;;  %v2121_v34 = vmul.f32 %v8906_v2, %v1003_v1  ;;  %3060 = vmatprep.mubr.bf16.mxu0 %v12225_v20 }
 0x14a   : > { %v1356_v63 = vpop.f32.mrf.mxu1  ;;  %7513 = vmatmul.mubr.msk.bf16.gmra.mxu1 %vm782_vm0, %v7847_v30  ;;  %v1005_v29 = vpop.f32.mrf.mxu0  ;;  %v9001_v55 = vrot.slane %v8978_v44, %v8287_v8  ;;  %v7848_v30 = vld [vmem:[%s8275_s12 + $0x110] sm:$0xff]  }
 0x14b   : > { %v8991_v31 = vadd.f32 %v8896_v61, %v2120_v33  ;;  %v8994_v45 = vadd.f32 %v8899_v51, %v2121_v34  ;;  %v2123_v19 = vmul.f32 %v8919_v56, %v1356_v63  ;;  %v2122_v25 = vmul.f32 %v8923_v35, %v1005_v29  ;;  %3413 = vmatprep.mubr.bf16.mxu1 %v12225_v20 }
 0x14c   : > { %v1358_v59 = vpop.f32.mrf.mxu1  ;;  %v1007_v21 = vpop.f32.mrf.mxu0  ;;  %v9014_v34 = vrot.slane %v8978_v44, %v8293_v10  ;;  %v9018_v63 = vrot.slane %v8978_v44, %v8290_v9 }
 0x14d   : > { %v9005_v36 = vadd.f32 %v8910_v3, %v2123_v19  ;;  %v9008_v61 = vadd.f32 %v8913_v53, %v2122_v25  ;;  %v2124_v51 = vmul.f32 %v8936_v57, %v1358_v59  ;;  %v2125_v32 = vmul.f32 %v8906_v2, %v1007_v21 }
 0x14e   : > { %v1360_v1 = vpop.f32.mrf.mxu1  ;;  %v1009_v33 = vpop.f32.mrf.mxu0  ;;  %v9031_v21 = vrot.slane %v8978_v44, %v8296_v11 }
 0x14f   : > { %v9021_v3 = vadd.f32 %v8926_v50, %v2124_v51  ;;  %v9024_v53 = vadd.f32 %v8929_v52, %v2125_v32  ;;  %v2127_v29 = vmul.f32 %v8919_v56, %v1360_v1  ;;  %v2126_v19 = vmul.f32 %v8923_v35, %v1009_v33 }
 0x150   : > { %v1362_v25 = vpop.f32.mrf.mxu1  ;;  %v1013_v59 = vpop.f32.mrf.mxu0  ;;  %7482 = vmatmul.mubr.msk.bf16.gmra.mxu0 %vm782_vm0, %v7848_v30 }
 0x151   : > { %v9034_v2 = vadd.f32 %v8939_v60, %v2127_v29  ;;  %v9037_v50 = vadd.f32 %v8942_v26, %v2126_v19  ;;  %v2128_v52 = vmul.f32 %v8936_v57, %v1362_v25  ;;  %v2129_v51 = vmul.f32 %v9001_v55, %v1013_v59  ;;  %3070 = vmatprep.mubr.bf16.mxu0 %v12225_v20  ;;  %v7849_v25 = vld [vmem:[%s8275_s12 + $0x118] sm:$0xff]  }
 0x152   : > { %v1366_v32 = vpop.f32.mrf.mxu1  ;;  %7514 = vmatmul.mubr.msk.bf16.gmra.mxu1 %vm782_vm0, %v7848_v30  ;;  %v1015_v1 = vpop.f32.mrf.mxu0 }
 0x153   : > { %v9044_v33 = vadd.f32 %v8949_v4, %v2128_v52  ;;  %v9047_v35 = vadd.f32 %v8952_v27, %v2129_v51  ;;  %v2131_v60 = vmul.f32 %v9014_v34, %v1366_v32  ;;  %v2130_v26 = vmul.f32 %v9018_v63, %v1015_v1  ;;  %3423 = vmatprep.mubr.bf16.mxu1 %v12225_v20 }
 0x154   : > { %v1368_v29 = vpop.f32.mrf.mxu1  ;;  %v1017_v19 = vpop.f32.mrf.mxu0 }
 0x155   : > { %v9054_v59 = vadd.f32 %v8961_v28, %v2131_v60  ;;  %v9057_v30 = vadd.f32 %v8964_v58, %v2130_v26  ;;  %v2132_v4 = vmul.f32 %v9031_v21, %v1368_v29  ;;  %v2133_v27 = vmul.f32 %v9001_v55, %v1017_v19 }
 0x156   : > { %v1370_v52 = vpop.f32.mrf.mxu1  ;;  %v1019_v51 = vpop.f32.mrf.mxu0  ;;  %v1658_v58 = vcombine.high %v8883_v54, %v8883_v54 }
 0x157   : > { %v9062_v32 = vadd.f32 %v8969_v22, %v2132_v4  ;;  %v9065_v1 = vadd.f32 %v8972_v0, %v2133_v27  ;;  %v2135_v57 = vmul.f32 %v9014_v34, %v1370_v52  ;;  %v2134_v28 = vmul.f32 %v9018_v63, %v1019_v51  ;;  %v7850_v51 = vld [vmem:[%s8275_s12 + $0x120] sm:$0xff]  }
 0x158   : > { %v1372_v60 = vpop.f32.mrf.mxu1  ;;  %v1023_v56 = vpop.f32.mrf.mxu0  ;;  %7483 = vmatmul.mubr.msk.bf16.gmra.mxu0 %vm782_vm0, %v7849_v25  ;;  %v9092_v52 = vrot.slane %v1658_v58, %v8287_v8 }
 0x159   : > { %v9073_v26 = vadd.f32 %v8981_v62, %v2135_v57  ;;  %v9076_v22 = vadd.f32 %v8984_v6, %v2134_v28  ;;  %v2136_v0 = vmul.f32 %v9031_v21, %v1372_v60  ;;  %v2137_v29 = vmul.f32 %v9001_v55, %v1023_v56  ;;  %3080 = vmatprep.mubr.bf16.mxu0 %v12225_v20 }
 0x15a   : > { %v1376_v19 = vpop.f32.mrf.mxu1  ;;  %7515 = vmatmul.mubr.msk.bf16.gmra.mxu1 %vm782_vm0, %v7849_v25  ;;  %v1025_v4 = vpop.f32.mrf.mxu0  ;;  %v9095_v25 = vrot.slane %v1658_v58, %v8293_v10 }
 0x15b   : > { %v9083_v27 = vadd.f32 %v8991_v31, %v2136_v0  ;;  %v9086_v54 = vadd.f32 %v8994_v45, %v2137_v29  ;;  %v2139_v57 = vmul.f32 %v9014_v34, %v1376_v19  ;;  %v2138_v62 = vmul.f32 %v9018_v63, %v1025_v4  ;;  %3433 = vmatprep.mubr.bf16.mxu1 %v12225_v20 }
 0x15c   : > { %v1378_v6 = vpop.f32.mrf.mxu1  ;;  %v1027_v56 = vpop.f32.mrf.mxu0  ;;  %v9099_v31 = vrot.slane %v1658_v58, %v8290_v9  ;;  %v9102_v45 = vrot.slane %v1658_v58, %v8296_v11 }
 0x15d   : > { %v9105_v28 = vadd.f32 %v9005_v36, %v2139_v57  ;;  %v9108_v60 = vadd.f32 %v9008_v61, %v2138_v62  ;;  %v2140_v0 = vmul.f32 %v9031_v21, %v1378_v6  ;;  %v2141_v29 = vmul.f32 %v9001_v55, %v1027_v56 }
 0x15e   : > { %12237 = vst [vmem:[#allocation39_spill] sm:$0xff] %v9099_v31  ;;  %12238 = vst [vmem:[#allocation40_spill] sm:$0xff] %v9102_v45  ;;  %v1380_v19 = vpop.f32.mrf.mxu1  ;;  %v1029_v4 = vpop.f32.mrf.mxu0 }
 0x15f   : > { %v9121_v36 = vadd.f32 %v9021_v3, %v2140_v0  ;;  %v9124_v61 = vadd.f32 %v9024_v53, %v2141_v29  ;;  %v2143_v58 = vmul.f32 %v9014_v34, %v1380_v19  ;;  %v2142_v57 = vmul.f32 %v9018_v63, %v1029_v4 }
 0x160   : > { %v1382_v62 = vpop.f32.mrf.mxu1  ;;  %v1033_v6 = vpop.f32.mrf.mxu0  ;;  %7484 = vmatmul.mubr.msk.bf16.gmra.mxu0 %vm782_vm0, %v7850_v51  ;;  %v490_v4 = vsel %vm460_vm12, %v8543_v49, 0.0  ;;  %v7851_v49 = vld [vmem:[%s8275_s12 + $0x128] sm:$0xff]  }
 0x161   : > { %v9138_v3 = vadd.f32 %v9034_v2, %v2143_v58  ;;  %v9141_v53 = vadd.f32 %v9037_v50, %v2142_v57  ;;  %v2144_v56 = vmul.f32 %v9031_v21, %v1382_v62  ;;  %v2145_v0 = vmul.f32 %v9092_v52, %v1033_v6  ;;  %3090 = vmatprep.mubr.bf16.mxu0 %v12225_v20  ;;  %v12239_v58 = vld [vmem:[#allocation18_spill] sm:$0xff]  ;;  %v12240_v62 = vld [vmem:[#allocation19_spill] sm:$0xff]  ;;  %v12241_v6 = vld [vmem:[#allocation20_spill] sm:$0xff] }
 0x162   : > { %v1386_v29 = vpop.f32.mrf.mxu1  ;;  %7516 = vmatmul.mubr.msk.bf16.gmra.mxu1 %vm782_vm0, %v7850_v51  ;;  %v1035_v19 = vpop.f32.mrf.mxu0  ;;  %v488_v2 = vsel %vm458_vm10, %v8525_v42, 0.0  ;;  %v489_v50 = vsel %vm459_vm11, %v8540_v48, 0.0  ;;  %v491_v51 = vsel %vm461_vm13, %v12239_v58, 0.0  ;;  %v542_v40 = vsel %vm513_vm14, %v12240_v62, 0.0 }
 0x163   : > { %v9164_v57 = vadd.f32 %v9044_v33, %v2144_v56  ;;  %v9167_v37 = vadd.f32 %v9047_v35, %v2145_v0  ;;  %v2147_v42 = vmul.f32 %v9095_v25, %v1386_v29  ;;  %v2146_v38 = vmul.f32 %v9099_v31, %v1035_v19  ;;  %3443 = vmatprep.mubr.bf16.mxu1 %v12225_v20  ;;  %v12242_v33 = vld [vmem:[#allocation21_spill] sm:$0xff]  ;;  %v12243_v0 = vld [vmem:[#allocation22_spill] sm:$0xff] }
 0x164   : > { %v1388_v48 = vpop.f32.mrf.mxu1  ;;  %v1037_v39 = vpop.f32.mrf.mxu0  ;;  %v543_v35 = vsel %vm514_vm15, %v12241_v6, 0.0  ;;  %v544_v56 = vsel %vm515_vm1, %v12242_v33, 0.0  ;;  %v545_v29 = vsel %vm516_vm2, %v12243_v0, 0.0 }
 0x165   : > { %v9190_v19 = vadd.f32 %v9054_v59, %v2147_v42  ;;  %v9193_v41 = vadd.f32 %v9057_v30, %v2146_v38  ;;  %v2148_v58 = vmul.f32 %v9102_v45, %v1388_v48  ;;  %v2149_v43 = vmul.f32 %v9092_v52, %v1037_v39 }
 0x166   : > { %v1390_v62 = vpop.f32.mrf.mxu1  ;;  %v1039_v6 = vpop.f32.mrf.mxu0  ;;  %v9208_v38 = vadd.f32 %v542_v40, %v488_v2  ;;  %v9210_v48 = vadd.f32 %v543_v35, %v489_v50  ;;  %v9212_v39 = vadd.f32 %v544_v56, %v490_v4  ;;  %v9214_v44 = vadd.f32 %v545_v29, %v491_v51  ;;  %v7852_v29 = vld [vmem:[%s8275_s12 + $0x130] sm:$0xff]  }
 0x167   : > { %v9200_v33 = vadd.f32 %v9062_v32, %v2148_v58  ;;  %v9203_v14 = vadd.f32 %v9065_v1, %v2149_v43  ;;  %v2151_v47 = vmul.f32 %v9095_v25, %v1390_v62  ;;  %v2150_v59 = vmul.f32 %v9099_v31, %v1039_v6 }
 0x168   : > { %v1392_v30 = vpop.f32.mrf.mxu1  ;;  %v1043_v42 = vpop.f32.mrf.mxu0  ;;  %7485 = vmatmul.mubr.msk.bf16.gmra.mxu0 %vm782_vm0, %v7851_v49  ;;  %v9236_v56 = vrot.slane %v1660_v46, %v8287_v8 }
 0x169   : > { %v9217_v32 = vadd.f32 %v9073_v26, %v2151_v47  ;;  %v9220_v1 = vadd.f32 %v9076_v22, %v2150_v59  ;;  %v2152_v0 = vmul.f32 %v9102_v45, %v1392_v30  ;;  %v2153_v58 = vmul.f32 %v9092_v52, %v1043_v42  ;;  %3100 = vmatprep.mubr.bf16.mxu0 %v12225_v20 }
 0x16a   : > { %v1396_v2 = vpop.f32.mrf.mxu1  ;;  %7517 = vmatmul.mubr.msk.bf16.gmra.mxu1 %vm782_vm0, %v7851_v49  ;;  %v1045_v50 = vpop.f32.mrf.mxu0  ;;  %12244 = vst [vmem:[#allocation18_spill] sm:$0xff] %v9236_v56  ;;  %v1661_v49 = vcombine.low %v9208_v38, %v9210_v48  ;;  %v9252_v30 = vrot.slane %v1660_v46, %v8293_v10  ;;  %v9255_v42 = vrot.slane %v1660_v46, %v8290_v9 }
 0x16b   : > { %v9227_v4 = vadd.f32 %v9083_v27, %v2152_v0  ;;  %v9230_v26 = vadd.f32 %v9086_v54, %v2153_v58  ;;  %v2155_v51 = vmul.f32 %v9095_v25, %v1396_v2  ;;  %v2154_v22 = vmul.f32 %v9099_v31, %v1045_v50  ;;  %3453 = vmatprep.mubr.bf16.mxu1 %v12225_v20 }
 0x16c   : > { %v1398_v40 = vpop.f32.mrf.mxu1  ;;  %v1047_v35 = vpop.f32.mrf.mxu0  ;;  %v1663_v27 = vcombine.low %v9212_v39, %v9214_v44  ;;  %12245 = vst [vmem:[#allocation19_spill] sm:$0xff] %v9252_v30  ;;  %12246 = vst [vmem:[#allocation20_spill] sm:$0xff] %v9255_v42 }
 0x16d   : > { %v9244_v54 = vadd.f32 %v9105_v28, %v2155_v51  ;;  %v9247_v43 = vadd.f32 %v9108_v60, %v2154_v22  ;;  %v2156_v62 = vmul.f32 %v9102_v45, %v1398_v40  ;;  %v2157_v6 = vmul.f32 %v9092_v52, %v1047_v35 }
 0x16e   : > { %v1400_v47 = vpop.f32.mrf.mxu1  ;;  %v1049_v59 = vpop.f32.mrf.mxu0  ;;  %v9267_v51 = vrot.slane %v1660_v46, %v8296_v11  ;;  %v9270_v22 = vrot.slane %v1661_v49, %v8607_v24 }
 0x16f   : > { %v9258_v0 = vadd.f32 %v9121_v36, %v2156_v62  ;;  %v9261_v28 = vadd.f32 %v9124_v61, %v2157_v6  ;;  %v2159_v60 = vmul.f32 %v9095_v25, %v1400_v47  ;;  %v2158_v58 = vmul.f32 %v9099_v31, %v1049_v59 }
 0x170   : > { %v1402_v2 = vpop.f32.mrf.mxu1  ;;  %v1053_v50 = vpop.f32.mrf.mxu0  ;;  %7486 = vmatmul.mubr.msk.bf16.gmra.mxu0 %vm782_vm0, %v7852_v29  ;;  %12247 = vst [vmem:[#allocation21_spill] sm:$0xff] %v9267_v51  ;;  %v9273_v36 = vrot.slane %v1663_v27, %v8607_v24 }
 0x171   : > { %v9276_v61 = vadd.f32 %v9138_v3, %v2159_v60  ;;  %v9279_v40 = vadd.f32 %v9141_v53, %v2158_v58  ;;  %v2160_v35 = vmul.f32 %v9102_v45, %v1402_v2  ;;  %v2161_v62 = vmul.f32 %v9236_v56, %v1053_v50  ;;  %3110 = vmatprep.mubr.bf16.mxu0 %v12225_v20  ;;  %v7853_v60 = vld [vmem:[%s8275_s12 + $0x138] sm:$0xff]  }
 0x172   : > { %v1406_v46 = vpop.f32.mrf.mxu1  ;;  %7518 = vmatmul.mubr.msk.bf16.gmra.mxu1 %vm782_vm0, %v7852_v29  ;;  %v1055_v49 = vpop.f32.mrf.mxu0  ;;  %v1693_v58 = vcombine.low %v9270_v22, %v9273_v36 }
 0x173   : > { %v9286_v27 = vadd.f32 %v9164_v57, %v2160_v35  ;;  %v9289_v6 = vadd.f32 %v9167_v37, %v2161_v62  ;;  %v2163_v3 = vmul.f32 %v9252_v30, %v1406_v46  ;;  %v2162_v53 = vmul.f32 %v9255_v42, %v1055_v49  ;;  %3463 = vmatprep.mubr.bf16.mxu1 %v12225_v20 }
 0x174   : > { %v1408_v47 = vpop.f32.mrf.mxu1  ;;  %v1057_v59 = vpop.f32.mrf.mxu0 }
 0x175   : > { %v9298_v29 = vadd.f32 %v9190_v19, %v2163_v3  ;;  %v9301_v57 = vadd.f32 %v9193_v41, %v2162_v53  ;;  %v2164_v37 = vmul.f32 %v9267_v51, %v1408_v47  ;;  %v2165_v2 = vmul.f32 %v9236_v56, %v1057_v59 }
 0x176   : > { %v1410_v50 = vpop.f32.mrf.mxu1  ;;  %v1059_v35 = vpop.f32.mrf.mxu0  ;;  %v9315_v41 = vrot.slane %v1693_v58, %v8607_v24 }
 0x177   : > { %v9306_v62 = vadd.f32 %v9200_v33, %v2164_v37  ;;  %v9309_v46 = vadd.f32 %v9203_v14, %v2165_v2  ;;  %v2167_v49 = vmul.f32 %v9252_v30, %v1410_v50  ;;  %v2166_v19 = vmul.f32 %v9255_v42, %v1059_v35 }
 0x178   : > { %v1412_v3 = vpop.f32.mrf.mxu1  ;;  %v1063_v45 = vpop.f32.mrf.mxu0  ;;  %7487 = vmatmul.mubr.msk.bf16.gmra.mxu0 %vm782_vm0, %v7853_v60  ;;  %v9338_v35 = vrot.slane %v9315_v41, %v8287_v8 }
 0x179   : > { %v9318_v53 = vadd.f32 %v9217_v32, %v2167_v49  ;;  %v9321_v33 = vadd.f32 %v9220_v1, %v2166_v19  ;;  %v2168_v14 = vmul.f32 %v9267_v51, %v1412_v3  ;;  %v2169_v47 = vmul.f32 %v9236_v56, %v1063_v45  ;;  %3120 = vmatprep.mubr.bf16.mxu0 %v12225_v20 }
 0x17a   : > { %v1416_v59 = vpop.f32.mrf.mxu1  ;;  %7519 = vmatmul.mubr.msk.bf16.gmra.mxu1 %vm782_vm0, %v7853_v60  ;;  %v1065_v37 = vpop.f32.mrf.mxu0  ;;  %12248 = vst [vmem:[#allocation22_spill] sm:$0xff] %v9338_v35  ;;  %v7854_v60 = vld [vmem:[%s8275_s12 + $0x140] sm:$0xff]  }
 0x17b   : > { %v9328_v58 = vadd.f32 %v9227_v4, %v2168_v14  ;;  %v9331_v32 = vadd.f32 %v9230_v26, %v2169_v47  ;;  %v2171_v2 = vmul.f32 %v9252_v30, %v1416_v59  ;;  %v2170_v1 = vmul.f32 %v9255_v42, %v1065_v37  ;;  %3473 = vmatprep.mubr.bf16.mxu1 %v12225_v20 }
 0x17c   : > { %v1418_v50 = vpop.f32.mrf.mxu1  ;;  %v1067_v45 = vpop.f32.mrf.mxu0  ;;  %v9351_v47 = vrot.slane %v9315_v41, %v8293_v10  ;;  %v9355_v59 = vrot.slane %v9315_v41, %v8290_v9 }
 0x17d   : > { %v9342_v49 = vadd.f32 %v9244_v54, %v2171_v2  ;;  %v9345_v4 = vadd.f32 %v9247_v43, %v2170_v1  ;;  %v2172_v26 = vmul.f32 %v9267_v51, %v1418_v50  ;;  %v2173_v19 = vmul.f32 %v9236_v56, %v1067_v45 }
 0x17e   : > { %v1420_v3 = vpop.f32.mrf.mxu1  ;;  %v1069_v14 = vpop.f32.mrf.mxu0  ;;  %12249 = vst [vmem:[#allocation41_spill] sm:$0xff] %v9351_v47  ;;  %12250 = vst [vmem:[#allocation42_spill] sm:$0xff] %v9355_v59  ;;  %v9368_v45 = vrot.slane %v9315_v41, %v8296_v11 }
 0x17f   : > { %v9358_v54 = vadd.f32 %v9258_v0, %v2172_v26  ;;  %v9361_v43 = vadd.f32 %v9261_v28, %v2173_v19  ;;  %v2175_v37 = vmul.f32 %v9252_v30, %v1420_v3  ;;  %v2174_v2 = vmul.f32 %v9255_v42, %v1069_v14 }
 0x180   : > { %v1422_v1 = vpop.f32.mrf.mxu1  ;;  %v1073_v50 = vpop.f32.mrf.mxu0  ;;  %7488 = vmatmul.mubr.msk.bf16.gmra.mxu0 %vm782_vm0, %v7854_v60  ;;  %12251 = vst [vmem:[#allocation43_spill] sm:$0xff] %v9368_v45 }
 0x181   : > { %v9371_v56 = vadd.f32 %v9276_v61, %v2175_v37  ;;  %v9374_v0 = vadd.f32 %v9279_v40, %v2174_v2  ;;  %v2176_v28 = vmul.f32 %v9267_v51, %v1422_v1  ;;  %v2177_v26 = vmul.f32 %v9338_v35, %v1073_v50  ;;  %3130 = vmatprep.mubr.bf16.mxu0 %v12225_v20  ;;  %v7855_v1 = vld [vmem:[%s8275_s12 + $0x148] sm:$0xff]  }
 0x182   : > { %v1426_v19 = vpop.f32.mrf.mxu1  ;;  %7520 = vmatmul.mubr.msk.bf16.gmra.mxu1 %vm782_vm0, %v7854_v60  ;;  %v1075_v3 = vpop.f32.mrf.mxu0  ;;  %v1694_v50 = vcombine.high %v9270_v22, %v9273_v36 }
 0x183   : > { %v9381_v14 = vadd.f32 %v9286_v27, %v2176_v28  ;;  %v9384_v42 = vadd.f32 %v9289_v6, %v2177_v26  ;;  %v2179_v61 = vmul.f32 %v9351_v47, %v1426_v19  ;;  %v2178_v40 = vmul.f32 %v9355_v59, %v1075_v3  ;;  %3483 = vmatprep.mubr.bf16.mxu1 %v12225_v20 }
 0x184   : > { %v1428_v37 = vpop.f32.mrf.mxu1  ;;  %v1077_v2 = vpop.f32.mrf.mxu0 }
 0x185   : > { %v9393_v60 = vadd.f32 %v9298_v29, %v2179_v61  ;;  %v9396_v27 = vadd.f32 %v9301_v57, %v2178_v40  ;;  %v2180_v6 = vmul.f32 %v9368_v45, %v1428_v37  ;;  %v2181_v28 = vmul.f32 %v9338_v35, %v1077_v2 }
 0x186   : > { %v1430_v26 = vpop.f32.mrf.mxu1  ;;  %v1079_v19 = vpop.f32.mrf.mxu0  ;;  %v9410_v57 = vrot.slane %v1694_v50, %v8607_v24 }
 0x187   : > { %v9401_v3 = vadd.f32 %v9306_v62, %v2180_v6  ;;  %v9404_v51 = vadd.f32 %v9309_v46, %v2181_v28  ;;  %v2183_v22 = vmul.f32 %v9351_v47, %v1430_v26  ;;  %v2182_v36 = vmul.f32 %v9355_v59, %v1079_v19 }
 0x188   : > { %v1432_v29 = vpop.f32.mrf.mxu1  ;;  %v1083_v61 = vpop.f32.mrf.mxu0  ;;  %7489 = vmatmul.mubr.msk.bf16.gmra.mxu0 %vm782_vm0, %v7855_v1 }
 0x189   : > { %v9413_v40 = vadd.f32 %v9318_v53, %v2183_v22  ;;  %v9416_v62 = vadd.f32 %v9321_v33, %v2182_v36  ;;  %v2184_v46 = vmul.f32 %v9368_v45, %v1432_v29  ;;  %v2185_v37 = vmul.f32 %v9338_v35, %v1083_v61  ;;  %3140 = vmatprep.mubr.bf16.mxu0 %v12225_v20 }
 0x18a   : > { %v1436_v2 = vpop.f32.mrf.mxu1  ;;  %7521 = vmatmul.mubr.msk.bf16.gmra.mxu1 %vm782_vm0, %v7855_v1  ;;  %v1085_v6 = vpop.f32.mrf.mxu0  ;;  %v9433_v22 = vrot.slane %v9410_v57, %v8287_v8  ;;  %v7856_v1 = vld [vmem:[%s8275_s12 + $0x150] sm:$0xff]  }
 0x18b   : > { %v9423_v50 = vadd.f32 %v9328_v58, %v2184_v46  ;;  %v9426_v53 = vadd.f32 %v9331_v32, %v2185_v37  ;;  %v2187_v28 = vmul.f32 %v9351_v47, %v1436_v2  ;;  %v2186_v33 = vmul.f32 %v9355_v59, %v1085_v6  ;;  %3493 = vmatprep.mubr.bf16.mxu1 %v12225_v20 }
 0x18c   : > { %v1438_v26 = vpop.f32.mrf.mxu1  ;;  %v1087_v19 = vpop.f32.mrf.mxu0  ;;  %12252 = vst [vmem:[#allocation44_spill] sm:$0xff] %v9433_v22  ;;  %v9446_v37 = vrot.slane %v9410_v57, %v8293_v10  ;;  %v9450_v2 = vrot.slane %v9410_v57, %v8290_v9 }
 0x18d   : > { %v9437_v36 = vadd.f32 %v9342_v49, %v2187_v28  ;;  %v9440_v58 = vadd.f32 %v9345_v4, %v2186_v33  ;;  %v2188_v32 = vmul.f32 %v9368_v45, %v1438_v26  ;;  %v2189_v29 = vmul.f32 %v9338_v35, %v1087_v19 }
 0x18e   : > { %v1440_v61 = vpop.f32.mrf.mxu1  ;;  %v1089_v46 = vpop.f32.mrf.mxu0  ;;  %12253 = vst [vmem:[#allocation45_spill] sm:$0xff] %v9446_v37  ;;  %12254 = vst [vmem:[#allocation46_spill] sm:$0xff] %v9450_v2  ;;  %v9463_v19 = vrot.slane %v9410_v57, %v8296_v11 }
 0x18f   : > { %v9453_v49 = vadd.f32 %v9358_v54, %v2188_v32  ;;  %v9456_v4 = vadd.f32 %v9361_v43, %v2189_v29  ;;  %v2191_v6 = vmul.f32 %v9351_v47, %v1440_v61  ;;  %v2190_v28 = vmul.f32 %v9355_v59, %v1089_v46 }
 0x190   : > { %v1442_v33 = vpop.f32.mrf.mxu1  ;;  %v1093_v26 = vpop.f32.mrf.mxu0  ;;  %7490 = vmatmul.mubr.msk.bf16.gmra.mxu0 %vm782_vm0, %v7856_v1  ;;  %12255 = vst [vmem:[#allocation47_spill] sm:$0xff] %v9463_v19 }
 0x191   : > { %v9466_v35 = vadd.f32 %v9371_v56, %v2191_v6  ;;  %v9469_v54 = vadd.f32 %v9374_v0, %v2190_v28  ;;  %v2192_v43 = vmul.f32 %v9368_v45, %v1442_v33  ;;  %v2193_v32 = vmul.f32 %v9433_v22, %v1093_v26  ;;  %3150 = vmatprep.mubr.bf16.mxu0 %v12225_v20  ;;  %v7857_v33 = vld [vmem:[%s8275_s12 + $0x158] sm:$0xff]  }
 0x192   : > { %v1446_v29 = vpop.f32.mrf.mxu1  ;;  %7522 = vmatmul.mubr.msk.bf16.gmra.mxu1 %vm782_vm0, %v7856_v1  ;;  %v1095_v61 = vpop.f32.mrf.mxu0 }
 0x193   : > { %v9476_v46 = vadd.f32 %v9381_v14, %v2192_v43  ;;  %v9479_v59 = vadd.f32 %v9384_v42, %v2193_v32  ;;  %v2195_v56 = vmul.f32 %v9446_v37, %v1446_v29  ;;  %v2194_v0 = vmul.f32 %v9450_v2, %v1095_v61  ;;  %3503 = vmatprep.mubr.bf16.mxu1 %v12225_v20 }
 0x194   : > { %v1448_v6 = vpop.f32.mrf.mxu1  ;;  %v1097_v28 = vpop.f32.mrf.mxu0 }
 0x195   : > { %v9486_v26 = vadd.f32 %v9393_v60, %v2195_v56  ;;  %v9489_v1 = vadd.f32 %v9396_v27, %v2194_v0  ;;  %v2196_v14 = vmul.f32 %v9463_v19, %v1448_v6  ;;  %v2197_v42 = vmul.f32 %v9433_v22, %v1097_v28 }
 0x196   : > { %v1450_v43 = vpop.f32.mrf.mxu1  ;;  %v1099_v32 = vpop.f32.mrf.mxu0  ;;  %v1725_v27 = vcombine.high %v9315_v41, %v9315_v41 }
 0x197   : > { %v9494_v29 = vadd.f32 %v9401_v3, %v2196_v14  ;;  %v9497_v61 = vadd.f32 %v9404_v51, %v2197_v42  ;;  %v2199_v45 = vmul.f32 %v9446_v37, %v1450_v43  ;;  %v2198_v60 = vmul.f32 %v9450_v2, %v1099_v32  ;;  %v7858_v32 = vld [vmem:[%s8275_s12 + $0x160] sm:$0xff]  }
 0x198   : > { %v1452_v56 = vpop.f32.mrf.mxu1  ;;  %v1103_v47 = vpop.f32.mrf.mxu0  ;;  %7491 = vmatmul.mubr.msk.bf16.gmra.mxu0 %vm782_vm0, %v7857_v33  ;;  %v9524_v43 = vrot.slane %v1725_v27, %v8287_v8 }
 0x199   : > { %v9505_v0 = vadd.f32 %v9413_v40, %v2199_v45  ;;  %v9508_v3 = vadd.f32 %v9416_v62, %v2198_v60  ;;  %v2200_v51 = vmul.f32 %v9463_v19, %v1452_v56  ;;  %v2201_v6 = vmul.f32 %v9433_v22, %v1103_v47  ;;  %3160 = vmatprep.mubr.bf16.mxu0 %v12225_v20 }
 0x19a   : > { %v1456_v28 = vpop.f32.mrf.mxu1  ;;  %7523 = vmatmul.mubr.msk.bf16.gmra.mxu1 %vm782_vm0, %v7857_v33  ;;  %v1105_v14 = vpop.f32.mrf.mxu0  ;;  %12256 = vst [vmem:[#allocation48_spill] sm:$0xff] %v9524_v43 }
 0x19b   : > { %v9515_v42 = vadd.f32 %v9423_v50, %v2200_v51  ;;  %v9518_v41 = vadd.f32 %v9426_v53, %v2201_v6  ;;  %v2203_v45 = vmul.f32 %v9446_v37, %v1456_v28  ;;  %v2202_v40 = vmul.f32 %v9450_v2, %v1105_v14  ;;  %3513 = vmatprep.mubr.bf16.mxu1 %v12225_v20 }
 0x19c   : > { %v1458_v62 = vpop.f32.mrf.mxu1  ;;  %v1107_v47 = vpop.f32.mrf.mxu0  ;;  %v9536_v6 = vrot.slane %v1725_v27, %v8293_v10  ;;  %v9539_v28 = vrot.slane %v1725_v27, %v8290_v9 }
 0x19d   : > { %v9528_v33 = vadd.f32 %v9437_v36, %v2203_v45  ;;  %v9531_v50 = vadd.f32 %v9440_v58, %v2202_v40  ;;  %v2204_v53 = vmul.f32 %v9463_v19, %v1458_v62  ;;  %v2205_v60 = vmul.f32 %v9433_v22, %v1107_v47 }
 0x19e   : > { %v1460_v56 = vpop.f32.mrf.mxu1  ;;  %v1109_v51 = vpop.f32.mrf.mxu0  ;;  %12257 = vst [vmem:[#allocation49_spill] sm:$0xff] %v9536_v6  ;;  %12258 = vst [vmem:[#allocation50_spill] sm:$0xff] %v9539_v28  ;;  %v9551_v47 = vrot.slane %v1725_v27, %v8296_v11 }
 0x19f   : > { %v9542_v14 = vadd.f32 %v9453_v49, %v2204_v53  ;;  %v9545_v36 = vadd.f32 %v9456_v4, %v2205_v60  ;;  %v2207_v58 = vmul.f32 %v9446_v37, %v1460_v56  ;;  %v2206_v45 = vmul.f32 %v9450_v2, %v1109_v51 }
 0x1a0   : > { %v1462_v40 = vpop.f32.mrf.mxu1  ;;  %v1113_v62 = vpop.f32.mrf.mxu0  ;;  %7492 = vmatmul.mubr.msk.bf16.gmra.mxu0 %vm782_vm0, %v7858_v32  ;;  %12259 = vst [vmem:[#allocation51_spill] sm:$0xff] %v9551_v47 }
 0x1a1   : > { %v9554_v22 = vadd.f32 %v9466_v35, %v2207_v58  ;;  %v9557_v49 = vadd.f32 %v9469_v54, %v2206_v45  ;;  %v2208_v4 = vmul.f32 %v9463_v19, %v1462_v40  ;;  %v2209_v53 = vmul.f32 %v9524_v43, %v1113_v62  ;;  %3170 = vmatprep.mubr.bf16.mxu0 %v12225_v20  ;;  %v7859_v40 = vld [vmem:[%s8275_s12 + $0x168] sm:$0xff]  }
 0x1a2   : > { %v1466_v60 = vpop.f32.mrf.mxu1  ;;  %7524 = vmatmul.mubr.msk.bf16.gmra.mxu1 %vm782_vm0, %v7858_v32  ;;  %v1115_v56 = vpop.f32.mrf.mxu0 }
 0x1a3   : > { %v9564_v27 = vadd.f32 %v9476_v46, %v2208_v4  ;;  %v9567_v51 = vadd.f32 %v9479_v59, %v2209_v53  ;;  %v2211_v35 = vmul.f32 %v9536_v6, %v1466_v60  ;;  %v2210_v54 = vmul.f32 %v9539_v28, %v1115_v56  ;;  %3523 = vmatprep.mubr.bf16.mxu1 %v12225_v20 }
 0x1a4   : > { %v1468_v58 = vpop.f32.mrf.mxu1  ;;  %v1117_v45 = vpop.f32.mrf.mxu0 }
 0x1a5   : > { %v9574_v62 = vadd.f32 %v9486_v26, %v2211_v35  ;;  %v9577_v32 = vadd.f32 %v9489_v1, %v2210_v54  ;;  %v2212_v46 = vmul.f32 %v9551_v47, %v1468_v58  ;;  %v2213_v59 = vmul.f32 %v9524_v43, %v1117_v45 }
 0x1a6   : > { %v1470_v4 = vpop.f32.mrf.mxu1  ;;  %v1119_v53 = vpop.f32.mrf.mxu0  ;;  %v1727_v1 = vcombine.high %v9410_v57, %v9410_v57 }
 0x1a7   : > { %v9582_v60 = vadd.f32 %v9494_v29, %v2212_v46  ;;  %v9585_v56 = vadd.f32 %v9497_v61, %v2213_v59  ;;  %v2215_v19 = vmul.f32 %v9536_v6, %v1470_v4  ;;  %v2214_v26 = vmul.f32 %v9539_v28, %v1119_v53  ;;  %v7860_v53 = vld [vmem:[%s8275_s12 + $0x170] sm:$0xff]  }
 0x1a8   : > { %v1472_v35 = vpop.f32.mrf.mxu1  ;;  %v1123_v2 = vpop.f32.mrf.mxu0  ;;  %7493 = vmatmul.mubr.msk.bf16.gmra.mxu0 %vm782_vm0, %v7859_v40  ;;  %v9612_v4 = vrot.slane %v1727_v1, %v8287_v8  ;;  %v9631_v37 = vrot.slane %v1727_v1, %v8290_v9 }
 0x1a9   : > { %v9593_v54 = vadd.f32 %v9505_v0, %v2215_v19  ;;  %v9596_v29 = vadd.f32 %v9508_v3, %v2214_v26  ;;  %v2216_v61 = vmul.f32 %v9551_v47, %v1472_v35  ;;  %v2217_v58 = vmul.f32 %v9524_v43, %v1123_v2  ;;  %3180 = vmatprep.mubr.bf16.mxu0 %v12225_v20 }
 0x1aa   : > { %v1476_v45 = vpop.f32.mrf.mxu1  ;;  %7525 = vmatmul.mubr.msk.bf16.gmra.mxu1 %vm782_vm0, %v7859_v40  ;;  %v1125_v46 = vpop.f32.mrf.mxu0  ;;  %v1662_v40 = vcombine.high %v9208_v38, %v9210_v48 }
 0x1ab   : > { %v9603_v59 = vadd.f32 %v9515_v42, %v2216_v61  ;;  %v9606_v57 = vadd.f32 %v9518_v41, %v2217_v58  ;;  %v2219_v19 = vmul.f32 %v9536_v6, %v1476_v45  ;;  %v2218_v0 = vmul.f32 %v9539_v28, %v1125_v46  ;;  %3533 = vmatprep.mubr.bf16.mxu1 %v12225_v20 }
 0x1ac   : > { %v1478_v3 = vpop.f32.mrf.mxu1  ;;  %v1127_v2 = vpop.f32.mrf.mxu0  ;;  %v1664_v42 = vcombine.high %v9212_v39, %v9214_v44  ;;  %v9628_v46 = vrot.slane %v1727_v1, %v8293_v10 }
 0x1ad   : > { %v9620_v41 = vadd.f32 %v9528_v33, %v2219_v19  ;;  %v9623_v26 = vadd.f32 %v9531_v50, %v2218_v0  ;;  %v2220_v35 = vmul.f32 %v9551_v47, %v1478_v3  ;;  %v2221_v61 = vmul.f32 %v9524_v43, %v1127_v2 }
 0x1ae   : > { %v1480_v58 = vpop.f32.mrf.mxu1  ;;  %v1129_v45 = vpop.f32.mrf.mxu0  ;;  %v9643_v2 = vrot.slane %v1727_v1, %v8296_v11  ;;  %v9646_v43 = vrot.slane %v1662_v40, %v8607_v24 }
 0x1af   : > { %v9634_v30 = vadd.f32 %v9542_v14, %v2220_v35  ;;  %v9637_v33 = vadd.f32 %v9545_v36, %v2221_v61  ;;  %v2223_v50 = vmul.f32 %v9536_v6, %v1480_v58  ;;  %v2222_v19 = vmul.f32 %v9539_v28, %v1129_v45 }
 0x1b0   : > { %v1482_v0 = vpop.f32.mrf.mxu1  ;;  %v1133_v3 = vpop.f32.mrf.mxu0  ;;  %7494 = vmatmul.mubr.msk.bf16.gmra.mxu0 %vm782_vm0, %v7860_v53  ;;  %v9649_v14 = vrot.slane %v1664_v42, %v8607_v24 }
 0x1b1   : > { %v9652_v36 = vadd.f32 %v9554_v22, %v2223_v50  ;;  %v9655_v35 = vadd.f32 %v9557_v49, %v2222_v19  ;;  %v2224_v61 = vmul.f32 %v9551_v47, %v1482_v0  ;;  %v2225_v58 = vmul.f32 %v9612_v4, %v1133_v3  ;;  %3190 = vmatprep.mubr.bf16.mxu0 %v12225_v20  ;;  %v7861_v0 = vld [vmem:[%s8275_s12 + $0x178] sm:$0xff]  }
 0x1b2   : > { %v1486_v1 = vpop.f32.mrf.mxu1  ;;  %7526 = vmatmul.mubr.msk.bf16.gmra.mxu1 %vm782_vm0, %v7860_v53  ;;  %v1135_v40 = vpop.f32.mrf.mxu0  ;;  %v1695_v3 = vcombine.low %v9646_v43, %v9649_v14 }
 0x1b3   : > { %v9662_v42 = vadd.f32 %v9564_v27, %v2224_v61  ;;  %v9665_v45 = vadd.f32 %v9567_v51, %v2225_v58  ;;  %v2227_v22 = vmul.f32 %v9628_v46, %v1486_v1  ;;  %v2226_v49 = vmul.f32 %v9631_v37, %v1135_v40  ;;  %3543 = vmatprep.mubr.bf16.mxu1 %v12225_v20 }
 0x1b4   : > { %v1488_v50 = vpop.f32.mrf.mxu1  ;;  %v1137_v19 = vpop.f32.mrf.mxu0 }
 0x1b5   : > { %v9674_v53 = vadd.f32 %v9574_v62, %v2227_v22  ;;  %v9677_v27 = vadd.f32 %v9577_v32, %v2226_v49  ;;  %v2228_v51 = vmul.f32 %v9643_v2, %v1488_v50  ;;  %v2229_v61 = vmul.f32 %v9612_v4, %v1137_v19 }
 0x1b6   : > { %v1490_v58 = vpop.f32.mrf.mxu1  ;;  %v1139_v1 = vpop.f32.mrf.mxu0  ;;  %v9691_v32 = vrot.slane %v1695_v3, %v8607_v24 }
 0x1b7   : > { %v9682_v40 = vadd.f32 %v9582_v60, %v2228_v51  ;;  %v9685_v47 = vadd.f32 %v9585_v56, %v2229_v61  ;;  %v2231_v28 = vmul.f32 %v9628_v46, %v1490_v58  ;;  %v2230_v62 = vmul.f32 %v9631_v37, %v1139_v1 }
 0x1b8   : > { %v1492_v22 = vpop.f32.mrf.mxu1  ;;  %v1143_v6 = vpop.f32.mrf.mxu0  ;;  %7495 = vmatmul.mubr.msk.bf16.gmra.mxu0 %vm782_vm0, %v7861_v0  ;;  %v9714_v58 = vrot.slane %v9691_v32, %v8287_v8  ;;  %v4229_v1 = vpack.c.bf16 %v9214_v44, %v8597_v17  ;;  %v9735_v31 = vrot.slane %v9691_v32, %v8290_v9  ;;  %v4228_v17 = vpack.c.bf16 %v9212_v39, %v8595_v16 }
 0x1b9   : > { %v9694_v49 = vadd.f32 %v9593_v54, %v2231_v28  ;;  %v9697_v60 = vadd.f32 %v9596_v29, %v2230_v62  ;;  %v2232_v56 = vmul.f32 %v9643_v2, %v1492_v22  ;;  %v2233_v50 = vmul.f32 %v9612_v4, %v1143_v6  ;;  %3200 = vmatprep.mubr.bf16.mxu0 %v12225_v20 }
 0x1ba   : > { %v1496_v19 = vpop.f32.mrf.mxu1  ;;  %7527 = vmatmul.mubr.msk.bf16.gmra.mxu1 %vm782_vm0, %v7861_v0  ;;  %v1145_v51 = vpop.f32.mrf.mxu0  ;;  %v9718_v0 = vrot.slane %v9691_v32, %v8293_v10  ;;  %4918 = vmatprep.subr.bf16.mxu1 %v4229_v1 }
 0x1bb   : > { %v9704_v3 = vadd.f32 %v9603_v59, %v2232_v56  ;;  %v9707_v28 = vadd.f32 %v9606_v57, %v2233_v50  ;;  %v2235_v54 = vmul.f32 %v9628_v46, %v1496_v19  ;;  %v2234_v29 = vmul.f32 %v9631_v37, %v1145_v51  ;;  %3553 = vmatprep.mubr.bf16.mxu1 %v12225_v20  ;;  %v7862_v59 = vld [vmem:[%s8275_s12 + $0x180] sm:$0xff]  }
 0x1bc   : > { %v1498_v61 = vpop.f32.mrf.mxu1  ;;  %v1147_v6 = vpop.f32.mrf.mxu0  ;;  %v4227_v57 = vpack.c.bf16 %v9210_v48, %v8593_v15  ;;  %v4226_v15 = vpack.c.bf16 %v9208_v38, %v8590_v13  ;;  %v9752_v13 = vrot.slane %v9691_v32, %v8296_v11  ;;  %4919 = vmatpush1.bf16.msra.mxu1 %v4228_v17 }
 0x1bd   : > { %v9726_v62 = vadd.f32 %v9620_v41, %v2235_v54  ;;  %v9729_v22 = vadd.f32 %v9623_v26, %v2234_v29  ;;  %v2236_v56 = vmul.f32 %v9643_v2, %v1498_v61  ;;  %v2237_v50 = vmul.f32 %v9612_v4, %v1147_v6 }
 0x1be   : > { %v1500_v19 = vpop.f32.mrf.mxu1  ;;  %v1149_v51 = vpop.f32.mrf.mxu0  ;;  %4565 = vmatprep.subr.bf16.mxu0 %v4227_v57 }
 0x1bf   : > { %v9742_v48 = vadd.f32 %v9634_v30, %v2236_v56  ;;  %v9745_v44 = vadd.f32 %v9637_v33, %v2237_v50  ;;  %v2239_v41 = vmul.f32 %v9628_v46, %v1500_v19  ;;  %v2238_v26 = vmul.f32 %v9631_v37, %v1149_v51  ;;  %4566 = vmatpush1.bf16.msra.mxu0 %v4226_v15  ;;  %v7863_v50 = vld [vmem:[%s8275_s12 + $0x188] sm:$0xff]  }
 0x1c0   : > { %v1502_v54 = vpop.f32.mrf.mxu1  ;;  %v1153_v29 = vpop.f32.mrf.mxu0  ;;  %7496 = vmatmul.mubr.msk.bf16.gmra.mxu0 %vm782_vm0, %v7862_v59 }
 0x1c1   : > { %v9755_v16 = vadd.f32 %v9652_v36, %v2239_v41  ;;  %v9758_v38 = vadd.f32 %v9655_v35, %v2238_v26  ;;  %v2240_v39 = vmul.f32 %v9643_v2, %v1502_v54  ;;  %v2241_v30 = vmul.f32 %v9714_v58, %v1153_v29  ;;  %3210 = vmatprep.mubr.bf16.mxu0 %v12225_v20 }
 0x1c2   : > { %v1506_v33 = vpop.f32.mrf.mxu1  ;;  %7528 = vmatmul.mubr.msk.bf16.gmra.mxu1 %vm782_vm0, %v7862_v59  ;;  %v1155_v61 = vpop.f32.mrf.mxu0  ;;  %v1696_v59 = vcombine.high %v9646_v43, %v9649_v14 }
 0x1c3   : > { %v9765_v6 = vadd.f32 %v9662_v42, %v2240_v39  ;;  %v9768_v36 = vadd.f32 %v9665_v45, %v2241_v30  ;;  %v2243_v35 = vmul.f32 %v9718_v0, %v1506_v33  ;;  %v2242_v57 = vmul.f32 %v9735_v31, %v1155_v61  ;;  %3563 = vmatprep.mubr.bf16.mxu1 %v12225_v20 }
 0x1c4   : > { %v1508_v1 = vpop.f32.mrf.mxu1  ;;  %v1157_v56 = vpop.f32.mrf.mxu0 }
 0x1c5   : > { %v9777_v19 = vadd.f32 %v9674_v53, %v2243_v35  ;;  %v9780_v42 = vadd.f32 %v9677_v27, %v2242_v57  ;;  %v2244_v45 = vmul.f32 %v9752_v13, %v1508_v1  ;;  %v2245_v51 = vmul.f32 %v9714_v58, %v1157_v56 }
 0x1c6   : > { %v1510_v15 = vpop.f32.mrf.mxu1  ;;  %v1159_v17 = vpop.f32.mrf.mxu0  ;;  %v9794_v27 = vrot.slane %v1696_v59, %v8607_v24 }
 0x1c7   : > { %v9785_v41 = vadd.f32 %v9682_v40, %v2244_v45  ;;  %v9788_v26 = vadd.f32 %v9685_v47, %v2245_v51  ;;  %v2247_v43 = vmul.f32 %v9718_v0, %v1510_v15  ;;  %v2246_v14 = vmul.f32 %v9735_v31, %v1159_v17 }
 0x1c8   : > { %v1512_v53 = vpop.f32.mrf.mxu1  ;;  %v1163_v54 = vpop.f32.mrf.mxu0  ;;  %7497 = vmatmul.mubr.msk.bf16.gmra.mxu0 %vm782_vm0, %v7863_v50  ;;  %v9817_v56 = vrot.slane %v9794_v27, %v8287_v8  ;;  %v9830_v17 = vrot.slane %v9794_v27, %v8293_v10 }
 0x1c9   : > { %v9797_v29 = vadd.f32 %v9694_v49, %v2247_v43  ;;  %v9800_v40 = vadd.f32 %v9697_v60, %v2246_v14  ;;  %v2248_v47 = vmul.f32 %v9752_v13, %v1512_v53  ;;  %v2249_v39 = vmul.f32 %v9714_v58, %v1163_v54  ;;  %3220 = vmatprep.mubr.bf16.mxu0 %v12225_v20 }
 0x1ca   : > { %v1516_v30 = vpop.f32.mrf.mxu1  ;;  %7529 = vmatmul.mubr.msk.bf16.gmra.mxu1 %vm782_vm0, %v7863_v50  ;;  %v1165_v33 = vpop.f32.mrf.mxu0  ;;  %v7864_v50 = vld [vmem:[%s8275_s12 + $0x190] sm:$0xff]   ;;  %v9834_v43 = vrot.slane %v9794_v27, %v8290_v9 }
 0x1cb   : > { %v9807_v61 = vadd.f32 %v9704_v3, %v2248_v47  ;;  %v9810_v49 = vadd.f32 %v9707_v28, %v2249_v39  ;;  %v2251_v35 = vmul.f32 %v9718_v0, %v1516_v30  ;;  %v2250_v60 = vmul.f32 %v9735_v31, %v1165_v33  ;;  %3573 = vmatprep.mubr.bf16.mxu1 %v12225_v20 }
 0x1cc   : > { %v1518_v57 = vpop.f32.mrf.mxu1  ;;  %v1167_v1 = vpop.f32.mrf.mxu0  ;;  %v9847_v39 = vrot.slane %v9794_v27, %v8296_v11 }
 0x1cd   : > { %v9821_v59 = vadd.f32 %v9726_v62, %v2251_v35  ;;  %v9824_v3 = vadd.f32 %v9729_v22, %v2250_v60  ;;  %v2252_v28 = vmul.f32 %v9752_v13, %v1518_v57  ;;  %v2253_v45 = vmul.f32 %v9714_v58, %v1167_v1 }
 0x1ce   : > { %v1520_v51 = vpop.f32.mrf.mxu1  ;;  %v1169_v15 = vpop.f32.mrf.mxu0 }
 0x1cf   : > { %v9837_v62 = vadd.f32 %v9742_v48, %v2252_v28  ;;  %v9840_v22 = vadd.f32 %v9745_v44, %v2253_v45  ;;  %v2255_v14 = vmul.f32 %v9718_v0, %v1520_v51  ;;  %v2254_v53 = vmul.f32 %v9735_v31, %v1169_v15  ;;  %v7865_v51 = vld [vmem:[%s8275_s12 + $0x198] sm:$0xff]  }
 0x1d0   : > { %v1522_v54 = vpop.f32.mrf.mxu1  ;;  %v1173_v47 = vpop.f32.mrf.mxu0  ;;  %7498 = vmatmul.mubr.msk.bf16.gmra.mxu0 %vm782_vm0, %v7864_v50 }
 0x1d1   : > { %v9850_v30 = vadd.f32 %v9755_v16, %v2255_v14  ;;  %v9853_v48 = vadd.f32 %v9758_v38, %v2254_v53  ;;  %v2256_v44 = vmul.f32 %v9752_v13, %v1522_v54  ;;  %v2257_v33 = vmul.f32 %v9817_v56, %v1173_v47  ;;  %3230 = vmatprep.mubr.bf16.mxu0 %v12225_v20 }
 0x1d2   : > { %v1526_v35 = vpop.f32.mrf.mxu1  ;;  %7530 = vmatmul.mubr.msk.bf16.gmra.mxu1 %vm782_vm0, %v7864_v50  ;;  %v1175_v60 = vpop.f32.mrf.mxu0 }
 0x1d3   : > { %v9860_v57 = vadd.f32 %v9765_v6, %v2256_v44  ;;  %v9863_v1 = vadd.f32 %v9768_v36, %v2257_v33  ;;  %v2259_v16 = vmul.f32 %v9830_v17, %v1526_v35  ;;  %v2258_v38 = vmul.f32 %v9834_v43, %v1175_v60  ;;  %3583 = vmatprep.mubr.bf16.mxu1 %v12225_v20 }
 0x1d4   : > { %v1528_v28 = vpop.f32.mrf.mxu1  ;;  %v1177_v45 = vpop.f32.mrf.mxu0 }
 0x1d5   : > { %v9870_v15 = vadd.f32 %v9777_v19, %v2259_v16  ;;  %v9873_v50 = vadd.f32 %v9780_v42, %v2258_v38  ;;  %v2260_v6 = vmul.f32 %v9847_v39, %v1528_v28  ;;  %v2261_v36 = vmul.f32 %v9817_v56, %v1177_v45 }
 0x1d6   : > { %v1530_v14 = vpop.f32.mrf.mxu1  ;;  %v1179_v53 = vpop.f32.mrf.mxu0  ;;  %v1726_v42 = vcombine.high %v9691_v32, %v9691_v32 }
 0x1d7   : > { %v9878_v54 = vadd.f32 %v9785_v41, %v2260_v6  ;;  %v9881_v47 = vadd.f32 %v9788_v26, %v2261_v36  ;;  %v2263_v44 = vmul.f32 %v9830_v17, %v1530_v14  ;;  %v2262_v19 = vmul.f32 %v9834_v43, %v1179_v53  ;;  %v7866_v53 = vld [vmem:[%s8275_s12 + $0x1a0] sm:$0xff]  }
 0x1d8   : > { %v1532_v33 = vpop.f32.mrf.mxu1  ;;  %v1183_v35 = vpop.f32.mrf.mxu0  ;;  %7499 = vmatmul.mubr.msk.bf16.gmra.mxu0 %vm782_vm0, %v7865_v51  ;;  %v9908_v14 = vrot.slane %v1726_v42, %v8287_v8 }
 0x1d9   : > { %v9889_v60 = vadd.f32 %v9797_v29, %v2263_v44  ;;  %v9892_v41 = vadd.f32 %v9800_v40, %v2262_v19  ;;  %v2264_v26 = vmul.f32 %v9847_v39, %v1532_v33  ;;  %v2265_v16 = vmul.f32 %v9817_v56, %v1183_v35  ;;  %3240 = vmatprep.mubr.bf16.mxu0 %v12225_v20 }
 0x1da   : > { %v1536_v38 = vpop.f32.mrf.mxu1  ;;  %7531 = vmatmul.mubr.msk.bf16.gmra.mxu1 %vm782_vm0, %v7865_v51  ;;  %v1185_v28 = vpop.f32.mrf.mxu0  ;;  %v9920_v35 = vrot.slane %v1726_v42, %v8293_v10 }
 0x1db   : > { %v9899_v45 = vadd.f32 %v9807_v61, %v2264_v26  ;;  %v9902_v32 = vadd.f32 %v9810_v49, %v2265_v16  ;;  %v2267_v29 = vmul.f32 %v9830_v17, %v1536_v38  ;;  %v2266_v40 = vmul.f32 %v9834_v43, %v1185_v28  ;;  %3593 = vmatprep.mubr.bf16.mxu1 %v12225_v20 }
 0x1dc   : > { %v1538_v6 = vpop.f32.mrf.mxu1  ;;  %v1187_v36 = vpop.f32.mrf.mxu0  ;;  %v9923_v26 = vrot.slane %v1726_v42, %v8290_v9 }
 0x1dd   : > { %v9912_v51 = vadd.f32 %v9821_v59, %v2267_v29  ;;  %v9915_v61 = vadd.f32 %v9824_v3, %v2266_v40  ;;  %v2268_v49 = vmul.f32 %v9847_v39, %v1538_v6  ;;  %v2269_v44 = vmul.f32 %v9817_v56, %v1187_v36 }
 0x1de   : > { %v1540_v19 = vpop.f32.mrf.mxu1  ;;  %v1189_v33 = vpop.f32.mrf.mxu0  ;;  %v9935_v40 = vrot.slane %v1726_v42, %v8296_v11 }
 0x1df   : > { %v9926_v16 = vadd.f32 %v9837_v62, %v2268_v49  ;;  %v9929_v59 = vadd.f32 %v9840_v22, %v2269_v44  ;;  %v2271_v3 = vmul.f32 %v9830_v17, %v1540_v19  ;;  %v2270_v38 = vmul.f32 %v9834_v43, %v1189_v33 }
 0x1e0   : > { %v1542_v28 = vpop.f32.mrf.mxu1  ;;  %v1193_v29 = vpop.f32.mrf.mxu0  ;;  %7500 = vmatmul.mubr.msk.bf16.gmra.mxu0 %vm782_vm0, %v7866_v53 }
 0x1e1   : > { %v9938_v6 = vadd.f32 %v9850_v30, %v2271_v3  ;;  %v9941_v62 = vadd.f32 %v9853_v48, %v2270_v38  ;;  %v2272_v22 = vmul.f32 %v9847_v39, %v1542_v28  ;;  %v2273_v36 = vmul.f32 %v9908_v14, %v1193_v29  ;;  %3250 = vmatprep.mubr.bf16.mxu0 %v12225_v20  ;;  %v7867_v38 = vld [vmem:[%s8275_s12 + $0x1a8] sm:$0xff]  }
 0x1e2   : > { %v1546_v49 = vpop.f32.mrf.mxu1  ;;  %7532 = vmatmul.mubr.msk.bf16.gmra.mxu1 %vm782_vm0, %v7866_v53  ;;  %v1195_v44 = vpop.f32.mrf.mxu0 }
 0x1e3   : > { %v9948_v42 = vadd.f32 %v9860_v57, %v2272_v22  ;;  %v9951_v19 = vadd.f32 %v9863_v1, %v2273_v36  ;;  %v2275_v30 = vmul.f32 %v9920_v35, %v1546_v49  ;;  %v2274_v48 = vmul.f32 %v9923_v26, %v1195_v44  ;;  %3603 = vmatprep.mubr.bf16.mxu1 %v12225_v20 }
 0x1e4   : > { %v1548_v33 = vpop.f32.mrf.mxu1  ;;  %v1197_v3 = vpop.f32.mrf.mxu0 }
 0x1e5   : > { %v9958_v28 = vadd.f32 %v9870_v15, %v2275_v30  ;;  %v9961_v53 = vadd.f32 %v9873_v50, %v2274_v48  ;;  %v2276_v57 = vmul.f32 %v9935_v40, %v1548_v33  ;;  %v2277_v1 = vmul.f32 %v9908_v14, %v1197_v3 }
 0x1e6   : > { %v1550_v29 = vpop.f32.mrf.mxu1  ;;  %v1199_v22 = vpop.f32.mrf.mxu0  ;;  %v1728_v50 = vcombine.high %v9794_v27, %v9794_v27 }
 0x1e7   : > { %v9966_v36 = vadd.f32 %v9878_v54, %v2276_v57  ;;  %v9969_v49 = vadd.f32 %v9881_v47, %v2277_v1  ;;  %v2279_v44 = vmul.f32 %v9920_v35, %v1550_v29  ;;  %v2278_v15 = vmul.f32 %v9923_v26, %v1199_v22 }
 0x1e8   : > { %v1552_v30 = vpop.f32.mrf.mxu1  ;;  %v1203_v24 = vpop.f32.mrf.mxu0  ;;  %7501 = vmatmul.mubr.msk.bf16.gmra.mxu0 %vm782_vm0, %v7867_v38 }
 0x1e9   : > { %v2408_v48 = vadd.f32 %v9889_v60, %v2279_v44  ;;  %v2393_v54 = vadd.f32 %v9892_v41, %v2278_v15  ;;  %v2280_v33 = vmul.f32 %v9935_v40, %v1552_v30  ;;  %v2281_v47 = vmul.f32 %v9908_v14, %v1203_v24  ;;  %3260 = vmatprep.mubr.bf16.mxu0 %v12225_v20  ;;  %v7868_v44 = vld [vmem:[%s8275_s12 + $0x1b0] sm:$0xff]  }
 0x1ea   : > { %v1556_v3 = vpop.f32.mrf.mxu1  ;;  %7533 = vmatmul.mubr.msk.bf16.gmra.mxu1 %vm782_vm0, %v7867_v38  ;;  %v1205_v57 = vpop.f32.mrf.mxu0  ;;  %v9988_v24 = vrot.slane %v1728_v50, %v8287_v8 }
 0x1eb   : > { %v2423_v1 = vadd.f32 %v9899_v45, %v2280_v33  ;;  %v2438_v29 = vadd.f32 %v9902_v32, %v2281_v47  ;;  %v2283_v27 = vmul.f32 %v9920_v35, %v1556_v3  ;;  %v2282_v60 = vmul.f32 %v9923_v26, %v1205_v57  ;;  %3613 = vmatprep.mubr.bf16.mxu1 %v12225_v20 }
 0x1ec   : > { %v1558_v41 = vpop.f32.mrf.mxu1  ;;  %v1207_v22 = vpop.f32.mrf.mxu0  ;;  %12260 = vst [vmem:[#allocation52_spill] sm:$0xff] %v9988_v24  ;;  %v9996_v47 = vrot.slane %v1728_v50, %v8293_v10  ;;  %v9999_v3 = vrot.slane %v1728_v50, %v8290_v9 }
 0x1ed   : > { %v2468_v15 = vadd.f32 %v9912_v51, %v2283_v27  ;;  %v2453_v38 = vadd.f32 %v9915_v61, %v2282_v60  ;;  %v2284_v45 = vmul.f32 %v9935_v40, %v1558_v41  ;;  %v2285_v32 = vmul.f32 %v9908_v14, %v1207_v22 }
 0x1ee   : > { %v1560_v30 = vpop.f32.mrf.mxu1  ;;  %v1209_v33 = vpop.f32.mrf.mxu0  ;;  %12261 = vst [vmem:[#allocation53_spill] sm:$0xff] %v9996_v47  ;;  %12262 = vst [vmem:[#allocation54_spill] sm:$0xff] %v9999_v3  ;;  %v10007_v41 = vrot.slane %v1728_v50, %v8296_v11 }
 0x1ef   : > { %v2483_v57 = vadd.f32 %v9926_v16, %v2284_v45  ;;  %v2498_v8 = vadd.f32 %v9929_v59, %v2285_v32  ;;  %v2287_v51 = vmul.f32 %v9920_v35, %v1560_v30  ;;  %v2286_v61 = vmul.f32 %v9923_v26, %v1209_v33 }
 0x1f0   : > { %v1562_v27 = vpop.f32.mrf.mxu1  ;;  %v1213_v60 = vpop.f32.mrf.mxu0  ;;  %7502 = vmatmul.mubr.msk.bf16.gmra.mxu0 %vm782_vm0, %v7868_v44  ;;  %12263 = vst [vmem:[#allocation55_spill] sm:$0xff] %v10007_v41 }
 0x1f1   : > { %v2528_v22 = vadd.f32 %v9938_v6, %v2287_v51  ;;  %v2513_v9 = vadd.f32 %v9941_v62, %v2286_v61  ;;  %v2288_v16 = vmul.f32 %v9935_v40, %v1562_v27  ;;  %v2289_v59 = vmul.f32 %v9988_v24, %v1213_v60  ;;  %3270 = vmatprep.mubr.bf16.mxu0 %v12225_v20  ;;  %v7869_v61 = vld [vmem:[%s8275_s12 + $0x1b8] sm:$0xff]  }
 0x1f2   : > { %v1566_v45 = vpop.f32.mrf.mxu1  ;;  %7534 = vmatmul.mubr.msk.bf16.gmra.mxu1 %vm782_vm0, %v7868_v44  ;;  %v1215_v32 = vpop.f32.mrf.mxu0 }
 0x1f3   : > { %v2543_v30 = vadd.f32 %v9948_v42, %v2288_v16  ;;  %v10017_v50 = vadd.f32 %v9951_v19, %v2289_v59  ;;  %v2291_v33 = vmul.f32 %v9996_v47, %v1566_v45  ;;  %v2290_v6 = vmul.f32 %v9999_v3, %v1215_v32  ;;  %3623 = vmatprep.mubr.bf16.mxu1 %v12225_v20 }
 0x1f4   : > { %v1568_v62 = vpop.f32.mrf.mxu1  ;;  %v1217_v51 = vpop.f32.mrf.mxu0 }
 0x1f5   : > { %12264 = vst [vmem:[#allocation56_spill] sm:$0xff] %v10017_v50  ;;  %v10024_v27 = vadd.f32 %v9958_v28, %v2291_v33  ;;  %v10027_v44 = vadd.f32 %v9961_v53, %v2290_v6  ;;  %v2292_v42 = vmul.f32 %v10007_v41, %v1568_v62  ;;  %v2293_v19 = vmul.f32 %v9988_v24, %v1217_v51 }
 0x1f6   : > { %v1570_v60 = vpop.f32.mrf.mxu1  ;;  %v1219_v16 = vpop.f32.mrf.mxu0 }
 0x1f7   : > { %12265 = vst [vmem:[#allocation57_spill] sm:$0xff] %v10024_v27  ;;  %12266 = vst [vmem:[#allocation58_spill] sm:$0xff] %v10027_v44  ;;  %v10032_v59 = vadd.f32 %v9966_v36, %v2292_v42  ;;  %v10035_v45 = vadd.f32 %v9969_v49, %v2293_v19  ;;  %v2295_v32 = vmul.f32 %v9996_v47, %v1570_v60 }
 0x1f8   : > { %v2294_v28 = vmul.f32 %v9999_v3, %v1219_v16  ;;  %v1572_v33 = vpop.f32.mrf.mxu1  ;;  %v1223_v11 = vpop.f32.mrf.mxu0  ;;  %7503 = vmatmul.mubr.msk.bf16.gmra.mxu0 %vm782_vm0, %v7869_v61 }
 0x1f9   : > { %12267 = vst [vmem:[#allocation59_spill] sm:$0xff] %v10032_v59  ;;  %12268 = vst [vmem:[#allocation60_spill] sm:$0xff] %v10035_v45  ;;  %v10040_v53 = vadd.f32 %v2408_v48, %v2295_v32  ;;  %v2296_v62 = vmul.f32 %v10007_v41, %v1572_v33  ;;  %v2297_v36 = vmul.f32 %v9988_v24, %v1223_v11  ;;  %3280 = vmatprep.mubr.bf16.mxu0 %v12225_v20  ;;  %v7870_v32 = vld [vmem:[%s8275_s12 + $0x1c0] sm:$0xff]   ;;  %v12281_v45 = vld [vmem:[#allocation25_spill] sm:$0xff] }
 0x1fa   : > { %v10042_v6 = vadd.f32 %v2393_v54, %v2294_v28  ;;  %v1576_v49 = vpop.f32.mrf.mxu1  ;;  %7535 = vmatmul.mubr.msk.bf16.gmra.mxu1 %vm782_vm0, %v7869_v61  ;;  %v1225_v51 = vpop.f32.mrf.mxu0 }
 0x1fb   : > { %12269 = vst [vmem:[#allocation61_spill] sm:$0xff] %v10040_v53  ;;  %v10048_v42 = vadd.f32 %v2423_v1, %v2296_v62  ;;  %v10050_v19 = vadd.f32 %v2438_v29, %v2297_v36  ;;  %v2299_v60 = vmul.f32 %v9996_v47, %v1576_v49  ;;  %v2298_v48 = vmul.f32 %v9999_v3, %v1225_v51 }
 0x1fc   : > { %12270 = vst [vmem:[#allocation62_spill] sm:$0xff] %v10042_v6  ;;  %3633 = vmatprep.mubr.bf16.mxu1 %v12225_v20  ;;  %v1578_v54 = vpop.f32.mrf.mxu1  ;;  %v1227_v16 = vpop.f32.mrf.mxu0 }
 0x1fd   : > { %12271 = vst [vmem:[#allocation63_spill] sm:$0xff] %v10048_v42  ;;  %12272 = vst [vmem:[#allocation64_spill] sm:$0xff] %v10050_v19  ;;  %v10056_v11 = vadd.f32 %v2468_v15, %v2299_v60  ;;  %v10058_v28 = vadd.f32 %v2453_v38, %v2298_v48  ;;  %v2300_v61 = vmul.f32 %v10007_v41, %v1578_v54  ;;  %v12280_v19 = vld [vmem:[#allocation24_spill] sm:$0xff] }
 0x1fe   : > { %v2301_v1 = vmul.f32 %v9988_v24, %v1227_v16  ;;  %v1580_v33 = vpop.f32.mrf.mxu1  ;;  %v1229_v29 = vpop.f32.mrf.mxu0 }
 0x1ff   : > { %12273 = vst [vmem:[#allocation65_spill] sm:$0xff] %v10056_v11  ;;  %12274 = vst [vmem:[#allocation66_spill] sm:$0xff] %v10058_v28  ;;  %v10062_v62 = vadd.f32 %v2483_v57, %v2300_v61  ;;  %v2303_v49 = vmul.f32 %v9996_v47, %v1580_v33  ;;  %v2302_v51 = vmul.f32 %v9999_v3, %v1229_v29 }
 0x200   : > { %v10064_v36 = vadd.f32 %v2498_v8, %v2301_v1  ;;  %v1582_v10 = vpop.f32.mrf.mxu1  ;;  %v3042_v15 = vpop.f32.mrf.mxu0  ;;  %7504 = vmatmul.mubr.msk.bf16.gmra.mxu0 %vm782_vm0, %v7870_v32  ;;  %v7871_v1 = vld [vmem:[%s8275_s12 + $0x1c8] sm:$0xff]  }
 0x201   : > { %12275 = vst [vmem:[#allocation67_spill] sm:$0xff] %v10062_v62  ;;  %v10069_v38 = vadd.f32 %v2528_v22, %v2303_v49  ;;  %v10071_v60 = vadd.f32 %v2513_v9, %v2302_v51  ;;  %v2304_v48 = vmul.f32 %v10007_v41, %v1582_v10  ;;  %3290 = vmatprep.mubr.bf16.mxu0 %v12225_v20  ;;  %v7872_v51 = vld [vmem:[%s8275_s12 + $0x1d0] sm:$0xff]   ;;  %v7873_v41 = vld [vmem:[%s8275_s12 + $0x1d8] sm:$0xff]  }
 0x202   : > { %12276 = vst [vmem:[#allocation68_spill] sm:$0xff] %v10064_v36  ;;  %v3395_v57 = vpop.f32.mrf.mxu1  ;;  %7536 = vmatmul.mubr.msk.bf16.gmra.mxu1 %vm782_vm0, %v7870_v32  ;;  %v3044_v8 = vpop.f32.mrf.mxu0  ;;  %v3714_v36 = vmul.f32 %v3042_v15, %v8630_v5  ;;  %v12282_v15 = vld [vmem:[#allocation26_spill] sm:$0xff] }
 0x203   : > { %12277 = vst [vmem:[#allocation69_spill] sm:$0xff] %v10069_v38  ;;  %12278 = vst [vmem:[#allocation70_spill] sm:$0xff] %v10071_v60  ;;  %v10076_v54 = vadd.f32 %v2543_v30, %v2304_v48  ;;  %3643 = vmatprep.mubr.bf16.mxu1 %v12225_v20  ;;  %v3716_v62 = vmul.f32 %v3395_v57, %v8637_v12  ;;  %v3715_v42 = vmul.f32 %v3044_v8, %v12280_v19  ;;  %v12283_v8 = vld [vmem:[#allocation27_spill] sm:$0xff] }
 0x204   : > { %v3397_v16 = vpop.f32.mrf.mxu1  ;;  %v3046_v61 = vpop.f32.mrf.mxu0 }
 0x205   : > { %12279 = vst [vmem:[#allocation71_spill] sm:$0xff] %v10076_v54  ;;  %v3718_v44 = vmul.f32 %v3046_v61, %v8630_v5 }
 0x206   : > { %v3399_v22 = vpop.f32.mrf.mxu1  ;;  %v3048_v33 = vpop.f32.mrf.mxu0 }
 0x208   : > { %v3401_v9 = vpop.f32.mrf.mxu1  ;;  %v3052_v29 = vpop.f32.mrf.mxu0  ;;  %7505 = vmatmul.mubr.msk.bf16.gmra.mxu0 %vm782_vm0, %v7871_v1 }
 0x209   : > { %3300 = vmatprep.mubr.bf16.mxu0 %v12225_v20 }
 0x20a   : > { %v3405_v10 = vpop.f32.mrf.mxu1  ;;  %7537 = vmatmul.mubr.msk.bf16.gmra.mxu1 %vm782_vm0, %v7871_v1  ;;  %v3054_v32 = vpop.f32.mrf.mxu0 }
 0x20b   : > { %3653 = vmatprep.mubr.bf16.mxu1 %v12225_v20 }
 0x20c   : > { %v3407_v30 = vpop.f32.mrf.mxu1  ;;  %v3056_v49 = vpop.f32.mrf.mxu0 }
 0x20e   : > { %v10085_v48 = vpop.f32.mrf.mxu1  ;;  %v10087_v54 = vpop.f32.mrf.mxu0 }
 0x210   : > { %v10089_v60 = vpop.f32.mrf.mxu1  ;;  %v3062_v38 = vpop.f32.mrf.mxu0  ;;  %7506 = vmatmul.mubr.msk.bf16.gmra.mxu0 %vm782_vm0, %v7872_v51 }
 0x211   : > { %v3730_v1 = vmul.f32 %v3062_v38, %v8634_v7  ;;  %3310 = vmatprep.mubr.bf16.mxu0 %v12225_v20  ;;  %v3717_v38 = vmul.f32 %v3397_v16, %v12282_v15 }
 0x212   : > { %v3415_v28 = vpop.f32.mrf.mxu1  ;;  %7538 = vmatmul.mubr.msk.bf16.gmra.mxu1 %vm782_vm0, %v7872_v51  ;;  %v3064_v11 = vpop.f32.mrf.mxu0 }
 0x213   : > { %v10098_v6 = vadd.f32 %v3730_v1, %v3714_v36  ;;  %v3732_v53 = vmul.f32 %v3415_v28, %v8648_v23  ;;  %v3731_v59 = vmul.f32 %v3064_v11, %v12281_v45  ;;  %3663 = vmatprep.mubr.bf16.mxu1 %v12225_v20  ;;  %v3720_v28 = vmul.f32 %v3399_v22, %v8637_v12 }
 0x214   : > { %v3417_v27 = vpop.f32.mrf.mxu1  ;;  %v3066_v57 = vpop.f32.mrf.mxu0  ;;  %v3719_v11 = vmul.f32 %v3048_v33, %v12280_v19 }
 0x215   : > { %v10106_v50 = vadd.f32 %v3732_v53, %v3716_v62  ;;  %v10108_v51 = vadd.f32 %v3731_v59, %v3715_v42  ;;  %v3733_v36 = vmul.f32 %v3417_v27, %v12283_v8  ;;  %v3734_v1 = vmul.f32 %v3066_v57, %v8634_v7 }
 0x216   : > { %v3419_v3 = vpop.f32.mrf.mxu1  ;;  %v3068_v47 = vpop.f32.mrf.mxu0  ;;  %v3721_v59 = vmul.f32 %v3401_v9, %v12282_v15  ;;  %v3722_v27 = vmul.f32 %v3052_v29, %v8630_v5 }
 0x217   : > { %v10114_v16 = vadd.f32 %v3733_v36, %v3717_v38  ;;  %v10116_v61 = vadd.f32 %v3734_v1, %v3718_v44  ;;  %v3736_v24 = vmul.f32 %v3419_v3, %v8648_v23  ;;  %v3735_v53 = vmul.f32 %v3068_v47, %v12281_v45 }
 0x218   : > { %v3421_v42 = vpop.f32.mrf.mxu1  ;;  %v3072_v62 = vpop.f32.mrf.mxu0  ;;  %7507 = vmatmul.mubr.msk.bf16.gmra.mxu0 %vm782_vm0, %v7873_v41  ;;  %v3724_v47 = vmul.f32 %v3405_v10, %v8637_v12  ;;  %v3723_v3 = vmul.f32 %v3054_v32, %v12280_v19  ;;  %v3726_v10 = vmul.f32 %v3056_v49, %v8630_v5 }
 0x219   : > { %v10123_v22 = vadd.f32 %v3736_v24, %v3720_v28  ;;  %v10125_v33 = vadd.f32 %v3735_v53, %v3719_v11  ;;  %v3737_v38 = vmul.f32 %v3421_v42, %v12283_v8  ;;  %v3738_v44 = vmul.f32 %v3072_v62, %v8634_v7  ;;  %3320 = vmatprep.mubr.bf16.mxu0 %v12225_v20  ;;  %v7874_v53 = vld [vmem:[%s8275_s12 + $0x1e0] sm:$0xff]  }
 0x21a   : > { %v3425_v9 = vpop.f32.mrf.mxu1  ;;  %7539 = vmatmul.mubr.msk.bf16.gmra.mxu1 %vm782_vm0, %v7873_v41  ;;  %v3074_v29 = vpop.f32.mrf.mxu0  ;;  %v3725_v28 = vmul.f32 %v3407_v30, %v12282_v15  ;;  %v3728_v62 = vmul.f32 %v10085_v48, %v8637_v12 }
 0x21b   : > { %v10133_v57 = vadd.f32 %v3737_v38, %v3721_v59  ;;  %v10135_v24 = vadd.f32 %v3738_v44, %v3722_v27  ;;  %v3740_v36 = vmul.f32 %v3425_v9, %v8648_v23  ;;  %v3739_v1 = vmul.f32 %v3074_v29, %v12281_v45  ;;  %3673 = vmatprep.mubr.bf16.mxu1 %v12225_v20 }
 0x21c   : > { %v3427_v11 = vpop.f32.mrf.mxu1  ;;  %v3076_v32 = vpop.f32.mrf.mxu0  ;;  %v3727_v38 = vmul.f32 %v10087_v54, %v12280_v19  ;;  %v12284_v54 = vld [vmem:[#allocation28_spill] sm:$0xff] }
 0x21d   : > { %v4120_v42 = vadd.f32 %v3740_v36, %v3724_v47  ;;  %v4105_v41 = vadd.f32 %v3739_v1, %v3723_v3  ;;  %v3741_v59 = vmul.f32 %v3427_v11, %v12283_v8  ;;  %v3742_v27 = vmul.f32 %v3076_v32, %v8634_v7 }
 0x21e   : > { %v3429_v44 = vpop.f32.mrf.mxu1  ;;  %v3078_v9 = vpop.f32.mrf.mxu0  ;;  %v3729_v47 = vmul.f32 %v10089_v60, %v12282_v15  ;;  %v12285_v15 = vld [vmem:[#allocation29_spill] sm:$0xff] }
 0x21f   : > { %v4135_v30 = vadd.f32 %v3741_v59, %v3725_v28  ;;  %v4150_v29 = vadd.f32 %v3742_v27, %v3726_v10  ;;  %v3744_v5 = vmul.f32 %v3429_v44, %v8648_v23  ;;  %v3743_v49 = vmul.f32 %v3078_v9, %v12281_v45  ;;  %v12286_v10 = vld [vmem:[#allocation30_spill] sm:$0xff] }
 0x220   : > { %v3431_v3 = vpop.f32.mrf.mxu1  ;;  %v3082_v36 = vpop.f32.mrf.mxu0  ;;  %7508 = vmatmul.mubr.msk.bf16.gmra.mxu0 %vm782_vm0, %v7874_v53 }
 0x221   : > { %v4180_v7 = vadd.f32 %v3744_v5, %v3728_v62  ;;  %v4165_v12 = vadd.f32 %v3743_v49, %v3727_v38  ;;  %v3745_v19 = vmul.f32 %v3431_v3, %v12283_v8  ;;  %v3746_v48 = vmul.f32 %v3082_v36, %v12284_v54  ;;  %3330 = vmatprep.mubr.bf16.mxu0 %v12225_v20  ;;  %v7875_v8 = vld [vmem:[%s8275_s12 + $0x1e8] sm:$0xff]  }
 0x222   : > { %v3435_v1 = vpop.f32.mrf.mxu1  ;;  %7540 = vmatmul.mubr.msk.bf16.gmra.mxu1 %vm782_vm0, %v7874_v53  ;;  %v3084_v23 = vpop.f32.mrf.mxu0  ;;  %v12287_v38 = vld [vmem:[#allocation31_spill] sm:$0xff] }
 0x223   : > { %v4195_v45 = vadd.f32 %v3745_v19, %v3729_v47  ;;  %v3971_v60 = vadd.f32 %v10098_v6, %v3746_v48  ;;  %v3748_v28 = vmul.f32 %v3435_v1, %v12285_v15  ;;  %v3747_v11 = vmul.f32 %v3084_v23, %v12286_v10  ;;  %3683 = vmatprep.mubr.bf16.mxu1 %v12225_v20 }
 0x224   : > { %v3437_v32 = vpop.f32.mrf.mxu1  ;;  %v3086_v59 = vpop.f32.mrf.mxu0 }
 0x225   : > { %v4001_v27 = vadd.f32 %v10106_v50, %v3748_v28  ;;  %v3986_v62 = vadd.f32 %v10108_v51, %v3747_v11  ;;  %v3749_v44 = vmul.f32 %v3437_v32, %v12287_v38  ;;  %v3750_v53 = vmul.f32 %v3086_v59, %v12284_v54  ;;  %v7876_v59 = vld [vmem:[%s8275_s12 + $0x1f0] sm:$0xff]  }
 0x226   : > { %v3439_v9 = vpop.f32.mrf.mxu1  ;;  %v3088_v5 = vpop.f32.mrf.mxu0 }
 0x227   : > { %v4016_v6 = vadd.f32 %v10114_v16, %v3749_v44  ;;  %v4031_v49 = vadd.f32 %v10116_v61, %v3750_v53  ;;  %v3752_v47 = vmul.f32 %v3439_v9, %v12285_v15  ;;  %v3751_v3 = vmul.f32 %v3088_v5, %v12286_v10 }
 0x228   : > { %v3441_v36 = vpop.f32.mrf.mxu1  ;;  %v3092_v19 = vpop.f32.mrf.mxu0  ;;  %7509 = vmatmul.mubr.msk.bf16.gmra.mxu0 %vm782_vm0, %v7875_v8 }
 0x229   : > { %v4061_v50 = vadd.f32 %v10123_v22, %v3752_v47  ;;  %v4046_v51 = vadd.f32 %v10125_v33, %v3751_v3  ;;  %v3753_v48 = vmul.f32 %v3441_v36, %v12287_v38  ;;  %v3754_v1 = vmul.f32 %v3092_v19, %v12284_v54  ;;  %3340 = vmatprep.mubr.bf16.mxu0 %v12225_v20 }
 0x22a   : > { %v3445_v16 = vpop.f32.mrf.mxu1  ;;  %7541 = vmatmul.mubr.msk.bf16.gmra.mxu1 %vm782_vm0, %v7875_v8  ;;  %v3094_v61 = vpop.f32.mrf.mxu0 }
 0x22b   : > { %v4076_v23 = vadd.f32 %v10133_v57, %v3753_v48  ;;  %v4091_v28 = vadd.f32 %v10135_v24, %v3754_v1  ;;  %v3756_v11 = vmul.f32 %v3445_v16, %v12285_v15  ;;  %v3755_v22 = vmul.f32 %v3094_v61, %v12286_v10  ;;  %3693 = vmatprep.mubr.bf16.mxu1 %v12225_v20  ;;  %v12288_v16 = vld [vmem:[#allocation32_spill] sm:$0xff] }
 0x22c   : > { %v3447_v33 = vpop.f32.mrf.mxu1  ;;  %v3096_v32 = vpop.f32.mrf.mxu0 }
 0x22d   : > { %v4121_v44 = vadd.f32 %v4120_v42, %v3756_v11  ;;  %v4106_v53 = vadd.f32 %v4105_v41, %v3755_v22  ;;  %v3757_v9 = vmul.f32 %v3447_v33, %v12287_v38  ;;  %v3758_v8 = vmul.f32 %v3096_v32, %v12284_v54  ;;  %v12289_v11 = vld [vmem:[#allocation33_spill] sm:$0xff] }
 0x22e   : > { %v3449_v5 = vpop.f32.mrf.mxu1  ;;  %v3098_v47 = vpop.f32.mrf.mxu0  ;;  %v7877_v33 = vld [vmem:[%s8275_s12 + $0x1f8] sm:$0xff]  }
 0x22f   : > { %v4136_v57 = vadd.f32 %v4135_v30, %v3757_v9  ;;  %v4151_v3 = vadd.f32 %v4150_v29, %v3758_v8  ;;  %v3760_v24 = vmul.f32 %v3449_v5, %v12285_v15  ;;  %v3759_v36 = vmul.f32 %v3098_v47, %v12286_v10  ;;  %v12290_v9 = vld [vmem:[#allocation34_spill] sm:$0xff] }
 0x230   : > { %v3451_v19 = vpop.f32.mrf.mxu1  ;;  %v3102_v48 = vpop.f32.mrf.mxu0  ;;  %7510 = vmatmul.mubr.msk.bf16.gmra.mxu0 %vm782_vm0, %v7876_v59 }
 0x231   : > { %v4181_v1 = vadd.f32 %v4180_v7, %v3760_v24  ;;  %v4166_v42 = vadd.f32 %v4165_v12, %v3759_v36  ;;  %v3761_v41 = vmul.f32 %v3451_v19, %v12287_v38  ;;  %v3762_v61 = vmul.f32 %v3102_v48, %v12288_v16  ;;  %3350 = vmatprep.mubr.bf16.mxu0 %v12225_v20 }
 0x232   : > { %v3455_v54 = vpop.f32.mrf.mxu1  ;;  %7542 = vmatmul.mubr.msk.bf16.gmra.mxu1 %vm782_vm0, %v7876_v59  ;;  %v3104_v30 = vpop.f32.mrf.mxu0 }
 0x233   : > { %v4196_v29 = vadd.f32 %v4195_v45, %v3761_v41  ;;  %v3972_v15 = vadd.f32 %v3971_v60, %v3762_v61  ;;  %v3764_v10 = vmul.f32 %v3455_v54, %v8820_v18  ;;  %v3763_v22 = vmul.f32 %v3104_v30, %v12289_v11  ;;  %3703 = vmatprep.mubr.bf16.mxu1 %v12225_v20 }
 0x234   : > { %v3457_v7 = vpop.f32.mrf.mxu1  ;;  %v3106_v12 = vpop.f32.mrf.mxu0 }
 0x235   : > { %v4002_v38 = vadd.f32 %v4001_v27, %v3764_v10  ;;  %v3987_v32 = vadd.f32 %v3986_v62, %v3763_v22  ;;  %v3765_v8 = vmul.f32 %v3457_v7, %v12290_v9  ;;  %v3766_v5 = vmul.f32 %v3106_v12, %v12288_v16  ;;  %v7878_v7 = vld [vmem:[%s8275_s12 + $0x200] sm:$0xff]  }
 0x236   : > { %v3459_v47 = vpop.f32.mrf.mxu1  ;;  %v3108_v59 = vpop.f32.mrf.mxu0 }
 0x237   : > { %v4017_v24 = vadd.f32 %v4016_v6, %v3765_v8  ;;  %v4032_v45 = vadd.f32 %v4031_v49, %v3766_v5  ;;  %v3768_v60 = vmul.f32 %v3459_v47, %v8820_v18  ;;  %v3767_v36 = vmul.f32 %v3108_v59, %v12289_v11 }
 0x238   : > { %v3461_v19 = vpop.f32.mrf.mxu1  ;;  %v3112_v48 = vpop.f32.mrf.mxu0  ;;  %7511 = vmatmul.mubr.msk.bf16.gmra.mxu0 %vm782_vm0, %v7877_v33 }
 0x239   : > { %v4062_v41 = vadd.f32 %v4061_v50, %v3768_v60  ;;  %v4047_v27 = vadd.f32 %v4046_v51, %v3767_v36  ;;  %v3769_v62 = vmul.f32 %v3461_v19, %v12290_v9  ;;  %v3770_v61 = vmul.f32 %v3112_v48, %v12288_v16  ;;  %4583 = vmatprep.mubr.bf16.mxu0 %v12225_v20 }
 0x23a   : > { %v3465_v54 = vpop.f32.mrf.mxu1  ;;  %7543 = vmatmul.mubr.msk.bf16.gmra.mxu1 %vm782_vm0, %v7877_v33  ;;  %v3114_v6 = vpop.f32.mrf.mxu0 }
 0x23b   : > { %v4077_v49 = vadd.f32 %v4076_v23, %v3769_v62  ;;  %v4092_v30 = vadd.f32 %v4091_v28, %v3770_v61  ;;  %v3772_v10 = vmul.f32 %v3465_v54, %v8820_v18  ;;  %v3771_v22 = vmul.f32 %v3114_v6, %v12289_v11  ;;  %4936 = vmatprep.mubr.bf16.mxu1 %v12225_v20  ;;  %v12291_v61 = vld [vmem:[#allocation35_spill] sm:$0xff] }
 0x23c   : > { %v3467_v50 = vpop.f32.mrf.mxu1  ;;  %v3116_v51 = vpop.f32.mrf.mxu0 }
 0x23d   : > { %v4122_v12 = vadd.f32 %v4121_v44, %v3772_v10  ;;  %v4107_v8 = vadd.f32 %v4106_v53, %v3771_v22  ;;  %v3773_v5 = vmul.f32 %v3467_v50, %v12290_v9  ;;  %v3774_v47 = vmul.f32 %v3116_v51, %v12288_v16  ;;  %v12293_v10 = vld [vmem:[#allocation37_spill] sm:$0xff]  ;;  %v7879_v50 = vld [vmem:[%s8275_s12 + $0x208] sm:$0xff]  }
 0x23e   : > { %v3469_v59 = vpop.f32.mrf.mxu1  ;;  %v3118_v33 = vpop.f32.mrf.mxu0 }
 0x23f   : > { %v4137_v60 = vadd.f32 %v4136_v57, %v3773_v5  ;;  %v4152_v23 = vadd.f32 %v4151_v3, %v3774_v47  ;;  %v3776_v28 = vmul.f32 %v3469_v59, %v8820_v18  ;;  %v3775_v36 = vmul.f32 %v3118_v33, %v12289_v11  ;;  %v12292_v11 = vld [vmem:[#allocation36_spill] sm:$0xff]  ;;  %v12294_v5 = vld [vmem:[#allocation38_spill] sm:$0xff] }
 0x240   : > { %v3471_v19 = vpop.f32.mrf.mxu1  ;;  %v3122_v48 = vpop.f32.mrf.mxu0  ;;  %7640 = vmatmul.mubr.msk.bf16.vlgmr.msra.gmra.mxu0 %vm782_vm0, %v7878_v7 }
 0x241   : > { %v4182_v62 = vadd.f32 %v4181_v1, %v3776_v28  ;;  %v4167_v44 = vadd.f32 %v4166_v42, %v3775_v36  ;;  %v3777_v53 = vmul.f32 %v3471_v19, %v12290_v9  ;;  %v3778_v54 = vmul.f32 %v3122_v48, %v12291_v61  ;;  %4593 = vmatprep.mubr.bf16.mxu0 %v12225_v20 }
 0x242   : > { %v3475_v16 = vpop.f32.mrf.mxu1  ;;  %7672 = vmatmul.mubr.msk.bf16.vlgmr.msra.gmra.mxu1 %vm782_vm0, %v7878_v7  ;;  %v3124_v57 = vpop.f32.mrf.mxu0 }
 0x243   : > { %v4197_v18 = vadd.f32 %v4196_v29, %v3777_v53  ;;  %v3973_v3 = vadd.f32 %v3972_v15, %v3778_v54  ;;  %v3780_v6 = vmul.f32 %v3475_v16, %v12292_v11  ;;  %v3779_v22 = vmul.f32 %v3124_v57, %v12293_v10  ;;  %4946 = vmatprep.mubr.bf16.mxu1 %v12225_v20 }
 0x244   : > { %v3477_v1 = vpop.f32.mrf.mxu1  ;;  %v3126_v42 = vpop.f32.mrf.mxu0 }
 0x245   : > { %v4003_v9 = vadd.f32 %v4002_v38, %v3780_v6  ;;  %v3988_v51 = vadd.f32 %v3987_v32, %v3779_v22  ;;  %v3781_v47 = vmul.f32 %v3477_v1, %v12294_v5  ;;  %v3782_v59 = vmul.f32 %v3126_v42, %v12291_v61  ;;  %v7880_v1 = vld [vmem:[%s8275_s12 + $0x210] sm:$0xff]  }
 0x246   : > { %v3479_v33 = vpop.f32.mrf.mxu1  ;;  %v3128_v7 = vpop.f32.mrf.mxu0 }
 0x247   : > { %v4018_v28 = vadd.f32 %v4017_v24, %v3781_v47  ;;  %v4033_v29 = vadd.f32 %v4032_v45, %v3782_v59  ;;  %v3784_v15 = vmul.f32 %v3479_v33, %v12292_v11  ;;  %v3783_v36 = vmul.f32 %v3128_v7, %v12293_v10 }
 0x248   : > { %v3481_v19 = vpop.f32.mrf.mxu1  ;;  %v3132_v48 = vpop.f32.mrf.mxu0  ;;  %7641 = vmatmul.mubr.msk.bf16.gmra.mxu0 %vm782_vm0, %v7879_v50 }
 0x249   : > { %v4063_v53 = vadd.f32 %v4062_v41, %v3784_v15  ;;  %v4048_v38 = vadd.f32 %v4047_v27, %v3783_v36  ;;  %v3785_v32 = vmul.f32 %v3481_v19, %v12294_v5  ;;  %v3786_v54 = vmul.f32 %v3132_v48, %v12291_v61  ;;  %4603 = vmatprep.mubr.bf16.mxu0 %v12225_v20 }
 0x24a   : > { %v3485_v16 = vpop.f32.mrf.mxu1  ;;  %7673 = vmatmul.mubr.msk.bf16.gmra.mxu1 %vm782_vm0, %v7879_v50  ;;  %v3134_v24 = vpop.f32.mrf.mxu0 }
 0x24b   : > { %v4078_v45 = vadd.f32 %v4077_v49, %v3785_v32  ;;  %v4093_v57 = vadd.f32 %v4092_v30, %v3786_v54  ;;  %v3788_v6 = vmul.f32 %v3485_v16, %v12292_v11  ;;  %v3787_v22 = vmul.f32 %v3134_v24, %v12293_v10  ;;  %4956 = vmatprep.mubr.bf16.mxu1 %v12225_v20  ;;  %v7881_v24 = vld [vmem:[%s8275_s12 + $0x218] sm:$0xff]  }
 0x24c   : > { %v3487_v41 = vpop.f32.mrf.mxu1  ;;  %v3136_v27 = vpop.f32.mrf.mxu0 }
 0x24d   : > { %v4123_v42 = vadd.f32 %v4122_v12, %v3788_v6  ;;  %v4108_v47 = vadd.f32 %v4107_v8, %v3787_v22  ;;  %v3789_v59 = vmul.f32 %v3487_v41, %v12294_v5  ;;  %v3790_v33 = vmul.f32 %v3136_v27, %v12291_v61 }
 0x24e   : > { %v3489_v7 = vpop.f32.mrf.mxu1  ;;  %v3138_v50 = vpop.f32.mrf.mxu0 }
 0x24f   : > { %v4138_v15 = vadd.f32 %v4137_v60, %v3789_v59  ;;  %v4153_v49 = vadd.f32 %v4152_v23, %v3790_v33  ;;  %v3792_v30 = vmul.f32 %v3489_v7, %v12292_v11  ;;  %v3791_v36 = vmul.f32 %v3138_v50, %v12293_v10 }
 0x250   : > { %v3491_v19 = vpop.f32.mrf.mxu1  ;;  %v3142_v48 = vpop.f32.mrf.mxu0  ;;  %7642 = vmatmul.mubr.msk.bf16.gmra.mxu0 %vm782_vm0, %v7880_v1 }
 0x251   : > { %v4183_v32 = vadd.f32 %v4182_v62, %v3792_v30  ;;  %v4168_v12 = vadd.f32 %v4167_v44, %v3791_v36  ;;  %v3793_v8 = vmul.f32 %v3491_v19, %v12294_v5  ;;  %v3794_v54 = vmul.f32 %v3142_v48, %v9001_v55  ;;  %4613 = vmatprep.mubr.bf16.mxu0 %v12225_v20 }
 0x252   : > { %v3495_v61 = vpop.f32.mrf.mxu1  ;;  %7674 = vmatmul.mubr.msk.bf16.gmra.mxu1 %vm782_vm0, %v7880_v1  ;;  %v3144_v60 = vpop.f32.mrf.mxu0 }
 0x253   : > { %v4198_v23 = vadd.f32 %v4197_v18, %v3793_v8  ;;  %v3974_v11 = vadd.f32 %v3973_v3, %v3794_v54  ;;  %v3796_v10 = vmul.f32 %v3495_v61, %v9014_v34  ;;  %v3795_v16 = vmul.f32 %v3144_v60, %v9018_v63  ;;  %4966 = vmatprep.mubr.bf16.mxu1 %v12225_v20  ;;  %v7882_v61 = vld [vmem:[%s8275_s12 + $0x220] sm:$0xff]  }
 0x254   : > { %v3497_v62 = vpop.f32.mrf.mxu1  ;;  %v3146_v44 = vpop.f32.mrf.mxu0 }
 0x255   : > { %v4004_v5 = vadd.f32 %v4003_v9, %v3796_v10  ;;  %v3989_v6 = vadd.f32 %v3988_v51, %v3795_v16  ;;  %v3797_v22 = vmul.f32 %v3497_v62, %v9031_v21  ;;  %v3798_v41 = vmul.f32 %v3146_v44, %v9001_v55 }
 0x256   : > { %v3499_v27 = vpop.f32.mrf.mxu1  ;;  %v3148_v1 = vpop.f32.mrf.mxu0 }
 0x257   : > { %v4019_v59 = vadd.f32 %v4018_v28, %v3797_v22  ;;  %v4034_v18 = vadd.f32 %v4033_v29, %v3798_v41  ;;  %v3800_v3 = vmul.f32 %v3499_v27, %v9014_v34  ;;  %v3799_v33 = vmul.f32 %v3148_v1, %v9018_v63 }
 0x258   : > { %v3501_v7 = vpop.f32.mrf.mxu1  ;;  %v3152_v50 = vpop.f32.mrf.mxu0  ;;  %7643 = vmatmul.mubr.msk.bf16.gmra.mxu0 %vm782_vm0, %v7881_v24 }
 0x259   : > { %v4064_v30 = vadd.f32 %v4063_v53, %v3800_v3  ;;  %v4049_v9 = vadd.f32 %v4048_v38, %v3799_v33  ;;  %v3801_v51 = vmul.f32 %v3501_v7, %v9031_v21  ;;  %v3802_v36 = vmul.f32 %v3152_v50, %v9001_v55  ;;  %4623 = vmatprep.mubr.bf16.mxu0 %v12225_v20  ;;  %v12295_v7 = vld [vmem:[#allocation39_spill] sm:$0xff] }
 0x25a   : > { %v3505_v19 = vpop.f32.mrf.mxu1  ;;  %7675 = vmatmul.mubr.msk.bf16.gmra.mxu1 %vm782_vm0, %v7881_v24  ;;  %v3154_v28 = vpop.f32.mrf.mxu0 }
 0x25b   : > { %v4079_v29 = vadd.f32 %v4078_v45, %v3801_v51  ;;  %v4094_v48 = vadd.f32 %v4093_v57, %v3802_v36  ;;  %v3804_v8 = vmul.f32 %v3505_v19, %v9014_v34  ;;  %v3803_v54 = vmul.f32 %v3154_v28, %v9018_v63  ;;  %4976 = vmatprep.mubr.bf16.mxu1 %v12225_v20  ;;  %v7883_v51 = vld [vmem:[%s8275_s12 + $0x228] sm:$0xff]   ;;  %v12296_v19 = vld [vmem:[#allocation40_spill] sm:$0xff] }
 0x25c   : > { %v3507_v53 = vpop.f32.mrf.mxu1  ;;  %v3156_v38 = vpop.f32.mrf.mxu0 }
 0x25d   : > { %v4124_v60 = vadd.f32 %v4123_v42, %v3804_v8  ;;  %v4109_v10 = vadd.f32 %v4108_v47, %v3803_v54  ;;  %v3805_v16 = vmul.f32 %v3507_v53, %v9031_v21  ;;  %v3806_v62 = vmul.f32 %v3156_v38, %v9001_v55 }
 0x25e   : > { %v3509_v44 = vpop.f32.mrf.mxu1  ;;  %v3158_v24 = vpop.f32.mrf.mxu0 }
 0x25f   : > { %v4139_v22 = vadd.f32 %v4138_v15, %v3805_v16  ;;  %v4154_v45 = vadd.f32 %v4153_v49, %v3806_v62  ;;  %v3808_v57 = vmul.f32 %v3509_v44, %v9014_v34  ;;  %v3807_v41 = vmul.f32 %v3158_v24, %v9018_v63 }
 0x260   : > { %v3511_v27 = vpop.f32.mrf.mxu1  ;;  %v3162_v1 = vpop.f32.mrf.mxu0  ;;  %7644 = vmatmul.mubr.msk.bf16.gmra.mxu0 %vm782_vm0, %v7882_v61 }
 0x261   : > { %v4184_v3 = vadd.f32 %v4183_v32, %v3808_v57  ;;  %v4169_v42 = vadd.f32 %v4168_v12, %v3807_v41  ;;  %v3809_v47 = vmul.f32 %v3511_v27, %v9031_v21  ;;  %v3810_v33 = vmul.f32 %v3162_v1, %v9092_v52  ;;  %4633 = vmatprep.mubr.bf16.mxu0 %v12225_v20 }
 0x262   : > { %v3515_v55 = vpop.f32.mrf.mxu1  ;;  %7676 = vmatmul.mubr.msk.bf16.gmra.mxu1 %vm782_vm0, %v7882_v61  ;;  %v3164_v15 = vpop.f32.mrf.mxu0 }
 0x263   : > { %v4199_v34 = vadd.f32 %v4198_v23, %v3809_v47  ;;  %v3975_v49 = vadd.f32 %v3974_v11, %v3810_v33  ;;  %v3812_v63 = vmul.f32 %v3515_v55, %v9095_v25  ;;  %v3811_v50 = vmul.f32 %v3164_v15, %v12295_v7  ;;  %4986 = vmatprep.mubr.bf16.mxu1 %v12225_v20  ;;  %v7884_v47 = vld [vmem:[%s8275_s12 + $0x230] sm:$0xff]  }
 0x264   : > { %v3517_v32 = vpop.f32.mrf.mxu1  ;;  %v3166_v12 = vpop.f32.mrf.mxu0 }
 0x265   : > { %v4005_v21 = vadd.f32 %v4004_v5, %v3812_v63  ;;  %v3990_v36 = vadd.f32 %v3989_v6, %v3811_v50  ;;  %v3813_v28 = vmul.f32 %v3517_v32, %v12296_v19  ;;  %v3814_v8 = vmul.f32 %v3166_v12, %v9092_v52 }
 0x266   : > { %v3519_v54 = vpop.f32.mrf.mxu1  ;;  %v3168_v53 = vpop.f32.mrf.mxu0 }
 0x267   : > { %v4020_v38 = vadd.f32 %v4019_v59, %v3813_v28  ;;  %v4035_v23 = vadd.f32 %v4034_v18, %v3814_v8  ;;  %v3816_v11 = vmul.f32 %v3519_v54, %v9095_v25  ;;  %v3815_v61 = vmul.f32 %v3168_v53, %v12295_v7  ;;  %v12297_v53 = vld [vmem:[#allocation18_spill] sm:$0xff] }
 0x268   : > { %v3521_v16 = vpop.f32.mrf.mxu1  ;;  %v3172_v62 = vpop.f32.mrf.mxu0  ;;  %7645 = vmatmul.mubr.msk.bf16.gmra.mxu0 %vm782_vm0, %v7883_v51 }
 0x269   : > { %v4065_v44 = vadd.f32 %v4064_v30, %v3816_v11  ;;  %v4050_v5 = vadd.f32 %v4049_v9, %v3815_v61  ;;  %v3817_v6 = vmul.f32 %v3521_v16, %v12296_v19  ;;  %v3818_v24 = vmul.f32 %v3172_v62, %v9092_v52  ;;  %4643 = vmatprep.mubr.bf16.mxu0 %v12225_v20  ;;  %v12299_v16 = vld [vmem:[#allocation20_spill] sm:$0xff] }
 0x26a   : > { %v3525_v57 = vpop.f32.mrf.mxu1  ;;  %7677 = vmatmul.mubr.msk.bf16.gmra.mxu1 %vm782_vm0, %v7883_v51  ;;  %v3174_v59 = vpop.f32.mrf.mxu0 }
 0x26b   : > { %v4080_v18 = vadd.f32 %v4079_v29, %v3817_v6  ;;  %v4095_v41 = vadd.f32 %v4094_v48, %v3818_v24  ;;  %v3820_v27 = vmul.f32 %v3525_v57, %v9095_v25  ;;  %v3819_v1 = vmul.f32 %v3174_v59, %v12295_v7  ;;  %4996 = vmatprep.mubr.bf16.mxu1 %v12225_v20  ;;  %v7885_v6 = vld [vmem:[%s8275_s12 + $0x238] sm:$0xff]  }
 0x26c   : > { %v3527_v30 = vpop.f32.mrf.mxu1  ;;  %v3176_v9 = vpop.f32.mrf.mxu0  ;;  %v12300_v57 = vld [vmem:[#allocation21_spill] sm:$0xff] }
 0x26d   : > { %v4125_v33 = vadd.f32 %v4124_v60, %v3820_v27  ;;  %v4110_v55 = vadd.f32 %v4109_v10, %v3819_v1  ;;  %v3821_v15 = vmul.f32 %v3527_v30, %v12296_v19  ;;  %v3822_v63 = vmul.f32 %v3176_v9, %v9092_v52 }
 0x26e   : > { %v3529_v50 = vpop.f32.mrf.mxu1  ;;  %v3178_v32 = vpop.f32.mrf.mxu0 }
 0x26f   : > { %v4140_v12 = vadd.f32 %v4139_v22, %v3821_v15  ;;  %v4155_v29 = vadd.f32 %v4154_v45, %v3822_v63  ;;  %v3824_v48 = vmul.f32 %v3529_v50, %v9095_v25  ;;  %v3823_v51 = vmul.f32 %v3178_v32, %v12295_v7  ;;  %v12298_v7 = vld [vmem:[#allocation19_spill] sm:$0xff] }
 0x270   : > { %v3531_v28 = vpop.f32.mrf.mxu1  ;;  %v3182_v8 = vpop.f32.mrf.mxu0  ;;  %7646 = vmatmul.mubr.msk.bf16.gmra.mxu0 %vm782_vm0, %v7884_v47 }
 0x271   : > { %v4185_v54 = vadd.f32 %v4184_v3, %v3824_v48  ;;  %v4170_v60 = vadd.f32 %v4169_v42, %v3823_v51  ;;  %v3825_v10 = vmul.f32 %v3531_v28, %v12296_v19  ;;  %v3826_v11 = vmul.f32 %v3182_v8, %v12297_v53  ;;  %4653 = vmatprep.mubr.bf16.mxu0 %v12225_v20 }
 0x272   : > { %v3535_v52 = vpop.f32.mrf.mxu1  ;;  %7678 = vmatmul.mubr.msk.bf16.gmra.mxu1 %vm782_vm0, %v7884_v47  ;;  %v3184_v22 = vpop.f32.mrf.mxu0 }
 0x273   : > { %v4200_v25 = vadd.f32 %v4199_v34, %v3825_v10  ;;  %v3976_v45 = vadd.f32 %v3975_v49, %v3826_v11  ;;  %v3828_v61 = vmul.f32 %v3535_v52, %v12298_v7  ;;  %v3827_v62 = vmul.f32 %v3184_v22, %v12299_v16  ;;  %5006 = vmatprep.mubr.bf16.mxu1 %v12225_v20  ;;  %v7886_v10 = vld [vmem:[%s8275_s12 + $0x240] sm:$0xff]  }
 0x274   : > { %v3537_v3 = vpop.f32.mrf.mxu1  ;;  %v3186_v42 = vpop.f32.mrf.mxu0 }
 0x275   : > { %v4006_v19 = vadd.f32 %v4005_v21, %v3828_v61  ;;  %v3991_v24 = vadd.f32 %v3990_v36, %v3827_v62  ;;  %v3829_v59 = vmul.f32 %v3537_v3, %v12300_v57  ;;  %v3830_v27 = vmul.f32 %v3186_v42, %v12297_v53 }
 0x276   : > { %v3539_v1 = vpop.f32.mrf.mxu1  ;;  %v3188_v30 = vpop.f32.mrf.mxu0 }
 0x277   : > { %v4021_v9 = vadd.f32 %v4020_v38, %v3829_v59  ;;  %v4036_v34 = vadd.f32 %v4035_v23, %v3830_v27  ;;  %v3832_v49 = vmul.f32 %v3539_v1, %v12298_v7  ;;  %v3831_v47 = vmul.f32 %v3188_v30, %v12299_v16  ;;  %v12301_v30 = vld [vmem:[#allocation22_spill] sm:$0xff] }
 0x278   : > { %v3541_v15 = vpop.f32.mrf.mxu1  ;;  %v3192_v63 = vpop.f32.mrf.mxu0  ;;  %7647 = vmatmul.mubr.msk.bf16.gmra.mxu0 %vm782_vm0, %v7885_v6 }
 0x279   : > { %v4066_v50 = vadd.f32 %v4065_v44, %v3832_v49  ;;  %v4051_v21 = vadd.f32 %v4050_v5, %v3831_v47  ;;  %v3833_v36 = vmul.f32 %v3541_v15, %v12300_v57  ;;  %v3834_v32 = vmul.f32 %v3192_v63, %v12297_v53  ;;  %4663 = vmatprep.mubr.bf16.mxu0 %v12225_v20  ;;  %v12303_v15 = vld [vmem:[#allocation42_spill] sm:$0xff] }
 0x27a   : > { %v3545_v48 = vpop.f32.mrf.mxu1  ;;  %7679 = vmatmul.mubr.msk.bf16.gmra.mxu1 %vm782_vm0, %v7885_v6  ;;  %v3194_v38 = vpop.f32.mrf.mxu0 }
 0x27b   : > { %v4081_v23 = vadd.f32 %v4080_v18, %v3833_v36  ;;  %v4096_v51 = vadd.f32 %v4095_v41, %v3834_v32  ;;  %v3836_v28 = vmul.f32 %v3545_v48, %v12298_v7  ;;  %v3835_v8 = vmul.f32 %v3194_v38, %v12299_v16  ;;  %5016 = vmatprep.mubr.bf16.mxu1 %v12225_v20  ;;  %v7887_v36 = vld [vmem:[%s8275_s12 + $0x248] sm:$0xff]  }
 0x27c   : > { %v3547_v44 = vpop.f32.mrf.mxu1  ;;  %v3196_v5 = vpop.f32.mrf.mxu0  ;;  %v12304_v48 = vld [vmem:[#allocation43_spill] sm:$0xff] }
 0x27d   : > { %v4126_v11 = vadd.f32 %v4125_v33, %v3836_v28  ;;  %v4111_v52 = vadd.f32 %v4110_v55, %v3835_v8  ;;  %v3837_v22 = vmul.f32 %v3547_v44, %v12300_v57  ;;  %v3838_v61 = vmul.f32 %v3196_v5, %v12297_v53 }
 0x27e   : > { %v3549_v62 = vpop.f32.mrf.mxu1  ;;  %v3198_v3 = vpop.f32.mrf.mxu0 }
 0x27f   : > { %v4141_v42 = vadd.f32 %v4140_v12, %v3837_v22  ;;  %v4156_v18 = vadd.f32 %v4155_v29, %v3838_v61  ;;  %v3840_v41 = vmul.f32 %v3549_v62, %v12298_v7  ;;  %v3839_v6 = vmul.f32 %v3198_v3, %v12299_v16  ;;  %v12302_v16 = vld [vmem:[#allocation41_spill] sm:$0xff] }
 0x280   : > { %v3551_v59 = vpop.f32.mrf.mxu1  ;;  %v3202_v27 = vpop.f32.mrf.mxu0  ;;  %7648 = vmatmul.mubr.msk.bf16.gmra.mxu0 %vm782_vm0, %v7886_v10 }
 0x281   : > { %v4186_v1 = vadd.f32 %v4185_v54, %v3840_v41  ;;  %v4171_v33 = vadd.f32 %v4170_v60, %v3839_v6  ;;  %v3841_v55 = vmul.f32 %v3551_v59, %v12300_v57  ;;  %v3842_v49 = vmul.f32 %v3202_v27, %v12301_v30  ;;  %4673 = vmatprep.mubr.bf16.mxu0 %v12225_v20 }
 0x282   : > { %v3555_v53 = vpop.f32.mrf.mxu1  ;;  %7680 = vmatmul.mubr.msk.bf16.gmra.mxu1 %vm782_vm0, %v7886_v10  ;;  %v3204_v12 = vpop.f32.mrf.mxu0 }
 0x283   : > { %v4201_v29 = vadd.f32 %v4200_v25, %v3841_v55  ;;  %v3977_v7 = vadd.f32 %v3976_v45, %v3842_v49  ;;  %v3844_v47 = vmul.f32 %v3555_v53, %v12302_v16  ;;  %v3843_v63 = vmul.f32 %v3204_v12, %v12303_v15  ;;  %5026 = vmatprep.mubr.bf16.mxu1 %v12225_v20  ;;  %v7888_v55 = vld [vmem:[%s8275_s12 + $0x250] sm:$0xff]  }
 0x284   : > { %v3557_v54 = vpop.f32.mrf.mxu1  ;;  %v3206_v60 = vpop.f32.mrf.mxu0 }
 0x285   : > { %v4007_v57 = vadd.f32 %v4006_v19, %v3844_v47  ;;  %v3992_v32 = vadd.f32 %v3991_v24, %v3843_v63  ;;  %v3845_v38 = vmul.f32 %v3557_v54, %v12304_v48  ;;  %v3846_v28 = vmul.f32 %v3206_v60, %v12301_v30 }
 0x286   : > { %v3559_v8 = vpop.f32.mrf.mxu1  ;;  %v3208_v44 = vpop.f32.mrf.mxu0 }
 0x287   : > { %v4022_v5 = vadd.f32 %v4021_v9, %v3845_v38  ;;  %v4037_v25 = vadd.f32 %v4036_v34, %v3846_v28  ;;  %v3848_v45 = vmul.f32 %v3559_v8, %v12302_v16  ;;  %v3847_v10 = vmul.f32 %v3208_v44, %v12303_v15  ;;  %v12305_v44 = vld [vmem:[#allocation44_spill] sm:$0xff] }
 0x288   : > { %v3561_v22 = vpop.f32.mrf.mxu1  ;;  %v3212_v61 = vpop.f32.mrf.mxu0  ;;  %7649 = vmatmul.mubr.msk.bf16.gmra.mxu0 %vm782_vm0, %v7887_v36 }
 0x289   : > { %v4067_v62 = vadd.f32 %v4066_v50, %v3848_v45  ;;  %v4052_v19 = vadd.f32 %v4051_v21, %v3847_v10  ;;  %v3849_v24 = vmul.f32 %v3561_v22, %v12304_v48  ;;  %v3850_v3 = vmul.f32 %v3212_v61, %v12301_v30  ;;  %4683 = vmatprep.mubr.bf16.mxu0 %v12225_v20  ;;  %v12307_v22 = vld [vmem:[#allocation46_spill] sm:$0xff] }
 0x28a   : > { %v3565_v41 = vpop.f32.mrf.mxu1  ;;  %7681 = vmatmul.mubr.msk.bf16.gmra.mxu1 %vm782_vm0, %v7887_v36  ;;  %v3214_v9 = vpop.f32.mrf.mxu0 }
 0x28b   : > { %v4082_v34 = vadd.f32 %v4081_v23, %v3849_v24  ;;  %v4097_v6 = vadd.f32 %v4096_v51, %v3850_v3  ;;  %v3852_v59 = vmul.f32 %v3565_v41, %v12302_v16  ;;  %v3851_v27 = vmul.f32 %v3214_v9, %v12303_v15  ;;  %5036 = vmatprep.mubr.bf16.mxu1 %v12225_v20  ;;  %v7889_v24 = vld [vmem:[%s8275_s12 + $0x258] sm:$0xff]   ;;  %v12308_v41 = vld [vmem:[#allocation47_spill] sm:$0xff] }
 0x28c   : > { %v3567_v50 = vpop.f32.mrf.mxu1  ;;  %v3216_v21 = vpop.f32.mrf.mxu0 }
 0x28d   : > { %v4127_v49 = vadd.f32 %v4126_v11, %v3852_v59  ;;  %v4112_v53 = vadd.f32 %v4111_v52, %v3851_v27  ;;  %v3853_v12 = vmul.f32 %v3567_v50, %v12304_v48  ;;  %v3854_v47 = vmul.f32 %v3216_v21, %v12301_v30 }
 0x28e   : > { %v3569_v63 = vpop.f32.mrf.mxu1  ;;  %v3218_v54 = vpop.f32.mrf.mxu0 }
 0x28f   : > { %v4142_v60 = vadd.f32 %v4141_v42, %v3853_v12  ;;  %v4157_v23 = vadd.f32 %v4156_v18, %v3854_v47  ;;  %v3856_v51 = vmul.f32 %v3569_v63, %v12302_v16  ;;  %v3855_v36 = vmul.f32 %v3218_v54, %v12303_v15  ;;  %v12306_v15 = vld [vmem:[#allocation45_spill] sm:$0xff] }
 0x290   : > { %v3571_v38 = vpop.f32.mrf.mxu1  ;;  %v3222_v28 = vpop.f32.mrf.mxu0  ;;  %7650 = vmatmul.mubr.msk.bf16.gmra.mxu0 %vm782_vm0, %v7888_v55 }
 0x291   : > { %v4187_v8 = vadd.f32 %v4186_v1, %v3856_v51  ;;  %v4172_v11 = vadd.f32 %v4171_v33, %v3855_v36  ;;  %v3857_v52 = vmul.f32 %v3571_v38, %v12304_v48  ;;  %v3858_v45 = vmul.f32 %v3222_v28, %v12305_v44  ;;  %4693 = vmatprep.mubr.bf16.mxu0 %v12225_v20 }
 0x292   : > { %v3575_v30 = vpop.f32.mrf.mxu1  ;;  %7682 = vmatmul.mubr.msk.bf16.gmra.mxu1 %vm782_vm0, %v7888_v55  ;;  %v3224_v42 = vpop.f32.mrf.mxu0 }
 0x293   : > { %v4202_v18 = vadd.f32 %v4201_v29, %v3857_v52  ;;  %v3978_v16 = vadd.f32 %v3977_v7, %v3858_v45  ;;  %v3860_v10 = vmul.f32 %v3575_v30, %v12306_v15  ;;  %v3859_v61 = vmul.f32 %v3224_v42, %v12307_v22  ;;  %5046 = vmatprep.mubr.bf16.mxu1 %v12225_v20  ;;  %v7890_v52 = vld [vmem:[%s8275_s12 + $0x260] sm:$0xff]  }
 0x294   : > { %v3577_v1 = vpop.f32.mrf.mxu1  ;;  %v3226_v33 = vpop.f32.mrf.mxu0 }
 0x295   : > { %v4008_v48 = vadd.f32 %v4007_v57, %v3860_v10  ;;  %v3993_v3 = vadd.f32 %v3992_v32, %v3859_v61  ;;  %v3861_v9 = vmul.f32 %v3577_v1, %v12308_v41  ;;  %v3862_v59 = vmul.f32 %v3226_v33, %v12305_v44 }
 0x296   : > { %v3579_v27 = vpop.f32.mrf.mxu1  ;;  %v3228_v50 = vpop.f32.mrf.mxu0 }
 0x297   : > { %v4023_v21 = vadd.f32 %v4022_v5, %v3861_v9  ;;  %v4038_v29 = vadd.f32 %v4037_v25, %v3862_v59  ;;  %v3864_v7 = vmul.f32 %v3579_v27, %v12306_v15  ;;  %v3863_v55 = vmul.f32 %v3228_v50, %v12307_v22  ;;  %v12309_v50 = vld [vmem:[#allocation48_spill] sm:$0xff] }
 0x298   : > { %v3581_v12 = vpop.f32.mrf.mxu1  ;;  %v3232_v47 = vpop.f32.mrf.mxu0  ;;  %7651 = vmatmul.mubr.msk.bf16.gmra.mxu0 %vm782_vm0, %v7889_v24 }
 0x299   : > { %v4068_v63 = vadd.f32 %v4067_v62, %v3864_v7  ;;  %v4053_v57 = vadd.f32 %v4052_v19, %v3863_v55  ;;  %v3865_v32 = vmul.f32 %v3581_v12, %v12308_v41  ;;  %v3866_v54 = vmul.f32 %v3232_v47, %v12305_v44  ;;  %4703 = vmatprep.mubr.bf16.mxu0 %v12225_v20  ;;  %v12311_v12 = vld [vmem:[#allocation50_spill] sm:$0xff] }
 0x29a   : > { %v3585_v51 = vpop.f32.mrf.mxu1  ;;  %7683 = vmatmul.mubr.msk.bf16.gmra.mxu1 %vm782_vm0, %v7889_v24  ;;  %v3234_v5 = vpop.f32.mrf.mxu0 }
 0x29b   : > { %v4083_v25 = vadd.f32 %v4082_v34, %v3865_v32  ;;  %v4098_v36 = vadd.f32 %v4097_v6, %v3866_v54  ;;  %v3868_v38 = vmul.f32 %v3585_v51, %v12306_v15  ;;  %v3867_v28 = vmul.f32 %v3234_v5, %v12307_v22  ;;  %5056 = vmatprep.mubr.bf16.mxu1 %v12225_v20  ;;  %v7891_v32 = vld [vmem:[%s8275_s12 + $0x268] sm:$0xff]  }
 0x29c   : > { %v3587_v62 = vpop.f32.mrf.mxu1  ;;  %v3236_v19 = vpop.f32.mrf.mxu0  ;;  %v12312_v51 = vld [vmem:[#allocation51_spill] sm:$0xff] }
 0x29d   : > { %v4128_v45 = vadd.f32 %v4127_v49, %v3868_v38  ;;  %v4113_v30 = vadd.f32 %v4112_v53, %v3867_v28  ;;  %v3869_v42 = vmul.f32 %v3587_v62, %v12308_v41  ;;  %v3870_v10 = vmul.f32 %v3236_v19, %v12305_v44 }
 0x29e   : > { %v3589_v61 = vpop.f32.mrf.mxu1  ;;  %v3238_v1 = vpop.f32.mrf.mxu0 }
 0x29f   : > { %v4143_v33 = vadd.f32 %v4142_v60, %v3869_v42  ;;  %v4158_v34 = vadd.f32 %v4157_v23, %v3870_v10  ;;  %v3872_v6 = vmul.f32 %v3589_v61, %v12306_v15  ;;  %v3871_v24 = vmul.f32 %v3238_v1, %v12307_v22  ;;  %v12310_v22 = vld [vmem:[#allocation49_spill] sm:$0xff] }
 0x2a0   : > { %v3591_v9 = vpop.f32.mrf.mxu1  ;;  %v3242_v59 = vpop.f32.mrf.mxu0  ;;  %7652 = vmatmul.mubr.msk.bf16.gmra.mxu0 %vm782_vm0, %v7890_v52 }
 0x2a1   : > { %v4188_v27 = vadd.f32 %v4187_v8, %v3872_v6  ;;  %v4173_v49 = vadd.f32 %v4172_v11, %v3871_v24  ;;  %v3873_v53 = vmul.f32 %v3591_v9, %v12308_v41  ;;  %v3874_v7 = vmul.f32 %v3242_v59, %v12309_v50  ;;  %4713 = vmatprep.mubr.bf16.mxu0 %v12225_v20 }
 0x2a2   : > { %v3595_v44 = vpop.f32.mrf.mxu1  ;;  %7684 = vmatmul.mubr.msk.bf16.gmra.mxu1 %vm782_vm0, %v7890_v52  ;;  %v3244_v60 = vpop.f32.mrf.mxu0 }
 0x2a3   : > { %v4203_v23 = vadd.f32 %v4202_v18, %v3873_v53  ;;  %v3979_v15 = vadd.f32 %v3978_v16, %v3874_v7  ;;  %v3876_v55 = vmul.f32 %v3595_v44, %v12310_v22  ;;  %v3875_v47 = vmul.f32 %v3244_v60, %v12311_v12  ;;  %5066 = vmatprep.mubr.bf16.mxu1 %v12225_v20  ;;  %v7892_v53 = vld [vmem:[%s8275_s12 + $0x270] sm:$0xff]  }
 0x2a4   : > { %v3597_v8 = vpop.f32.mrf.mxu1  ;;  %v3246_v11 = vpop.f32.mrf.mxu0 }
 0x2a5   : > { %v4009_v41 = vadd.f32 %v4008_v48, %v3876_v55  ;;  %v3994_v54 = vadd.f32 %v3993_v3, %v3875_v47  ;;  %v3877_v5 = vmul.f32 %v3597_v8, %v12312_v51  ;;  %v3878_v38 = vmul.f32 %v3246_v11, %v12309_v50 }
 0x2a6   : > { %v3599_v28 = vpop.f32.mrf.mxu1  ;;  %v3248_v62 = vpop.f32.mrf.mxu0 }
 0x2a7   : > { %v4024_v19 = vadd.f32 %v4023_v21, %v3877_v5  ;;  %v4039_v18 = vadd.f32 %v4038_v29, %v3878_v38  ;;  %v3880_v16 = vmul.f32 %v3599_v28, %v12310_v22  ;;  %v3879_v52 = vmul.f32 %v3248_v62, %v12311_v12 }
 0x2a8   : > { %v3601_v42 = vpop.f32.mrf.mxu1  ;;  %v3252_v10 = vpop.f32.mrf.mxu0  ;;  %7653 = vmatmul.mubr.msk.bf16.gmra.mxu0 %vm782_vm0, %v7891_v32 }
 0x2a9   : > { %v4069_v61 = vadd.f32 %v4068_v63, %v3880_v16  ;;  %v4054_v48 = vadd.f32 %v4053_v57, %v3879_v52  ;;  %v3881_v3 = vmul.f32 %v3601_v42, %v12312_v51  ;;  %v3882_v1 = vmul.f32 %v3252_v10, %v12309_v50  ;;  %4723 = vmatprep.mubr.bf16.mxu0 %v12225_v20  ;;  %v7893_v52 = vld [vmem:[%s8275_s12 + $0x278] sm:$0xff]  }
 0x2aa   : > { %v3605_v6 = vpop.f32.mrf.mxu1  ;;  %7685 = vmatmul.mubr.msk.bf16.gmra.mxu1 %vm782_vm0, %v7891_v32  ;;  %v3254_v21 = vpop.f32.mrf.mxu0 }
 0x2ab   : > { %v4084_v29 = vadd.f32 %v4083_v25, %v3881_v3  ;;  %v4099_v24 = vadd.f32 %v4098_v36, %v3882_v1  ;;  %v3884_v9 = vmul.f32 %v3605_v6, %v12310_v22  ;;  %v3883_v59 = vmul.f32 %v3254_v21, %v12311_v12  ;;  %5076 = vmatprep.mubr.bf16.mxu1 %v12225_v20 }
 0x2ac   : > { %v3607_v63 = vpop.f32.mrf.mxu1  ;;  %v3256_v57 = vpop.f32.mrf.mxu0 }
 0x2ad   : > { %v4129_v7 = vadd.f32 %v4128_v45, %v3884_v9  ;;  %v4114_v44 = vadd.f32 %v4113_v30, %v3883_v59  ;;  %v3885_v60 = vmul.f32 %v3607_v63, %v12312_v51  ;;  %v3886_v55 = vmul.f32 %v3256_v57, %v12309_v50 }
 0x2ae   : > { %v3609_v47 = vpop.f32.mrf.mxu1  ;;  %v3258_v8 = vpop.f32.mrf.mxu0 }
 0x2af   : > { %v4144_v11 = vadd.f32 %v4143_v33, %v3885_v60  ;;  %v4159_v25 = vadd.f32 %v4158_v34, %v3886_v55  ;;  %v3888_v36 = vmul.f32 %v3609_v47, %v12310_v22  ;;  %v3887_v32 = vmul.f32 %v3258_v8, %v12311_v12 }
 0x2b0   : > { %v3611_v5 = vpop.f32.mrf.mxu1  ;;  %v3262_v38 = vpop.f32.mrf.mxu0  ;;  %7654 = vmatmul.mubr.msk.bf16.gmra.mxu0 %vm782_vm0, %v7892_v53 }
 0x2b1   : > { %v4189_v28 = vadd.f32 %v4188_v27, %v3888_v36  ;;  %v4174_v45 = vadd.f32 %v4173_v49, %v3887_v32  ;;  %v3889_v30 = vmul.f32 %v3611_v5, %v12312_v51  ;;  %v3890_v62 = vmul.f32 %v3262_v38, %v9612_v4  ;;  %4733 = vmatprep.mubr.bf16.mxu0 %v12225_v20  ;;  %v7894_v36 = vld [vmem:[%s8275_s12 + $0x280] sm:$0xff]  }
 0x2b2   : > { %v3615_v50 = vpop.f32.mrf.mxu1  ;;  %7686 = vmatmul.mubr.msk.bf16.gmra.mxu1 %vm782_vm0, %v7892_v53  ;;  %v3264_v33 = vpop.f32.mrf.mxu0 }
 0x2b3   : > { %v4204_v34 = vadd.f32 %v4203_v23, %v3889_v30  ;;  %v3980_v22 = vadd.f32 %v3979_v15, %v3890_v62  ;;  %v3892_v12 = vmul.f32 %v3615_v50, %v9628_v46  ;;  %v3891_v16 = vmul.f32 %v3264_v33, %v9631_v37  ;;  %5086 = vmatprep.mubr.bf16.mxu1 %v12225_v20 }
 0x2b4   : > { %v3617_v27 = vpop.f32.mrf.mxu1  ;;  %v3266_v49 = vpop.f32.mrf.mxu0 }
 0x2b5   : > { %v4010_v51 = vadd.f32 %v4009_v41, %v3892_v12  ;;  %v3995_v42 = vadd.f32 %v3994_v54, %v3891_v16  ;;  %v3893_v10 = vmul.f32 %v3617_v27, %v9643_v2  ;;  %v3894_v3 = vmul.f32 %v3266_v49, %v9612_v4 }
 0x2b6   : > { %v3619_v1 = vpop.f32.mrf.mxu1  ;;  %v3268_v6 = vpop.f32.mrf.mxu0 }
 0x2b7   : > { %v4025_v21 = vadd.f32 %v4024_v19, %v3893_v10  ;;  %v4040_v23 = vadd.f32 %v4039_v18, %v3894_v3  ;;  %v3896_v15 = vmul.f32 %v3619_v1, %v9628_v46  ;;  %v3895_v9 = vmul.f32 %v3268_v6, %v9631_v37  ;;  %v7895_v3 = vld [vmem:[%s8275_s12 + $0x288] sm:$0xff]  }
 0x2b8   : > { %v3621_v59 = vpop.f32.mrf.mxu1  ;;  %v3272_v63 = vpop.f32.mrf.mxu0  ;;  %7655 = vmatmul.mubr.msk.bf16.gmra.mxu0 %vm782_vm0, %v7893_v52 }
 0x2b9   : > { %v4070_v57 = vadd.f32 %v4069_v61, %v3896_v15  ;;  %v4055_v41 = vadd.f32 %v4054_v48, %v3895_v9  ;;  %v3897_v54 = vmul.f32 %v3621_v59, %v9643_v2  ;;  %v3898_v53 = vmul.f32 %v3272_v63, %v9612_v4  ;;  %4743 = vmatprep.mubr.bf16.mxu0 %v12225_v20 }
 0x2ba   : > { %v3625_v60 = vpop.f32.mrf.mxu1  ;;  %7687 = vmatmul.mubr.msk.bf16.gmra.mxu1 %vm782_vm0, %v7893_v52  ;;  %v3274_v19 = vpop.f32.mrf.mxu0 }
 0x2bb   : > { %v4085_v18 = vadd.f32 %v4084_v29, %v3897_v54  ;;  %v4100_v55 = vadd.f32 %v4099_v24, %v3898_v53  ;;  %v3900_v47 = vmul.f32 %v3625_v60, %v9628_v46  ;;  %v3899_v8 = vmul.f32 %v3274_v19, %v9631_v37  ;;  %5096 = vmatprep.mubr.bf16.mxu1 %v12225_v20 }
 0x2bc   : > { %v3627_v61 = vpop.f32.mrf.mxu1  ;;  %v3276_v48 = vpop.f32.mrf.mxu0 }
 0x2bd   : > { %v4130_v32 = vadd.f32 %v4129_v7, %v3900_v47  ;;  %v4115_v5 = vadd.f32 %v4114_v44, %v3899_v8  ;;  %v3901_v38 = vmul.f32 %v3627_v61, %v9643_v2  ;;  %v3902_v30 = vmul.f32 %v3276_v48, %v9612_v4 }
 0x2be   : > { %v3629_v62 = vpop.f32.mrf.mxu1  ;;  %v3278_v50 = vpop.f32.mrf.mxu0 }
 0x2bf   : > { %v4145_v33 = vadd.f32 %v4144_v11, %v3901_v38  ;;  %v4160_v29 = vadd.f32 %v4159_v25, %v3902_v30  ;;  %v3904_v24 = vmul.f32 %v3629_v62, %v9628_v46  ;;  %v3903_v12 = vmul.f32 %v3278_v50, %v9631_v37  ;;  %v7896_v38 = vld [vmem:[%s8275_s12 + $0x290] sm:$0xff]  }
 0x2c0   : > { %v3631_v16 = vpop.f32.mrf.mxu1  ;;  %v3282_v27 = vpop.f32.mrf.mxu0  ;;  %7656 = vmatmul.mubr.msk.bf16.gmra.mxu0 %vm782_vm0, %v7894_v36 }
 0x2c1   : > { %v4190_v49 = vadd.f32 %v4189_v28, %v3904_v24  ;;  %v4175_v7 = vadd.f32 %v4174_v45, %v3903_v12  ;;  %v3905_v44 = vmul.f32 %v3631_v16, %v9643_v2  ;;  %v3906_v52 = vmul.f32 %v3282_v27, %v9714_v58  ;;  %4753 = vmatprep.mubr.bf16.mxu0 %v12225_v20 }
 0x2c2   : > { %v3635_v4 = vpop.f32.mrf.mxu1  ;;  %7688 = vmatmul.mubr.msk.bf16.gmra.mxu1 %vm782_vm0, %v7894_v36  ;;  %v3284_v11 = vpop.f32.mrf.mxu0 }
 0x2c3   : > { %v4205_v46 = vadd.f32 %v4204_v34, %v3905_v44  ;;  %v3981_v25 = vadd.f32 %v3980_v22, %v3906_v52  ;;  %v3908_v37 = vmul.f32 %v3635_v4, %v9718_v0  ;;  %v3907_v10 = vmul.f32 %v3284_v11, %v9735_v31  ;;  %5106 = vmatprep.mubr.bf16.mxu1 %v12225_v20 }
 0x2c4   : > { %v3637_v28 = vpop.f32.mrf.mxu1  ;;  %v3286_v45 = vpop.f32.mrf.mxu0 }
 0x2c5   : > { %v4011_v2 = vadd.f32 %v4010_v51, %v3908_v37  ;;  %v3996_v1 = vadd.f32 %v3995_v42, %v3907_v10  ;;  %v3909_v6 = vmul.f32 %v3637_v28, %v9752_v13  ;;  %v3910_v15 = vmul.f32 %v3286_v45, %v9714_v58  ;;  %v7897_v28 = vld [vmem:[%s8275_s12 + $0x298] sm:$0xff]  }
 0x2c6   : > { %v3639_v9 = vpop.f32.mrf.mxu1  ;;  %v3288_v59 = vpop.f32.mrf.mxu0 }
 0x2c7   : > { %v4026_v63 = vadd.f32 %v4025_v21, %v3909_v6  ;;  %v4041_v34 = vadd.f32 %v4040_v23, %v3910_v15  ;;  %v3912_v22 = vmul.f32 %v3639_v9, %v9718_v0  ;;  %v3911_v54 = vmul.f32 %v3288_v59, %v9735_v31 }
 0x2c8   : > { %v3641_v53 = vpop.f32.mrf.mxu1  ;;  %v3292_v60 = vpop.f32.mrf.mxu0  ;;  %7657 = vmatmul.mubr.msk.bf16.gmra.mxu0 %vm782_vm0, %v7895_v3 }
 0x2c9   : > { %v4071_v19 = vadd.f32 %v4070_v57, %v3912_v22  ;;  %v4056_v51 = vadd.f32 %v4055_v41, %v3911_v54  ;;  %v3913_v42 = vmul.f32 %v3641_v53, %v9752_v13  ;;  %v3914_v47 = vmul.f32 %v3292_v60, %v9714_v58  ;;  %4763 = vmatprep.mubr.bf16.mxu0 %v12225_v20 }
 0x2ca   : > { %v3645_v8 = vpop.f32.mrf.mxu1  ;;  %7689 = vmatmul.mubr.msk.bf16.gmra.mxu1 %vm782_vm0, %v7895_v3  ;;  %v3294_v21 = vpop.f32.mrf.mxu0 }
 0x2cb   : > { %v4086_v23 = vadd.f32 %v4085_v18, %v3913_v42  ;;  %v4101_v61 = vadd.f32 %v4100_v55, %v3914_v47  ;;  %v3916_v48 = vmul.f32 %v3645_v8, %v9718_v0  ;;  %v3915_v36 = vmul.f32 %v3294_v21, %v9735_v31  ;;  %5116 = vmatprep.mubr.bf16.mxu1 %v12225_v20 }
 0x2cc   : > { %v3647_v57 = vpop.f32.mrf.mxu1  ;;  %v3296_v41 = vpop.f32.mrf.mxu0 }
 0x2cd   : > { %v4131_v30 = vadd.f32 %v4130_v32, %v3916_v48  ;;  %v4116_v62 = vadd.f32 %v4115_v5, %v3915_v36  ;;  %v3917_v50 = vmul.f32 %v3647_v57, %v9752_v13  ;;  %v3918_v24 = vmul.f32 %v3296_v41, %v9714_v58  ;;  %v7898_v36 = vld [vmem:[%s8275_s12 + $0x2a0] sm:$0xff]  }
 0x2ce   : > { %v3649_v12 = vpop.f32.mrf.mxu1  ;;  %v3298_v16 = vpop.f32.mrf.mxu0 }
 0x2cf   : > { %v4146_v27 = vadd.f32 %v4145_v33, %v3917_v50  ;;  %v4161_v18 = vadd.f32 %v4160_v29, %v3918_v24  ;;  %v3920_v55 = vmul.f32 %v3649_v12, %v9718_v0  ;;  %v3919_v44 = vmul.f32 %v3298_v16, %v9735_v31 }
 0x2d0   : > { %v3651_v52 = vpop.f32.mrf.mxu1  ;;  %v3302_v4 = vpop.f32.mrf.mxu0  ;;  %7658 = vmatmul.mubr.msk.bf16.gmra.mxu0 %vm782_vm0, %v7896_v38 }
 0x2d1   : > { %v4191_v11 = vadd.f32 %v4190_v49, %v3920_v55  ;;  %v4176_v32 = vadd.f32 %v4175_v7, %v3919_v44  ;;  %v3921_v5 = vmul.f32 %v3651_v52, %v9752_v13  ;;  %v3922_v37 = vmul.f32 %v3302_v4, %v9817_v56  ;;  %4773 = vmatprep.mubr.bf16.mxu0 %v12225_v20 }
 0x2d2   : > { %v3655_v58 = vpop.f32.mrf.mxu1  ;;  %7690 = vmatmul.mubr.msk.bf16.gmra.mxu1 %vm782_vm0, %v7896_v38  ;;  %v3304_v33 = vpop.f32.mrf.mxu0 }
 0x2d3   : > { %v4206_v0 = vadd.f32 %v4205_v46, %v3921_v5  ;;  %v3982_v29 = vadd.f32 %v3981_v25, %v3922_v37  ;;  %v3924_v31 = vmul.f32 %v3655_v58, %v9830_v17  ;;  %v3923_v10 = vmul.f32 %v3304_v33, %v9834_v43  ;;  %5126 = vmatprep.mubr.bf16.mxu1 %v12225_v20  ;;  %v7899_v58 = vld [vmem:[%s8275_s12 + $0x2a8] sm:$0xff]  }
 0x2d4   : > { %v3657_v49 = vpop.f32.mrf.mxu1  ;;  %v3306_v7 = vpop.f32.mrf.mxu0 }
 0x2d5   : > { %v4012_v13 = vadd.f32 %v4011_v2, %v3924_v31  ;;  %v3997_v45 = vadd.f32 %v3996_v1, %v3923_v10  ;;  %v3925_v3 = vmul.f32 %v3657_v49, %v9847_v39  ;;  %v3926_v6 = vmul.f32 %v3306_v7, %v9817_v56 }
 0x2d6   : > { %v3659_v15 = vpop.f32.mrf.mxu1  ;;  %v3308_v9 = vpop.f32.mrf.mxu0 }
 0x2d7   : > { %v4027_v59 = vadd.f32 %v4026_v63, %v3925_v3  ;;  %v4042_v46 = vadd.f32 %v4041_v34, %v3926_v6  ;;  %v3928_v25 = vmul.f32 %v3659_v15, %v9830_v17  ;;  %v3927_v22 = vmul.f32 %v3308_v9, %v9834_v43 }
 0x2d8   : > { %v3661_v54 = vpop.f32.mrf.mxu1  ;;  %v3312_v53 = vpop.f32.mrf.mxu0  ;;  %7659 = vmatmul.mubr.msk.bf16.gmra.mxu0 %vm782_vm0, %v7897_v28 }
 0x2d9   : > { %v4072_v60 = vadd.f32 %v4071_v19, %v3928_v25  ;;  %v4057_v2 = vadd.f32 %v4056_v51, %v3927_v22  ;;  %v3929_v1 = vmul.f32 %v3661_v54, %v9847_v39  ;;  %v3930_v42 = vmul.f32 %v3312_v53, %v9817_v56  ;;  %4783 = vmatprep.mubr.bf16.mxu0 %v12225_v20 }
 0x2da   : > { %v3665_v47 = vpop.f32.mrf.mxu1  ;;  %7691 = vmatmul.mubr.msk.bf16.gmra.mxu1 %vm782_vm0, %v7897_v28  ;;  %v3314_v63 = vpop.f32.mrf.mxu0 }
 0x2db   : > { %v4087_v34 = vadd.f32 %v4086_v23, %v3929_v1  ;;  %v4102_v8 = vadd.f32 %v4101_v61, %v3930_v42  ;;  %v3932_v21 = vmul.f32 %v3665_v47, %v9830_v17  ;;  %v3931_v48 = vmul.f32 %v3314_v63, %v9834_v43  ;;  %5136 = vmatprep.mubr.bf16.mxu1 %v12225_v20  ;;  %v7900_v42 = vld [vmem:[%s8275_s12 + $0x2b0] sm:$0xff]  }
 0x2dc   : > { %v3667_v19 = vpop.f32.mrf.mxu1  ;;  %v3316_v51 = vpop.f32.mrf.mxu0 }
 0x2dd   : > { %v4132_v57 = vadd.f32 %v4131_v30, %v3932_v21  ;;  %v4117_v41 = vadd.f32 %v4116_v62, %v3931_v48  ;;  %v3933_v38 = vmul.f32 %v3667_v19, %v9847_v39  ;;  %v3934_v50 = vmul.f32 %v3316_v51, %v9817_v56 }
 0x2de   : > { %v3669_v24 = vpop.f32.mrf.mxu1  ;;  %v3318_v12 = vpop.f32.mrf.mxu0 }
 0x2df   : > { %v4147_v16 = vadd.f32 %v4146_v27, %v3933_v38  ;;  %v4162_v23 = vadd.f32 %v4161_v18, %v3934_v50  ;;  %v3936_v61 = vmul.f32 %v3669_v24, %v9830_v17  ;;  %v3935_v55 = vmul.f32 %v3318_v12, %v9834_v43  ;;  %v12313_v12 = vld [vmem:[#allocation52_spill] sm:$0xff] }
 0x2e0   : > { %v3671_v44 = vpop.f32.mrf.mxu1  ;;  %v3322_v52 = vpop.f32.mrf.mxu0  ;;  %7660 = vmatmul.mubr.msk.bf16.gmra.mxu0 %vm782_vm0, %v7898_v36 }
 0x2e1   : > { %v4192_v4 = vadd.f32 %v4191_v11, %v3936_v61  ;;  %v4177_v30 = vadd.f32 %v4176_v32, %v3935_v55  ;;  %v3937_v62 = vmul.f32 %v3671_v44, %v9847_v39  ;;  %v3938_v5 = vmul.f32 %v3322_v52, %v9908_v14  ;;  %4793 = vmatprep.mubr.bf16.mxu0 %v12225_v20  ;;  %v12314_v55 = vld [vmem:[#allocation53_spill] sm:$0xff]  ;;  %v12315_v52 = vld [vmem:[#allocation54_spill] sm:$0xff] }
 0x2e2   : > { %v3675_v56 = vpop.f32.mrf.mxu1  ;;  %7692 = vmatmul.mubr.msk.bf16.gmra.mxu1 %vm782_vm0, %v7898_v36  ;;  %v3324_v27 = vpop.f32.mrf.mxu0 }
 0x2e3   : > { %v4207_v17 = vadd.f32 %v4206_v0, %v3937_v62  ;;  %v3983_v18 = vadd.f32 %v3982_v29, %v3938_v5  ;;  %v3940_v43 = vmul.f32 %v3675_v56, %v9920_v35  ;;  %v3939_v37 = vmul.f32 %v3324_v27, %v9923_v26  ;;  %5146 = vmatprep.mubr.bf16.mxu1 %v12225_v20  ;;  %v12316_v5 = vld [vmem:[#allocation56_spill] sm:$0xff] }
 0x2e4   : > { %v3677_v11 = vpop.f32.mrf.mxu1  ;;  %v3326_v32 = vpop.f32.mrf.mxu0 }
 0x2e5   : > { %v4013_v39 = vadd.f32 %v4012_v13, %v3940_v43  ;;  %v3998_v33 = vadd.f32 %v3997_v45, %v3939_v37  ;;  %v3941_v31 = vmul.f32 %v3677_v11, %v9935_v40  ;;  %v3942_v10 = vmul.f32 %v3326_v32, %v9908_v14  ;;  %v12318_v37 = vld [vmem:[#allocation55_spill] sm:$0xff] }
 0x2e6   : > { %v3679_v49 = vpop.f32.mrf.mxu1  ;;  %v3328_v7 = vpop.f32.mrf.mxu0 }
 0x2e7   : > { %v4028_v28 = vadd.f32 %v4027_v59, %v3941_v31  ;;  %v4043_v0 = vadd.f32 %v4042_v46, %v3942_v10  ;;  %v3944_v29 = vmul.f32 %v3679_v49, %v9920_v35  ;;  %v3943_v3 = vmul.f32 %v3328_v7, %v9923_v26  ;;  %v12321_v10 = vld [vmem:[#allocation58_spill] sm:$0xff] }
 0x2e8   : > { %v3681_v6 = vpop.f32.mrf.mxu1  ;;  %v3332_v15 = vpop.f32.mrf.mxu0  ;;  %7661 = vmatmul.mubr.msk.bf16.gmra.mxu0 %vm782_vm0, %v7899_v58 }
 0x2e9   : > { %v4073_v9 = vadd.f32 %v4072_v60, %v3944_v29  ;;  %v10488_v13 = vadd.f32 %v4057_v2, %v3943_v3  ;;  %v3945_v45 = vmul.f32 %v3681_v6, %v9935_v40  ;;  %v3946_v25 = vmul.f32 %v3332_v15, %v9908_v14  ;;  %4803 = vmatprep.mubr.bf16.mxu0 %v12225_v20  ;;  %v12323_v15 = vld [vmem:[#allocation59_spill] sm:$0xff] }
 0x2ea   : > { %v3685_v59 = vpop.f32.mrf.mxu1  ;;  %7693 = vmatmul.mubr.msk.bf16.gmra.mxu1 %vm782_vm0, %v7899_v58  ;;  %v3334_v46 = vpop.f32.mrf.mxu0  ;;  %v12319_v58 = vld [vmem:[#allocation57_spill] sm:$0xff] }
 0x2eb   : > { %v10494_v22 = vadd.f32 %v4087_v34, %v3945_v45  ;;  %v10496_v54 = vadd.f32 %v4102_v8, %v3946_v25  ;;  %v3948_v53 = vmul.f32 %v3685_v59, %v9920_v35  ;;  %v3947_v60 = vmul.f32 %v3334_v46, %v9923_v26  ;;  %5156 = vmatprep.mubr.bf16.mxu1 %v12225_v20 }
 0x2ec   : > { %v3687_v2 = vpop.f32.mrf.mxu1  ;;  %v3336_v1 = vpop.f32.mrf.mxu0 }
 0x2ed   : > { %v10502_v47 = vadd.f32 %v4132_v57, %v3948_v53  ;;  %v10504_v63 = vadd.f32 %v4117_v41, %v3947_v60  ;;  %v3949_v21 = vmul.f32 %v3687_v2, %v9935_v40  ;;  %v3950_v34 = vmul.f32 %v3336_v1, %v9908_v14  ;;  %v12327_v1 = vld [vmem:[#allocation61_spill] sm:$0xff] }
 0x2ee   : > { %v3689_v48 = vpop.f32.mrf.mxu1  ;;  %v3338_v8 = vpop.f32.mrf.mxu0 }
 0x2ef   : > { %v10508_v19 = vadd.f32 %v4147_v16, %v3949_v21  ;;  %v10510_v51 = vadd.f32 %v4162_v23, %v3950_v34  ;;  %v3952_v36 = vmul.f32 %v3689_v48, %v9920_v35  ;;  %v3951_v38 = vmul.f32 %v3338_v8, %v9923_v26  ;;  %v12329_v48 = vld [vmem:[#allocation62_spill] sm:$0xff] }
 0x2f0   : > { %v3691_v50 = vpop.f32.mrf.mxu1  ;;  %v3342_v24 = vpop.f32.mrf.mxu0  ;;  %7662 = vmatmul.mubr.msk.bf16.gmra.mxu0 %vm782_vm0, %v7900_v42 }
 0x2f1   : > { %v10515_v57 = vadd.f32 %v4192_v4, %v3952_v36  ;;  %v10517_v41 = vadd.f32 %v4177_v30, %v3951_v38  ;;  %v3953_v14 = vmul.f32 %v3691_v50, %v9935_v40  ;;  %v3954_v16 = vmul.f32 %v3342_v24, %v12313_v12  ;;  %4813 = vmatprep.mubr.bf16.mxu0 %v12225_v20  ;;  %v7901_v40 = vld [vmem:[%s8275_s12 + $0x2b8] sm:$0xff]   ;;  %v12331_v50 = vld [vmem:[#allocation10_spill] sm:$0xff] }
 0x2f2   : > { %v3695_v23 = vpop.f32.mrf.mxu1  ;;  %7694 = vmatmul.mubr.msk.bf16.gmra.mxu1 %vm782_vm0, %v7900_v42  ;;  %v3344_v35 = vpop.f32.mrf.mxu0  ;;  %v12332_v24 = vld [vmem:[#allocation14_spill] sm:$0xff] }
 0x2f3   : > { %v10523_v26 = vadd.f32 %v4207_v17, %v3953_v14  ;;  %v3984_v61 = vadd.f32 %v3983_v18, %v3954_v16  ;;  %v3956_v44 = vmul.f32 %v3695_v23, %v12314_v55  ;;  %v3955_v4 = vmul.f32 %v3344_v35, %v12315_v52  ;;  %5166 = vmatprep.mubr.bf16.mxu1 %v12225_v20  ;;  %v12333_v16 = vld [vmem:[#allocation12_spill] sm:$0xff] }
 0x2f4   : > { %v3697_v30 = vpop.f32.mrf.mxu1  ;;  %v3346_v62 = vpop.f32.mrf.mxu0  ;;  %v5265_v14 = vcombine.low %v12332_v24, %v12331_v50  ;;  %v12334_v23 = vld [vmem:[#allocation16_spill] sm:$0xff] }
 0x2f5   : > { %v10530_v56 = vadd.f32 %v3984_v61, %v12316_v5  ;;  %v4014_v27 = vadd.f32 %v4013_v39, %v3956_v44  ;;  %v3999_v43 = vadd.f32 %v3998_v33, %v3955_v4  ;;  %v3957_v11 = vmul.f32 %v3697_v30, %v12318_v37  ;;  %v12335_v61 = vld [vmem:[#allocation63_spill] sm:$0xff]  ;;  %v12337_v44 = vld [vmem:[#allocation64_spill] sm:$0xff] }
 0x2f6   : > { %v3958_v17 = vmul.f32 %v3346_v62, %v12313_v12  ;;  %v3699_v32 = vpop.f32.mrf.mxu1  ;;  %v3348_v18 = vpop.f32.mrf.mxu0  ;;  %v5267_v35 = vcombine.low %v12334_v23, %v12333_v16 }
 0x2f7   : > { %12317 = vst [vmem:[#allocation24_spill] sm:$0xff] %v10530_v56  ;;  %v10535_v31 = vadd.f32 %v4014_v27, %v12319_v58  ;;  %v10538_v49 = vadd.f32 %v3999_v43, %v12321_v10  ;;  %v4029_v7 = vadd.f32 %v4028_v28, %v3957_v11  ;;  %v3960_v29 = vmul.f32 %v3699_v32, %v12314_v55  ;;  %v12325_v28 = vld [vmem:[#allocation60_spill] sm:$0xff]  ;;  %v12339_v11 = vld [vmem:[#allocation65_spill] sm:$0xff]  ;;  %v12341_v10 = vld [vmem:[#allocation66_spill] sm:$0xff] }
 0x2f8   : > { %v4044_v3 = vadd.f32 %v4043_v0, %v3958_v17  ;;  %v3959_v6 = vmul.f32 %v3348_v18, %v12315_v52  ;;  %v3701_v39 = vpop.f32.mrf.mxu1  ;;  %v3352_v33 = vpop.f32.mrf.mxu0  ;;  %7663 = vmatmul.mubr.msk.bf16.gmra.mxu0 %vm782_vm0, %v7901_v40 }
 0x2f9   : > { %12320 = vst [vmem:[#allocation25_spill] sm:$0xff] %v10535_v31  ;;  %12322 = vst [vmem:[#allocation26_spill] sm:$0xff] %v10538_v49  ;;  %v10544_v45 = vadd.f32 %v4029_v7, %v12323_v15  ;;  %v4074_v25 = vadd.f32 %v4073_v9, %v3960_v29  ;;  %v3961_v59 = vmul.f32 %v3701_v39, %v12318_v37  ;;  %4823 = vmatprep.mubr.bf16.mxu0 %v12225_v20  ;;  %v12344_v39 = vld [vmem:[#allocation67_spill] sm:$0xff] }
 0x2fa   : > { %v3962_v46 = vmul.f32 %v3352_v33, %v12313_v12  ;;  %v10550_v53 = vadd.f32 %v4044_v3, %v12325_v28  ;;  %v4059_v0 = vadd.f32 %v10488_v13, %v3959_v6  ;;  %v3705_v60 = vpop.f32.mrf.mxu1  ;;  %7695 = vmatmul.mubr.msk.bf16.gmra.mxu1 %vm782_vm0, %v7901_v40  ;;  %v3354_v2 = vpop.f32.mrf.mxu0  ;;  %v12343_v3 = vld [vmem:[#allocation23_spill] sm:$0xff] }
 0x2fb   : > { %12324 = vst [vmem:[#allocation27_spill] sm:$0xff] %v10544_v45  ;;  %v10555_v42 = vadd.f32 %v4074_v25, %v12327_v1  ;;  %v4089_v9 = vadd.f32 %v10494_v22, %v3961_v59  ;;  %v3964_v34 = vmul.f32 %v3705_v60, %v12314_v55  ;;  %5176 = vmatprep.mubr.bf16.mxu1 %v12225_v20  ;;  %v7902_v22 = vld [vmem:[%s8275_s12 + $0x2c0] sm:$0xff]   ;;  %v12352_v1 = vld [vmem:[#allocation71_spill] sm:$0xff] }
 0x2fc   : > { %12326 = vst [vmem:[#allocation28_spill] sm:$0xff] %v10550_v53  ;;  %v4104_v21 = vadd.f32 %v10496_v54, %v3962_v46  ;;  %v10562_v8 = vadd.f32 %v4059_v0, %v12329_v48  ;;  %v3963_v13 = vmul.f32 %v3354_v2, %v12315_v52  ;;  %v3707_v36 = vpop.f32.mrf.mxu1  ;;  %v3356_v38 = vpop.f32.mrf.mxu0  ;;  %v5289_v6 = vrot.slane %v5267_v35, %v12343_v3  ;;  %v12348_v46 = vld [vmem:[#allocation69_spill] sm:$0xff]  ;;  %v12350_v0 = vld [vmem:[#allocation70_spill] sm:$0xff]  ;;  %v7903_v2 = vld [vmem:[%s8275_s12 + $0x2c8] sm:$0xff]  }
 0x2fd   : > { %12328 = vst [vmem:[#allocation29_spill] sm:$0xff] %v10555_v42  ;;  %v10571_v54 = vadd.f32 %v4089_v9, %v12335_v61  ;;  %v4134_v30 = vadd.f32 %v10502_v47, %v3964_v34  ;;  %v3965_v62 = vmul.f32 %v3707_v36, %v12318_v37  ;;  %v3966_v5 = vmul.f32 %v3356_v38, %v12313_v12 }
 0x2fe   : > { %12330 = vst [vmem:[#allocation30_spill] sm:$0xff] %v10562_v8  ;;  %v10574_v4 = vadd.f32 %v4104_v21, %v12337_v44  ;;  %v4119_v40 = vadd.f32 %v10504_v63, %v3963_v13  ;;  %v3709_v27 = vpop.f32.mrf.mxu1  ;;  %v3358_v43 = vpop.f32.mrf.mxu0  ;;  %v5275_v12 = vrot.slane %v5265_v14, %v12343_v3 }
 0x2ff   : > { %12336 = vst [vmem:[#allocation31_spill] sm:$0xff] %v10571_v54  ;;  %v10581_v17 = vadd.f32 %v4134_v30, %v12339_v11  ;;  %v4149_v32 = vadd.f32 %v10508_v19, %v3965_v62  ;;  %v3968_v18 = vmul.f32 %v3709_v27, %v12314_v55  ;;  %v3967_v58 = vmul.f32 %v3358_v43, %v12315_v52  ;;  %v7904_v30 = vld [vmem:[%s8275_s12 + $0x2d0] sm:$0xff]   ;;  %v12354_v62 = vld [vmem:[#allocation6_spill] sm:$0xff] }
 0x300   : > { %12338 = vst [vmem:[#allocation32_spill] sm:$0xff] %v10574_v4  ;;  %v10587_v7 = vadd.f32 %v4119_v40, %v12341_v10  ;;  %v4164_v47 = vadd.f32 %v10510_v51, %v3966_v5  ;;  %v3711_v29 = vpop.f32.mrf.mxu1  ;;  %v4585_v63 = vpop.f32.mrf.mxu0  ;;  %7664 = vmatmul.mubr.msk.bf16.gmra.mxu0 %vm782_vm0, %v7902_v22  ;;  %v12346_v51 = vld [vmem:[#allocation68_spill] sm:$0xff]  ;;  %v5297_v21 = vcombine.low %v5275_v12, %v5289_v6 }
 0x301   : > { %12340 = vst [vmem:[#allocation33_spill] sm:$0xff] %v10581_v17  ;;  %v10594_v19 = vadd.f32 %v4149_v32, %v12344_v39  ;;  %v4194_v55 = vadd.f32 %v10515_v57, %v3968_v18  ;;  %v4179_v52 = vadd.f32 %v10517_v41, %v3967_v58  ;;  %v3969_v33 = vmul.f32 %v3711_v29, %v12318_v37  ;;  %v12355_v27 = vld [vmem:[#allocation8_spill] sm:$0xff]  ;;  %v12356_v18 = vld [vmem:[#allocation7_spill] sm:$0xff]  ;;  %v12357_v29 = vld [vmem:[#allocation9_spill] sm:$0xff] }
 0x302   : > { %12342 = vst [vmem:[#allocation34_spill] sm:$0xff] %v10587_v7  ;;  %4833 = vmatprep.mubr.bf16.mxu0 %v12225_v20  ;;  %v10601_v15 = vadd.f32 %v4164_v47, %v12346_v51  ;;  %v4938_v25 = vpop.f32.mrf.mxu1  ;;  %7696 = vmatmul.mubr.msk.bf16.gmra.mxu1 %vm782_vm0, %v7902_v22  ;;  %v4587_v59 = vpop.f32.mrf.mxu0  ;;  %v5298_v34 = vcombine.high %v5275_v12, %v5289_v6 }
 0x303   : > { %12345 = vst [vmem:[#allocation35_spill] sm:$0xff] %v10594_v19  ;;  %v10605_v28 = vadd.f32 %v4194_v55, %v12348_v46  ;;  %v10608_v60 = vadd.f32 %v4179_v52, %v12350_v0  ;;  %v4209_v57 = vadd.f32 %v10523_v26, %v3969_v33  ;;  %5186 = vmatprep.mubr.bf16.mxu1 %v12225_v20 }
 0x304   : > { %12347 = vst [vmem:[#allocation36_spill] sm:$0xff] %v10601_v15  ;;  %v4940_v41 = vpop.f32.mrf.mxu1  ;;  %v4589_v37 = vpop.f32.mrf.mxu0  ;;  %v5307_v14 = vrot.slane %v5297_v21, %v12343_v3  ;;  %v10620_v26 = vrot.slane %v5298_v34, %v12343_v3 }
 0x305   : > { %12349 = vst [vmem:[#allocation37_spill] sm:$0xff] %v10605_v28  ;;  %12351 = vst [vmem:[#allocation38_spill] sm:$0xff] %v10608_v60  ;;  %v10614_v9 = vadd.f32 %v4209_v57, %v12352_v1 }
 0x306   : > { %v4942_v48 = vpop.f32.mrf.mxu1  ;;  %v4591_v13 = vpop.f32.mrf.mxu0  ;;  %v10630_v40 = vrot.slane %v5307_v14, %v12354_v62  ;;  %v10634_v5 = vrot.slane %v10620_v26, %v12354_v62  ;;  %v10637_v43 = vrot.slane %v5307_v14, %v12355_v27  ;;  %v10644_v58 = vrot.slane %v5307_v14, %v12356_v18 }
 0x307   : > { %12353 = vst [vmem:[#allocation39_spill] sm:$0xff] %v10614_v9  ;;  %v10648_v10 = vrot.slane %v10620_v26, %v12355_v27  ;;  %v10652_v47 = vrot.slane %v10620_v26, %v12356_v18  ;;  %v10655_v12 = vrot.slane %v5307_v14, %v12357_v29  ;;  %v10664_v33 = vrot.slane %v10620_v26, %v12357_v29  ;;  %v7905_v9 = vld [vmem:[%s8275_s12 + $0x2d8] sm:$0xff]  }
 0x308   : > { %v4944_v36 = vpop.f32.mrf.mxu1  ;;  %v4595_v38 = vpop.f32.mrf.mxu0  ;;  %7665 = vmatmul.mubr.msk.bf16.gmra.mxu0 %vm782_vm0, %v7903_v2  ;;  %v5721_v55 = vmul.f32 %v10630_v40, %v4585_v63  ;;  %v5723_v51 = vmul.f32 %v10637_v43, %v4938_v25  ;;  %v5722_v57 = vmul.f32 %v10644_v58, %v4587_v59  ;;  %v5725_v34 = vmul.f32 %v10630_v40, %v4589_v37 }
 0x309   : > { %4843 = vmatprep.mubr.bf16.mxu0 %v12225_v20  ;;  %v5724_v21 = vmul.f32 %v10655_v12, %v4940_v41 }
 0x30a   : > { %v4948_v35 = vpop.f32.mrf.mxu1  ;;  %7697 = vmatmul.mubr.msk.bf16.gmra.mxu1 %vm782_vm0, %v7903_v2  ;;  %v4597_v22 = vpop.f32.mrf.mxu0 }
 0x30b   : > { %5196 = vmatprep.mubr.bf16.mxu1 %v12225_v20 }
 0x30c   : > { %v10624_v61 = vpop.f32.mrf.mxu1  ;;  %v10626_v44 = vpop.f32.mrf.mxu0 }
 0x30e   : > { %v10639_v11 = vpop.f32.mrf.mxu1  ;;  %v10641_v32 = vpop.f32.mrf.mxu0 }
 0x310   : > { %v10657_v6 = vpop.f32.mrf.mxu1  ;;  %v4605_v39 = vpop.f32.mrf.mxu0  ;;  %7666 = vmatmul.mubr.msk.bf16.gmra.mxu0 %vm782_vm0, %v7904_v30 }
 0x311   : > { %v5737_v52 = vmul.f32 %v10634_v5, %v4605_v39  ;;  %4853 = vmatprep.mubr.bf16.mxu0 %v12225_v20 }
 0x312   : > { %v4958_v46 = vpop.f32.mrf.mxu1  ;;  %7698 = vmatmul.mubr.msk.bf16.gmra.mxu1 %vm782_vm0, %v7904_v30  ;;  %v4607_v0 = vpop.f32.mrf.mxu0 }
 0x313   : > { %v10670_v2 = vadd.f32 %v5737_v52, %v5721_v55  ;;  %v5739_v63 = vmul.f32 %v10648_v10, %v4958_v46  ;;  %v5738_v1 = vmul.f32 %v10652_v47, %v4607_v0  ;;  %5206 = vmatprep.mubr.bf16.mxu1 %v12225_v20  ;;  %v5727_v52 = vmul.f32 %v10637_v43, %v4942_v48 }
 0x314   : > { %v4960_v39 = vpop.f32.mrf.mxu1  ;;  %v4609_v25 = vpop.f32.mrf.mxu0  ;;  %v5726_v46 = vmul.f32 %v10644_v58, %v4591_v13  ;;  %v5329_v48 = vcombine.high %v5307_v14, %v5307_v14 }
 0x315   : > { %v10678_v60 = vadd.f32 %v5739_v63, %v5723_v51  ;;  %v10680_v30 = vadd.f32 %v5738_v1, %v5722_v57  ;;  %v5740_v59 = vmul.f32 %v10664_v33, %v4960_v39  ;;  %v5741_v55 = vmul.f32 %v10634_v5, %v4609_v25 }
 0x316   : > { %v4962_v0 = vpop.f32.mrf.mxu1  ;;  %v4611_v28 = vpop.f32.mrf.mxu0  ;;  %v5728_v57 = vmul.f32 %v10655_v12, %v4944_v36  ;;  %v5729_v63 = vmul.f32 %v10630_v40, %v4595_v38  ;;  %v5730_v36 = vmul.f32 %v10644_v58, %v4597_v22 }
 0x317   : > { %v10686_v41 = vadd.f32 %v5740_v59, %v5724_v21  ;;  %v10688_v37 = vadd.f32 %v5741_v55, %v5725_v34  ;;  %v5743_v15 = vmul.f32 %v10648_v10, %v4962_v0  ;;  %v5742_v51 = vmul.f32 %v10652_v47, %v4611_v28 }
 0x318   : > { %v4964_v1 = vpop.f32.mrf.mxu1  ;;  %v4615_v39 = vpop.f32.mrf.mxu0  ;;  %7667 = vmatmul.mubr.msk.bf16.gmra.mxu0 %vm782_vm0, %v7905_v9  ;;  %v5731_v28 = vmul.f32 %v10637_v43, %v4948_v35  ;;  %v5733_v35 = vmul.f32 %v10630_v40, %v10626_v44  ;;  %v5734_v44 = vmul.f32 %v10644_v58, %v10641_v32  ;;  %v10742_v32 = vrot.slane %v5329_v48, %v12357_v29 }
 0x319   : > { %v10695_v13 = vadd.f32 %v5743_v15, %v5727_v52  ;;  %v10697_v25 = vadd.f32 %v5742_v51, %v5726_v46  ;;  %v5744_v21 = vmul.f32 %v10664_v33, %v4964_v1  ;;  %v5745_v34 = vmul.f32 %v10634_v5, %v4615_v39  ;;  %4863 = vmatprep.mubr.bf16.mxu0 %v12225_v20  ;;  %v7906_v51 = vld [vmem:[%s8275_s12 + $0x2e0] sm:$0xff]  }
 0x31a   : > { %v4968_v38 = vpop.f32.mrf.mxu1  ;;  %7699 = vmatmul.mubr.msk.bf16.gmra.mxu1 %vm782_vm0, %v7905_v9  ;;  %v4617_v59 = vpop.f32.mrf.mxu0  ;;  %v5732_v46 = vmul.f32 %v10655_v12, %v10624_v61  ;;  %v10717_v9 = vrot.slane %v5329_v48, %v12354_v62  ;;  %v5735_v61 = vmul.f32 %v10637_v43, %v10639_v11  ;;  %v5736_v43 = vmul.f32 %v10655_v12, %v10657_v6 }
 0x31b   : > { %v10705_v14 = vadd.f32 %v5744_v21, %v5728_v57  ;;  %v10707_v15 = vadd.f32 %v5745_v34, %v5729_v63  ;;  %v5747_v55 = vmul.f32 %v10648_v10, %v4968_v38  ;;  %v5746_v52 = vmul.f32 %v10652_v47, %v4617_v59  ;;  %5216 = vmatprep.mubr.bf16.mxu1 %v12225_v20 }
 0x31c   : > { %v4970_v22 = vpop.f32.mrf.mxu1  ;;  %v4619_v0 = vpop.f32.mrf.mxu0  ;;  %v10731_v34 = vrot.slane %v5329_v48, %v12355_v27 }
 0x31d   : > { %v10720_v57 = vadd.f32 %v5747_v55, %v5731_v28  ;;  %v10722_v63 = vadd.f32 %v5746_v52, %v5730_v36  ;;  %v5748_v1 = vmul.f32 %v10664_v33, %v4970_v22  ;;  %v5749_v39 = vmul.f32 %v10634_v5, %v4619_v0 }
 0x31e   : > { %v4972_v40 = vpop.f32.mrf.mxu1  ;;  %v4621_v21 = vpop.f32.mrf.mxu0  ;;  %v10734_v28 = vrot.slane %v5329_v48, %v12356_v18 }
 0x31f   : > { %v6142_v36 = vadd.f32 %v5748_v1, %v5732_v46  ;;  %v6157_v38 = vadd.f32 %v5749_v39, %v5733_v35  ;;  %v5751_v59 = vmul.f32 %v10648_v10, %v4972_v40  ;;  %v5750_v5 = vmul.f32 %v10652_v47, %v4621_v21  ;;  %v7907_v1 = vld [vmem:[%s8275_s12 + $0x2e8] sm:$0xff]  }
 0x320   : > { %v4974_v11 = vpop.f32.mrf.mxu1  ;;  %v4625_v55 = vpop.f32.mrf.mxu0  ;;  %7668 = vmatmul.mubr.msk.bf16.gmra.mxu0 %vm782_vm0, %v7906_v51 }
 0x321   : > { %v6187_v58 = vadd.f32 %v5751_v59, %v5735_v61  ;;  %v10744_v52 = vadd.f32 %v5750_v5, %v5734_v44  ;;  %v5752_v46 = vmul.f32 %v10664_v33, %v4974_v11  ;;  %v5753_v10 = vmul.f32 %v10717_v9, %v4625_v55  ;;  %4873 = vmatprep.mubr.bf16.mxu0 %v12225_v20 }
 0x322   : > { %v4978_v47 = vpop.f32.mrf.mxu1  ;;  %7700 = vmatmul.mubr.msk.bf16.gmra.mxu1 %vm782_vm0, %v7906_v51  ;;  %v4627_v12 = vpop.f32.mrf.mxu0 }
 0x323   : > { %v10750_v6 = vadd.f32 %v5752_v46, %v5736_v43  ;;  %v5978_v35 = vadd.f32 %v10670_v2, %v5753_v10  ;;  %v5755_v48 = vmul.f32 %v10731_v34, %v4978_v47  ;;  %v5754_v22 = vmul.f32 %v10734_v28, %v4627_v12  ;;  %5226 = vmatprep.mubr.bf16.mxu1 %v12225_v20 }
 0x324   : > { %v4980_v0 = vpop.f32.mrf.mxu1  ;;  %v4629_v33 = vpop.f32.mrf.mxu0 }
 0x325   : > { %v6008_v39 = vadd.f32 %v10678_v60, %v5755_v48  ;;  %v5993_v61 = vadd.f32 %v10680_v30, %v5754_v22  ;;  %v5756_v51 = vmul.f32 %v10742_v32, %v4980_v0  ;;  %v5757_v44 = vmul.f32 %v10717_v9, %v4629_v33  ;;  %v7908_v48 = vld [vmem:[%s8275_s12 + $0x2f0] sm:$0xff]  }
 0x326   : > { %v4982_v40 = vpop.f32.mrf.mxu1  ;;  %v10761_v21 = vpop.f32.mrf.mxu0  ;;  %v5331_v60 = vcombine.high %v10620_v26, %v10620_v26  ;;  %v5266_v22 = vcombine.high %v12332_v24, %v12331_v50  ;;  %v5268_v0 = vcombine.high %v12334_v23, %v12333_v16 }
 0x327   : > { %v6023_v2 = vadd.f32 %v10686_v41, %v5756_v51  ;;  %v6038_v59 = vadd.f32 %v10688_v37, %v5757_v44  ;;  %v5759_v5 = vmul.f32 %v10731_v34, %v4982_v40 }
 0x328   : > { %v10766_v43 = vpop.f32.mrf.mxu1  ;;  %v4635_v11 = vpop.f32.mrf.mxu0  ;;  %7669 = vmatmul.mubr.msk.bf16.gmra.mxu0 %vm782_vm0, %v7907_v1  ;;  %v10796_v24 = vrot.slane %v5331_v60, %v12356_v18 }
 0x329   : > { %v6068_v30 = vadd.f32 %v10695_v13, %v5759_v5  ;;  %v5761_v55 = vmul.f32 %v10717_v9, %v4635_v11  ;;  %4883 = vmatprep.mubr.bf16.mxu0 %v12225_v20  ;;  %v10780_v13 = vrot.slane %v5331_v60, %v12354_v62  ;;  %v5460_v5 = vrot.slane %v5331_v60, %v12355_v27 }
 0x32a   : > { %v4988_v41 = vpop.f32.mrf.mxu1  ;;  %7701 = vmatmul.mubr.msk.bf16.gmra.mxu1 %vm782_vm0, %v7907_v1  ;;  %v4637_v37 = vpop.f32.mrf.mxu0 }
 0x32b   : > { %v6098_v46 = vadd.f32 %v10707_v15, %v5761_v55  ;;  %v5763_v10 = vmul.f32 %v10731_v34, %v4988_v41  ;;  %v5762_v47 = vmul.f32 %v10734_v28, %v4637_v37  ;;  %5236 = vmatprep.mubr.bf16.mxu1 %v12225_v20 }
 0x32c   : > { %v4990_v12 = vpop.f32.mrf.mxu1  ;;  %v4639_v26 = vpop.f32.mrf.mxu0 }
 0x32d   : > { %v6128_v15 = vadd.f32 %v10720_v57, %v5763_v10  ;;  %v6113_v33 = vadd.f32 %v10722_v63, %v5762_v47  ;;  %v5764_v1 = vmul.f32 %v10742_v32, %v4990_v12  ;;  %v5765_v51 = vmul.f32 %v10717_v9, %v4639_v26 }
 0x32e   : > { %v4992_v44 = vpop.f32.mrf.mxu1  ;;  %v10791_v40 = vpop.f32.mrf.mxu0  ;;  %v10802_v9 = vrot.slane %v5266_v22, %v12343_v3  ;;  %v10805_v57 = vrot.slane %v5268_v0, %v12343_v3 }
 0x32f   : > { %v6143_v11 = vadd.f32 %v6142_v36, %v5764_v1  ;;  %v6158_v55 = vadd.f32 %v6157_v38, %v5765_v51  ;;  %v5767_v50 = vmul.f32 %v10731_v34, %v4992_v44  ;;  %v10809_v34 = vrot.slane %v5331_v60, %v12357_v29 }
 0x330   : > { %v10798_v16 = vpop.f32.mrf.mxu1  ;;  %v4645_v23 = vpop.f32.mrf.mxu0  ;;  %7670 = vmatmul.mubr.msk.bf16.gmra.mxu0 %vm782_vm0, %v7908_v48  ;;  %v5299_v22 = vcombine.low %v10802_v9, %v10805_v57 }
 0x331   : > { %v6188_v63 = vadd.f32 %v6187_v58, %v5767_v50  ;;  %v5769_v36 = vmul.f32 %v10780_v13, %v4645_v23  ;;  %4893 = vmatprep.mubr.bf16.mxu0 %v12225_v20  ;;  %v7909_v58 = vld [vmem:[%s8275_s12 + $0x2f8] sm:$0xff]   ;;  %s7729_s12 = sshll.u32 %s7178_s9, 6 }
 0x332   : > { %v4998_v38 = vpop.f32.mrf.mxu1  ;;  %7702 = vmatmul.mubr.msk.bf16.gmra.mxu1 %vm782_vm0, %v7908_v48  ;;  %v4647_v41 = vpop.f32.mrf.mxu0  ;;  %s12008_s8 = scalar_lea.hbm %s12064_s6, %s7729_s12 }
 0x333   : > { %v5979_v37 = vadd.f32 %v5978_v35, %v5769_v36  ;;  %v5771_v10 = vmul.f32 %v5460_v5, %v4998_v38  ;;  %v5770_v47 = vmul.f32 %v10796_v24, %v4647_v41  ;;  %5246 = vmatprep.mubr.bf16.mxu1 %v12225_v20  ;;  %v10826_v41 = vrot.slane %v5299_v22, %v12343_v3 }
 0x334   : > { %v5000_v12 = vpop.f32.mrf.mxu1  ;;  %v4649_v26 = vpop.f32.mrf.mxu0 }
 0x335   : > { %v6009_v60 = vadd.f32 %v6008_v39, %v5771_v10  ;;  %v5994_v0 = vadd.f32 %v5993_v61, %v5770_v47  ;;  %v5772_v1 = vmul.f32 %v10809_v34, %v5000_v12  ;;  %v5773_v51 = vmul.f32 %v10780_v13, %v4649_v26 }
 0x336   : > { %v5002_v48 = vpop.f32.mrf.mxu1  ;;  %v10820_v44 = vpop.f32.mrf.mxu0  ;;  %v5468_v22 = vrot.slane %v10826_v41, %v12354_v62 }
 0x337   : > { %v6024_v35 = vadd.f32 %v6023_v2, %v5772_v1  ;;  %v6039_v50 = vadd.f32 %v6038_v59, %v5773_v51  ;;  %v5775_v23 = vmul.f32 %v5460_v5, %v5002_v48 }
 0x338   : > { %v10822_v36 = vpop.f32.mrf.mxu1  ;;  %v4655_v38 = vpop.f32.mrf.mxu0  ;;  %7671 = vmatmul.mubr.msk.bf16.gmra.mxu0 %vm782_vm0, %v7909_v58 }
 0x339   : > { %v6069_v39 = vadd.f32 %v6068_v30, %v5775_v23  ;;  %v5777_v61 = vmul.f32 %v10780_v13, %v4655_v38  ;;  %6378 = vmatprep.mubr.bf16.mxu0 %v12225_v20 }
 0x33a   : > { %v5008_v10 = vpop.f32.mrf.mxu1  ;;  %7703 = vmatmul.mubr.msk.bf16.gmra.mxu1 %vm782_vm0, %v7909_v58  ;;  %v4657_v47 = vpop.f32.mrf.mxu0  ;;  %vm6333_vm0 = vcmask 261120  }
 0x33b   : > { %v6099_v2 = vadd.f32 %v6098_v46, %v5777_v61  ;;  %v5779_v59 = vmul.f32 %v5460_v5, %v5008_v10  ;;  %v5778_v12 = vmul.f32 %v10796_v24, %v4657_v47  ;;  %6451 = vmatprep.mubr.bf16.mxu1 %v12225_v20  ;;  %v5476_v46 = vrot.slane %v10826_v41, %v12355_v27 }
 0x33c   : > { %v5010_v26 = vpop.f32.mrf.mxu1  ;;  %v4659_v1 = vpop.f32.mrf.mxu0  ;;  %v10841_v20 = vrot.slane %v10826_v41, %v12356_v18 }
 0x33d   : > { %v6129_v30 = vadd.f32 %v6128_v15, %v5779_v59  ;;  %v6114_v51 = vadd.f32 %v6113_v33, %v5778_v12  ;;  %v5780_v48 = vmul.f32 %v10809_v34, %v5010_v26  ;;  %v5781_v23 = vmul.f32 %v10780_v13, %v4659_v1 }
 0x33e   : > { %v5012_v38 = vpop.f32.mrf.mxu1  ;;  %v4661_v58 = vpop.f32.mrf.mxu0  ;;  %v10845_v59 = vrot.slane %v10826_v41, %v12357_v29 }
 0x33f   : > { %v6144_v61 = vadd.f32 %v6143_v11, %v5780_v48  ;;  %v6159_v10 = vadd.f32 %v6158_v55, %v5781_v23  ;;  %v5783_v47 = vmul.f32 %v5460_v5, %v5012_v38  ;;  %v5300_v48 = vcombine.high %v10802_v9, %v10805_v57 }
 0x340   : > { %v5014_v19 = vpop.f32.mrf.mxu1  ;;  %v4665_v7 = vpop.f32.mrf.mxu0 }
 0x341   : > { %v6189_v15 = vadd.f32 %v6188_v63, %v5783_v47  ;;  %v5785_v33 = vmul.f32 %v5468_v22, %v4665_v7  ;;  %v10864_v9 = vrot.slane %v5300_v48, %v12343_v3  ;;  %v5784_v48 = vmul.f32 %v10809_v34, %v5014_v19 }
 0x342   : > { %v5018_v13 = vpop.f32.mrf.mxu1  ;;  %v4667_v12 = vpop.f32.mrf.mxu0  ;;  %v5758_v19 = vmul.f32 %v10734_v28, %v10761_v21 }
 0x343   : > { %v10847_v26 = vadd.f32 %v5979_v37, %v5785_v33  ;;  %v5787_v1 = vmul.f32 %v5476_v46, %v5018_v13  ;;  %v5786_v11 = vmul.f32 %v10841_v20, %v4667_v12  ;;  %v5766_v13 = vmul.f32 %v10734_v28, %v10791_v40 }
 0x344   : > { %v5020_v5 = vpop.f32.mrf.mxu1  ;;  %v4669_v55 = vpop.f32.mrf.mxu0  ;;  %v5774_v28 = vmul.f32 %v10796_v24, %v10820_v44 }
 0x345   : > { %v10852_v23 = vadd.f32 %v6009_v60, %v5787_v1  ;;  %v10854_v63 = vadd.f32 %v5994_v0, %v5786_v11  ;;  %v5788_v7 = vmul.f32 %v10845_v59, %v5020_v5  ;;  %v5789_v38 = vmul.f32 %v5468_v22, %v4669_v55 }
 0x346   : > { %v5022_v47 = vpop.f32.mrf.mxu1  ;;  %v4671_v17 = vpop.f32.mrf.mxu0  ;;  %v5768_v0 = vmul.f32 %v10742_v32, %v10798_v16  ;;  %v6173_v55 = vadd.f32 %v10744_v52, %v5766_v13  ;;  %v10882_v16 = vrot.slane %v10864_v9, %v12355_v27 }
 0x347   : > { %v10857_v4 = vadd.f32 %v6024_v35, %v5788_v7  ;;  %v10859_v37 = vadd.f32 %v6039_v50, %v5789_v38  ;;  %v5791_v33 = vmul.f32 %v5476_v46, %v5022_v47  ;;  %v5782_v35 = vmul.f32 %v10796_v24, %v4661_v58 }
 0x348   : > { %v5024_v12 = vpop.f32.mrf.mxu1  ;;  %v4675_v54 = vpop.f32.mrf.mxu0  ;;  %v6203_v52 = vadd.f32 %v10750_v6, %v5768_v0 }
 0x349   : > { %v10866_v57 = vadd.f32 %v6069_v39, %v5791_v33  ;;  %v5793_v60 = vmul.f32 %v5468_v22, %v4675_v54  ;;  %v10878_v54 = vrot.slane %v10864_v9, %v12354_v62  ;;  %v6174_v33 = vadd.f32 %v6173_v55, %v5782_v35 }
 0x34a   : > { %v5028_v1 = vpop.f32.mrf.mxu1  ;;  %v4677_v50 = vpop.f32.mrf.mxu0  ;;  %v6204_v6 = vadd.f32 %v6203_v52, %v5784_v48  ;;  %v10907_v35 = vrot.slane %v10864_v9, %v12357_v29  ;;  %v6053_v55 = vadd.f32 %v10697_v25, %v5758_v19  ;;  %v5792_v52 = vmul.f32 %v10845_v59, %v5024_v12 }
 0x34b   : > { %v10871_v11 = vadd.f32 %v6099_v2, %v5793_v60  ;;  %v5795_v5 = vmul.f32 %v5476_v46, %v5028_v1  ;;  %v5794_v40 = vmul.f32 %v10841_v20, %v4677_v50  ;;  %v10894_v1 = vrot.slane %v10864_v9, %v12356_v18 }
 0x34c   : > { %v5030_v7 = vpop.f32.mrf.mxu1  ;;  %v4679_v39 = vpop.f32.mrf.mxu0 }
 0x34d   : > { %v10884_v58 = vadd.f32 %v6129_v30, %v5795_v5  ;;  %v10886_v2 = vadd.f32 %v6114_v51, %v5794_v40  ;;  %v5796_v38 = vmul.f32 %v10845_v59, %v5030_v7  ;;  %v5797_v47 = vmul.f32 %v5468_v22, %v4679_v39 }
 0x34e   : > { %v5032_v13 = vpop.f32.mrf.mxu1  ;;  %v4681_v60 = vpop.f32.mrf.mxu0  ;;  %v5760_v22 = vmul.f32 %v10742_v32, %v10766_v43  ;;  %v5776_v32 = vmul.f32 %v10809_v34, %v10822_v36  ;;  %v5790_v43 = vmul.f32 %v10841_v20, %v4671_v17 }
 0x34f   : > { %v10896_v50 = vadd.f32 %v6144_v61, %v5796_v38  ;;  %v10898_v30 = vadd.f32 %v6159_v10, %v5797_v47  ;;  %v5799_v51 = vmul.f32 %v5476_v46, %v5032_v13  ;;  %v5798_v5 = vmul.f32 %v10841_v20, %v4681_v60 }
 0x350   : > { %v5034_v21 = vpop.f32.mrf.mxu1  ;;  %v4685_v0 = vpop.f32.mrf.mxu0  ;;  %v6083_v38 = vadd.f32 %v10705_v14, %v5760_v22  ;;  %v6054_v47 = vadd.f32 %v6053_v55, %v5774_v28 }
 0x351   : > { %v6190_v61 = vadd.f32 %v6189_v15, %v5799_v51  ;;  %v6175_v40 = vadd.f32 %v6174_v33, %v5798_v5  ;;  %v5800_v10 = vmul.f32 %v10845_v59, %v5034_v21  ;;  %v5801_v46 = vmul.f32 %v10878_v54, %v4685_v0 }
 0x352   : > { %v5038_v24 = vpop.f32.mrf.mxu1  ;;  %v4687_v44 = vpop.f32.mrf.mxu0  ;;  %v6055_v33 = vadd.f32 %v6054_v47, %v5790_v43 }
 0x353   : > { %v6205_v48 = vadd.f32 %v6204_v6, %v5800_v10  ;;  %v5981_v7 = vadd.f32 %v10847_v26, %v5801_v46  ;;  %v5803_v39 = vmul.f32 %v10882_v16, %v5038_v24  ;;  %v5802_v15 = vmul.f32 %v10894_v1, %v4687_v44 }
 0x354   : > { %v5040_v25 = vpop.f32.mrf.mxu1  ;;  %v4689_v19 = vpop.f32.mrf.mxu0  ;;  %v6084_v26 = vadd.f32 %v6083_v38, %v5776_v32 }
 0x355   : > { %v6011_v34 = vadd.f32 %v10852_v23, %v5803_v39  ;;  %v5996_v20 = vadd.f32 %v10854_v63, %v5802_v15  ;;  %v5804_v17 = vmul.f32 %v10907_v35, %v5040_v25  ;;  %v5805_v36 = vmul.f32 %v10878_v54, %v4689_v19 }
 0x356   : > { %v5042_v13 = vpop.f32.mrf.mxu1  ;;  %v4691_v60 = vpop.f32.mrf.mxu0  ;;  %v6085_v5 = vadd.f32 %v6084_v26, %v5792_v52  ;;  %v5330_v63 = vcombine.high %v10826_v41, %v10826_v41 }
 0x357   : > { %v6026_v51 = vadd.f32 %v10857_v4, %v5804_v17  ;;  %v6041_v14 = vadd.f32 %v10859_v37, %v5805_v36  ;;  %v5807_v59 = vmul.f32 %v10882_v16, %v5042_v13  ;;  %v5806_v12 = vmul.f32 %v10894_v1, %v4691_v60 }
 0x358   : > { %v5044_v23 = vpop.f32.mrf.mxu1  ;;  %v4695_v22 = vpop.f32.mrf.mxu0  ;;  %v5500_v41 = vrot.slane %v5330_v63, %v12354_v62  ;;  %v5504_v52 = vrot.slane %v5330_v63, %v12356_v18  ;;  %v5512_v26 = vrot.slane %v5330_v63, %v12357_v29 }
 0x359   : > { %v6071_v28 = vadd.f32 %v10866_v57, %v5807_v59  ;;  %v6056_v6 = vadd.f32 %v6055_v33, %v5806_v12  ;;  %v5808_v21 = vmul.f32 %v10907_v35, %v5044_v23  ;;  %v5809_v0 = vmul.f32 %v10878_v54, %v4695_v22 }
 0x35a   : > { %v5048_v4 = vpop.f32.mrf.mxu1  ;;  %v4697_v10 = vpop.f32.mrf.mxu0 }
 0x35b   : > { %v6086_v37 = vadd.f32 %v6085_v5, %v5808_v21  ;;  %v6101_v46 = vadd.f32 %v10871_v11, %v5809_v0  ;;  %v5811_v55 = vmul.f32 %v10882_v16, %v5048_v4  ;;  %v5810_v32 = vmul.f32 %v10894_v1, %v4697_v10 }
 0x35c   : > { %v5050_v43 = vpop.f32.mrf.mxu1  ;;  %v4699_v24 = vpop.f32.mrf.mxu0  ;;  %v5508_v11 = vrot.slane %v5330_v63, %v12355_v27 }
 0x35d   : > { %v6131_v57 = vadd.f32 %v10884_v58, %v5811_v55  ;;  %v6116_v44 = vadd.f32 %v10886_v2, %v5810_v32  ;;  %v5812_v39 = vmul.f32 %v10907_v35, %v5050_v43  ;;  %v5813_v15 = vmul.f32 %v10878_v54, %v4699_v24 }
 0x35e   : > { %v5052_v38 = vpop.f32.mrf.mxu1  ;;  %v4701_v47 = vpop.f32.mrf.mxu0 }
 0x35f   : > { %v6146_v25 = vadd.f32 %v10896_v50, %v5812_v39  ;;  %v6161_v19 = vadd.f32 %v10898_v30, %v5813_v15  ;;  %v5815_v17 = vmul.f32 %v10882_v16, %v5052_v38  ;;  %v5814_v58 = vmul.f32 %v10894_v1, %v4701_v47 }
 0x360   : > { %v5054_v36 = vpop.f32.mrf.mxu1  ;;  %v4705_v2 = vpop.f32.mrf.mxu0 }
 0x361   : > { %v6191_v33 = vadd.f32 %v6190_v61, %v5815_v17  ;;  %v6176_v54 = vadd.f32 %v6175_v40, %v5814_v58  ;;  %v5816_v13 = vmul.f32 %v10907_v35, %v5054_v36  ;;  %v5817_v60 = vmul.f32 %v5500_v41, %v4705_v2  ;;  %v12358_v2 = vld [vmem:[#allocation11_spill] sm:$0xff] }
 0x362   : > { %v5058_v59 = vpop.f32.mrf.mxu1  ;;  %v4707_v12 = vpop.f32.mrf.mxu0 }
 0x363   : > { %v6206_v5 = vadd.f32 %v6205_v48, %v5816_v13  ;;  %v5982_v23 = vadd.f32 %v5981_v7, %v5817_v60  ;;  %v5819_v50 = vmul.f32 %v5508_v11, %v5058_v59  ;;  %v5818_v22 = vmul.f32 %v5504_v52, %v4707_v12  ;;  %v12359_v13 = vld [vmem:[#allocation15_spill] sm:$0xff]  ;;  %v12360_v59 = vld [vmem:[#allocation13_spill] sm:$0xff] }
 0x364   : > { %v5060_v30 = vpop.f32.mrf.mxu1  ;;  %v4709_v21 = vpop.f32.mrf.mxu0  ;;  %v5332_v48 = vcombine.high %v10864_v9, %v10864_v9  ;;  %v5333_v60 = vcombine.low %v12359_v13, %v12358_v2  ;;  %v12361_v12 = vld [vmem:[#allocation17_spill] sm:$0xff] }
 0x365   : > { %v6012_v16 = vadd.f32 %v6011_v34, %v5819_v50  ;;  %v5997_v0 = vadd.f32 %v5996_v20, %v5818_v22  ;;  %v5820_v1 = vmul.f32 %v5512_v26, %v5060_v30  ;;  %v5821_v4 = vmul.f32 %v5500_v41, %v4709_v21 }
 0x366   : > { %v5062_v10 = vpop.f32.mrf.mxu1  ;;  %v4711_v55 = vpop.f32.mrf.mxu0  ;;  %v5335_v9 = vcombine.low %v12361_v12, %v12360_v59 }
 0x367   : > { %v6027_v63 = vadd.f32 %v6026_v51, %v5820_v1  ;;  %v6042_v61 = vadd.f32 %v6041_v14, %v5821_v4  ;;  %v5823_v40 = vmul.f32 %v5508_v11, %v5062_v10  ;;  %v5822_v32 = vmul.f32 %v5504_v52, %v4711_v55 }
 0x368   : > { %v5064_v35 = vpop.f32.mrf.mxu1  ;;  %v4715_v43 = vpop.f32.mrf.mxu0  ;;  %v5516_v14 = vrot.slane %v5332_v48, %v12354_v62 }
 0x369   : > { %v6072_v7 = vadd.f32 %v6071_v28, %v5823_v40  ;;  %v6057_v24 = vadd.f32 %v6056_v6, %v5822_v32  ;;  %v5824_v39 = vmul.f32 %v5512_v26, %v5064_v35  ;;  %v5825_v15 = vmul.f32 %v5500_v41, %v4715_v43 }
 0x36a   : > { %v5068_v38 = vpop.f32.mrf.mxu1  ;;  %v4717_v34 = vpop.f32.mrf.mxu0  ;;  %v5528_v35 = vrot.slane %v5332_v48, %v12357_v29  ;;  %v10960_v43 = vrot.slane %v5333_v60, %v12343_v3 }
 0x36b   : > { %v6087_v20 = vadd.f32 %v6086_v37, %v5824_v39  ;;  %v6102_v47 = vadd.f32 %v6101_v46, %v5825_v15  ;;  %v5827_v17 = vmul.f32 %v5508_v11, %v5068_v38  ;;  %v5826_v58 = vmul.f32 %v5504_v52, %v4717_v34 }
 0x36c   : > { %v5070_v36 = vpop.f32.mrf.mxu1  ;;  %v4719_v51 = vpop.f32.mrf.mxu0  ;;  %v5524_v37 = vrot.slane %v5332_v48, %v12355_v27  ;;  %v5520_v46 = vrot.slane %v5332_v48, %v12356_v18 }
 0x36d   : > { %v6132_v28 = vadd.f32 %v6131_v57, %v5827_v17  ;;  %v6117_v6 = vadd.f32 %v6116_v44, %v5826_v58  ;;  %v5828_v50 = vmul.f32 %v5512_v26, %v5070_v36  ;;  %v5829_v22 = vmul.f32 %v5500_v41, %v4719_v51 }
 0x36e   : > { %v5072_v30 = vpop.f32.mrf.mxu1  ;;  %v4721_v21 = vpop.f32.mrf.mxu0  ;;  %v10963_v57 = vrot.slane %v5335_v9, %v12343_v3 }
 0x36f   : > { %v6147_v1 = vadd.f32 %v6146_v25, %v5828_v50  ;;  %v6162_v4 = vadd.f32 %v6161_v19, %v5829_v22  ;;  %v5831_v10 = vmul.f32 %v5508_v11, %v5072_v30  ;;  %v5830_v55 = vmul.f32 %v5504_v52, %v4721_v21 }
 0x370   : > { %v5074_v40 = vpop.f32.mrf.mxu1  ;;  %v4725_v32 = vpop.f32.mrf.mxu0  ;;  %v5365_v48 = vcombine.low %v10960_v43, %v10963_v57 }
 0x371   : > { %v6192_v41 = vadd.f32 %v6191_v33, %v5831_v10  ;;  %v6177_v44 = vadd.f32 %v6176_v54, %v5830_v55  ;;  %v5832_v39 = vmul.f32 %v5512_v26, %v5074_v40  ;;  %v5833_v15 = vmul.f32 %v5516_v14, %v4725_v32 }
 0x372   : > { %v5078_v38 = vpop.f32.mrf.mxu1  ;;  %v4727_v34 = vpop.f32.mrf.mxu0 }
 0x373   : > { %v6207_v25 = vadd.f32 %v6206_v5, %v5832_v39  ;;  %v5983_v19 = vadd.f32 %v5982_v23, %v5833_v15  ;;  %v5835_v11 = vmul.f32 %v5524_v37, %v5078_v38  ;;  %v5834_v52 = vmul.f32 %v5520_v46, %v4727_v34 }
 0x374   : > { %v5080_v17 = vpop.f32.mrf.mxu1  ;;  %v4729_v58 = vpop.f32.mrf.mxu0  ;;  %v10968_v23 = vrot.slane %v5365_v48, %v12343_v3 }
 0x375   : > { %v6013_v36 = vadd.f32 %v6012_v16, %v5835_v11  ;;  %v5998_v51 = vadd.f32 %v5997_v0, %v5834_v52  ;;  %v5836_v60 = vmul.f32 %v5528_v35, %v5080_v17  ;;  %v5837_v9 = vmul.f32 %v5516_v14, %v4729_v58 }
 0x376   : > { %v5082_v50 = vpop.f32.mrf.mxu1  ;;  %v4731_v33 = vpop.f32.mrf.mxu0 }
 0x377   : > { %v6028_v54 = vadd.f32 %v6027_v63, %v5836_v60  ;;  %v6043_v26 = vadd.f32 %v6042_v61, %v5837_v9  ;;  %v5839_v22 = vmul.f32 %v5524_v37, %v5082_v50  ;;  %v5838_v30 = vmul.f32 %v5520_v46, %v4731_v33 }
 0x378   : > { %v5084_v21 = vpop.f32.mrf.mxu1  ;;  %v4735_v5 = vpop.f32.mrf.mxu0  ;;  %v5532_v61 = vrot.slane %v10968_v23, %v12354_v62 }
 0x379   : > { %v6073_v10 = vadd.f32 %v6072_v7, %v5839_v22  ;;  %v6058_v55 = vadd.f32 %v6057_v24, %v5838_v30  ;;  %v5840_v40 = vmul.f32 %v5528_v35, %v5084_v21  ;;  %v5841_v32 = vmul.f32 %v5516_v14, %v4735_v5 }
 0x37a   : > { %v5088_v39 = vpop.f32.mrf.mxu1  ;;  %v4737_v16 = vpop.f32.mrf.mxu0  ;;  %v5540_v24 = vrot.slane %v10968_v23, %v12355_v27 }
 0x37b   : > { %v6088_v0 = vadd.f32 %v6087_v20, %v5840_v40  ;;  %v6103_v15 = vadd.f32 %v6102_v47, %v5841_v32  ;;  %v5843_v38 = vmul.f32 %v5524_v37, %v5088_v39  ;;  %v5842_v34 = vmul.f32 %v5520_v46, %v4737_v16 }
 0x37c   : > { %v5090_v11 = vpop.f32.mrf.mxu1  ;;  %v4739_v63 = vpop.f32.mrf.mxu0  ;;  %v5536_v20 = vrot.slane %v10968_v23, %v12356_v18 }
 0x37d   : > { %v6133_v52 = vadd.f32 %v6132_v28, %v5843_v38  ;;  %v6118_v17 = vadd.f32 %v6117_v6, %v5842_v34  ;;  %v5844_v58 = vmul.f32 %v5528_v35, %v5090_v11  ;;  %v5845_v48 = vmul.f32 %v5516_v14, %v4739_v63 }
 0x37e   : > { %v5092_v60 = vpop.f32.mrf.mxu1  ;;  %v4741_v7 = vpop.f32.mrf.mxu0  ;;  %v5544_v28 = vrot.slane %v10968_v23, %v12357_v29 }
 0x37f   : > { %v6148_v47 = vadd.f32 %v6147_v1, %v5844_v58  ;;  %v6163_v9 = vadd.f32 %v6162_v4, %v5845_v48  ;;  %v5847_v50 = vmul.f32 %v5524_v37, %v5092_v60  ;;  %v5846_v33 = vmul.f32 %v5520_v46, %v4741_v7 }
 0x380   : > { %v5094_v22 = vpop.f32.mrf.mxu1  ;;  %v4745_v30 = vpop.f32.mrf.mxu0  ;;  %v5366_v37 = vcombine.high %v10960_v43, %v10963_v57 }
 0x381   : > { %v6193_v6 = vadd.f32 %v6192_v41, %v5847_v50  ;;  %v6178_v21 = vadd.f32 %v6177_v44, %v5846_v33  ;;  %v5848_v14 = vmul.f32 %v5528_v35, %v5094_v22  ;;  %v5849_v5 = vmul.f32 %v5532_v61, %v4745_v30 }
 0x382   : > { %v5098_v40 = vpop.f32.mrf.mxu1  ;;  %v4747_v32 = vpop.f32.mrf.mxu0 }
 0x383   : > { %v6208_v39 = vadd.f32 %v6207_v25, %v5848_v14  ;;  %v5984_v16 = vadd.f32 %v5983_v19, %v5849_v5  ;;  %v5851_v38 = vmul.f32 %v5540_v24, %v5098_v40  ;;  %v5850_v34 = vmul.f32 %v5536_v20, %v4747_v32 }
 0x384   : > { %v5100_v11 = vpop.f32.mrf.mxu1  ;;  %v4749_v1 = vpop.f32.mrf.mxu0  ;;  %v10981_v19 = vrot.slane %v5366_v37, %v12343_v3 }
 0x385   : > { %v6014_v46 = vadd.f32 %v6013_v36, %v5851_v38  ;;  %v5999_v4 = vadd.f32 %v5998_v51, %v5850_v34  ;;  %v5852_v63 = vmul.f32 %v5544_v28, %v5100_v11  ;;  %v5853_v58 = vmul.f32 %v5532_v61, %v4749_v1 }
 0x386   : > { %v5102_v48 = vpop.f32.mrf.mxu1  ;;  %v4751_v41 = vpop.f32.mrf.mxu0 }
 0x387   : > { %v6029_v44 = vadd.f32 %v6028_v54, %v5852_v63  ;;  %v6044_v35 = vadd.f32 %v6043_v26, %v5853_v58  ;;  %v5855_v60 = vmul.f32 %v5540_v24, %v5102_v48  ;;  %v5854_v7 = vmul.f32 %v5536_v20, %v4751_v41 }
 0x388   : > { %v5104_v50 = vpop.f32.mrf.mxu1  ;;  %v4755_v25 = vpop.f32.mrf.mxu0  ;;  %v5548_v26 = vrot.slane %v10981_v19, %v12354_v62 }
 0x389   : > { %v6074_v33 = vadd.f32 %v6073_v10, %v5855_v60  ;;  %v6059_v22 = vadd.f32 %v6058_v55, %v5854_v7  ;;  %v5856_v30 = vmul.f32 %v5544_v28, %v5104_v50  ;;  %v5857_v14 = vmul.f32 %v5532_v61, %v4755_v25 }
 0x38a   : > { %v5108_v43 = vpop.f32.mrf.mxu1  ;;  %v4757_v57 = vpop.f32.mrf.mxu0  ;;  %v5556_v55 = vrot.slane %v10981_v19, %v12355_v27 }
 0x38b   : > { %v6089_v36 = vadd.f32 %v6088_v0, %v5856_v30  ;;  %v6104_v51 = vadd.f32 %v6103_v15, %v5857_v14  ;;  %v5859_v5 = vmul.f32 %v5540_v24, %v5108_v43  ;;  %v5858_v40 = vmul.f32 %v5536_v20, %v4757_v57 }
 0x38c   : > { %v5110_v32 = vpop.f32.mrf.mxu1  ;;  %v4759_v54 = vpop.f32.mrf.mxu0  ;;  %v5552_v0 = vrot.slane %v10981_v19, %v12356_v18 }
 0x38d   : > { %v6134_v38 = vadd.f32 %v6133_v52, %v5859_v5  ;;  %v6119_v34 = vadd.f32 %v6118_v17, %v5858_v40  ;;  %v5860_v11 = vmul.f32 %v5544_v28, %v5110_v32  ;;  %v5861_v1 = vmul.f32 %v5532_v61, %v4759_v54 }
 0x38e   : > { %v5112_v37 = vpop.f32.mrf.mxu1  ;;  %v4761_v10 = vpop.f32.mrf.mxu0  ;;  %v5560_v52 = vrot.slane %v10981_v19, %v12357_v29 }
 0x38f   : > { %v6149_v15 = vadd.f32 %v6148_v47, %v5860_v11  ;;  %v6164_v63 = vadd.f32 %v6163_v9, %v5861_v1  ;;  %v5863_v58 = vmul.f32 %v5540_v24, %v5112_v37  ;;  %v5862_v48 = vmul.f32 %v5536_v20, %v4761_v10 }
 0x390   : > { %v5114_v41 = vpop.f32.mrf.mxu1  ;;  %v4765_v60 = vpop.f32.mrf.mxu0 }
 0x391   : > { %v6194_v17 = vadd.f32 %v6193_v6, %v5863_v58  ;;  %v6179_v7 = vadd.f32 %v6178_v21, %v5862_v48  ;;  %v5864_v61 = vmul.f32 %v5544_v28, %v5114_v41  ;;  %v5865_v50 = vmul.f32 %v5548_v26, %v4765_v60 }
 0x392   : > { %v5118_v25 = vpop.f32.mrf.mxu1  ;;  %v4767_v30 = vpop.f32.mrf.mxu0 }
 0x393   : > { %v6209_v14 = vadd.f32 %v6208_v39, %v5864_v61  ;;  %v5985_v43 = vadd.f32 %v5984_v16, %v5865_v50  ;;  %v5867_v57 = vmul.f32 %v5556_v55, %v5118_v25  ;;  %v5866_v5 = vmul.f32 %v5552_v0, %v4767_v30 }
 0x394   : > { %v5120_v40 = vpop.f32.mrf.mxu1  ;;  %v4769_v47 = vpop.f32.mrf.mxu0  ;;  %v5397_v39 = vcombine.high %v10968_v23, %v10968_v23 }
 0x395   : > { %v6015_v9 = vadd.f32 %v6014_v46, %v5867_v57  ;;  %v6000_v24 = vadd.f32 %v5999_v4, %v5866_v5  ;;  %v5868_v20 = vmul.f32 %v5560_v52, %v5120_v40  ;;  %v5869_v32 = vmul.f32 %v5548_v26, %v4769_v47 }
 0x396   : > { %v5122_v54 = vpop.f32.mrf.mxu1  ;;  %v4771_v11 = vpop.f32.mrf.mxu0 }
 0x397   : > { %v6030_v1 = vadd.f32 %v6029_v44, %v5868_v20  ;;  %v6045_v37 = vadd.f32 %v6044_v35, %v5869_v32  ;;  %v5871_v6 = vmul.f32 %v5556_v55, %v5122_v54  ;;  %v5870_v21 = vmul.f32 %v5552_v0, %v4771_v11 }
 0x398   : > { %v5124_v28 = vpop.f32.mrf.mxu1  ;;  %v4775_v10 = vpop.f32.mrf.mxu0  ;;  %v5564_v35 = vrot.slane %v5397_v39, %v12354_v62 }
 0x399   : > { %v6075_v16 = vadd.f32 %v6074_v33, %v5871_v6  ;;  %v6060_v58 = vadd.f32 %v6059_v22, %v5870_v21  ;;  %v5872_v48 = vmul.f32 %v5560_v52, %v5124_v28  ;;  %v5873_v41 = vmul.f32 %v5548_v26, %v4775_v10 }
 0x39a   : > { %v5128_v60 = vpop.f32.mrf.mxu1  ;;  %v4777_v46 = vpop.f32.mrf.mxu0  ;;  %v5572_v33 = vrot.slane %v5397_v39, %v12355_v27  ;;  %v5568_v22 = vrot.slane %v5397_v39, %v12356_v18  ;;  %v5576_v21 = vrot.slane %v5397_v39, %v12357_v29 }
 0x39b   : > { %v6090_v4 = vadd.f32 %v6089_v36, %v5872_v48  ;;  %v6105_v61 = vadd.f32 %v6104_v51, %v5873_v41  ;;  %v5875_v50 = vmul.f32 %v5556_v55, %v5128_v60  ;;  %v5874_v25 = vmul.f32 %v5552_v0, %v4777_v46 }
 0x39c   : > { %v5130_v30 = vpop.f32.mrf.mxu1  ;;  %v4779_v44 = vpop.f32.mrf.mxu0 }
 0x39d   : > { %v6135_v57 = vadd.f32 %v6134_v38, %v5875_v50  ;;  %v6120_v5 = vadd.f32 %v6119_v34, %v5874_v25  ;;  %v5876_v40 = vmul.f32 %v5560_v52, %v5130_v30  ;;  %v5877_v47 = vmul.f32 %v5548_v26, %v4779_v44 }
 0x39e   : > { %v5132_v20 = vpop.f32.mrf.mxu1  ;;  %v4781_v23 = vpop.f32.mrf.mxu0 }
 0x39f   : > { %v6150_v32 = vadd.f32 %v6149_v15, %v5876_v40  ;;  %v6165_v54 = vadd.f32 %v6164_v63, %v5877_v47  ;;  %v5879_v36 = vmul.f32 %v5556_v55, %v5132_v20  ;;  %v5878_v51 = vmul.f32 %v5552_v0, %v4781_v23 }
 0x3a0   : > { %v5134_v11 = vpop.f32.mrf.mxu1  ;;  %v4785_v6 = vpop.f32.mrf.mxu0  ;;  %v5399_v47 = vcombine.high %v10981_v19, %v10981_v19  ;;  %v6271_v19 = vld [vmem:[%s12061_s3 + $0x30] sm:$0xff] }
 0x3a1   : > { %v6195_v28 = vadd.f32 %v6194_v17, %v5879_v36  ;;  %v6180_v10 = vadd.f32 %v6179_v7, %v5878_v51  ;;  %v5880_v38 = vmul.f32 %v5560_v52, %v5134_v11  ;;  %v5881_v34 = vmul.f32 %v5564_v35, %v4785_v6  ;;  %6305 = vperm.xlu0 %7812, %v6271_v19   ;;  %v6265_v19 = vld [vmem:[%s12061_s3] sm:$0xff] }
 0x3a2   : > { %v5138_v48 = vpop.f32.mrf.mxu1  ;;  %v4787_v26 = vpop.f32.mrf.mxu0 }
 0x3a3   : > { %v6210_v41 = vadd.f32 %v6209_v14, %v5880_v38  ;;  %v5986_v60 = vadd.f32 %v5985_v43, %v5881_v34  ;;  %v5883_v46 = vmul.f32 %v5572_v33, %v5138_v48  ;;  %v5882_v50 = vmul.f32 %v5568_v22, %v4787_v26 }
 0x3a4   : > { %v5140_v25 = vpop.f32.mrf.mxu1  ;;  %v4789_v30 = vpop.f32.mrf.mxu0  ;;  %v11016_v48 = vrot.slane %v5399_v47, %v12354_v62 }
 0x3a5   : > { %v10997_v15 = vadd.f32 %v6015_v9, %v5883_v46  ;;  %v10999_v55 = vadd.f32 %v6000_v24, %v5882_v50  ;;  %v5884_v0 = vmul.f32 %v5576_v21, %v5140_v25  ;;  %v5885_v63 = vmul.f32 %v5564_v35, %v4789_v30 }
 0x3a6   : > { %v5142_v44 = vpop.f32.mrf.mxu1  ;;  %v4791_v39 = vpop.f32.mrf.mxu0  ;;  %v11029_v25 = vrot.slane %v5399_v47, %v12355_v27  ;;  %v11032_v30 = vrot.slane %v5399_v47, %v12356_v18 }
 0x3a7   : > { %v11001_v17 = vadd.f32 %v6030_v1, %v5884_v0  ;;  %v11003_v52 = vadd.f32 %v6045_v37, %v5885_v63  ;;  %v5887_v7 = vmul.f32 %v5572_v33, %v5142_v44  ;;  %v5886_v40 = vmul.f32 %v5568_v22, %v4791_v39  ;;  %v6272_v0 = vld [vmem:[%s12061_s3 + $0x38] sm:$0xff]  ;;  %v6270_v44 = vld [vmem:[%s12061_s3 + $0x28] sm:$0xff] }
 0x3a8   : > { %v5144_v14 = vpop.f32.mrf.mxu1  ;;  %v4795_v43 = vpop.f32.mrf.mxu0  ;;  %6310 = vperm.xlu0 %7812, %v6272_v0  }
 0x3a9   : > { %v11007_v20 = vadd.f32 %v6075_v16, %v5887_v7  ;;  %v11009_v9 = vadd.f32 %v6060_v58, %v5886_v40  ;;  %v5888_v24 = vmul.f32 %v5576_v21, %v5144_v14  ;;  %v5889_v23 = vmul.f32 %v5564_v35, %v4795_v43  ;;  %v6269_v16 = vld [vmem:[%s12061_s3 + $0x20] sm:$0xff] }
 0x3aa   : > { %v5148_v36 = vpop.f32.mrf.mxu1  ;;  %v4797_v51 = vpop.f32.mrf.mxu0  ;;  %6295 = vperm.xlu1 %7813, %v6269_v16   ;;  %v11045_v40 = vrot.slane %v5399_v47, %v12357_v29 }
 0x3ab   : > { %v11011_v11 = vadd.f32 %v6090_v4, %v5888_v24  ;;  %v11013_v1 = vadd.f32 %v6105_v61, %v5889_v23  ;;  %v5891_v37 = vmul.f32 %v5572_v33, %v5148_v36  ;;  %v5890_v6 = vmul.f32 %v5568_v22, %v4797_v51 }
 0x3ac   : > { %v5150_v38 = vpop.f32.mrf.mxu1  ;;  %v4799_v34 = vpop.f32.mrf.mxu0 }
 0x3ad   : > { %v11024_v58 = vadd.f32 %v6135_v57, %v5891_v37  ;;  %v11026_v4 = vadd.f32 %v6120_v5, %v5890_v6  ;;  %v5892_v61 = vmul.f32 %v5576_v21, %v5150_v38  ;;  %v5893_v26 = vmul.f32 %v5564_v35, %v4799_v34 }
 0x3ae   : > { %v5152_v46 = vpop.f32.mrf.mxu1  ;;  %v4801_v50 = vpop.f32.mrf.mxu0  ;;  %6300 = vperm.xlu1 %7813, %v6270_v44  }
 0x3af   : > { %v11037_v57 = vadd.f32 %v6150_v32, %v5892_v61  ;;  %v11039_v5 = vadd.f32 %v6165_v54, %v5893_v26  ;;  %v5895_v63 = vmul.f32 %v5572_v33, %v5152_v46  ;;  %v5894_v35 = vmul.f32 %v5568_v22, %v4801_v50  ;;  %v6267_v22 = vld [vmem:[%s12061_s3 + $0x10] sm:$0xff]  ;;  %v6266_v26 = vld [vmem:[%s12061_s3 + $0x8] sm:$0xff] }
 0x3b0   : > { %v5154_v39 = vpop.f32.mrf.mxu1  ;;  %v4805_v7 = vpop.f32.mrf.mxu0  ;;  %6285 = vperm.xlu0 %7812, %v6267_v22  }
 0x3b1   : > { %v11047_v14 = vadd.f32 %v6195_v28, %v5895_v63  ;;  %v11049_v43 = vadd.f32 %v6180_v10, %v5894_v35  ;;  %v5896_v24 = vmul.f32 %v5576_v21, %v5154_v39  ;;  %v5897_v32 = vmul.f32 %v11016_v48, %v4805_v7  ;;  %v6268_v21 = vld [vmem:[%s12061_s3 + $0x18] sm:$0xff] }
 0x3b2   : > { %v5158_v54 = vpop.f32.mrf.mxu1  ;;  %v4807_v33 = vpop.f32.mrf.mxu0  ;;  %6290 = vperm.xlu1 %7813, %v6268_v21   ;;  %v5336_v21 = vcombine.high %v12361_v12, %v12360_v59 }
 0x3b3   : > { %v11055_v23 = vadd.f32 %v6210_v41, %v5896_v24  ;;  %v11057_v36 = vadd.f32 %v5986_v60, %v5897_v32  ;;  %v5899_v28 = vmul.f32 %v11029_v25, %v5158_v54  ;;  %v5898_v10 = vmul.f32 %v11032_v30, %v4807_v33 }
 0x3b4   : > { %v5160_v47 = vpop.f32.mrf.mxu1  ;;  %v4809_v51 = vpop.f32.mrf.mxu0  ;;  %6275 = vperm.xlu0 %7812, %v6265_v19  }
 0x3b5   : > { %v11065_v37 = vadd.f32 %v10997_v15, %v5899_v28  ;;  %v11068_v6 = vadd.f32 %v10999_v55, %v5898_v10  ;;  %v5900_v41 = vmul.f32 %v11045_v40, %v5160_v47  ;;  %v5901_v60 = vmul.f32 %v11016_v48, %v4809_v51 }
 0x3b6   : > { %v5162_v38 = vpop.f32.mrf.mxu1  ;;  %v4811_v34 = vpop.f32.mrf.mxu0  ;;  %6280 = vperm.xlu1 %7813, %v6266_v26   ;;  %v5334_v10 = vcombine.high %v12359_v13, %v12358_v2 }
 0x3b7   : > { %v11076_v16 = vadd.f32 %v11001_v17, %v5900_v41  ;;  %v11079_v15 = vadd.f32 %v11003_v52, %v5901_v60  ;;  %v5903_v55 = vmul.f32 %v11029_v25, %v5162_v38  ;;  %v5902_v61 = vmul.f32 %v11032_v30, %v4811_v34 }
 0x3b8   : > { %v5164_v46 = vpop.f32.mrf.mxu1  ;;  %v4815_v50 = vpop.f32.mrf.mxu0  ;;  %v5350_v60 = vrot.slane %v5334_v10, %v12343_v3  ;;  %v5364_v38 = vrot.slane %v5336_v21, %v12343_v3 }
 0x3b9   : > { %v11087_v0 = vadd.f32 %v11007_v20, %v5903_v55  ;;  %v11090_v63 = vadd.f32 %v11009_v9, %v5902_v61  ;;  %v5904_v17 = vmul.f32 %v11045_v40, %v5164_v46 }
 0x3ba   : > { %v5168_v52 = vpop.f32.mrf.mxu1  ;;  %v4817_v35 = vpop.f32.mrf.mxu0  ;;  %v5367_v59 = vcombine.low %v5350_v60, %v5364_v38  ;;  %v5368_v61 = vcombine.high %v5350_v60, %v5364_v38 }
 0x3bb   : > { %v11094_v44 = vadd.f32 %v11011_v11, %v5904_v17 }
 0x3bc   : > { %v5170_v39 = vpop.f32.mrf.mxu1  ;;  %v4819_v7 = vpop.f32.mrf.mxu0  ;;  %v5382_v17 = vrot.slane %v5367_v59, %v12343_v3  ;;  %v5396_v10 = vrot.slane %v5368_v61, %v12343_v3 }
 0x3bd   : > { %12362 = vst [vmem:[#allocation40_spill] sm:$0xff] %v11094_v44 }
 0x3be   : > { %v5172_v24 = vpop.f32.mrf.mxu1  ;;  %v4821_v32 = vpop.f32.mrf.mxu0  ;;  %v5398_v42 = vcombine.high %v5382_v17, %v5382_v17  ;;  %v11141_v49 = vrot.slane %v5382_v17, %v12354_v62  ;;  %v5400_v60 = vcombine.high %v5396_v10, %v5396_v10  ;;  %v11144_v38 = vrot.slane %v5382_v17, %v12355_v27 }
 0x3bf   : > { %v11147_v59 = vrot.slane %v5382_v17, %v12356_v18  ;;  %v11150_v61 = vrot.slane %v5382_v17, %v12357_v29  ;;  %v11153_v3 = vrot.slane %v5396_v10, %v12354_v62  ;;  %v5905_v17 = vmul.f32 %v11016_v48, %v4815_v50 }
 0x3c0   : > { %v5174_v54 = vpop.f32.mrf.mxu1  ;;  %v4825_v33 = vpop.f32.mrf.mxu0  ;;  %v11169_v44 = vrot.slane %v5398_v42, %v12354_v62  ;;  %v11191_v50 = vrot.slane %v5400_v60, %v12355_v27 }
 0x3c1   : > { %12367 = vst [vmem:[#allocation22_spill] sm:$0xff] %v11153_v3 }
 0x3c2   : > { %v5178_v20 = vpop.f32.mrf.mxu1  ;;  %v4827_v22 = vpop.f32.mrf.mxu0  ;;  %12372 = vst [vmem:[#allocation45_spill] sm:$0xff] %v11169_v44  ;;  %v11188_v44 = vrot.slane %v5400_v60, %v12354_v62  ;;  %12377 = vst [vmem:[#allocation50_spill] sm:$0xff] %v11191_v50  ;;  %v5912_v62 = vmul.f32 %v11045_v40, %v5174_v54 }
 0x3c3   : > { %v5915_v50 = vmul.f32 %v11144_v38, %v5178_v20 }
 0x3c4   : > { %v11096_v28 = vpop.f32.mrf.mxu1  ;;  %v11098_v9 = vpop.f32.mrf.mxu0 }
 0x3c6   : > { %v11104_v11 = vpop.f32.mrf.mxu1  ;;  %v11106_v47 = vpop.f32.mrf.mxu0 }
 0x3c8   : > { %v11108_v51 = vpop.f32.mrf.mxu1  ;;  %v11110_v41 = vpop.f32.mrf.mxu0 }
 0x3ca   : > { %v11114_v34 = vpop.f32.mrf.mxu1  ;;  %v11116_v19 = vpop.f32.mrf.mxu0 }
 0x3cc   : > { %v11118_v2 = vpop.f32.mrf.mxu1  ;;  %v11120_v13 = vpop.f32.mrf.mxu0 }
 0x3ce   : > { %v11122_v12 = vpop.f32.mrf.mxu1  ;;  %v11124_v55 = vpop.f32.mrf.mxu0 }
 0x3d0   : > { %v11126_v26 = vpop.f32.mrf.mxu1  ;;  %v11128_v46 = vpop.f32.mrf.mxu0 }
 0x3d2   : > { %v11132_v21 = vpop.f32.mrf.mxu1  ;;  %v11134_v8 = vpop.f32.mrf.mxu0 }
 0x3d3   : > { %12363 = vst [vmem:[#allocation18_spill] sm:$0xff] %v11132_v21  ;;  %12364 = vst [vmem:[#allocation19_spill] sm:$0xff] %v11134_v8  ;;  %v11166_v8 = vrot.slane %v5396_v10, %v12357_v29  ;;  %v5907_v21 = vmul.f32 %v11029_v25, %v5168_v52  ;;  %v5908_v52 = vmul.f32 %v11045_v40, %v5170_v39 }
 0x3d4   : > { %v11136_v53 = vpop.f32.mrf.mxu1  ;;  %v11138_v45 = vpop.f32.mrf.mxu0  ;;  %v6107_v39 = vadd.f32 %v11013_v1, %v5905_v17  ;;  %v5916_v40 = vmul.f32 %v11150_v61, %v11096_v28  ;;  %v5919_v1 = vmul.f32 %v11144_v38, %v11104_v11  ;;  %v6212_v28 = vadd.f32 %v11055_v23, %v5912_v62 }
 0x3d5   : > { %12365 = vst [vmem:[#allocation20_spill] sm:$0xff] %v11136_v53  ;;  %12366 = vst [vmem:[#allocation21_spill] sm:$0xff] %v11138_v45  ;;  %v11160_v45 = vrot.slane %v5396_v10, %v12355_v27  ;;  %v11163_v53 = vrot.slane %v5396_v10, %v12356_v18  ;;  %v5906_v10 = vmul.f32 %v11032_v30, %v4817_v35 }
 0x3d6   : > { %v11155_v31 = vpop.f32.mrf.mxu1  ;;  %v11157_v56 = vpop.f32.mrf.mxu0  ;;  %12371 = vst [vmem:[#allocation44_spill] sm:$0xff] %v11166_v8  ;;  %v11185_v8 = vrot.slane %v5398_v42, %v12357_v29  ;;  %v11201_v35 = vrot.slane %v5400_v60, %v12356_v18 }
 0x3d7   : > { %12368 = vst [vmem:[#allocation41_spill] sm:$0xff] %v11155_v31  ;;  %12369 = vst [vmem:[#allocation42_spill] sm:$0xff] %v11157_v56  ;;  %v11178_v56 = vrot.slane %v5398_v42, %v12355_v27  ;;  %v5913_v27 = vmul.f32 %v11141_v49, %v4825_v33 }
 0x3d8   : > { %12370 = vst [vmem:[#allocation43_spill] sm:$0xff] %v11160_v45  ;;  %v11173_v3 = vpop.f32.mrf.mxu1  ;;  %v11175_v31 = vpop.f32.mrf.mxu0  ;;  %v11181_v45 = vrot.slane %v5398_v42, %v12356_v18  ;;  %v5910_v42 = vmul.f32 %v11032_v30, %v4821_v32  ;;  %v11215_v18 = vrot.slane %v5400_v60, %v12357_v29  ;;  %v6122_v30 = vadd.f32 %v11026_v4, %v5906_v10  ;;  %v12381_v10 = vld [vmem:[#allocation40_spill] sm:$0xff] }
 0x3d9   : > { %12373 = vst [vmem:[#allocation46_spill] sm:$0xff] %v11173_v3  ;;  %12374 = vst [vmem:[#allocation47_spill] sm:$0xff] %v11175_v31  ;;  %v5909_v31 = vmul.f32 %v11016_v48, %v4819_v7  ;;  %v6137_v48 = vadd.f32 %v11024_v58, %v5907_v21  ;;  %v5917_v32 = vmul.f32 %v11141_v49, %v11098_v9 }
 0x3da   : > { %12375 = vst [vmem:[#allocation48_spill] sm:$0xff] %v11178_v56  ;;  %12376 = vst [vmem:[#allocation49_spill] sm:$0xff] %v11181_v45  ;;  %v5911_v56 = vmul.f32 %v11029_v25, %v5172_v24  ;;  %v11196_v3 = vpop.f32.mrf.mxu1  ;;  %v11198_v45 = vpop.f32.mrf.mxu0  ;;  %v5914_v25 = vmul.f32 %v11147_v59, %v4827_v22  ;;  %v6152_v58 = vadd.f32 %v11037_v57, %v5908_v52  ;;  %v12379_v60 = vld [vmem:[#allocation18_spill] sm:$0xff]  ;;  %v12382_v52 = vld [vmem:[#allocation19_spill] sm:$0xff] }
 0x3db   : > { %v6167_v54 = vadd.f32 %v11039_v5, %v5909_v31  ;;  %v5918_v29 = vmul.f32 %v11147_v59, %v11106_v47  ;;  %v6182_v22 = vadd.f32 %v11049_v43, %v5910_v42  ;;  %v5988_v9 = vadd.f32 %v11057_v36, %v5913_v27 }
 0x3dc   : > { %v11210_v7 = vpop.f32.mrf.mxu1  ;;  %v11212_v24 = vpop.f32.mrf.mxu0  ;;  %v6197_v33 = vadd.f32 %v11047_v14, %v5911_v56  ;;  %v6018_v21 = vadd.f32 %v11065_v37, %v5915_v50  ;;  %v6003_v11 = vadd.f32 %v11068_v6, %v5914_v25  ;;  %v5920_v31 = vmul.f32 %v11150_v61, %v11108_v51 }
 0x3dd   : > { %v5921_v56 = vmul.f32 %v11141_v49, %v11110_v41  ;;  %v5923_v57 = vmul.f32 %v11144_v38, %v11114_v34  ;;  %v6033_v43 = vadd.f32 %v11076_v16, %v5916_v40  ;;  %v6048_v23 = vadd.f32 %v11079_v15, %v5917_v32 }
 0x3de   : > { %v5212_v20 = vpop.f32.mrf.mxu1  ;;  %v4861_v4 = vpop.f32.mrf.mxu0  ;;  %v6078_v36 = vadd.f32 %v11087_v0, %v5919_v1  ;;  %v5922_v37 = vmul.f32 %v11147_v59, %v11116_v19  ;;  %v6063_v6 = vadd.f32 %v11090_v63, %v5918_v29  ;;  %v5924_v47 = vmul.f32 %v11150_v61, %v11118_v2  ;;  %v12378_v19 = vld [vmem:[#allocation22_spill] sm:$0xff] }
 0x3df   : > { %v5925_v51 = vmul.f32 %v11141_v49, %v11120_v13  ;;  %v5927_v41 = vmul.f32 %v11144_v38, %v11122_v12  ;;  %v5926_v15 = vmul.f32 %v11147_v59, %v11124_v55  ;;  %v5928_v0 = vmul.f32 %v11150_v61, %v11126_v26  ;;  %v12380_v17 = vld [vmem:[#allocation43_spill] sm:$0xff]  ;;  %v12383_v55 = vld [vmem:[#allocation20_spill] sm:$0xff]  ;;  %v12385_v26 = vld [vmem:[#allocation21_spill] sm:$0xff] }
 0x3e0   : > { %v5214_v5 = vpop.f32.mrf.mxu1  ;;  %v4865_v14 = vpop.f32.mrf.mxu0  ;;  %v5929_v63 = vmul.f32 %v12378_v19, %v11128_v46  ;;  %v5931_v2 = vmul.f32 %v12380_v17, %v12379_v60  ;;  %v6093_v50 = vadd.f32 %v12381_v10, %v5920_v31  ;;  %v6108_v49 = vadd.f32 %v6107_v39, %v5921_v56  ;;  %v12384_v59 = vld [vmem:[#allocation44_spill] sm:$0xff]  ;;  %v12386_v46 = vld [vmem:[#allocation41_spill] sm:$0xff]  ;;  %v12387_v39 = vld [vmem:[#allocation42_spill] sm:$0xff] }
 0x3e1   : > { %v6138_v13 = vadd.f32 %v6137_v48, %v5923_v57  ;;  %v5930_v12 = vmul.f32 %v11163_v53, %v12382_v52  ;;  %v6123_v62 = vadd.f32 %v6122_v30, %v5922_v37  ;;  %v5932_v27 = vmul.f32 %v12384_v59, %v12383_v55  ;;  %v12388_v10 = vld [vmem:[#allocation46_spill] sm:$0xff]  ;;  %v12389_v55 = vld [vmem:[#allocation47_spill] sm:$0xff] }
 0x3e2   : > { %v5218_v34 = vpop.f32.mrf.mxu1  ;;  %v4867_v16 = vpop.f32.mrf.mxu0  ;;  %v5933_v61 = vmul.f32 %v12378_v19, %v12385_v26  ;;  %v5935_v25 = vmul.f32 %v12380_v17, %v12386_v46  ;;  %v6153_v40 = vadd.f32 %v6152_v58, %v5924_v47  ;;  %v6168_v32 = vadd.f32 %v6167_v54, %v5925_v51 }
 0x3e3   : > { %v6198_v1 = vadd.f32 %v6197_v33, %v5927_v41  ;;  %v5934_v48 = vmul.f32 %v11163_v53, %v12387_v39  ;;  %v6183_v56 = vadd.f32 %v6182_v22, %v5926_v15  ;;  %v6213_v57 = vadd.f32 %v6212_v28, %v5928_v0 }
 0x3e4   : > { %v5220_v38 = vpop.f32.mrf.mxu1  ;;  %v4869_v42 = vpop.f32.mrf.mxu0  ;;  %v5989_v30 = vadd.f32 %v5988_v9, %v5929_v63  ;;  %v6019_v37 = vadd.f32 %v6018_v21, %v5931_v2  ;;  %v6004_v60 = vadd.f32 %v6003_v11, %v5930_v12  ;;  %v5936_v52 = vmul.f32 %v12384_v59, %v12388_v10  ;;  %v12391_v63 = vld [vmem:[#allocation48_spill] sm:$0xff] }
 0x3e5   : > { %v5937_v26 = vmul.f32 %v12378_v19, %v12389_v55  ;;  %v5939_v58 = vmul.f32 %v12380_v17, %v11196_v3  ;;  %v6034_v47 = vadd.f32 %v6033_v43, %v5932_v27  ;;  %v6049_v51 = vadd.f32 %v6048_v23, %v5933_v61  ;;  %v12390_v23 = vld [vmem:[#allocation45_spill] sm:$0xff]  ;;  %v12393_v55 = vld [vmem:[#allocation50_spill] sm:$0xff] }
 0x3e6   : > { %v5222_v29 = vpop.f32.mrf.mxu1  ;;  %v4871_v31 = vpop.f32.mrf.mxu0  ;;  %v6079_v41 = vadd.f32 %v6078_v36, %v5935_v25  ;;  %v5938_v22 = vmul.f32 %v11163_v53, %v11198_v45  ;;  %v6064_v28 = vadd.f32 %v6063_v6, %v5934_v48  ;;  %v5940_v9 = vmul.f32 %v12384_v59, %v11210_v7  ;;  %v12392_v27 = vld [vmem:[#allocation49_spill] sm:$0xff] }
 0x3e7   : > { %v5941_v21 = vmul.f32 %v12378_v19, %v11212_v24  ;;  %v5943_v11 = vmul.f32 %v12380_v17, %v5212_v20  ;;  %v5942_v3 = vmul.f32 %v11163_v53, %v4861_v4  ;;  %v5944_v43 = vmul.f32 %v12384_v59, %v5214_v5 }
 0x3e8   : > { %v5224_v54 = vpop.f32.mrf.mxu1  ;;  %v4875_v33 = vpop.f32.mrf.mxu0  ;;  %v5945_v36 = vmul.f32 %v12390_v23, %v4865_v14  ;;  %v5947_v2 = vmul.f32 %v12391_v63, %v5218_v34  ;;  %v6094_v45 = vadd.f32 %v6093_v50, %v5936_v52  ;;  %v6109_v6 = vadd.f32 %v6108_v49, %v5937_v26 }
 0x3e9   : > { %v6139_v12 = vadd.f32 %v6138_v13, %v5939_v58  ;;  %v5946_v7 = vmul.f32 %v12392_v27, %v4867_v16  ;;  %v6124_v24 = vadd.f32 %v6123_v62, %v5938_v22  ;;  %v5948_v20 = vmul.f32 %v11185_v8, %v5220_v38 }
 0x3ea   : > { %v5228_v15 = vpop.f32.mrf.mxu1  ;;  %v4877_v0 = vpop.f32.mrf.mxu0  ;;  %v5949_v19 = vmul.f32 %v12390_v23, %v4869_v42  ;;  %v5951_v53 = vmul.f32 %v12391_v63, %v5222_v29  ;;  %v6154_v4 = vadd.f32 %v6153_v40, %v5940_v9  ;;  %v6169_v5 = vadd.f32 %v6168_v32, %v5941_v21 }
 0x3eb   : > { %v6199_v17 = vadd.f32 %v6198_v1, %v5943_v11  ;;  %v5950_v14 = vmul.f32 %v12392_v27, %v4871_v31  ;;  %v6184_v49 = vadd.f32 %v6183_v56, %v5942_v3  ;;  %v11293_v13 = vadd.f32 %v6213_v57, %v5944_v43 }
 0x3ec   : > { %v5230_v61 = vpop.f32.mrf.mxu1  ;;  %v4879_v46 = vpop.f32.mrf.mxu0  ;;  %v5990_v16 = vadd.f32 %v5989_v30, %v5945_v36  ;;  %v6020_v59 = vadd.f32 %v6019_v37, %v5947_v2  ;;  %v6005_v25 = vadd.f32 %v6004_v60, %v5946_v7  ;;  %v5952_v62 = vmul.f32 %v11185_v8, %v5224_v54 }
 0x3ed   : > { %v5953_v38 = vmul.f32 %v12390_v23, %v4875_v33  ;;  %v5955_v42 = vmul.f32 %v12391_v63, %v5228_v15  ;;  %v6035_v32 = vadd.f32 %v6034_v47, %v5948_v20  ;;  %v6050_v1 = vadd.f32 %v6049_v51, %v5949_v19 }
 0x3ee   : > { %v5232_v34 = vpop.f32.mrf.mxu1  ;;  %v4881_v50 = vpop.f32.mrf.mxu0  ;;  %v6080_v48 = vadd.f32 %v6079_v41, %v5951_v53  ;;  %v6065_v31 = vadd.f32 %v6064_v28, %v5950_v14  ;;  %v5954_v56 = vmul.f32 %v12392_v27, %v4877_v0  ;;  %v5956_v57 = vmul.f32 %v11185_v8, %v5230_v61  ;;  %v12394_v28 = vld [vmem:[#allocation24_spill] sm:$0xff]  ;;  %v12397_v14 = vld [vmem:[#allocation27_spill] sm:$0xff] }
 0x3ef   : > { %v5957_v30 = vmul.f32 %v12390_v23, %v4879_v46  ;;  %v5959_v10 = vmul.f32 %v12391_v63, %v5232_v34  ;;  %v6095_v54 = vadd.f32 %v6094_v45, %v5952_v62  ;;  %v6110_v33 = vadd.f32 %v6109_v6, %v5953_v38  ;;  %v12395_v45 = vld [vmem:[#allocation25_spill] sm:$0xff] }
 0x3f0   : > { %v5234_v39 = vpop.f32.mrf.mxu1  ;;  %v4885_v40 = vpop.f32.mrf.mxu0  ;;  %v6140_v47 = vadd.f32 %v6139_v12, %v5955_v42  ;;  %v5958_v51 = vmul.f32 %v12392_v27, %v4881_v50  ;;  %v6125_v0 = vadd.f32 %v6124_v24, %v5954_v56  ;;  %v6155_v3 = vadd.f32 %v6154_v4, %v5956_v57  ;;  %v12396_v12 = vld [vmem:[#allocation26_spill] sm:$0xff]  ;;  %v12398_v50 = vld [vmem:[#allocation28_spill] sm:$0xff] }
 0x3f1   : > { %v5961_v29 = vmul.f32 %v11188_v44, %v4885_v40  ;;  %v6170_v43 = vadd.f32 %v6169_v5, %v5957_v30  ;;  %v6200_v2 = vadd.f32 %v6199_v17, %v5959_v10  ;;  %v5960_v4 = vmul.f32 %v11185_v8, %v5234_v39  ;;  %v12400_v56 = vld [vmem:[#allocation30_spill] sm:$0xff] }
 0x3f2   : > { %v5238_v37 = vpop.f32.mrf.mxu1  ;;  %v4887_v60 = vpop.f32.mrf.mxu0  ;;  %v6185_v61 = vadd.f32 %v6184_v49, %v5958_v51 }
 0x3f3   : > { %v5991_v52 = vadd.f32 %v5990_v16, %v5961_v29  ;;  %v5963_v26 = vmul.f32 %v12393_v55, %v5238_v37  ;;  %v5962_v58 = vmul.f32 %v11201_v35, %v4887_v60 }
 0x3f4   : > { %v5240_v41 = vpop.f32.mrf.mxu1  ;;  %v4889_v22 = vpop.f32.mrf.mxu0 }
 0x3f5   : > { %v6217_v9 = vadd.f32 %v5991_v52, %v12394_v28  ;;  %v6021_v21 = vadd.f32 %v6020_v59, %v5963_v26  ;;  %v6006_v11 = vadd.f32 %v6005_v25, %v5962_v58  ;;  %v5964_v15 = vmul.f32 %v11215_v18, %v5240_v41  ;;  %v12402_v41 = vld [vmem:[#allocation32_spill] sm:$0xff] }
 0x3f6   : > { %v5965_v23 = vmul.f32 %v11188_v44, %v4889_v22  ;;  %v5242_v36 = vpop.f32.mrf.mxu1  ;;  %v4891_v63 = vpop.f32.mrf.mxu0 }
 0x3f7   : > { %v6219_v6 = vadd.f32 %v6021_v21, %v12395_v45  ;;  %v6218_v27 = vadd.f32 %v6006_v11, %v12396_v12  ;;  %v6036_v7 = vadd.f32 %v6035_v32, %v5964_v15  ;;  %v5967_v20 = vmul.f32 %v12393_v55, %v5242_v36  ;;  %v12403_v11 = vld [vmem:[#allocation33_spill] sm:$0xff] }
 0x3f8   : > { %v6051_v46 = vadd.f32 %v6050_v1, %v5965_v23  ;;  %v5966_v19 = vmul.f32 %v11201_v35, %v4891_v63  ;;  %v5244_v53 = vpop.f32.mrf.mxu1  ;;  %v4895_v24 = vpop.f32.mrf.mxu0  ;;  %v11314_v5 = vmul.f32 0.33333334, %v6217_v9  ;;  %v12399_v1 = vld [vmem:[#allocation29_spill] sm:$0xff]  ;;  %v6215_v12 = vadd.f32 %v11293_v13, %v5960_v4 }
 0x3f9   : > { %v6220_v34 = vadd.f32 %v6036_v7, %v12397_v14  ;;  %v5968_v17 = vmul.f32 %v11215_v18, %v5244_v53  ;;  %v6081_v59 = vadd.f32 %v6080_v48, %v5967_v20  ;;  %v5969_v49 = vmul.f32 %v11188_v44, %v4895_v24 }
 0x3fa   : > { %v6221_v16 = vadd.f32 %v6051_v46, %v12398_v50  ;;  %v6066_v25 = vadd.f32 %v6065_v31, %v5966_v19  ;;  %v5248_v62 = vpop.f32.mrf.mxu1  ;;  %v4897_v38 = vpop.f32.mrf.mxu0  ;;  %v11320_v42 = vmul.f32 0.33333334, %v6219_v6  ;;  %v12401_v31 = vld [vmem:[#allocation31_spill] sm:$0xff]  ;;  %v6234_v63 = vmul.f32 0.33333334, %v6218_v27 }
 0x3fb   : > { %v6096_v40 = vadd.f32 %v6095_v54, %v5968_v17  ;;  %v5971_v32 = vmul.f32 %v12393_v55, %v5248_v62  ;;  %v5970_v8 = vmul.f32 %v11201_v35, %v4897_v38  ;;  %v6223_v29 = vadd.f32 %v6081_v59, %v12399_v1  ;;  %v12405_v46 = vld [vmem:[#allocation35_spill] sm:$0xff]  ;;  %v12406_v17 = vld [vmem:[#allocation36_spill] sm:$0xff] }
 0x3fc   : > { %v6237_v39 = vmul.f32 0.33333334, %v6221_v16  ;;  %v6222_v57 = vadd.f32 %v6066_v25, %v12400_v56  ;;  %v6111_v30 = vadd.f32 %v6110_v33, %v5969_v49  ;;  %v5250_v37 = vpop.f32.mrf.mxu1  ;;  %v4899_v48 = vpop.f32.mrf.mxu0  ;;  %v12404_v33 = vld [vmem:[#allocation34_spill] sm:$0xff]  ;;  %v6236_v7 = vmul.f32 0.33333334, %v6220_v34  ;;  %v12409_v62 = vld [vmem:[#allocation39_spill] sm:$0xff] }
 0x3fd   : > { %v6224_v60 = vadd.f32 %v6096_v40, %v12401_v31  ;;  %v6141_v10 = vadd.f32 %v6140_v47, %v5971_v32  ;;  %v6126_v52 = vadd.f32 %v6125_v0, %v5970_v8  ;;  %v5972_v26 = vmul.f32 %v11215_v18, %v5250_v37  ;;  %v12408_v25 = vld [vmem:[#allocation38_spill] sm:$0xff]  ;;  %v7911_v1 = vld [vmem:[%s12060_s2 + $0x8] sm:$0xff]   ;;  %v7913_v56 = vld [vmem:[%s12060_s2 + $0x18] sm:$0xff]  }
 0x3fe   : > { %v6249_v58 = vpack.c.bf16 %v6237_v39, %v11314_v5  ;;  %v6239_v54 = vmul.f32 0.33333334, %v6223_v29  ;;  %v6238_v51 = vmul.f32 0.33333334, %v6222_v57  ;;  %v6225_v22 = vadd.f32 %v6111_v30, %v12402_v41  ;;  %v5252_v28 = vpop.f32.mrf.mxu1  ;;  %v4901_v9 = vpop.f32.mrf.mxu0  ;;  %v7910_v8 = vld [vmem:[%s12060_s2] sm:$0xff]   ;;  %v7912_v29 = vld [vmem:[%s12060_s2 + $0x10] sm:$0xff]  }
 0x3ff   : > { %v6240_v21 = vmul.f32 0.33333334, %v6224_v60  ;;  %v6227_v15 = vadd.f32 %v6141_v10, %v12403_v11  ;;  %v6226_v23 = vadd.f32 %v6126_v52, %v12404_v33  ;;  %v6156_v36 = vadd.f32 %v6155_v3, %v5972_v26  ;;  %v6989_v57 = vld [vmem:[%s12063_s5] sm:$0xf] }
 0x400   : > { %v6251_v47 = vpack.c.bf16 %v6239_v54, %v11320_v42  ;;  %v5973_v0 = vmul.f32 %v11188_v44, %v4899_v48  ;;  %v5975_v45 = vmul.f32 %v12393_v55, %v5252_v28  ;;  %v5254_v6 = vpop.f32.mrf.mxu1  ;;  %v5974_v19 = vmul.f32 %v11201_v35, %v4901_v9  ;;  %v12407_v44 = vld [vmem:[#allocation37_spill] sm:$0xff]  ;;  %6992 = vperm.xlu0 %7812, %v6989_v57  }
 0x401   : > { %v6228_v20 = vadd.f32 %v6156_v36, %v12405_v46  ;;  %v5976_v5 = vmul.f32 %v11215_v18, %v5254_v6  ;;  %v6250_v3 = vpack.c.bf16 %v6238_v51, %v6234_v63  ;;  %v6252_v14 = vpack.c.bf16 %v6240_v21, %v6236_v7 }
 0x402   : > { %v6171_v53 = vadd.f32 %v6170_v43, %v5973_v0  ;;  %v6201_v24 = vadd.f32 %v6200_v2, %v5975_v45  ;;  %v6186_v27 = vadd.f32 %v6185_v61, %v5974_v19  ;;  %v6241_v59 = vmul.f32 0.33333334, %v6225_v22 }
 0x403   : > { %v6216_v55 = vadd.f32 %v6215_v12, %v5976_v5  ;;  %v6243_v4 = vmul.f32 0.33333334, %v6227_v15  ;;  %v6242_v43 = vmul.f32 0.33333334, %v6226_v23  ;;  %v6244_v38 = vmul.f32 0.33333334, %v6228_v20 }
 0x404   : > { %v6229_v50 = vadd.f32 %v6171_v53, %v12406_v17  ;;  %v6231_v16 = vadd.f32 %v6201_v24, %v12407_v44  ;;  %v6230_v13 = vadd.f32 %v6186_v27, %v12408_v25  ;;  %v12410_v39 = vmov 0  }
 0x405   : > { %v6232_v35 = vadd.f32 %v6216_v55, %v12409_v62 }
 0x406   : > { %v6245_v34 = vmul.f32 0.33333334, %v6229_v50  ;;  %v6247_v49 = vmul.f32 0.33333334, %v6231_v16  ;;  %v6246_v2 = vmul.f32 0.33333334, %v6230_v13 }
 0x407   : > { %v6248_v61 = vmul.f32 0.33333334, %v6232_v35 }
 0x408   : > { %v6253_v18 = vpack.c.bf16 %v6245_v34, %v6241_v59  ;;  %v6255_v42 = vpack.c.bf16 %v6247_v49, %v6243_v4  ;;  %v6254_v40 = vpack.c.bf16 %v6246_v2, %v6242_v43 }
 0x409   : > { %v6256_v32 = vpack.c.bf16 %v6248_v61, %v6244_v38 }
 0x40a   : > { %6358 = vmatprep.subr.bf16.mxu0 %v6254_v40 }
 0x40b   : > { %6431 = vmatprep.subr.bf16.mxu1 %v6256_v32  ;;  %6359 = vmatpush1.bf16.msra.mxu0 %v6253_v18 }
 0x40c   : > { %6432 = vmatpush1.bf16.msra.mxu1 %v6255_v42  ;;  %6360 = vmatprep.subr.bf16.mxu0 %v6250_v3 }
 0x40d   : > { %6433 = vmatprep.subr.bf16.mxu1 %v6252_v14 }
 0x40f   : > { %6361 = vmatpush1.bf16.msra.mxu0 %v6249_v58 }
 0x410   : > { %6434 = vmatpush1.bf16.msra.mxu1 %v6251_v47 }
 0x412   : > { %7708 = vmatmul.mubr.msk.bf16.vlgmr.msra.gmra.mxu0 %vm6333_vm0, %v7910_v8 }
 0x413   : > { %7712 = vmatmul.mubr.msk.bf16.vlgmr.msra.gmra.mxu1 %vm6333_vm0, %v7910_v8  ;;  %6388 = vmatprep.mubr.bf16.mxu0 %v12410_v39 }
 0x414   : > { %6461 = vmatprep.mubr.bf16.mxu1 %v12410_v39 }
 0x41a   : > { %7709 = vmatmul.mubr.msk.bf16.gmra.mxu0 %vm6333_vm0, %v7911_v1 }
 0x41b   : > { %7713 = vmatmul.mubr.msk.bf16.gmra.mxu1 %vm6333_vm0, %v7911_v1  ;;  %6398 = vmatprep.mubr.bf16.mxu0 %v12410_v39 }
 0x41c   : > { %6471 = vmatprep.mubr.bf16.mxu1 %v12410_v39  ;;  %v11374_v30 = vpop.permute.xlu0 %6305 }
 0x422   : > { %7710 = vmatmul.mubr.msk.bf16.gmra.mxu0 %vm6333_vm0, %v7912_v29 }
 0x423   : > { %7714 = vmatmul.mubr.msk.bf16.gmra.mxu1 %vm6333_vm0, %v7912_v29  ;;  %6408 = vmatprep.mubr.bf16.mxu0 %v12410_v39  ;;  %v11378_v48 = vpop.permute.xlu0 %6310 }
 0x424   : > { %6481 = vmatprep.mubr.bf16.mxu1 %v12410_v39 }
 0x425   : > { %v11376_v37 = vpop.permute.xlu1 %6295 }
 0x429   : > { %v11380_v31 = vpop.permute.xlu1 %6300 }
 0x42a   : > { %7711 = vmatmul.mubr.msk.bf16.gmra.mxu0 %vm6333_vm0, %v7913_v56 }
 0x42b   : > { %7715 = vmatmul.mubr.msk.bf16.gmra.mxu1 %vm6333_vm0, %v7913_v56  ;;  %7031 = vmatprep.mubr.bf16.mxu0 %v12410_v39  ;;  %v6286_v10 = vpop.permute.xlu0 %6285 }
 0x42c   : > { %7072 = vmatprep.mubr.bf16.mxu1 %v12410_v39 }
 0x42d   : > { %v11382_v54 = vpop.permute.xlu1 %6290 }
 0x42f   : > { %v6276_v28 = vpop.permute.xlu0 %6275 }
 0x431   : > { %v6281_v15 = vpop.permute.xlu1 %6280 }
 0x4d2   : > { %v6380_v60 = vpop.f32.mrf.mxu0 }
 0x4d3   : > { %v6453_v52 = vpop.f32.mrf.mxu1  ;;  %v11384_v33 = vadd.f32 %v6380_v60, %v6276_v28 }
 0x4d4   : > { %v6382_v26 = vpop.f32.mrf.mxu0  ;;  %v11386_v36 = vadd.f32 %v6453_v52, %v6276_v28 }
 0x4d5   : > { %v6455_v58 = vpop.f32.mrf.mxu1  ;;  %12411 = vst [vmem:[#allocation51_spill] sm:$0xff] %v11384_v33  ;;  %v11388_v47 = vadd.f32 %v6382_v26, %v6276_v28  ;;  %v6524_v46 = vand.u32 2147483647, %v11384_v33 }
 0x4d6   : > { %v6384_v51 = vpop.f32.mrf.mxu0  ;;  %12412 = vst [vmem:[#allocation52_spill] sm:$0xff] %v11386_v36  ;;  %v11390_v0 = vadd.f32 %v6455_v58, %v6276_v28  ;;  %v6526_v53 = vand.u32 2147483647, %v11386_v36 }
 0x4d7   : > { %v6457_v41 = vpop.f32.mrf.mxu1  ;;  %12413 = vst [vmem:[#allocation53_spill] sm:$0xff] %v11388_v47  ;;  %v11392_v6 = vadd.f32 %v6384_v51, %v6281_v15  ;;  %v6525_v3 = vand.u32 2147483647, %v11388_v47  ;;  %v11415_v4 = vsub.f32 0.0, %v6524_v46 }
 0x4d8   : > { %v6386_v22 = vpop.f32.mrf.mxu0  ;;  %12414 = vst [vmem:[#allocation54_spill] sm:$0xff] %v11390_v0  ;;  %v11394_v7 = vadd.f32 %v6457_v41, %v6281_v15  ;;  %v6527_v27 = vand.u32 2147483647, %v11390_v0  ;;  %v11423_v43 = vsub.f32 0.0, %v6526_v53 }
 0x4d9   : > { %v6459_v9 = vpop.f32.mrf.mxu1  ;;  %12415 = vst [vmem:[#allocation56_spill] sm:$0xff] %v11392_v6  ;;  %v11397_v19 = vadd.f32 %v6386_v22, %v6281_v15  ;;  %v6528_v44 = vand.u32 2147483647, %v11392_v6  ;;  %v11427_v42 = vsub.f32 0.0, %v6525_v3 }
 0x4da   : > { %v6390_v21 = vpop.f32.mrf.mxu0  ;;  %12416 = vst [vmem:[#allocation55_spill] sm:$0xff] %v11394_v7  ;;  %v11400_v5 = vadd.f32 %v6459_v9, %v6281_v15  ;;  %v6530_v25 = vand.u32 2147483647, %v11394_v7  ;;  %v11429_v61 = vsub.f32 0.0, %v6527_v27 }
 0x4db   : > { %v6463_v11 = vpop.f32.mrf.mxu1  ;;  %12417 = vst [vmem:[#allocation57_spill] sm:$0xff] %v11397_v19  ;;  %v11404_v17 = vadd.f32 %v6390_v21, %v6286_v10  ;;  %v6529_v35 = vand.u32 2147483647, %v11397_v19  ;;  %v11435_v1 = vsub.f32 0.0, %v6528_v44 }
 0x4dc   : > { %v6392_v23 = vpop.f32.mrf.mxu0  ;;  %12418 = vst [vmem:[#allocation58_spill] sm:$0xff] %v11400_v5  ;;  %v11406_v50 = vadd.f32 %v6463_v11, %v6286_v10  ;;  %v6531_v18 = vand.u32 2147483647, %v11400_v5  ;;  %v11442_v52 = vsub.f32 0.0, %v6530_v25 }
 0x4dd   : > { %v6465_v63 = vpop.f32.mrf.mxu1  ;;  %12419 = vst [vmem:[#allocation59_spill] sm:$0xff] %v11404_v17  ;;  %v11420_v62 = vadd.f32 %v6392_v23, %v6286_v10  ;;  %v6532_v8 = vand.u32 2147483647, %v11404_v17  ;;  %v11447_v41 = vsub.f32 0.0, %v6529_v35 }
 0x4de   : > { %v6394_v45 = vpop.f32.mrf.mxu0  ;;  %12420 = vst [vmem:[#allocation60_spill] sm:$0xff] %v11406_v50  ;;  %v11431_v32 = vadd.f32 %v6465_v63, %v6286_v10  ;;  %v6534_v39 = vand.u32 2147483647, %v11406_v50  ;;  %v11456_v11 = vsub.f32 0.0, %v6531_v18 }
 0x4df   : > { %v6467_v12 = vpop.f32.mrf.mxu1  ;;  %12421 = vst [vmem:[#allocation61_spill] sm:$0xff] %v11420_v62  ;;  %v11439_v57 = vadd.f32 %v6394_v45, %v11382_v54  ;;  %v6533_v51 = vand.u32 2147483647, %v11420_v62  ;;  %v11460_v45 = vsub.f32 0.0, %v6532_v8 }
 0x4e0   : > { %v6396_v20 = vpop.f32.mrf.mxu0  ;;  %12422 = vst [vmem:[#allocation62_spill] sm:$0xff] %v11431_v32  ;;  %v11453_v9 = vadd.f32 %v6467_v12, %v11382_v54  ;;  %v11462_v46 = vsub.f32 0.0, %v6534_v39 }
 0x4e1   : > { %v6469_v24 = vpop.f32.mrf.mxu1  ;;  %12423 = vst [vmem:[#allocation10_spill] sm:$0xff] %v11439_v57  ;;  %v11468_v12 = vadd.f32 %v6396_v20, %v11382_v54  ;;  %v11475_v35 = vsub.f32 0.0, %v6533_v51 }
 0x4e2   : > { %v6400_v14 = vpop.f32.mrf.mxu0  ;;  %12424 = vst [vmem:[#allocation14_spill] sm:$0xff] %v11453_v9  ;;  %v11482_v20 = vadd.f32 %v6469_v24, %v11382_v54 }
 0x4e3   : > { %v6473_v55 = vpop.f32.mrf.mxu1  ;;  %v11411_v59 = vadd.f32 %v6400_v14, %v11376_v37  ;;  %12425 = vst [vmem:[#allocation12_spill] sm:$0xff] %v11468_v12  ;;  %v6537_v7 = vand.u32 2147483647, %v11468_v12 }
 0x4e4   : > { %v6402_v34 = vpop.f32.mrf.mxu0  ;;  %v11418_v49 = vadd.f32 %v6473_v55, %v11376_v37  ;;  %12426 = vst [vmem:[#allocation16_spill] sm:$0xff] %v11482_v20 }
 0x4e5   : > { %v6475_v2 = vpop.f32.mrf.mxu1  ;;  %v6540_v56 = vand.u32 2147483647, %v11411_v59  ;;  %v11450_v28 = vadd.f32 %v6402_v34, %v11376_v37 }
 0x4e6   : > { %v6404_v40 = vpop.f32.mrf.mxu0  ;;  %v6542_v10 = vand.u32 2147483647, %v11418_v49  ;;  %v11472_v55 = vadd.f32 %v6475_v2, %v11376_v37 }
 0x4e7   : > { %v6477_v29 = vpop.f32.mrf.mxu1  ;;  %v6572_v27 = vsub.f32 0.0, %v6540_v56  ;;  %v6541_v39 = vand.u32 2147483647, %v11450_v28  ;;  %v11498_v24 = vadd.f32 %v6404_v40, %v11380_v31 }
 0x4e8   : > { %v6406_v26 = vpop.f32.mrf.mxu0  ;;  %v6574_v25 = vsub.f32 0.0, %v6542_v10  ;;  %v6543_v16 = vand.u32 2147483647, %v11472_v55 }
 0x4e9   : > { %v6479_v22 = vpop.f32.mrf.mxu1  ;;  %v6620_v38 = vmul.f32 1.442695, %v6572_v27  ;;  %v6573_v14 = vsub.f32 0.0, %v6541_v39  ;;  %v11506_v27 = vadd.f32 %v6406_v26, %v11380_v31 }
 0x4ea   : > { %v6410_v15 = vpop.f32.mrf.mxu0  ;;  %v6624_v56 = vmul.f32 1.442695, %v6574_v25  ;;  %v11513_v51 = vadd.f32 %v6479_v22, %v11380_v31 }
 0x4eb   : > { %v6483_v53 = vpop.f32.mrf.mxu1  ;;  %v11465_v3 = vadd.f32 %v6410_v15, %v11374_v30  ;;  %7914 = vpow2.f32 %v6620_v38 }
 0x4ec   : > { %v6412_v44 = vpop.f32.mrf.mxu0  ;;  %v11486_v15 = vadd.f32 %v6483_v53, %v11374_v30  ;;  %7916 = vpow2.f32 %v6624_v56  ;;  %v6545_v56 = vand.u32 2147483647, %v11506_v27 }
 0x4ed   : > { %v11478_v18 = vadd.f32 %v6412_v44, %v11374_v30  ;;  %v6485_v8 = vpop.f32.mrf.mxu1  ;;  %v6548_v37 = vand.u32 2147483647, %v11465_v3 }
 0x4ee   : > { %v11490_v2 = vadd.f32 %v6485_v8, %v11374_v30  ;;  %v6414_v10 = vpop.f32.mrf.mxu0  ;;  %v6550_v40 = vand.u32 2147483647, %v11486_v15 }
 0x4ef   : > { %v6549_v44 = vand.u32 2147483647, %v11478_v18  ;;  %v6487_v13 = vpop.f32.mrf.mxu1  ;;  %v11495_v54 = vadd.f32 %v6414_v10, %v11378_v48  ;;  %v11509_v10 = vadd.f32 %v6477_v29, %v11380_v31  ;;  %v6580_v23 = vsub.f32 0.0, %v6548_v37 }
 0x4f0   : > { %v6551_v53 = vand.u32 2147483647, %v11490_v2  ;;  %v11503_v30 = vadd.f32 %v6487_v13, %v11378_v48  ;;  %v6416_v8 = vpop.f32.mrf.mxu0  ;;  %v6575_v37 = vsub.f32 0.0, %v6543_v16  ;;  %v6582_v22 = vsub.f32 0.0, %v6550_v40 }
 0x4f1   : > { %v6581_v58 = vsub.f32 0.0, %v6549_v44  ;;  %v6489_v60 = vpop.f32.mrf.mxu1  ;;  %v6552_v13 = vand.u32 2147483647, %v11495_v54  ;;  %v11517_v39 = vadd.f32 %v6416_v8, %v11378_v48  ;;  %v6547_v16 = vand.u32 2147483647, %v11513_v51 }
 0x4f2   : > { %v6583_v21 = vsub.f32 0.0, %v6551_v53  ;;  %v6554_v26 = vand.u32 2147483647, %v11503_v30  ;;  %v11521_v29 = vadd.f32 %v6489_v60, %v11378_v48  ;;  %v6622_v53 = vmul.f32 1.442695, %v6573_v14 }
 0x4f3   : > { %v6638_v25 = vmul.f32 1.442695, %v6581_v58  ;;  %v6553_v31 = vand.u32 2147483647, %v11517_v39  ;;  %v6636_v58 = vmul.f32 1.442695, %v6580_v23 }
 0x4f4   : > { %v6642_v44 = vmul.f32 1.442695, %v6583_v21  ;;  %v6555_v38 = vand.u32 2147483647, %v11521_v29  ;;  %v6584_v34 = vsub.f32 0.0, %v6552_v13  ;;  %v6586_v63 = vsub.f32 0.0, %v6554_v26 }
 0x4f5   : > { %7918 = vpow2.f32 %v6638_v25  ;;  %v6585_v8 = vsub.f32 0.0, %v6553_v31  ;;  %v6544_v21 = vand.u32 2147483647, %v11498_v24  ;;  %v6546_v48 = vand.u32 2147483647, %v11509_v10 }
 0x4f6   : > { %7920 = vpow2.f32 %v6642_v44  ;;  %v6587_v36 = vsub.f32 0.0, %v6555_v38  ;;  %v6626_v60 = vmul.f32 1.442695, %v6575_v37  ;;  %v6640_v23 = vmul.f32 1.442695, %v6582_v22 }
 0x4f7   : > { %7922 = vpow2.f32 %v6622_v53  ;;  %v6646_v14 = vmul.f32 1.442695, %v6585_v8  ;;  %v6576_v40 = vsub.f32 0.0, %v6544_v21  ;;  %v6577_v44 = vsub.f32 0.0, %v6545_v56 }
 0x4f8   : > { %7924 = vpow2.f32 %v6636_v58  ;;  %v6650_v25 = vmul.f32 1.442695, %v6587_v36  ;;  %v6644_v13 = vmul.f32 1.442695, %v6584_v34  ;;  %v6578_v31 = vsub.f32 0.0, %v6546_v48 }
 0x4f9   : > { %7926 = vpow2.f32 %v6646_v14  ;;  %v6648_v0 = vmul.f32 1.442695, %v6586_v63  ;;  %v6579_v26 = vsub.f32 0.0, %v6547_v16  ;;  %v6539_v38 = vand.u32 2147483647, %v11482_v20  ;;  %v11540_v16 = vpop.eup %7914 }
 0x4fa   : > { %7928 = vpow2.f32 %v6650_v25  ;;  %v6628_v33 = vmul.f32 1.442695, %v6576_v40  ;;  %v12427_v53 = vand.u32 2147483647, %v11431_v32  ;;  %v6630_v36 = vmul.f32 1.442695, %v6577_v44 }
 0x4fb   : > { %7930 = vpow2.f32 %v6626_v60  ;;  %v12428_v22 = vand.u32 2147483647, %v11439_v57  ;;  %v6632_v21 = vmul.f32 1.442695, %v6578_v31  ;;  %v12429_v56 = vand.u32 2147483647, %v11453_v9 }
 0x4fc   : > { %v6567_v58 = vsub.f32 0.0, %v12427_v53  ;;  %7932 = vpow2.f32 %v6640_v23  ;;  %v6634_v60 = vmul.f32 1.442695, %v6579_v26  ;;  %v6569_v14 = vsub.f32 0.0, %v6537_v7  ;;  %v11542_v23 = vpop.eup %7916 }
 0x4fd   : > { %v6568_v8 = vsub.f32 0.0, %v12428_v22  ;;  %7934 = vpow2.f32 %v6644_v13  ;;  %v6570_v48 = vsub.f32 0.0, %v12429_v56  ;;  %v6571_v40 = vsub.f32 0.0, %v6539_v38 }
 0x4fe   : > { %7936 = vpow2.f32 %v6648_v0  ;;  %v6614_v37 = vmul.f32 1.442695, %v6569_v14  ;;  %v6606_v14 = vmul.f32 1.442695, %v11475_v35  ;;  %v6598_v63 = vmul.f32 1.442695, %v11447_v41 }
 0x4ff   : > { %7938 = vpow2.f32 %v6628_v33  ;;  %v6612_v56 = vmul.f32 1.442695, %v6568_v8  ;;  %v6618_v8 = vmul.f32 1.442695, %v6571_v40  ;;  %v11586_v41 = vmul.f32 1.442695, %v11415_v4 }
 0x500   : > { %7940 = vpow2.f32 %v6630_v36  ;;  %v6616_v36 = vmul.f32 1.442695, %v6570_v48  ;;  %v6610_v48 = vmul.f32 1.442695, %v6567_v58  ;;  %v11589_v31 = vmul.f32 1.442695, %v11427_v42 }
 0x501   : > { %7942 = vpow2.f32 %v6632_v21 }
 0x502   : > { %v11547_v13 = vpop.eup %7918  ;;  %7944 = vpow2.f32 %v6634_v60  ;;  %v6604_v60 = vmul.f32 1.442695, %v11460_v45  ;;  %v6600_v45 = vmul.f32 1.442695, %v11442_v52  ;;  %v11592_v52 = vmul.f32 1.442695, %v11423_v43 }
 0x503   : > { %v11552_v7 = vpop.eup %7920  ;;  %v6877_v38 = vadd.f32 1.0, %v11547_v13  ;;  %v6880_v40 = vmul.f32 -0.5, %v11547_v13  ;;  %v6883_v34 = vand.u32 2147483647, %v11547_v13 }
 0x504   : > { %v6895_v33 = vadd.f32 1.0, %v11552_v7  ;;  %v11560_v44 = vpop.eup %7922  ;;  %v6901_v42 = vand.u32 2147483647, %v11552_v7 }
 0x505   : > { %7946 = vlog2.f32 %v6877_v38  ;;  %v11564_v25 = vpop.eup %7924  ;;  %v6608_v38 = vmul.f32 1.442695, %v11462_v46  ;;  %v6881_v4 = vadd.f32 1.0, %v6880_v40  ;;  %vm11621_vm3 = vcmp.lt.f32.partialorder %v6883_v34, 0.0004427343 }
 0x506   : > { %7948 = vlog2.f32 %v6895_v33  ;;  %v11569_v22 = vpop.eup %7926  ;;  %v6596_v33 = vmul.f32 1.442695, %v11435_v1  ;;  %v6871_v1 = vmul.f32 -0.5, %v11564_v25  ;;  %v6868_v21 = vadd.f32 1.0, %v11564_v25 }
 0x507   : > { %7950 = vpow2.f32 %v6612_v56  ;;  %v11573_v53 = vpop.eup %7928  ;;  %v6913_v56 = vadd.f32 1.0, %v11569_v22  ;;  %v6916_v6 = vmul.f32 -0.5, %v11569_v22  ;;  %v6882_v26 = vmul.f32 %v11547_v13, %v6881_v4 }
 0x508   : > { %7952 = vpow2.f32 %v6614_v37  ;;  %v11578_v35 = vpop.eup %7930  ;;  %v6931_v46 = vadd.f32 1.0, %v11573_v53  ;;  %v6602_v37 = vmul.f32 1.442695, %v11456_v11  ;;  %v11598_v11 = vmul.f32 1.442695, %v11429_v61 }
 0x509   : > { %7954 = vpow2.f32 %v6616_v36  ;;  %v11583_v58 = vpop.eup %7932  ;;  %v6872_v0 = vadd.f32 1.0, %v6871_v1  ;;  %v6934_v47 = vmul.f32 -0.5, %v11573_v53  ;;  %vm11625_vm4 = vcmp.lt.f32.partialorder %v6901_v42, 0.0004427343 }
 0x50a   : > { %7956 = vpow2.f32 %v6618_v8  ;;  %v11594_v36 = vpop.eup %7934  ;;  %v6898_v8 = vmul.f32 -0.5, %v11552_v7  ;;  %v6889_v5 = vmul.f32 -0.5, %v11583_v58  ;;  %v6917_v13 = vadd.f32 1.0, %v6916_v6 }
 0x50b   : > { %7958 = vlog2.f32 %v6913_v56  ;;  %v11601_v56 = vpop.eup %7936  ;;  %v6907_v40 = vmul.f32 -0.5, %v11594_v36  ;;  %v6937_v34 = vand.u32 2147483647, %v11573_v53  ;;  %v6910_v32 = vand.u32 2147483647, %v11594_v36 }
 0x50c   : > { %7960 = vlog2.f32 %v6931_v46  ;;  %v11605_v43 = vpop.eup %7938  ;;  %v6886_v46 = vadd.f32 1.0, %v11583_v58  ;;  %v6922_v20 = vadd.f32 1.0, %v11601_v56  ;;  %v6805_v6 = vadd.f32 1.0, %v11560_v44 }
 0x50d   : > { %7962 = vpow2.f32 %v6604_v60  ;;  %v11609_v61 = vpop.eup %7940  ;;  %v6899_v60 = vadd.f32 1.0, %v6898_v8  ;;  %v6919_v8 = vand.u32 2147483647, %v11569_v22  ;;  %v6908_v4 = vadd.f32 1.0, %v6907_v40 }
 0x50e   : > { %7964 = vpow2.f32 %v6606_v14  ;;  %v11614_v19 = vpop.eup %7942  ;;  %v6904_v14 = vadd.f32 1.0, %v11594_v36  ;;  %vm11653_vm6 = vcmp.lt.f32.partialorder %v6937_v34, 0.0004427343  ;;  %v6808_v9 = vmul.f32 -0.5, %v11560_v44 }
 0x50f   : > { %7966 = vpow2.f32 %v6608_v38  ;;  %v11618_v1 = vpop.eup %7944  ;;  %v6900_v17 = vmul.f32 %v11552_v7, %v6899_v60  ;;  %vm11645_vm5 = vcmp.lt.f32.partialorder %v6919_v8, 0.0004427343  ;;  %v6890_v8 = vadd.f32 1.0, %v6889_v5 }
 0x510   : > { %7968 = vpow2.f32 %v6610_v48  ;;  %v11631_v48 = vmul.f32 %v11564_v25, %v6872_v0  ;;  %v12439_v38 = vmax.f32 %v11478_v18, 0.0  ;;  %vm11698_vm8 = vcmp.lt.f32.partialorder %v6910_v32, 0.0004427343 }
 0x511   : > { %7970 = vpow2.f32 %v6596_v33  ;;  %v6935_v33 = vadd.f32 1.0, %v6934_v47  ;;  %v6841_v47 = vadd.f32 1.0, %v11609_v61 }
 0x512   : > { %v7947_v50 = vpop.eup %7946  ;;  %7972 = vpow2.f32 %v6598_v63 }
 0x513   : > { %v7949_v57 = vpop.eup %7948  ;;  %7974 = vpow2.f32 %v6600_v45  ;;  %v6879_v0 = vmul.f32 0.6931472, %v7947_v50  ;;  %v6936_v60 = vmul.f32 %v11573_v53, %v6935_v33  ;;  %v6928_v53 = vand.u32 2147483647, %v11601_v56 }
 0x514   : > { %v11635_v42 = vpop.eup %7950  ;;  %7976 = vpow2.f32 %v6602_v37  ;;  %v6897_v45 = vmul.f32 0.6931472, %v7949_v57  ;;  %v6918_v37 = vmul.f32 %v11569_v22, %v6917_v13  ;;  %v6925_v13 = vmul.f32 -0.5, %v11601_v56 }
 0x515   : > { %v11639_v63 = vpop.eup %7952  ;;  %7978 = vlog2.f32 %v6868_v21  ;;  %v11658_v21 = vmul.f32 %v11594_v36, %v6908_v4  ;;  %v6859_v4 = vadd.f32 1.0, %v11618_v1  ;;  %vm11719_vm10 = vcmp.lt.f32.partialorder %v6928_v53, 0.0004427343 }
 0x516   : > { %v11643_v12 = vpop.eup %7954  ;;  %7980 = vlog2.f32 %v6904_v14  ;;  %v6823_v14 = vadd.f32 1.0, %v11578_v35  ;;  %v6903_v36 = vsel %vm11625_vm4, %v6900_v17, %v6897_v45  ;;  %v12441_v45 = vand.u32 2147483647, %v11564_v25 }
 0x517   : > { %12434 = vst [vmem:[#allocation63_spill] sm:$0xff] %v11643_v12  ;;  %v11650_v7 = vpop.eup %7956  ;;  %7982 = vlog2.f32 %v6886_v46  ;;  %v6885_v12 = vsel %vm11621_vm3, %v6882_v26, %v6879_v0  ;;  %v6844_v26 = vmul.f32 -0.5, %v11609_v61  ;;  %v6891_v25 = vmul.f32 %v11583_v58, %v6890_v8 }
 0x518   : > { %v7959_v57 = vpop.eup %7958  ;;  %7984 = vlog2.f32 %v6922_v20  ;;  %v6965_v17 = vadd.f32 %v6885_v12, %v12439_v38  ;;  %vm11687_vm7 = vcmp.lt.f32.partialorder %v12441_v45, 0.0004427343  ;;  %v12445_v12 = vmax.f32 %v11521_v29, 0.0 }
 0x519   : > { %v7961_v62 = vpop.eup %7960  ;;  %v6915_v22 = vmul.f32 0.6931472, %v7959_v57  ;;  %7986 = vlog2.f32 %v6805_v6  ;;  %v6926_v29 = vadd.f32 1.0, %v6925_v13  ;;  %v6847_v8 = vand.u32 2147483647, %v11609_v61 }
 0x51a   : > { %v11665_v34 = vpop.eup %7962  ;;  %v6933_v46 = vmul.f32 0.6931472, %v7961_v62  ;;  %7988 = vlog2.f32 %v6841_v47  ;;  %v12440_v62 = vmax.f32 %v11517_v39, 0.0  ;;  %v6796_v13 = vadd.f32 1.0, %v11540_v16 }
 0x51b   : > { %v11670_v5 = vpop.eup %7964  ;;  %v6921_v20 = vsel %vm11645_vm5, %v6918_v37, %v6915_v22  ;;  %7990 = vlog2.f32 %v6823_v14  ;;  %v12444_v37 = vmax.f32 %v11490_v2, 0.0  ;;  %v12448_v14 = vand.u32 2147483647, %v11583_v58 }
 0x51c   : > { %v11677_v33 = vpop.eup %7966  ;;  %v6969_v0 = vadd.f32 %v6921_v20, %v12440_v62  ;;  %v6939_v6 = vsel %vm11653_vm6, %v6936_v60, %v6933_v46  ;;  %7992 = vpow2.f32 %v11586_v41  ;;  %v6811_v41 = vand.u32 2147483647, %v11560_v44 }
 0x51d   : > { %v11691_v47 = vpop.eup %7968  ;;  %v6967_v57 = vadd.f32 %v6903_v36, %v12444_v37  ;;  %v6971_v18 = vadd.f32 %v6939_v6, %v12445_v12  ;;  %7994 = vpow2.f32 %v11589_v31  ;;  %vm11708_vm9 = vcmp.lt.f32.partialorder %v12448_v14, 0.0004427343 }
 0x51e   : > { %v11703_v50 = vpop.eup %7970  ;;  %v6986_v60 = vpack.c.bf16 %v6969_v0, %v6965_v17  ;;  %v6809_v36 = vadd.f32 1.0, %v6808_v9  ;;  %7996 = vlog2.f32 %v6859_v4  ;;  %v6845_v58 = vadd.f32 1.0, %v6844_v26 }
 0x51f   : > { %v11713_v32 = vpop.eup %7972  ;;  %v6988_v22 = vpack.c.bf16 %v6971_v18, %v6967_v57  ;;  %7998 = vpow2.f32 %v11592_v52  ;;  %v6826_v9 = vmul.f32 -0.5, %v11578_v35  ;;  %v6829_v4 = vand.u32 2147483647, %v11578_v35 }
 0x520   : > { %v11716_v46 = vpop.eup %7974  ;;  %7007 = vmatprep.subr.bf16.mxu0 %v6986_v60  ;;  %8000 = vpow2.f32 %v11598_v11  ;;  %v6832_v38 = vadd.f32 1.0, %v11605_v43  ;;  %v6927_v53 = vmul.f32 %v11601_v56, %v6926_v29  ;;  %vm11731_vm11 = vcmp.lt.f32.partialorder %v6811_v41, 0.0004427343 }
 0x521   : > { %v11724_v20 = vpop.eup %7976  ;;  %7048 = vmatprep.subr.bf16.mxu1 %v6988_v22  ;;  %8002 = vlog2.f32 %v6796_v13  ;;  %v6814_v26 = vadd.f32 1.0, %v11542_v23  ;;  %v6810_v11 = vmul.f32 %v11560_v44, %v6809_v36  ;;  %vm11737_vm12 = vcmp.lt.f32.partialorder %v6847_v8, 0.0004427343 }
 0x522   : > { %v7979_v52 = vpop.eup %7978  ;;  %8004 = vlog2.f32 %v6832_v38  ;;  %v6846_v56 = vmul.f32 %v11609_v61, %v6845_v58  ;;  %v6862_v57 = vmul.f32 -0.5, %v11618_v1  ;;  %v6865_v12 = vand.u32 2147483647, %v11618_v1 }
 0x523   : > { %v7981_v62 = vpop.eup %7980  ;;  %v6870_v0 = vmul.f32 0.6931472, %v7979_v52  ;;  %v6827_v44 = vadd.f32 1.0, %v6826_v9  ;;  %vm11747_vm13 = vcmp.lt.f32.partialorder %v6829_v4, 0.0004427343  ;;  %v6799_v36 = vmul.f32 -0.5, %v11540_v16 }
 0x524   : > { %v7983_v45 = vpop.eup %7982  ;;  %v6906_v37 = vmul.f32 0.6931472, %v7981_v62  ;;  %8006 = vlog2.f32 %v6814_v26  ;;  %v12459_v58 = vmax.f32 %v11465_v3, 0.0  ;;  %v6835_v52 = vmul.f32 -0.5, %v11605_v43 }
 0x525   : > { %v7985_v18 = vpop.eup %7984  ;;  %v6876_v60 = vsel %vm11687_vm7, %v11631_v48, %v6870_v0  ;;  %v6888_v14 = vmul.f32 0.6931472, %v7983_v45  ;;  %v12460_v48 = vmax.f32 %v11495_v54, 0.0  ;;  %v12461_v0 = vmax.f32 %v11486_v15, 0.0 }
 0x526   : > { %v7987_v41 = vpop.eup %7986  ;;  %v6912_v61 = vsel %vm11698_vm8, %v11658_v21, %v6906_v37  ;;  %v6924_v22 = vmul.f32 0.6931472, %v7985_v18  ;;  %v6964_v40 = vadd.f32 %v6876_v60, %v12459_v58  ;;  %v6863_v21 = vadd.f32 1.0, %v6862_v57 }
 0x527   : > { %v7989_v8 = vpop.eup %7988  ;;  %v6968_v13 = vadd.f32 %v6912_v61, %v12460_v48  ;;  %v6894_v9 = vsel %vm11708_vm9, %v6891_v25, %v6888_v14  ;;  %v6807_v4 = vmul.f32 0.6931472, %v7987_v41  ;;  %v12462_v45 = vmax.f32 %v11503_v30, 0.0 }
 0x528   : > { %v6930_v38 = vsel %vm11719_vm10, %v6927_v53, %v6924_v22  ;;  %v6843_v39 = vmul.f32 0.6931472, %v7989_v8  ;;  %v7991_v62 = vpop.eup %7990  ;;  %v6966_v3 = vadd.f32 %v6894_v9, %v12461_v0  ;;  %v6828_v37 = vmul.f32 %v11578_v35, %v6827_v44 }
 0x529   : > { %v6985_v26 = vpack.c.bf16 %v6968_v13, %v6964_v40  ;;  %v6970_v54 = vadd.f32 %v6930_v38, %v12462_v45  ;;  %v6813_v2 = vsel %vm11731_vm11, %v6810_v11, %v6807_v4  ;;  %v11770_v25 = vpop.eup %7992  ;;  %v6825_v53 = vmul.f32 0.6931472, %v7991_v62 }
 0x52a   : > { %v6849_v31 = vsel %vm11737_vm12, %v6846_v56, %v6843_v39  ;;  %v6800_v57 = vadd.f32 1.0, %v6799_v36  ;;  %v11775_v18 = vpop.eup %7994  ;;  %v12463_v60 = vmax.f32 %v11450_v28, 0.0  ;;  %v12464_v14 = vmax.f32 %v11506_v27, 0.0 }
 0x52b   : > { %7008 = vmatpush1.bf16.msra.mxu0 %v6985_v26  ;;  %v6987_v15 = vpack.c.bf16 %v6970_v54, %v6966_v3  ;;  %v6850_v11 = vadd.f32 1.0, %v11614_v19  ;;  %v7997_v41 = vpop.eup %7996  ;;  %v6864_v6 = vmul.f32 %v11618_v1, %v6863_v21  ;;  %v6802_v56 = vand.u32 2147483647, %v11540_v16 }
 0x52c   : > { %v6957_v30 = vadd.f32 %v6813_v2, %v12463_v60  ;;  %v6961_v17 = vadd.f32 %v6849_v31, %v12464_v14  ;;  %v6838_v35 = vand.u32 2147483647, %v11605_v43  ;;  %v6733_v44 = vadd.f32 1.0, %v11670_v5  ;;  %v11786_v61 = vpop.eup %7998 }
 0x52d   : > { %7049 = vmatpush1.bf16.msra.mxu1 %v6987_v15  ;;  %v6831_v28 = vsel %vm11747_vm13, %v6828_v37, %v6825_v53  ;;  %v6861_v27 = vmul.f32 0.6931472, %v7997_v41  ;;  %v6836_v36 = vadd.f32 1.0, %v6835_v52  ;;  %v11790_v8 = vpop.eup %8000  ;;  %v6515_v58 = vmax.f32 %v11513_v51, 0.0 }
 0x52e   : > { %v6982_v22 = vpack.c.bf16 %v6961_v17, %v6957_v30  ;;  %v6688_v1 = vadd.f32 1.0, %v11703_v50  ;;  %vm6866_vm14 = vcmp.lt.f32.partialorder %v6865_v12, 0.0004427343  ;;  %8008 = vlog2.f32 %v6850_v11  ;;  %v8003_v40 = vpop.eup %8002 }
 0x52f   : > { %v6706_v48 = vadd.f32 1.0, %v11716_v46  ;;  %v6867_v13 = vsel %vm6866_vm14, %v6864_v6, %v6861_v27  ;;  %v6801_v9 = vmul.f32 %v11540_v16, %v6800_v57  ;;  %8010 = vlog2.f32 %v6733_v44  ;;  %v8005_v29 = vpop.eup %8004 }
 0x530   : > { %7009 = vmatprep.subr.bf16.mxu0 %v6982_v22  ;;  %v12465_v4 = vmax.f32 %v11472_v55, 0.0  ;;  %v6963_v39 = vadd.f32 %v6867_v13, %v6515_v58  ;;  %v6798_v21 = vmul.f32 0.6931472, %v8003_v40  ;;  %v6817_v51 = vmul.f32 -0.5, %v11542_v23 }
 0x531   : > { %vm6803_vm15 = vcmp.lt.f32.partialorder %v6802_v56, 0.0004427343  ;;  %v6834_v52 = vmul.f32 0.6931472, %v8005_v29  ;;  %v6837_v12 = vmul.f32 %v11605_v43, %v6836_v36  ;;  %vm6839_vm1 = vcmp.lt.f32.partialorder %v6838_v35, 0.0004427343  ;;  %v8007_v3 = vpop.eup %8006 }
 0x532   : > { %v6959_v38 = vadd.f32 %v6831_v28, %v12465_v4  ;;  %v6804_v26 = vsel %vm6803_vm15, %v6801_v9, %v6798_v21  ;;  %v6853_v0 = vmul.f32 -0.5, %v11614_v19  ;;  %v6769_v16 = vadd.f32 1.0, %v11639_v63  ;;  %v12483_v35 = vld [vmem:[#allocation61_spill] sm:$0xff] }
 0x533   : > { %v6510_v45 = vmax.f32 %v11418_v49, 0.0  ;;  %8012 = vlog2.f32 %v6688_v1  ;;  %v6840_v55 = vsel %vm6839_vm1, %v6837_v12, %v6834_v52  ;;  %v6736_v54 = vmul.f32 -0.5, %v11670_v5 }
 0x534   : > { %v6984_v62 = vpack.c.bf16 %v6963_v39, %v6959_v38  ;;  %v12466_v2 = vmax.f32 %v11411_v59, 0.0  ;;  %v12467_v43 = vmax.f32 %v11498_v24, 0.0  ;;  %v6818_v37 = vadd.f32 1.0, %v6817_v51 }
 0x535   : > { %8014 = vlog2.f32 %v6769_v16  ;;  %v6820_v57 = vand.u32 2147483647, %v11542_v23  ;;  %v6856_v15 = vand.u32 2147483647, %v11614_v19  ;;  %v6751_v49 = vadd.f32 1.0, %v11691_v47 }
 0x536   : > { %7050 = vmatprep.subr.bf16.mxu1 %v6984_v62  ;;  %v6956_v31 = vadd.f32 %v6804_v26, %v12466_v2  ;;  %v6960_v53 = vadd.f32 %v6840_v55, %v12467_v43  ;;  %8016 = vlog2.f32 %v6706_v48  ;;  %v6816_v30 = vmul.f32 0.6931472, %v8007_v3 }
 0x537   : > { %v6854_v14 = vadd.f32 1.0, %v6853_v0  ;;  %v6787_v17 = vadd.f32 1.0, %v11650_v7  ;;  %v6514_v59 = vmax.f32 %v11509_v10, 0.0  ;;  %v11814_v11 = vmul.f32 -0.5, %v11703_v50  ;;  %v12474_v0 = vld [vmem:[#allocation63_spill] sm:$0xff] }
 0x538   : > { %v6981_v60 = vpack.c.bf16 %v6960_v53, %v6956_v31  ;;  %v6737_v24 = vadd.f32 1.0, %v6736_v54  ;;  %8018 = vlog2.f32 %v6751_v49  ;;  %v11817_v41 = vmul.f32 -0.5, %v11716_v46 }
 0x539   : > { %v6819_v6 = vmul.f32 %v11542_v23, %v6818_v37  ;;  %v6772_v56 = vmul.f32 -0.5, %v11639_v63  ;;  %8020 = vlog2.f32 %v6787_v17  ;;  %vm11821_vm2 = vcmp.lt.f32.partialorder %v6820_v57, 0.0004427343 }
 0x53a   : > { %7010 = vmatpush1.bf16.msra.mxu0 %v6981_v60  ;;  %v6739_v10 = vand.u32 2147483647, %v11670_v5  ;;  %v6754_v44 = vmul.f32 -0.5, %v11691_v47  ;;  %v6724_v22 = vadd.f32 1.0, %v11665_v34  ;;  %v6855_v27 = vmul.f32 %v11614_v19, %v6854_v14 }
 0x53b   : > { %v6822_v28 = vsel %vm11821_vm2, %v6819_v6, %v6816_v30  ;;  %vm11831_vm0 = vcmp.lt.f32.partialorder %v6856_v15, 0.0004427343  ;;  %v6760_v36 = vadd.f32 1.0, %v11635_v42  ;;  %v8009_v58 = vpop.eup %8008  ;;  %v6738_v1 = vmul.f32 %v11670_v5, %v6737_v24 }
 0x53c   : > { %v6775_v40 = vand.u32 2147483647, %v11639_v63  ;;  %v6790_v48 = vmul.f32 -0.5, %v11650_v7  ;;  %8022 = vlog2.f32 %v6724_v22  ;;  %v8011_v13 = vpop.eup %8010  ;;  %v6852_v9 = vmul.f32 0.6931472, %v8009_v58  ;;  %v12485_v22 = vld [vmem:[#allocation12_spill] sm:$0xff] }
 0x53d   : > { %v6773_v29 = vadd.f32 1.0, %v6772_v56  ;;  %v6757_v4 = vand.u32 2147483647, %v11691_v47  ;;  %8024 = vlog2.f32 %v6760_v36  ;;  %v6958_v19 = vadd.f32 %v6822_v28, %v6510_v45 }
 0x53e   : > { %vm11840_vm3 = vcmp.lt.f32.partialorder %v6739_v10, 0.0004427343  ;;  %v6755_v39 = vadd.f32 1.0, %v6754_v44  ;;  %v6742_v21 = vadd.f32 1.0, %v11677_v33  ;;  %v6858_v5 = vsel %vm11831_vm0, %v6855_v27, %v6852_v9 }
 0x53f   : > { %v6735_v51 = vmul.f32 0.6931472, %v8011_v13  ;;  %v6793_v52 = vand.u32 2147483647, %v11650_v7  ;;  %v6727_v12 = vmul.f32 -0.5, %v11665_v34  ;;  %v6962_v62 = vadd.f32 %v6858_v5, %v6514_v59  ;;  %v12489_v5 = vld [vmem:[#allocation62_spill] sm:$0xff] }
 0x540   : > { %v6791_v26 = vadd.f32 1.0, %v6790_v48  ;;  %8026 = vlog2.f32 %v6742_v21  ;;  %v6778_v16 = vadd.f32 1.0, %v12474_v0  ;;  %v11850_v3 = vpop.eup %8012  ;;  %v6774_v45 = vmul.f32 %v11639_v63, %v6773_v29 }
 0x541   : > { %vm11853_vm4 = vcmp.lt.f32.partialorder %v6775_v40, 0.0004427343  ;;  %vm11857_vm5 = vcmp.lt.f32.partialorder %v6757_v4, 0.0004427343  ;;  %v6730_v2 = vand.u32 2147483647, %v11665_v34  ;;  %v6983_v43 = vpack.c.bf16 %v6962_v62, %v6958_v19 }
 0x542   : > { %v8015_v31 = vpop.eup %8014  ;;  %v6756_v53 = vmul.f32 %v11691_v47, %v6755_v39  ;;  %8028 = vlog2.f32 %v6778_v16  ;;  %v6661_v37 = vadd.f32 1.0, %v11775_v18  ;;  %v6741_v63 = vsel %vm11840_vm3, %v6738_v1, %v6735_v51 }
 0x543   : > { %v11864_v57 = vpop.eup %8016  ;;  %v6771_v15 = vmul.f32 0.6931472, %v8015_v31  ;;  %v6728_v49 = vadd.f32 1.0, %v6727_v12  ;;  %v6763_v60 = vmul.f32 -0.5, %v11635_v42  ;;  %7051 = vmatpush1.bf16.msra.mxu1 %v6983_v43  ;;  %v6792_v30 = vmul.f32 %v11650_v7, %v6791_v26  ;;  %v12491_v12 = vld [vmem:[#allocation16_spill] sm:$0xff] }
 0x544   : > { %vm11870_vm6 = vcmp.lt.f32.partialorder %v6793_v52, 0.0004427343  ;;  %8030 = vlog2.f32 %v6661_v37  ;;  %v6697_v47 = vadd.f32 1.0, %v11713_v32  ;;  %vm11877_vm7 = vcmp.lt.f32.partialorder %v6730_v2, 0.0004427343 }
 0x545   : > { %v8019_v17 = vpop.eup %8018  ;;  %v6777_v59 = vsel %vm11853_vm4, %v6774_v45, %v6771_v15  ;;  %v6766_v6 = vand.u32 2147483647, %v11635_v42  ;;  %v6745_v56 = vmul.f32 -0.5, %v11677_v33  ;;  %v12484_v10 = vmax.f32 %v12483_v35, 0.0 }
 0x546   : > { %v8021_v7 = vpop.eup %8020  ;;  %v12486_v28 = vmax.f32 %v12485_v22, 0.0  ;;  %v6753_v23 = vmul.f32 0.6931472, %v8019_v17  ;;  %8032 = vlog2.f32 %v6697_v47  ;;  %v6729_v58 = vmul.f32 %v11665_v34, %v6728_v49  ;;  %v12497_v47 = vld [vmem:[#allocation10_spill] sm:$0xff] }
 0x547   : > { %v6949_v44 = vadd.f32 %v6741_v63, %v12484_v10  ;;  %v6789_v36 = vmul.f32 0.6931472, %v8021_v7  ;;  %v6764_v1 = vadd.f32 1.0, %v6763_v60  ;;  %v6781_v40 = vmul.f32 -0.5, %v12474_v0  ;;  %v12495_v60 = vld [vmem:[#allocation59_spill] sm:$0xff] }
 0x548   : > { %v6953_v27 = vadd.f32 %v6777_v59, %v12486_v28  ;;  %v6759_v13 = vsel %vm11857_vm5, %v6756_v53, %v6753_v23  ;;  %v6748_v9 = vand.u32 2147483647, %v11677_v33  ;;  %v6679_v29 = vadd.f32 1.0, %v11790_v8  ;;  %v12507_v53 = vld [vmem:[#allocation57_spill] sm:$0xff] }
 0x549   : > { %v8023_v4 = vpop.eup %8022  ;;  %v6795_v19 = vsel %vm11870_vm6, %v6792_v30, %v6789_v36  ;;  %vm11895_vm8 = vcmp.lt.f32.partialorder %v6766_v6, 0.0004427343  ;;  %v6746_v34 = vadd.f32 1.0, %v6745_v56  ;;  %v6664_v39 = vmul.f32 -0.5, %v11775_v18 }
 0x54a   : > { %v6978_v48 = vpack.c.bf16 %v6953_v27, %v6949_v44  ;;  %v8025_v21 = vpop.eup %8024  ;;  %v12490_v51 = vmax.f32 %v12489_v5, 0.0  ;;  %v12492_v62 = vmax.f32 %v12491_v12, 0.0  ;;  %v6726_v16 = vmul.f32 0.6931472, %v8023_v4  ;;  %v12501_v4 = vld [vmem:[#allocation14_spill] sm:$0xff] }
 0x54b   : > { %8034 = vlog2.f32 %v6679_v29  ;;  %v6762_v45 = vmul.f32 0.6931472, %v8025_v21  ;;  %v6765_v55 = vmul.f32 %v11635_v42, %v6764_v1  ;;  %v6782_v54 = vadd.f32 1.0, %v6781_v40 }
 0x54c   : > { %7011 = vmatprep.subr.bf16.mxu0 %v6978_v48  ;;  %v6951_v52 = vadd.f32 %v6759_v13, %v12490_v51  ;;  %v6955_v26 = vadd.f32 %v6795_v19, %v12492_v62  ;;  %v6715_v2 = vadd.f32 1.0, %v11724_v20  ;;  %v6732_v43 = vsel %vm11877_vm7, %v6729_v58, %v6726_v16  ;;  %v12499_v13 = vld [vmem:[#allocation60_spill] sm:$0xff] }
 0x54d   : > { %vm11908_vm9 = vcmp.lt.f32.partialorder %v6748_v9, 0.0004427343  ;;  %v6700_v37 = vmul.f32 -0.5, %v11713_v32  ;;  %v8027_v63 = vpop.eup %8026  ;;  %v6768_v15 = vsel %vm11895_vm8, %v6765_v55, %v6762_v45  ;;  %v6747_v49 = vmul.f32 %v11677_v33, %v6746_v34 }
 0x54e   : > { %v6980_v31 = vpack.c.bf16 %v6955_v26, %v6951_v52  ;;  %v6784_v42 = vand.u32 2147483647, %v12474_v0  ;;  %8036 = vlog2.f32 %v6715_v2  ;;  %v12496_v30 = vmax.f32 %v12495_v60, 0.0  ;;  %v12505_v2 = vld [vmem:[#allocation53_spill] sm:$0xff] }
 0x54f   : > { %v12498_v17 = vmax.f32 %v12497_v47, 0.0  ;;  %v6744_v24 = vmul.f32 0.6931472, %v8027_v63  ;;  %v6665_v6 = vadd.f32 1.0, %v6664_v39  ;;  %v8029_v56 = vpop.eup %8028  ;;  %v6783_v7 = vmul.f32 %v12474_v0, %v6782_v54 }
 0x550   : > { %7052 = vmatprep.subr.bf16.mxu1 %v6980_v31  ;;  %v6948_v14 = vadd.f32 %v6732_v43, %v12496_v30  ;;  %v6667_v35 = vand.u32 2147483647, %v11775_v18  ;;  %v6652_v10 = vadd.f32 1.0, %v11770_v25  ;;  %v6670_v33 = vadd.f32 1.0, %v11786_v61 }
 0x551   : > { %v6952_v59 = vadd.f32 %v6768_v15, %v12498_v17  ;;  %v6750_v22 = vsel %vm11908_vm9, %v6747_v49, %v6744_v24  ;;  %v6780_v28 = vmul.f32 0.6931472, %v8029_v56  ;;  %v6701_v27 = vadd.f32 1.0, %v6700_v37  ;;  %v8031_v23 = vpop.eup %8030  ;;  %v12509_v15 = vld [vmem:[#allocation58_spill] sm:$0xff] }
 0x552   : > { %vm6785_vm10 = vcmp.lt.f32.partialorder %v6784_v42, 0.0004427343  ;;  %v6703_v36 = vand.u32 2147483647, %v11713_v32  ;;  %v6682_v58 = vmul.f32 -0.5, %v11790_v8  ;;  %8038 = vlog2.f32 %v6652_v10 }
 0x553   : > { %v6977_v44 = vpack.c.bf16 %v6952_v59, %v6948_v14  ;;  %v6786_v0 = vsel %vm6785_vm10, %v6783_v7, %v6780_v28  ;;  %v6663_v1 = vmul.f32 0.6931472, %v8031_v23  ;;  %v6666_v40 = vmul.f32 %v11775_v18, %v6665_v6  ;;  %v8033_v48 = vpop.eup %8032 }
 0x554   : > { %8040 = vlog2.f32 %v6670_v33  ;;  %v12500_v9 = vmax.f32 %v12499_v13, 0.0  ;;  %v12502_v19 = vmax.f32 %v12501_v4, 0.0  ;;  %vm11934_vm11 = vcmp.lt.f32.partialorder %v6667_v35, 0.0004427343 }
 0x555   : > { %7012 = vmatpush1.bf16.msra.mxu0 %v6977_v44  ;;  %v6718_v39 = vmul.f32 -0.5, %v11724_v20  ;;  %v6694_v21 = vand.u32 2147483647, %v11703_v50  ;;  %v6669_v5 = vsel %vm11934_vm11, %v6666_v40, %v6663_v1  ;;  %v6699_v18 = vmul.f32 0.6931472, %v8033_v48 }
 0x556   : > { %v6950_v29 = vadd.f32 %v6750_v22, %v12500_v9  ;;  %v6954_v38 = vadd.f32 %v6786_v0, %v12502_v19  ;;  %v6702_v51 = vmul.f32 %v11713_v32, %v6701_v27  ;;  %v6692_v52 = vadd.f32 1.0, %v11814_v11  ;;  %v12518_v0 = vld [vmem:[#allocation54_spill] sm:$0xff]  ;;  %v12520_v9 = vld [vmem:[#allocation55_spill] sm:$0xff] }
 0x557   : > { %vm6704_vm12 = vcmp.lt.f32.partialorder %v6703_v36, 0.0004427343  ;;  %v6683_v62 = vadd.f32 1.0, %v6682_v58  ;;  %v6690_v26 = vmul.f32 0.6931472, %v11850_v3  ;;  %v6710_v16 = vadd.f32 1.0, %v11817_v41 }
 0x558   : > { %v6979_v12 = vpack.c.bf16 %v6954_v38, %v6950_v29  ;;  %v6705_v45 = vsel %vm6704_vm12, %v6702_v51, %v6699_v18  ;;  %v6685_v55 = vand.u32 2147483647, %v11790_v8  ;;  %v8035_v54 = vpop.eup %8034  ;;  %v12506_v31 = vmax.f32 %v12505_v2, 0.0  ;;  %v12517_v36 = vld [vmem:[#allocation51_spill] sm:$0xff]  ;;  %v12521_v18 = vld [vmem:[#allocation52_spill] sm:$0xff] }
 0x559   : > { %v12508_v37 = vmax.f32 %v12507_v53, 0.0  ;;  %v6719_v63 = vadd.f32 1.0, %v6718_v39  ;;  %v6655_v11 = vmul.f32 -0.5, %v11770_v25  ;;  %v6499_v49 = vmax.f32 %v12509_v15, 0.0 }
 0x55a   : > { %7053 = vmatpush1.bf16.msra.mxu1 %v6979_v12  ;;  %v6941_v43 = vadd.f32 %v6669_v5, %v12506_v31  ;;  %v6681_v42 = vmul.f32 0.6931472, %v8035_v54  ;;  %v6721_v3 = vand.u32 2147483647, %v11724_v20  ;;  %v6673_v41 = vmul.f32 -0.5, %v11786_v61 }
 0x55b   : > { %v6945_v32 = vadd.f32 %v6705_v45, %v12508_v37  ;;  %vm11955_vm13 = vcmp.lt.f32.partialorder %v6694_v21, 0.0004427343  ;;  %v6712_v30 = vand.u32 2147483647, %v11716_v46  ;;  %v6684_v47 = vmul.f32 %v11790_v8, %v6683_v62  ;;  %v8037_v17 = vpop.eup %8036 }
 0x55c   : > { %v6693_v59 = vmul.f32 %v11703_v50, %v6692_v52  ;;  %v6708_v24 = vmul.f32 0.6931472, %v11864_v57  ;;  %v6711_v6 = vmul.f32 %v11716_v46, %v6710_v16  ;;  %vm11964_vm14 = vcmp.lt.f32.partialorder %v6685_v55, 0.0004427343  ;;  %v12514_v46 = vld [vmem:[#allocation56_spill] sm:$0xff] }
 0x55d   : > { %v6974_v14 = vpack.c.bf16 %v6945_v32, %v6941_v43  ;;  %v6687_v7 = vsel %vm11964_vm14, %v6684_v47, %v6681_v42  ;;  %v6717_v35 = vmul.f32 0.6931472, %v8037_v17  ;;  %v6720_v10 = vmul.f32 %v11724_v20, %v6719_v63  ;;  %v12522_v17 = vld [vmem:[#allocation23_spill] sm:$0xff] }
 0x55e   : > { %v6656_v33 = vadd.f32 1.0, %v6655_v11  ;;  %v6696_v8 = vsel %vm11955_vm13, %v6693_v59, %v6690_v26  ;;  %vm6722_vm15 = vcmp.lt.f32.partialorder %v6721_v3, 0.0004427343  ;;  %v6658_v50 = vand.u32 2147483647, %v11770_v25 }
 0x55f   : > { %7013 = vmatprep.subr.bf16.mxu0 %v6974_v14  ;;  %v6674_v57 = vadd.f32 1.0, %v6673_v41  ;;  %v6496_v44 = vmax.f32 %v12514_v46, 0.0  ;;  %vm11975_vm1 = vcmp.lt.f32.partialorder %v6712_v30, 0.0004427343  ;;  %v6723_v28 = vsel %vm6722_vm15, %v6720_v10, %v6717_v35  ;;  %v8039_v23 = vpop.eup %8038 }
 0x560   : > { %v6676_v27 = vand.u32 2147483647, %v11786_v61  ;;  %v6714_v20 = vsel %vm11975_vm1, %v6711_v6, %v6708_v24  ;;  %v6492_v58 = vmax.f32 %v12517_v36, 0.0  ;;  %v12519_v1 = vmax.f32 %v12518_v0, 0.0 }
 0x561   : > { %v6947_v48 = vadd.f32 %v6723_v28, %v6499_v49  ;;  %v8041_v13 = vpop.eup %8040  ;;  %v6498_v29 = vmax.f32 %v12520_v9, 0.0  ;;  %v6944_v4 = vadd.f32 %v6696_v8, %v6496_v44  ;;  %v6654_v19 = vmul.f32 0.6931472, %v8039_v23 }
 0x562   : > { %v6943_v40 = vadd.f32 %v6687_v7, %v12519_v1  ;;  %v6657_v38 = vmul.f32 %v11770_v25, %v6656_v33  ;;  %vm6659_vm2 = vcmp.lt.f32.partialorder %v6658_v50, 0.0004427343  ;;  %v6672_v39 = vmul.f32 0.6931472, %v8041_v13  ;;  %v6972_v25 = vld [vmem:[%s12062_s4] sm:$0x3] }
 0x563   : > { %v6675_v21 = vmul.f32 %v11786_v61, %v6674_v57  ;;  %v6946_v5 = vadd.f32 %v6714_v20, %v6498_v29  ;;  %v6494_v51 = vmax.f32 %v12521_v18, 0.0  ;;  %vm6677_vm0 = vcmp.lt.f32.partialorder %v6676_v27, 0.0004427343  ;;  %v6993_v61 = vpop.permute.xlu0 %6992 }
 0x564   : > { %v6976_v34 = vpack.c.bf16 %v6947_v48, %v6943_v40  ;;  %v6660_v52 = vsel %vm6659_vm2, %v6657_v38, %v6654_v19  ;;  %vm6995_vm3 = vcmask 523264   ;;  %v12523_v10 = vlaneseq }
 0x565   : > { %v6940_v12 = vadd.f32 %v6660_v52, %v6492_v58  ;;  %v6678_v62 = vsel %vm6677_vm0, %v6675_v21, %v6672_v39 }
 0x566   : > { %7054 = vmatprep.subr.bf16.mxu1 %v6976_v34  ;;  %v6942_v26 = vadd.f32 %v6678_v62, %v6494_v51  ;;  %vm7112_vm4 = vcmp.lt.s32.totalorder %v12523_v10, 512 }
 0x567   : > { %v6973_v16 = vpack.c.bf16 %v6944_v4, %v6940_v12 }
 0x568   : > { %v6975_v45 = vpack.c.bf16 %v6946_v5, %v6942_v26 }
 0x569   : > { %7014 = vmatpush1.bf16.msra.mxu0 %v6973_v16 }
 0x56a   : > { %7055 = vmatpush1.bf16.msra.mxu1 %v6975_v45 }
 0x56c   : > { %7716 = vmatmul.mubr.msk.bf16.vlgmr.msra.gmra.mxu0 %vm6995_vm3, %v6972_v25 }
 0x56d   : > { %7717 = vmatmul.mubr.msk.bf16.vlgmr.msra.gmra.mxu1 %vm6995_vm3, %v6972_v25 }
 0x62c   : > { %v7033_v55 = vpop.f32.mrf.mxu0 }
 0x62d   : > { %v7034_v54 = vadd.f32 %v7033_v55, %v6993_v61  ;;  %v7074_v2 = vpop.f32.mrf.mxu1 }
 0x62e   : > { %v7075_v31 = vadd.f32 %v7074_v2, %v6993_v61  ;;  %v7035_v43 = vpop.f32.mrf.mxu0 }
 0x62f   : > { %v7115_v53 = vsub.f32 0.0, %v7034_v54  ;;  %v7036_v37 = vadd.f32 %v7035_v43, %v6993_v61  ;;  %v7076_v32 = vpop.f32.mrf.mxu1 }
 0x630   : > { %v7117_v63 = vsub.f32 0.0, %v7075_v31  ;;  %v7077_v11 = vadd.f32 %v7076_v32, %v6993_v61  ;;  %v7037_v15 = vpop.f32.mrf.mxu0 }
 0x631   : > { %v7119_v49 = vmul.f32 1.442695, %v7115_v53  ;;  %v7085_v42 = vcombine.low %v7034_v54, %v7036_v37  ;;  %v7116_v3 = vsub.f32 0.0, %v7036_v37  ;;  %v7078_v41 = vpop.f32.mrf.mxu1 }
 0x632   : > { %v7123_v60 = vmul.f32 1.442695, %v7117_v63  ;;  %v7086_v30 = vcombine.low %v7075_v31, %v7077_v11  ;;  %v7118_v14 = vsub.f32 0.0, %v7077_v11  ;;  %v7038_v47 = vpop.f32.mrf.mxu0 }
 0x633   : > { %8042 = vpow2.f32 %v7119_v49  ;;  %v7093_v59 = vrot.slane %v7085_v42, %v12522_v17  ;;  %v7121_v24 = vmul.f32 1.442695, %v7116_v3  ;;  %v7079_v6 = vpop.f32.mrf.mxu1 }
 0x634   : > { %8044 = vpow2.f32 %v7123_v60  ;;  %v7100_v56 = vrot.slane %v7086_v30, %v12522_v17  ;;  %v7125_v7 = vmul.f32 1.442695, %v7118_v14 }
 0x635   : > { %8046 = vpow2.f32 %v7121_v24 }
 0x636   : > { %v7101_v35 = vcombine.low %v7093_v59, %v7100_v56  ;;  %8048 = vpow2.f32 %v7125_v7 }
 0x638   : > { %v7108_v33 = vrot.slane %v7101_v35, %v12522_v17 }
 0x63a   : > { %7114 = vst.msk [vmem:[%s11999_s24] ss:$4 sm:$0xf] %vm7112_vm4, %v7108_v33 }
 0x640   : > { %v8043_v8 = vpop.eup %8042 }
 0x641   : > { %v8045_v50 = vpop.eup %8044  ;;  %v7127_v57 = vadd.f32 1.0, %v8043_v8 }
 0x642   : > { %v8047_v46 = vpop.eup %8046  ;;  %v7129_v44 = vadd.f32 1.0, %v8045_v50 }
 0x643   : > { %v8049_v22 = vpop.eup %8048  ;;  %8050 = vrcp.f32 %v7127_v57  ;;  %v7128_v28 = vadd.f32 1.0, %v8047_v46 }
 0x644   : > { %8052 = vrcp.f32 %v7129_v44  ;;  %v7130_v27 = vadd.f32 1.0, %v8049_v22 }
 0x645   : > { %8054 = vrcp.f32 %v7128_v28 }
 0x646   : > { %8056 = vrcp.f32 %v7130_v27 }
 0x650   : > { %v8051_v23 = vpop.eup %8050 }
 0x651   : > { %v8053_v20 = vpop.eup %8052  ;;  %v7139_v36 = vmul.f32 1.002, %v8051_v23 }
 0x652   : > { %v8055_v58 = vpop.eup %8054  ;;  %v7141_v0 = vmul.f32 1.002, %v8053_v20 }
 0x653   : > { %v8057_v1 = vpop.eup %8056  ;;  %v7718_v40 = vadd.f32 -0.001, %v7139_v36  ;;  %v7140_v48 = vmul.f32 1.002, %v8055_v58 }
 0x654   : > { %v7720_v13 = vadd.f32 -0.001, %v7141_v0  ;;  %v7142_v9 = vmul.f32 1.002, %v8057_v1 }
 0x655   : > { %v7147_v29 = vmul.f32 2.0, %v7718_v40  ;;  %v7719_v4 = vadd.f32 -0.001, %v7140_v48 }
 0x656   : > { %v7149_v19 = vmul.f32 2.0, %v7720_v13  ;;  %v7721_v38 = vadd.f32 -0.001, %v7142_v9 }
 0x657   : > { %v7148_v34 = vmul.f32 2.0, %v7719_v4  ;;  %v7722_v21 = vadd.f32 -1.0, %v7147_v29 }
 0x658   : > { %v7150_v39 = vmul.f32 2.0, %v7721_v38  ;;  %v7724_v18 = vadd.f32 -1.0, %v7149_v19 }
 0x659   : > { %v7723_v5 = vadd.f32 -1.0, %v7148_v34 }
 0x65a   : > { %v7725_v51 = vadd.f32 -1.0, %v7150_v39 }
 0x65b   : > { %v7159_v52 = vcombine.low %v7722_v21, %v7723_v5 }
 0x65c   : > { %v7160_v12 = vcombine.low %v7724_v18, %v7725_v51 }
 0x65d   : > { %7163 = vst [vmem:[%s11999_s24] sm:$0xee] %v7159_v52 }
 0x65e   : > { %7164 = vst [vmem:[%s11999_s24 + $0x8] sm:$0xee] %v7160_v12 }
 0x65f   : > { %8071 = shalt.err (!%p8068_p7)
}
 0x660   : > { %s8072_s24 = scalar_lea.hbm %s12008_s8, 256  ;;  %s8076_s9 = scalar_lea.hbm %s12064_s6, 1024 }
 0x661   : > { %p8073_p9 = scmp.ne.s32.totalorder %s12008_s8, %s8072_s24  ;;  %p8077_p12 = scmp.lt.s32.totalorder %s12008_s8, %s12064_s6 }
 0x662   : > { %p8078_p13 = scmp.lt.s32.totalorder %s8076_s9, %s8072_s24 }
 0x663   : > { %p8074_p10 = pnand %p8073_p9, %p8241_p3 }
 0x664   : > { %p8079_p0 = por %p8078_p13, %p8077_p12 }
 0x665   : > { %p8075_p11 = pneg %p8074_p10 }
 0x667   : > { %p8080_p1 = pnand %p8079_p0, %p8075_p11 }
 0x669   : > { %8083 = shalt.err (!%p8080_p1)
}
 0x66a   : > { %7739 = dma.vmem_to_hbm [thread:$0]  (%p8241_p3), %s7183_s13, 256, %s12008_s8, %s7166_s16  }
 0x66b PF: > { %p7745_p2 = scmp.ge.s32.totalorder %s8150_s28, 2  ;;  %s7194_s14 = sand.u32 1, %s8122_s21  }
 0x66c   : > { %s7195_s17 = scalar_lea.sflag [#allocation3], %s7194_s14 }
 0x66d   : > { %p7742_p4 = pnand %p7745_p2, %p8250_p8 }
 0x66f   : > { %p7743_p5 = pneg %p7742_p4 }
 0x671   : > { %8117 = dma.done.wait (%p7743_p5), %s7195_s17, 256  }
 0x672   : > { %8119 = vsyncadd (%p7743_p5), %s7195_s17, 4294967040  ;;  %s19_s28 = sadd.s32 1, %s8150_s28   ;;  %s12524_s10 = sld [smem:[#allocation5_spill]] }
 0x673   : > { %p16_p6 = scmp.ge.s32.totalorder %s19_s28, 6   ;;  %s12525_s21 = smov %s8126_s22 }
 0x674   : > { %s12526_s22 = smov %s8130_s23  ;;  %s12527_s23 = smov %s8259_s15 }
 0x675   : > { %s12528_s24 = smov %s8142_s26  ;;  %s12529_s25 = smov %s8146_s27 }
 0x676   : > { %s12530_s26 = smov %s12533_s7  ;;  %18 = sbr.rel (!%p16_p6) target bundleno = 5 (0x5), region = 86 }
 0x678   : > { %s12531_s27 = smov %s12524_s10 }
 0x67b   :  { %7200 = vsyncpa [#allocation3], 1 }
 0x67c   :  { %7202 = vsyncpa [#allocation3 + $0x1], 1 }

</bundles_post_ra>
